<compile_context>
chip_gen: v6e
topology: v6e:2x2x1
jax: 0.10.0
libtpu: 0.0.40
codegen_flags: <defaults>
</compile_context>

<pallas_src>
import jax
import jax.numpy as jnp
from jax import lax
from jax.experimental import pallas as pl
from jax.experimental.pallas import tpu as pltpu

_BN_EPS = 1e-5

# Static ConvTranspose geometry of the stride-2 layers.
_L2 = dict(K=3, p=1, H=4, OH=7, Cin=512, Cout=256)
_L3 = dict(K=4, p=1, H=7, OH=14, Cin=256, Cout=128)
_L4 = dict(K=4, p=1, H=14, OH=28, Cin=128, Cout=1)

_PARALLEL = pltpu.CompilerParams(dimension_semantics=("parallel",))


def _round_up(x, m):
    return (x + m - 1) // m * m


def _choose_tile_m(m, c):
    """Row tile: multiple of 8, <= 512 rows, f32 output block <= ~2 MiB."""
    cap = max(8, min(512, (2 * 1024 * 1024) // (4 * c) // 8 * 8))
    return min(cap, _round_up(m, 8))


def _phase_plan(K, p, H, OH):
    """Sub-pixel decomposition of a stride-2 ConvTranspose along one spatial dim.

    Output position oy = 2*q + r (r in {0,1}) receives contributions from taps ky
    with (r + p - ky) even, reading input row iy = q + dy, dy = (r + p - ky)//2.
    Returns ([(Q_r, [(ky, dy), ...]) for r in (0,1)], P) where P is the per-side
    zero padding that makes every q + dy + P a valid padded-input index.
    """
    plans, P = [], 0
    for r in (0, 1):
        Q = (OH - r + 1) // 2
        taps = []
        for ky in range(K):
            if (r + p - ky) % 2:
                continue
            dy = (r + p - ky) // 2
            taps.append((ky, dy))
            P = max(P, -dy, Q - 1 + dy - (H - 1))
        plans.append((Q, taps))
    return plans, P


# ---------------------------------------------------------------------------
# Pallas kernels
# ---------------------------------------------------------------------------
def _matmul_stats_kernel(a_ref, w_ref, out_ref, stats_ref):
    """out = a @ w (bf16 in, f32 out). stats rows 0/1 = column sum / sum-of-squares
    of this tile (partial BatchNorm statistics)."""
    acc = jnp.dot(a_ref[...], w_ref[...], preferred_element_type=jnp.float32)
    out_ref[...] = acc
    s1 = jnp.sum(acc, axis=0, keepdims=True)
    s2 = jnp.sum(acc * acc, axis=0, keepdims=True)
    pad = jnp.zeros((6, acc.shape[1]), jnp.float32)
    stats_ref[...] = jnp.concatenate([s1, s2, pad], axis=0)


def _affine_relu_kernel(x_ref, scale_ref, shift_ref, out_ref):
    """BatchNorm pass 2 (per-channel affine) + ReLU, all f32."""
    out_ref[...] = jnp.maximum(x_ref[...] * scale_ref[...] + shift_ref[...], 0.0)


def _matmul_tanh_t_kernel(wt_ref, pt_ref, out_ref):
    """Transposed (lane-dense) final layer: tanh(wT @ patchesT)."""
    acc = jnp.dot(wt_ref[...], pt_ref[...], preferred_element_type=jnp.float32)
    out_ref[...] = jnp.tanh(acc)


# ---------------------------------------------------------------------------
# pallas_call wrappers
# ---------------------------------------------------------------------------
def _matmul_stats(a, w):
    """a: (M, Kc); w: (Kc, C) bf16 -> (a@w as f32 (M, C), col-sum (C,), col-sumsq (C,))."""
    M, Kc = a.shape
    C = w.shape[1]
    tm = _choose_tile_m(M, C)
    Mp = _round_up(M, tm)
    a = jnp.pad(a.astype(jnp.bfloat16), ((0, Mp - M), (0, 0)))
    nt = Mp // tm
    out, stats = pl.pallas_call(
        _matmul_stats_kernel,
        grid=(nt,),
        in_specs=[pl.BlockSpec((tm, Kc), lambda i: (i, 0)),
                  pl.BlockSpec((Kc, C), lambda i: (0, 0))],
        out_specs=(pl.BlockSpec((tm, C), lambda i: (i, 0)),
                   pl.BlockSpec((8, C), lambda i: (i, 0))),
        out_shape=(jax.ShapeDtypeStruct((Mp, C), jnp.float32),
                   jax.ShapeDtypeStruct((nt * 8, C), jnp.float32)),
        compiler_params=_PARALLEL,
    )(a, w)
    st = stats.reshape(nt, 8, C)
    return out[:M], st[:, 0, :].sum(axis=0), st[:, 1, :].sum(axis=0)


def _affine_relu(x, scale, shift):
    M, C = x.shape
    tm = _choose_tile_m(M, C)
    Mp = _round_up(M, tm)
    xp = jnp.pad(x, ((0, Mp - M), (0, 0)))
    nt = Mp // tm
    y = pl.pallas_call(
        _affine_relu_kernel,
        grid=(nt,),
        in_specs=[pl.BlockSpec((tm, C), lambda i: (i, 0)),
                  pl.BlockSpec((1, C), lambda i: (0, 0)),
                  pl.BlockSpec((1, C), lambda i: (0, 0))],
        out_specs=pl.BlockSpec((tm, C), lambda i: (i, 0)),
        out_shape=jax.ShapeDtypeStruct((Mp, C), jnp.float32),
        compiler_params=_PARALLEL,
    )(xp, scale.reshape(1, C), shift.reshape(1, C))
    return y[:M]


def _matmul_tanh_t(wt8, pt):
    """wt8: (8, Kc) bf16 (row 0 = real weights); pt: (Kc, M) bf16 -> tanh(w@pt)[0]."""
    Kc, M = pt.shape
    tc = min(2048, _round_up(M, 128))
    Mp = _round_up(M, tc)
    pt = jnp.pad(pt, ((0, 0), (0, Mp - M)))
    nt = Mp // tc
    out = pl.pallas_call(
        _matmul_tanh_t_kernel,
        grid=(nt,),
        in_specs=[pl.BlockSpec((8, Kc), lambda j: (0, 0)),
                  pl.BlockSpec((Kc, tc), lambda j: (0, j))],
        out_specs=pl.BlockSpec((8, tc), lambda j: (0, j)),
        out_shape=jax.ShapeDtypeStruct((8, Mp), jnp.float32),
        compiler_params=_PARALLEL,
    )(wt8, pt)
    return out[0, :M]


def _bn_scale_shift(s1, s2, count, gamma, beta):
    """Training-mode BatchNorm (biased variance) -> per-channel scale/shift (f32)."""
    mean = s1 / count
    var = jnp.maximum(s2 / count - mean * mean, 0.0)
    scale = gamma * lax.rsqrt(var + _BN_EPS)
    return scale, beta - mean * scale


# ---------------------------------------------------------------------------
# Layers
# ---------------------------------------------------------------------------
def _layer1(x_lat, wmat1, gamma, beta):
    """(N, nzp) latent -> (N, 4, 4, 512): one matmul + two-pass BN + ReLU."""
    N = x_lat.shape[0]
    C = wmat1.shape[1] // 16
    pre, s1, s2 = _matmul_stats(x_lat, wmat1)          # (N, 16*C), per-(s,co) sums
    s1 = s1.reshape(16, C).sum(axis=0)                 # fold the 16 spatial slots
    s2 = s2.reshape(16, C).sum(axis=0)
    scale, shift = _bn_scale_shift(s1, s2, N * 16, gamma, beta)
    act = _affine_relu(pre.reshape(N * 16, C), scale, shift)
    return act.reshape(N, 4, 4, C)


def _deconv_bn_relu(x, wphase, cfg, gamma, beta):
    """Stride-2 ConvTranspose (phase decomposed) + training-mode BN + ReLU. NHWC."""
    N, H, _, Cin = x.shape
    K, p, OH, Cout = cfg["K"], cfg["p"], cfg["OH"], cfg["Cout"]
    plans, P = _phase_plan(K, p, H, OH)
    # TODO(synk): phase/patch slab construction and the phase re-interleave below
    # are thin XLA glue; for very large batches they could move in-kernel via DMA.
    xpad = jnp.pad(x, ((0, 0), (P, P), (P, P), (0, 0))).astype(jnp.bfloat16)

    s1 = jnp.zeros((Cout,), jnp.float32)
    s2 = jnp.zeros((Cout,), jnp.float32)
    phase_pre = []
    for ry in (0, 1):
        for rx in (0, 1):
            Qh, ty = plans[ry]
            Qw, tx = plans[rx]
            slabs = [xpad[:, dy + P:dy + P + Qh, dx + P:dx + P + Qw, :]
                     .reshape(N * Qh * Qw, Cin)
                     for (_ky, dy) in ty for (_kx, dx) in tx]
            patches = jnp.concatenate(slabs, axis=1)       # (M_ph, T*Cin) bf16
            pre, ps1, ps2 = _matmul_stats(patches, wphase[(ry, rx)])
            s1, s2 = s1 + ps1, s2 + ps2
            phase_pre.append((ry, rx, Qh, Qw, pre))

    scale, shift = _bn_scale_shift(s1, s2, N * OH * OH, gamma, beta)

    # Re-interleave phases into the full pre-activation image, then normalize.
    full = jnp.zeros((N, OH, OH, Cout), jnp.float32)
    for ry, rx, Qh, Qw, pre in phase_pre:
        full = full.at[:, ry::2, rx::2, :].set(pre.reshape(N, Qh, Qw, Cout))
    act = _affine_relu(full.reshape(N * OH * OH, Cout), scale, shift)
    return act.reshape(N, OH, OH, Cout)


def _deconv_tanh(x, wphase_t, cfg):
    """Final stride-2 ConvTranspose (Cout=1) + tanh; lane-dense transposed matmuls."""
    N, H, _, Cin = x.shape
    K, p, OH = cfg["K"], cfg["p"], cfg["OH"]
    plans, P = _phase_plan(K, p, H, OH)
    xpad = jnp.pad(x, ((0, 0), (P, P), (P, P), (0, 0))).astype(jnp.bfloat16)

    y = jnp.zeros((N, OH, OH), jnp.float32)
    for ry in (0, 1):
        for rx in (0, 1):
            Qh, ty = plans[ry]
            Qw, tx = plans[rx]
            slabs = [xpad[:, dy + P:dy + P + Qh, dx + P:dx + P + Qw, :]
                     .reshape(N * Qh * Qw, Cin).T
                     for (_ky, dy) in ty for (_kx, dx) in tx]
            pt = jnp.concatenate(slabs, axis=0)            # (T*Cin, M_ph)
            ph = _matmul_tanh_t(wphase_t[(ry, rx)], pt)    # (M_ph,)
            y = y.at[:, ry::2, rx::2].set(ph.reshape(N, Qh, Qw))
    return y[:, None, :, :]                                # NCHW (N, 1, 28, 28)


# ---------------------------------------------------------------------------
# Parameters
# ---------------------------------------------------------------------------
def init_generator_params(key, nz=100):
    ks = jax.random.split(key, 4)
    return {
        # PyTorch ConvTranspose2d weight layout: (Cin, Cout, kH, kW)
        "w1": 0.02 * jax.random.normal(ks[0], (nz, 512, 4, 4), jnp.float32),
        "w2": 0.02 * jax.random.normal(ks[1], (512, 256, 3, 3), jnp.float32),
        "w3": 0.02 * jax.random.normal(ks[2], (256, 128, 4, 4), jnp.float32),
        "w4": 0.02 * jax.random.normal(ks[3], (128, 1, 4, 4), jnp.float32),
        # BatchNorm2d affine params (PyTorch default init)
        "g1": jnp.ones((512,), jnp.float32), "b1": jnp.zeros((512,), jnp.float32),
        "g2": jnp.ones((256,), jnp.float32), "b2": jnp.zeros((256,), jnp.float32),
        "g3": jnp.ones((128,), jnp.float32), "b3": jnp.zeros((128,), jnp.float32),
    }


def prepare_params(params):
    """One-time weight rearrangement + bf16 cast (done outside the forward pass)."""
    nz = params["w1"].shape[0]
    nzp = _round_up(nz, 128)
    w1 = jnp.pad(params["w1"], ((0, nzp - nz), (0, 0), (0, 0), (0, 0)))
    prep = {
        # layer 1 as a dense matmul; columns ordered (oy, ox, co)
        "wmat1": w1.transpose(0, 2, 3, 1).reshape(nzp, 16 * 512).astype(jnp.bfloat16),
        "g1": params["g1"], "b1": params["b1"],
        "g2": params["g2"], "b2": params["b2"],
        "g3": params["g3"], "b3": params["b3"],
    }
    for name, cfg, wkey in (("l2", _L2, "w2"), ("l3", _L3, "w3")):
        w = params[wkey]
        plans, _ = _phase_plan(cfg["K"], cfg["p"], cfg["H"], cfg["OH"])
        for ry in (0, 1):
            for rx in (0, 1):
                taps = [w[:, :, ky, kx]
                        for (ky, _) in plans[ry][1] for (kx, _) in plans[rx][1]]
                prep[f"{name}_{ry}{rx}"] = jnp.concatenate(taps, 0).astype(jnp.bfloat16)
    w4 = params["w4"]
    plans, _ = _phase_plan(_L4["K"], _L4["p"], _L4["H"], _L4["OH"])
    for ry in (0, 1):
        for rx in (0, 1):
            taps = [w4[:, 0, ky, kx]
                    for (ky, _) in plans[ry][1] for (kx, _) in plans[rx][1]]
            wvec = jnp.concatenate(taps, 0)
            wt8 = jnp.zeros((8, wvec.shape[0]), jnp.float32).at[0].set(wvec)
            prep[f"l4_{ry}{rx}"] = wt8.astype(jnp.bfloat16)
    return prep


def _phase_dict(prep, name):
    return {(ry, rx): prep[f"{name}_{ry}{rx}"] for ry in (0, 1) for rx in (0, 1)}


@jax.jit
def generator_forward(x_nchw, prep):
    N, nz = x_nchw.shape[0], x_nchw.shape[1]
    nzp = prep["wmat1"].shape[0]
    x_lat = jnp.pad(x_nchw.reshape(N, nz).astype(jnp.float32),
                    ((0, 0), (0, nzp - nz)))
    h = _layer1(x_lat, prep["wmat1"], prep["g1"], prep["b1"])            # (N,4,4,512)
    h = _deconv_bn_relu(h, _phase_dict(prep, "l2"), _L2, prep["g2"], prep["b2"])
    h = _deconv_bn_relu(h, _phase_dict(prep, "l3"), _L3, prep["g3"], prep["b3"])
    return _deconv_tanh(h, _phase_dict(prep, "l4"), _L4)                 # (N,1,28,28)


# ---------------------------------------------------------------------------
# Pure-XLA f32 reference (for numerical validation only)
# ---------------------------------------------------------------------------
def _reference_forward(x, params):
    def deconv(h, w, s, p):
        K = w.shape[2]
        wr = jnp.flip(w, (2, 3)).transpose(1, 0, 2, 3)          # (Cout, Cin, K, K)
        return lax.conv_general_dilated(
            h, wr, window_strides=(1, 1),
            padding=[(K - 1 - p, K - 1 - p)] * 2,
            lhs_dilation=(s, s),
            dimension_numbers=("NCHW", "OIHW", "NCHW"),
            precision=lax.Precision.HIGHEST)

    def bn_relu(h, g, b):
        mean = h.mean(axis=(0, 2, 3), keepdims=True)
        var = ((h - mean) ** 2).mean(axis=(0, 2, 3), keepdims=True)
        y = (h - mean) * lax.rsqrt(var + _BN_EPS)
        return jnp.maximum(y * g.reshape(1, -1, 1, 1) + b.reshape(1, -1, 1, 1), 0.0)

    h = bn_relu(deconv(x, params["w1"], 1, 0), params["g1"], params["b1"])
    h = bn_relu(deconv(h, params["w2"], 2, 1), params["g2"], params["b2"])
    h = bn_relu(deconv(h, params["w3"], 2, 1), params["g3"], params["b3"])
    return jnp.tanh(deconv(h, params["w4"], 2, 1))


if __name__ == "__main__":
    key = jax.random.PRNGKey(0)
    pkey, xkey = jax.random.split(key)
    nz, batch = 100, 2
    params = init_generator_params(pkey, nz=nz)
    prep = prepare_params(params)
    x = jax.random.normal(xkey, (batch, nz, 1, 1), jnp.float32)

    out = jax.block_until_ready(generator_forward(x, prep))
    assert out.shape == (batch, 1, 28, 28), out.shape
    assert bool(jnp.all(jnp.isfinite(out)))
    assert bool(jnp.all(jnp.abs(out) <= 1.0 + 1e-6))            # tanh range

    ref = jax.block_until_ready(jax.jit(_reference_forward)(x, params))
    max_err = float(jnp.max(jnp.abs(out - ref)))
    assert max_err < 0.1, f"max |pallas - reference| = {max_err}"
    print("KERNEL_OK")
</pallas_src>

<mosaic_0001>
module attributes {stable_mosaic.version = 11 : i64} {
  func.func @_matmul_stats_kernel(%arg0: i32, %arg1: memref<8x128xbf16, #tpu.memory_space<vmem>>, %arg2: memref<128x8192xbf16, #tpu.memory_space<vmem>>, %arg3: memref<8x8192xf32, #tpu.memory_space<vmem>>, %arg4: memref<8x8192xf32, #tpu.memory_space<vmem>>) attributes {dimension_semantics = [#tpu.dimension_semantics<parallel>], iteration_bounds = array<i64: 1>, scalar_prefetch = 0 : i64, scratch_operands = 0 : i64, tpu.core_type = #tpu.core_type<tc>, window_params = [{transform_indices = @transform_0, window_bounds = array<i64: 8, 128>}, {pipeline_mode = #tpu.pipeline_mode<synchronous>, transform_indices = @transform_1, window_bounds = array<i64: 128, 8192>}, {transform_indices = @transform_2, window_bounds = array<i64: 8, 8192>}, {transform_indices = @transform_3, window_bounds = array<i64: 8, 8192>}]} {
    %c0 = arith.constant 0 : index
    %c0_0 = arith.constant 0 : index
    %0 = vector.load %arg1[%c0, %c0_0] : memref<8x128xbf16, #tpu.memory_space<vmem>>, vector<8x128xbf16>
    %c0_1 = arith.constant 0 : index
    %c0_2 = arith.constant 0 : index
    %1 = vector.load %arg2[%c0_1, %c0_2] : memref<128x8192xbf16, #tpu.memory_space<vmem>>, vector<128x8192xbf16>
    %cst = arith.constant dense<0.000000e+00> : vector<8x8192xf32>
    %2 = tpu.matmul %0, %1, %cst {dimension_numbers = #tpu.dot_dimension_numbers<[1], [0], [0], [1], [0, 0, 1, 1], [], []>} : vector<8x128xbf16>, vector<128x8192xbf16>, vector<8x8192xf32> -> vector<8x8192xf32>
    %c0_3 = arith.constant 0 : index
    %c0_4 = arith.constant 0 : index
    %3 = vector.load %arg3[%c0_3, %c0_4] : memref<8x8192xf32, #tpu.memory_space<vmem>>, vector<8x8192xf32>
    tpu.vector_store %arg3[%c0_3, %c0_4], %2 {strides = array<i32>} : memref<8x8192xf32, #tpu.memory_space<vmem>>, vector<8x8192xf32>,
    %cst_5 = arith.constant dense<0.000000e+00> : vector<8192xf32>
    %4 = vector.multi_reduction <add>, %2, %cst_5 [0] : vector<8x8192xf32> to vector<8192xf32>
    %5 = vector.shape_cast %4 : vector<8192xf32> to vector<1x8192xf32>
    %6 = arith.mulf %2, %2 : vector<8x8192xf32>
    %cst_6 = arith.constant dense<0.000000e+00> : vector<8192xf32>
    %7 = vector.multi_reduction <add>, %6, %cst_6 [0] : vector<8x8192xf32> to vector<8192xf32>
    %8 = vector.shape_cast %7 : vector<8192xf32> to vector<1x8192xf32>
    %cst_7 = arith.constant 0.000000e+00 : f32
    %9 = vector.broadcast %cst_7 : f32 to vector<6x8192xf32>
    %10 = tpu.concatenate %5, %8, %9 in 0 : vector<1x8192xf32>, vector<1x8192xf32>, vector<6x8192xf32> -> vector<8x8192xf32>
    %c0_8 = arith.constant 0 : index
    %c0_9 = arith.constant 0 : index
    %11 = vector.load %arg4[%c0_8, %c0_9] : memref<8x8192xf32, #tpu.memory_space<vmem>>, vector<8x8192xf32>
    tpu.vector_store %arg4[%c0_8, %c0_9], %10 {strides = array<i32>} : memref<8x8192xf32, #tpu.memory_space<vmem>>, vector<8x8192xf32>,
    return
  }
  func.func @transform_0(%arg0: i32) -> (i32, i32) {
    %c0_i32 = arith.constant 0 : i32
    %c0_i32_0 = arith.constant 0 : i32
    return %arg0, %c0_i32 : i32, i32
  }
  func.func @transform_1(%arg0: i32) -> (i32, i32) {
    %c0_i32 = arith.constant 0 : i32
    %c0_i32_0 = arith.constant 0 : i32
    %c0_i32_1 = arith.constant 0 : i32
    return %c0_i32, %c0_i32_0 : i32, i32
  }
  func.func @transform_2(%arg0: i32) -> (i32, i32) {
    %c0_i32 = arith.constant 0 : i32
    %c0_i32_0 = arith.constant 0 : i32
    return %arg0, %c0_i32 : i32, i32
  }
  func.func @transform_3(%arg0: i32) -> (i32, i32) {
    %c0_i32 = arith.constant 0 : i32
    %c0_i32_0 = arith.constant 0 : i32
    return %arg0, %c0_i32 : i32, i32
  }
}

module attributes {stable_mosaic.version = 11 : i64} {
  func.func @_affine_relu_kernel(%arg0: i32, %arg1: memref<32x512xf32, #tpu.memory_space<vmem>>, %arg2: memref<1x512xf32, #tpu.memory_space<vmem>>, %arg3: memref<1x512xf32, #tpu.memory_space<vmem>>, %arg4: memref<32x512xf32, #tpu.memory_space<vmem>>) attributes {dimension_semantics = [#tpu.dimension_semantics<parallel>], iteration_bounds = array<i64: 1>, scalar_prefetch = 0 : i64, scratch_operands = 0 : i64, tpu.core_type = #tpu.core_type<tc>, window_params = [{transform_indices = @transform_0, window_bounds = array<i64: 32, 512>}, {pipeline_mode = #tpu.pipeline_mode<synchronous>, transform_indices = @transform_1, window_bounds = array<i64: 1, 512>}, {pipeline_mode = #tpu.pipeline_mode<synchronous>, transform_indices = @transform_2, window_bounds = array<i64: 1, 512>}, {transform_indices = @transform_3, window_bounds = array<i64: 32, 512>}]} {
    %c0 = arith.constant 0 : index
    %c0_0 = arith.constant 0 : index
    %0 = vector.load %arg1[%c0, %c0_0] : memref<32x512xf32, #tpu.memory_space<vmem>>, vector<32x512xf32>
    %c0_1 = arith.constant 0 : index
    %c0_2 = arith.constant 0 : index
    %1 = vector.load %arg2[%c0_1, %c0_2] : memref<1x512xf32, #tpu.memory_space<vmem>>, vector<1x512xf32>
    %2 = vector.broadcast %1 : vector<1x512xf32> to vector<32x512xf32>
    %3 = arith.mulf %0, %2 : vector<32x512xf32>
    %c0_3 = arith.constant 0 : index
    %c0_4 = arith.constant 0 : index
    %4 = vector.load %arg3[%c0_3, %c0_4] : memref<1x512xf32, #tpu.memory_space<vmem>>, vector<1x512xf32>
    %5 = vector.broadcast %4 : vector<1x512xf32> to vector<32x512xf32>
    %6 = arith.addf %3, %5 : vector<32x512xf32>
    %cst = arith.constant 0.000000e+00 : f32
    %7 = vector.broadcast %cst : f32 to vector<32x512xf32>
    %8 = arith.maximumf %6, %7 : vector<32x512xf32>
    %c0_5 = arith.constant 0 : index
    %c0_6 = arith.constant 0 : index
    %9 = vector.load %arg4[%c0_5, %c0_6] : memref<32x512xf32, #tpu.memory_space<vmem>>, vector<32x512xf32>
    tpu.vector_store %arg4[%c0_5, %c0_6], %8 {strides = array<i32>} : memref<32x512xf32, #tpu.memory_space<vmem>>, vector<32x512xf32>,
    return
  }
  func.func @transform_0(%arg0: i32) -> (i32, i32) {
    %c0_i32 = arith.constant 0 : i32
    %c0_i32_0 = arith.constant 0 : i32
    return %arg0, %c0_i32 : i32, i32
  }
  func.func @transform_1(%arg0: i32) -> (i32, i32) {
    %c0_i32 = arith.constant 0 : i32
    %c0_i32_0 = arith.constant 0 : i32
    %c0_i32_1 = arith.constant 0 : i32
    return %c0_i32, %c0_i32_0 : i32, i32
  }
  func.func @transform_2(%arg0: i32) -> (i32, i32) {
    %c0_i32 = arith.constant 0 : i32
    %c0_i32_0 = arith.constant 0 : i32
    %c0_i32_1 = arith.constant 0 : i32
    return %c0_i32, %c0_i32_0 : i32, i32
  }
  func.func @transform_3(%arg0: i32) -> (i32, i32) {
    %c0_i32 = arith.constant 0 : i32
    %c0_i32_0 = arith.constant 0 : i32
    return %arg0, %c0_i32 : i32, i32
  }
}

module attributes {stable_mosaic.version = 11 : i64} {
  func.func @_matmul_stats_kernel(%arg0: i32, %arg1: memref<24x2048xbf16, #tpu.memory_space<vmem>>, %arg2: memref<2048x256xbf16, #tpu.memory_space<vmem>>, %arg3: memref<24x256xf32, #tpu.memory_space<vmem>>, %arg4: memref<8x256xf32, #tpu.memory_space<vmem>>) attributes {dimension_semantics = [#tpu.dimension_semantics<parallel>], iteration_bounds = array<i64: 1>, scalar_prefetch = 0 : i64, scratch_operands = 0 : i64, tpu.core_type = #tpu.core_type<tc>, window_params = [{transform_indices = @transform_0, window_bounds = array<i64: 24, 2048>}, {pipeline_mode = #tpu.pipeline_mode<synchronous>, transform_indices = @transform_1, window_bounds = array<i64: 2048, 256>}, {transform_indices = @transform_2, window_bounds = array<i64: 24, 256>}, {transform_indices = @transform_3, window_bounds = array<i64: 8, 256>}]} {
    %c0 = arith.constant 0 : index
    %c0_0 = arith.constant 0 : index
    %0 = vector.load %arg1[%c0, %c0_0] : memref<24x2048xbf16, #tpu.memory_space<vmem>>, vector<24x2048xbf16>
    %c0_1 = arith.constant 0 : index
    %c0_2 = arith.constant 0 : index
    %1 = vector.load %arg2[%c0_1, %c0_2] : memref<2048x256xbf16, #tpu.memory_space<vmem>>, vector<2048x256xbf16>
    %cst = arith.constant dense<0.000000e+00> : vector<24x256xf32>
    %2 = tpu.matmul %0, %1, %cst {dimension_numbers = #tpu.dot_dimension_numbers<[1], [0], [0], [1], [0, 0, 1, 1], [], []>} : vector<24x2048xbf16>, vector<2048x256xbf16>, vector<24x256xf32> -> vector<24x256xf32>
    %c0_3 = arith.constant 0 : index
    %c0_4 = arith.constant 0 : index
    %3 = vector.load %arg3[%c0_3, %c0_4] : memref<24x256xf32, #tpu.memory_space<vmem>>, vector<24x256xf32>
    tpu.vector_store %arg3[%c0_3, %c0_4], %2 {strides = array<i32>} : memref<24x256xf32, #tpu.memory_space<vmem>>, vector<24x256xf32>,
    %cst_5 = arith.constant dense<0.000000e+00> : vector<256xf32>
    %4 = vector.multi_reduction <add>, %2, %cst_5 [0] : vector<24x256xf32> to vector<256xf32>
    %5 = vector.shape_cast %4 : vector<256xf32> to vector<1x256xf32>
    %6 = arith.mulf %2, %2 : vector<24x256xf32>
    %cst_6 = arith.constant dense<0.000000e+00> : vector<256xf32>
    %7 = vector.multi_reduction <add>, %6, %cst_6 [0] : vector<24x256xf32> to vector<256xf32>
    %8 = vector.shape_cast %7 : vector<256xf32> to vector<1x256xf32>
    %cst_7 = arith.constant 0.000000e+00 : f32
    %9 = vector.broadcast %cst_7 : f32 to vector<6x256xf32>
    %10 = tpu.concatenate %5, %8, %9 in 0 : vector<1x256xf32>, vector<1x256xf32>, vector<6x256xf32> -> vector<8x256xf32>
    %c0_8 = arith.constant 0 : index
    %c0_9 = arith.constant 0 : index
    %11 = vector.load %arg4[%c0_8, %c0_9] : memref<8x256xf32, #tpu.memory_space<vmem>>, vector<8x256xf32>
    tpu.vector_store %arg4[%c0_8, %c0_9], %10 {strides = array<i32>} : memref<8x256xf32, #tpu.memory_space<vmem>>, vector<8x256xf32>,
    return
  }
  func.func @transform_0(%arg0: i32) -> (i32, i32) {
    %c0_i32 = arith.constant 0 : i32
    %c0_i32_0 = arith.constant 0 : i32
    return %arg0, %c0_i32 : i32, i32
  }
  func.func @transform_1(%arg0: i32) -> (i32, i32) {
    %c0_i32 = arith.constant 0 : i32
    %c0_i32_0 = arith.constant 0 : i32
    %c0_i32_1 = arith.constant 0 : i32
    return %c0_i32, %c0_i32_0 : i32, i32
  }
  func.func @transform_2(%arg0: i32) -> (i32, i32) {
    %c0_i32 = arith.constant 0 : i32
    %c0_i32_0 = arith.constant 0 : i32
    return %arg0, %c0_i32 : i32, i32
  }
  func.func @transform_3(%arg0: i32) -> (i32, i32) {
    %c0_i32 = arith.constant 0 : i32
    %c0_i32_0 = arith.constant 0 : i32
    return %arg0, %c0_i32 : i32, i32
  }
}

module attributes {stable_mosaic.version = 11 : i64} {
  func.func @_matmul_stats_kernel(%arg0: i32, %arg1: memref<24x1024xbf16, #tpu.memory_space<vmem>>, %arg2: memref<1024x256xbf16, #tpu.memory_space<vmem>>, %arg3: memref<24x256xf32, #tpu.memory_space<vmem>>, %arg4: memref<8x256xf32, #tpu.memory_space<vmem>>) attributes {dimension_semantics = [#tpu.dimension_semantics<parallel>], iteration_bounds = array<i64: 1>, scalar_prefetch = 0 : i64, scratch_operands = 0 : i64, tpu.core_type = #tpu.core_type<tc>, window_params = [{transform_indices = @transform_0, window_bounds = array<i64: 24, 1024>}, {pipeline_mode = #tpu.pipeline_mode<synchronous>, transform_indices = @transform_1, window_bounds = array<i64: 1024, 256>}, {transform_indices = @transform_2, window_bounds = array<i64: 24, 256>}, {transform_indices = @transform_3, window_bounds = array<i64: 8, 256>}]} {
    %c0 = arith.constant 0 : index
    %c0_0 = arith.constant 0 : index
    %0 = vector.load %arg1[%c0, %c0_0] : memref<24x1024xbf16, #tpu.memory_space<vmem>>, vector<24x1024xbf16>
    %c0_1 = arith.constant 0 : index
    %c0_2 = arith.constant 0 : index
    %1 = vector.load %arg2[%c0_1, %c0_2] : memref<1024x256xbf16, #tpu.memory_space<vmem>>, vector<1024x256xbf16>
    %cst = arith.constant dense<0.000000e+00> : vector<24x256xf32>
    %2 = tpu.matmul %0, %1, %cst {dimension_numbers = #tpu.dot_dimension_numbers<[1], [0], [0], [1], [0, 0, 1, 1], [], []>} : vector<24x1024xbf16>, vector<1024x256xbf16>, vector<24x256xf32> -> vector<24x256xf32>
    %c0_3 = arith.constant 0 : index
    %c0_4 = arith.constant 0 : index
    %3 = vector.load %arg3[%c0_3, %c0_4] : memref<24x256xf32, #tpu.memory_space<vmem>>, vector<24x256xf32>
    tpu.vector_store %arg3[%c0_3, %c0_4], %2 {strides = array<i32>} : memref<24x256xf32, #tpu.memory_space<vmem>>, vector<24x256xf32>,
    %cst_5 = arith.constant dense<0.000000e+00> : vector<256xf32>
    %4 = vector.multi_reduction <add>, %2, %cst_5 [0] : vector<24x256xf32> to vector<256xf32>
    %5 = vector.shape_cast %4 : vector<256xf32> to vector<1x256xf32>
    %6 = arith.mulf %2, %2 : vector<24x256xf32>
    %cst_6 = arith.constant dense<0.000000e+00> : vector<256xf32>
    %7 = vector.multi_reduction <add>, %6, %cst_6 [0] : vector<24x256xf32> to vector<256xf32>
    %8 = vector.shape_cast %7 : vector<256xf32> to vector<1x256xf32>
    %cst_7 = arith.constant 0.000000e+00 : f32
    %9 = vector.broadcast %cst_7 : f32 to vector<6x256xf32>
    %10 = tpu.concatenate %5, %8, %9 in 0 : vector<1x256xf32>, vector<1x256xf32>, vector<6x256xf32> -> vector<8x256xf32>
    %c0_8 = arith.constant 0 : index
    %c0_9 = arith.constant 0 : index
    %11 = vector.load %arg4[%c0_8, %c0_9] : memref<8x256xf32, #tpu.memory_space<vmem>>, vector<8x256xf32>
    tpu.vector_store %arg4[%c0_8, %c0_9], %10 {strides = array<i32>} : memref<8x256xf32, #tpu.memory_space<vmem>>, vector<8x256xf32>,
    return
  }
  func.func @transform_0(%arg0: i32) -> (i32, i32) {
    %c0_i32 = arith.constant 0 : i32
    %c0_i32_0 = arith.constant 0 : i32
    return %arg0, %c0_i32 : i32, i32
  }
  func.func @transform_1(%arg0: i32) -> (i32, i32) {
    %c0_i32 = arith.constant 0 : i32
    %c0_i32_0 = arith.constant 0 : i32
    %c0_i32_1 = arith.constant 0 : i32
    return %c0_i32, %c0_i32_0 : i32, i32
  }
  func.func @transform_2(%arg0: i32) -> (i32, i32) {
    %c0_i32 = arith.constant 0 : i32
    %c0_i32_0 = arith.constant 0 : i32
    return %arg0, %c0_i32 : i32, i32
  }
  func.func @transform_3(%arg0: i32) -> (i32, i32) {
    %c0_i32 = arith.constant 0 : i32
    %c0_i32_0 = arith.constant 0 : i32
    return %arg0, %c0_i32 : i32, i32
  }
}

module attributes {stable_mosaic.version = 11 : i64} {
  func.func @_matmul_stats_kernel(%arg0: i32, %arg1: memref<32x512xbf16, #tpu.memory_space<vmem>>, %arg2: memref<512x256xbf16, #tpu.memory_space<vmem>>, %arg3: memref<32x256xf32, #tpu.memory_space<vmem>>, %arg4: memref<8x256xf32, #tpu.memory_space<vmem>>) attributes {dimension_semantics = [#tpu.dimension_semantics<parallel>], iteration_bounds = array<i64: 1>, scalar_prefetch = 0 : i64, scratch_operands = 0 : i64, tpu.core_type = #tpu.core_type<tc>, window_params = [{transform_indices = @transform_0, window_bounds = array<i64: 32, 512>}, {pipeline_mode = #tpu.pipeline_mode<synchronous>, transform_indices = @transform_1, window_bounds = array<i64: 512, 256>}, {transform_indices = @transform_2, window_bounds = array<i64: 32, 256>}, {transform_indices = @transform_3, window_bounds = array<i64: 8, 256>}]} {
    %c0 = arith.constant 0 : index
    %c0_0 = arith.constant 0 : index
    %0 = vector.load %arg1[%c0, %c0_0] : memref<32x512xbf16, #tpu.memory_space<vmem>>, vector<32x512xbf16>
    %c0_1 = arith.constant 0 : index
    %c0_2 = arith.constant 0 : index
    %1 = vector.load %arg2[%c0_1, %c0_2] : memref<512x256xbf16, #tpu.memory_space<vmem>>, vector<512x256xbf16>
    %cst = arith.constant dense<0.000000e+00> : vector<32x256xf32>
    %2 = tpu.matmul %0, %1, %cst {dimension_numbers = #tpu.dot_dimension_numbers<[1], [0], [0], [1], [0, 0, 1, 1], [], []>} : vector<32x512xbf16>, vector<512x256xbf16>, vector<32x256xf32> -> vector<32x256xf32>
    %c0_3 = arith.constant 0 : index
    %c0_4 = arith.constant 0 : index
    %3 = vector.load %arg3[%c0_3, %c0_4] : memref<32x256xf32, #tpu.memory_space<vmem>>, vector<32x256xf32>
    tpu.vector_store %arg3[%c0_3, %c0_4], %2 {strides = array<i32>} : memref<32x256xf32, #tpu.memory_space<vmem>>, vector<32x256xf32>,
    %cst_5 = arith.constant dense<0.000000e+00> : vector<256xf32>
    %4 = vector.multi_reduction <add>, %2, %cst_5 [0] : vector<32x256xf32> to vector<256xf32>
    %5 = vector.shape_cast %4 : vector<256xf32> to vector<1x256xf32>
    %6 = arith.mulf %2, %2 : vector<32x256xf32>
    %cst_6 = arith.constant dense<0.000000e+00> : vector<256xf32>
    %7 = vector.multi_reduction <add>, %6, %cst_6 [0] : vector<32x256xf32> to vector<256xf32>
    %8 = vector.shape_cast %7 : vector<256xf32> to vector<1x256xf32>
    %cst_7 = arith.constant 0.000000e+00 : f32
    %9 = vector.broadcast %cst_7 : f32 to vector<6x256xf32>
    %10 = tpu.concatenate %5, %8, %9 in 0 : vector<1x256xf32>, vector<1x256xf32>, vector<6x256xf32> -> vector<8x256xf32>
    %c0_8 = arith.constant 0 : index
    %c0_9 = arith.constant 0 : index
    %11 = vector.load %arg4[%c0_8, %c0_9] : memref<8x256xf32, #tpu.memory_space<vmem>>, vector<8x256xf32>
    tpu.vector_store %arg4[%c0_8, %c0_9], %10 {strides = array<i32>} : memref<8x256xf32, #tpu.memory_space<vmem>>, vector<8x256xf32>,
    return
  }
  func.func @transform_0(%arg0: i32) -> (i32, i32) {
    %c0_i32 = arith.constant 0 : i32
    %c0_i32_0 = arith.constant 0 : i32
    return %arg0, %c0_i32 : i32, i32
  }
  func.func @transform_1(%arg0: i32) -> (i32, i32) {
    %c0_i32 = arith.constant 0 : i32
    %c0_i32_0 = arith.constant 0 : i32
    %c0_i32_1 = arith.constant 0 : i32
    return %c0_i32, %c0_i32_0 : i32, i32
  }
  func.func @transform_2(%arg0: i32) -> (i32, i32) {
    %c0_i32 = arith.constant 0 : i32
    %c0_i32_0 = arith.constant 0 : i32
    return %arg0, %c0_i32 : i32, i32
  }
  func.func @transform_3(%arg0: i32) -> (i32, i32) {
    %c0_i32 = arith.constant 0 : i32
    %c0_i32_0 = arith.constant 0 : i32
    return %arg0, %c0_i32 : i32, i32
  }
}

module attributes {stable_mosaic.version = 11 : i64} {
  func.func @_affine_relu_kernel(%arg0: i32, %arg1: memref<104x256xf32, #tpu.memory_space<vmem>>, %arg2: memref<1x256xf32, #tpu.memory_space<vmem>>, %arg3: memref<1x256xf32, #tpu.memory_space<vmem>>, %arg4: memref<104x256xf32, #tpu.memory_space<vmem>>) attributes {dimension_semantics = [#tpu.dimension_semantics<parallel>], iteration_bounds = array<i64: 1>, scalar_prefetch = 0 : i64, scratch_operands = 0 : i64, tpu.core_type = #tpu.core_type<tc>, window_params = [{transform_indices = @transform_0, window_bounds = array<i64: 104, 256>}, {pipeline_mode = #tpu.pipeline_mode<synchronous>, transform_indices = @transform_1, window_bounds = array<i64: 1, 256>}, {pipeline_mode = #tpu.pipeline_mode<synchronous>, transform_indices = @transform_2, window_bounds = array<i64: 1, 256>}, {transform_indices = @transform_3, window_bounds = array<i64: 104, 256>}]} {
    %c0 = arith.constant 0 : index
    %c0_0 = arith.constant 0 : index
    %0 = vector.load %arg1[%c0, %c0_0] : memref<104x256xf32, #tpu.memory_space<vmem>>, vector<104x256xf32>
    %c0_1 = arith.constant 0 : index
    %c0_2 = arith.constant 0 : index
    %1 = vector.load %arg2[%c0_1, %c0_2] : memref<1x256xf32, #tpu.memory_space<vmem>>, vector<1x256xf32>
    %2 = vector.broadcast %1 : vector<1x256xf32> to vector<104x256xf32>
    %3 = arith.mulf %0, %2 : vector<104x256xf32>
    %c0_3 = arith.constant 0 : index
    %c0_4 = arith.constant 0 : index
    %4 = vector.load %arg3[%c0_3, %c0_4] : memref<1x256xf32, #tpu.memory_space<vmem>>, vector<1x256xf32>
    %5 = vector.broadcast %4 : vector<1x256xf32> to vector<104x256xf32>
    %6 = arith.addf %3, %5 : vector<104x256xf32>
    %cst = arith.constant 0.000000e+00 : f32
    %7 = vector.broadcast %cst : f32 to vector<104x256xf32>
    %8 = arith.maximumf %6, %7 : vector<104x256xf32>
    %c0_5 = arith.constant 0 : index
    %c0_6 = arith.constant 0 : index
    %9 = vector.load %arg4[%c0_5, %c0_6] : memref<104x256xf32, #tpu.memory_space<vmem>>, vector<104x256xf32>
    tpu.vector_store %arg4[%c0_5, %c0_6], %8 {strides = array<i32>} : memref<104x256xf32, #tpu.memory_space<vmem>>, vector<104x256xf32>,
    return
  }
  func.func @transform_0(%arg0: i32) -> (i32, i32) {
    %c0_i32 = arith.constant 0 : i32
    %c0_i32_0 = arith.constant 0 : i32
    return %arg0, %c0_i32 : i32, i32
  }
  func.func @transform_1(%arg0: i32) -> (i32, i32) {
    %c0_i32 = arith.constant 0 : i32
    %c0_i32_0 = arith.constant 0 : i32
    %c0_i32_1 = arith.constant 0 : i32
    return %c0_i32, %c0_i32_0 : i32, i32
  }
  func.func @transform_2(%arg0: i32) -> (i32, i32) {
    %c0_i32 = arith.constant 0 : i32
    %c0_i32_0 = arith.constant 0 : i32
    %c0_i32_1 = arith.constant 0 : i32
    return %c0_i32, %c0_i32_0 : i32, i32
  }
  func.func @transform_3(%arg0: i32) -> (i32, i32) {
    %c0_i32 = arith.constant 0 : i32
    %c0_i32_0 = arith.constant 0 : i32
    return %arg0, %c0_i32 : i32, i32
  }
}

module attributes {stable_mosaic.version = 11 : i64} {
  func.func @_matmul_stats_kernel(%arg0: i32, %arg1: memref<104x1024xbf16, #tpu.memory_space<vmem>>, %arg2: memref<1024x128xbf16, #tpu.memory_space<vmem>>, %arg3: memref<104x128xf32, #tpu.memory_space<vmem>>, %arg4: memref<8x128xf32, #tpu.memory_space<vmem>>) attributes {dimension_semantics = [#tpu.dimension_semantics<parallel>], iteration_bounds = array<i64: 1>, scalar_prefetch = 0 : i64, scratch_operands = 0 : i64, tpu.core_type = #tpu.core_type<tc>, window_params = [{transform_indices = @transform_0, window_bounds = array<i64: 104, 1024>}, {pipeline_mode = #tpu.pipeline_mode<synchronous>, transform_indices = @transform_1, window_bounds = array<i64: 1024, 128>}, {transform_indices = @transform_2, window_bounds = array<i64: 104, 128>}, {transform_indices = @transform_3, window_bounds = array<i64: 8, 128>}]} {
    %c0 = arith.constant 0 : index
    %c0_0 = arith.constant 0 : index
    %0 = vector.load %arg1[%c0, %c0_0] : memref<104x1024xbf16, #tpu.memory_space<vmem>>, vector<104x1024xbf16>
    %c0_1 = arith.constant 0 : index
    %c0_2 = arith.constant 0 : index
    %1 = vector.load %arg2[%c0_1, %c0_2] : memref<1024x128xbf16, #tpu.memory_space<vmem>>, vector<1024x128xbf16>
    %cst = arith.constant dense<0.000000e+00> : vector<104x128xf32>
    %2 = tpu.matmul %0, %1, %cst {dimension_numbers = #tpu.dot_dimension_numbers<[1], [0], [0], [1], [0, 0, 1, 1], [], []>} : vector<104x1024xbf16>, vector<1024x128xbf16>, vector<104x128xf32> -> vector<104x128xf32>
    %c0_3 = arith.constant 0 : index
    %c0_4 = arith.constant 0 : index
    %3 = vector.load %arg3[%c0_3, %c0_4] : memref<104x128xf32, #tpu.memory_space<vmem>>, vector<104x128xf32>
    tpu.vector_store %arg3[%c0_3, %c0_4], %2 {strides = array<i32>} : memref<104x128xf32, #tpu.memory_space<vmem>>, vector<104x128xf32>,
    %cst_5 = arith.constant dense<0.000000e+00> : vector<128xf32>
    %4 = vector.multi_reduction <add>, %2, %cst_5 [0] : vector<104x128xf32> to vector<128xf32>
    %5 = vector.shape_cast %4 : vector<128xf32> to vector<1x128xf32>
    %6 = arith.mulf %2, %2 : vector<104x128xf32>
    %cst_6 = arith.constant dense<0.000000e+00> : vector<128xf32>
    %7 = vector.multi_reduction <add>, %6, %cst_6 [0] : vector<104x128xf32> to vector<128xf32>
    %8 = vector.shape_cast %7 : vector<128xf32> to vector<1x128xf32>
    %cst_7 = arith.constant 0.000000e+00 : f32
    %9 = vector.broadcast %cst_7 : f32 to vector<6x128xf32>
    %10 = tpu.concatenate %5, %8, %9 in 0 : vector<1x128xf32>, vector<1x128xf32>, vector<6x128xf32> -> vector<8x128xf32>
    %c0_8 = arith.constant 0 : index
    %c0_9 = arith.constant 0 : index
    %11 = vector.load %arg4[%c0_8, %c0_9] : memref<8x128xf32, #tpu.memory_space<vmem>>, vector<8x128xf32>
    tpu.vector_store %arg4[%c0_8, %c0_9], %10 {strides = array<i32>} : memref<8x128xf32, #tpu.memory_space<vmem>>, vector<8x128xf32>,
    return
  }
  func.func @transform_0(%arg0: i32) -> (i32, i32) {
    %c0_i32 = arith.constant 0 : i32
    %c0_i32_0 = arith.constant 0 : i32
    return %arg0, %c0_i32 : i32, i32
  }
  func.func @transform_1(%arg0: i32) -> (i32, i32) {
    %c0_i32 = arith.constant 0 : i32
    %c0_i32_0 = arith.constant 0 : i32
    %c0_i32_1 = arith.constant 0 : i32
    return %c0_i32, %c0_i32_0 : i32, i32
  }
  func.func @transform_2(%arg0: i32) -> (i32, i32) {
    %c0_i32 = arith.constant 0 : i32
    %c0_i32_0 = arith.constant 0 : i32
    return %arg0, %c0_i32 : i32, i32
  }
  func.func @transform_3(%arg0: i32) -> (i32, i32) {
    %c0_i32 = arith.constant 0 : i32
    %c0_i32_0 = arith.constant 0 : i32
    return %arg0, %c0_i32 : i32, i32
  }
}

module attributes {stable_mosaic.version = 11 : i64} {
  func.func @_affine_relu_kernel(%arg0: i32, %arg1: memref<392x128xf32, #tpu.memory_space<vmem>>, %arg2: memref<1x128xf32, #tpu.memory_space<vmem>>, %arg3: memref<1x128xf32, #tpu.memory_space<vmem>>, %arg4: memref<392x128xf32, #tpu.memory_space<vmem>>) attributes {dimension_semantics = [#tpu.dimension_semantics<parallel>], iteration_bounds = array<i64: 1>, scalar_prefetch = 0 : i64, scratch_operands = 0 : i64, tpu.core_type = #tpu.core_type<tc>, window_params = [{transform_indices = @transform_0, window_bounds = array<i64: 392, 128>}, {pipeline_mode = #tpu.pipeline_mode<synchronous>, transform_indices = @transform_1, window_bounds = array<i64: 1, 128>}, {pipeline_mode = #tpu.pipeline_mode<synchronous>, transform_indices = @transform_2, window_bounds = array<i64: 1, 128>}, {transform_indices = @transform_3, window_bounds = array<i64: 392, 128>}]} {
    %c0 = arith.constant 0 : index
    %c0_0 = arith.constant 0 : index
    %0 = vector.load %arg1[%c0, %c0_0] : memref<392x128xf32, #tpu.memory_space<vmem>>, vector<392x128xf32>
    %c0_1 = arith.constant 0 : index
    %c0_2 = arith.constant 0 : index
    %1 = vector.load %arg2[%c0_1, %c0_2] : memref<1x128xf32, #tpu.memory_space<vmem>>, vector<1x128xf32>
    %2 = vector.broadcast %1 : vector<1x128xf32> to vector<392x128xf32>
    %3 = arith.mulf %0, %2 : vector<392x128xf32>
    %c0_3 = arith.constant 0 : index
    %c0_4 = arith.constant 0 : index
    %4 = vector.load %arg3[%c0_3, %c0_4] : memref<1x128xf32, #tpu.memory_space<vmem>>, vector<1x128xf32>
    %5 = vector.broadcast %4 : vector<1x128xf32> to vector<392x128xf32>
    %6 = arith.addf %3, %5 : vector<392x128xf32>
    %cst = arith.constant 0.000000e+00 : f32
    %7 = vector.broadcast %cst : f32 to vector<392x128xf32>
    %8 = arith.maximumf %6, %7 : vector<392x128xf32>
    %c0_5 = arith.constant 0 : index
    %c0_6 = arith.constant 0 : index
    %9 = vector.load %arg4[%c0_5, %c0_6] : memref<392x128xf32, #tpu.memory_space<vmem>>, vector<392x128xf32>
    tpu.vector_store %arg4[%c0_5, %c0_6], %8 {strides = array<i32>} : memref<392x128xf32, #tpu.memory_space<vmem>>, vector<392x128xf32>,
    return
  }
  func.func @transform_0(%arg0: i32) -> (i32, i32) {
    %c0_i32 = arith.constant 0 : i32
    %c0_i32_0 = arith.constant 0 : i32
    return %arg0, %c0_i32 : i32, i32
  }
  func.func @transform_1(%arg0: i32) -> (i32, i32) {
    %c0_i32 = arith.constant 0 : i32
    %c0_i32_0 = arith.constant 0 : i32
    %c0_i32_1 = arith.constant 0 : i32
    return %c0_i32, %c0_i32_0 : i32, i32
  }
  func.func @transform_2(%arg0: i32) -> (i32, i32) {
    %c0_i32 = arith.constant 0 : i32
    %c0_i32_0 = arith.constant 0 : i32
    %c0_i32_1 = arith.constant 0 : i32
    return %c0_i32, %c0_i32_0 : i32, i32
  }
  func.func @transform_3(%arg0: i32) -> (i32, i32) {
    %c0_i32 = arith.constant 0 : i32
    %c0_i32_0 = arith.constant 0 : i32
    return %arg0, %c0_i32 : i32, i32
  }
}

module attributes {stable_mosaic.version = 11 : i64} {
  func.func @_matmul_tanh_t_kernel(%arg0: i32, %arg1: memref<8x512xbf16, #tpu.memory_space<vmem>>, %arg2: memref<512x512xbf16, #tpu.memory_space<vmem>>, %arg3: memref<8x512xf32, #tpu.memory_space<vmem>>) attributes {dimension_semantics = [#tpu.dimension_semantics<parallel>], iteration_bounds = array<i64: 1>, scalar_prefetch = 0 : i64, scratch_operands = 0 : i64, tpu.core_type = #tpu.core_type<tc>, window_params = [{pipeline_mode = #tpu.pipeline_mode<synchronous>, transform_indices = @transform_0, window_bounds = array<i64: 8, 512>}, {transform_indices = @transform_1, window_bounds = array<i64: 512, 512>}, {transform_indices = @transform_2, window_bounds = array<i64: 8, 512>}]} {
    %c0 = arith.constant 0 : index
    %c0_0 = arith.constant 0 : index
    %0 = vector.load %arg1[%c0, %c0_0] : memref<8x512xbf16, #tpu.memory_space<vmem>>, vector<8x512xbf16>
    %c0_1 = arith.constant 0 : index
    %c0_2 = arith.constant 0 : index
    %1 = vector.load %arg2[%c0_1, %c0_2] : memref<512x512xbf16, #tpu.memory_space<vmem>>, vector<512x512xbf16>
    %cst = arith.constant dense<0.000000e+00> : vector<8x512xf32>
    %2 = tpu.matmul %0, %1, %cst {dimension_numbers = #tpu.dot_dimension_numbers<[1], [0], [0], [1], [0, 0, 1, 1], [], []>} : vector<8x512xbf16>, vector<512x512xbf16>, vector<8x512xf32> -> vector<8x512xf32>
    %3 = math.tanh %2 : vector<8x512xf32>
    %c0_3 = arith.constant 0 : index
    %c0_4 = arith.constant 0 : index
    %4 = vector.load %arg3[%c0_3, %c0_4] : memref<8x512xf32, #tpu.memory_space<vmem>>, vector<8x512xf32>
    tpu.vector_store %arg3[%c0_3, %c0_4], %3 {strides = array<i32>} : memref<8x512xf32, #tpu.memory_space<vmem>>, vector<8x512xf32>,
    return
  }
  func.func @transform_0(%arg0: i32) -> (i32, i32) {
    %c0_i32 = arith.constant 0 : i32
    %c0_i32_0 = arith.constant 0 : i32
    %c0_i32_1 = arith.constant 0 : i32
    return %c0_i32, %c0_i32_0 : i32, i32
  }
  func.func @transform_1(%arg0: i32) -> (i32, i32) {
    %c0_i32 = arith.constant 0 : i32
    %c0_i32_0 = arith.constant 0 : i32
    return %c0_i32, %arg0 : i32, i32
  }
  func.func @transform_2(%arg0: i32) -> (i32, i32) {
    %c0_i32 = arith.constant 0 : i32
    %c0_i32_0 = arith.constant 0 : i32
    return %c0_i32, %arg0 : i32, i32
  }
}

</mosaic_0001>

<bundles_post_ra>
// kernel: generator_forward.17
= control target key start
LH: loop header
LB: loop body
LE: loop exit
PB: predicated region body
PF: predicated region fallthrough
CT: control target
= control target key end

     0   :  { %v32_v0 = vlaneseq  ;;  %s270_s1 = inlined_call_operand.vmem [shape: f32[1,512], index: 1, kind: input, shape index: {}]   ;;  %s271_s2 = inlined_call_operand.vmem [shape: f32[1,512], index: 2, kind: input, shape index: {}]   ;;  %s272_s0 = inlined_call_operand.vmem [shape: f32[32,512], index: 0, kind: input, shape index: {}]   ;;  %s273_s3 = inlined_call_operand.vmem [shape: f32[32,512], index: 3, kind: output, shape index: {}]  }
   0x1   :  { %v30_v2 = vld [vmem:[%s270_s1] sm:$0xf]  ;;  %v15_v6 = vld [vmem:[%s272_s0 + $0x8] sm:$0xff]  ;;  %v16_v10 = vld [vmem:[%s272_s0 + $0x10] sm:$0xff] }
   0x2   :  { %v33_v1 = vshrl.u32 %v32_v0, 7  ;;  %v68_v3 = vld [vmem:[%s271_s2] sm:$0xf]  ;;  %v19_v12 = vld [vmem:[%s272_s0 + $0x28] sm:$0xff]  ;;  %v17_v17 = vld [vmem:[%s272_s0 + $0x18] sm:$0xff] }
   0x3   :  { %v14_v4 = vld [vmem:[%s272_s0] sm:$0xff]  ;;  %v20_v18 = vld [vmem:[%s272_s0 + $0x30] sm:$0xff]  ;;  %v21_v19 = vld [vmem:[%s272_s0 + $0x38] sm:$0xff] }
   0x4   :  { %v34_v5 = vsub.s32 0, %v33_v1  ;;  %v38_v7 = vsub.s32 1, %v33_v1  ;;  %v42_v8 = vsub.s32 2, %v33_v1  ;;  %v46_v9 = vsub.s32 3, %v33_v1  ;;  %v18_v11 = vld [vmem:[%s272_s0 + $0x20] sm:$0xff]  ;;  %v23_v37 = vld [vmem:[%s272_s0 + $0x48] sm:$0xff] }
   0x5   :  { %v22_v36 = vld [vmem:[%s272_s0 + $0x40] sm:$0xff]  ;;  %v24_v38 = vld [vmem:[%s272_s0 + $0x50] sm:$0xff]  ;;  %v25_v43 = vld [vmem:[%s272_s0 + $0x58] sm:$0xff] }
   0x6   :  { %v35_v13 = vrot.slane %v30_v2, %v34_v5  ;;  %v183_v14 = vrot.slane %v68_v3, %v34_v5  ;;  %v39_v15 = vrot.slane %v30_v2, %v38_v7  ;;  %v77_v16 = vrot.slane %v68_v3, %v38_v7  ;;  %v26_v44 = vld [vmem:[%s272_s0 + $0x60] sm:$0xff]  ;;  %v27_v45 = vld [vmem:[%s272_s0 + $0x68] sm:$0xff]  ;;  %v28_v50 = vld [vmem:[%s272_s0 + $0x70] sm:$0xff] }
   0x7   :  { %v43_v20 = vrot.slane %v30_v2, %v42_v8  ;;  %v81_v21 = vrot.slane %v68_v3, %v42_v8  ;;  %v47_v22 = vrot.slane %v30_v2, %v46_v9  ;;  %v85_v23 = vrot.slane %v68_v3, %v46_v9  ;;  %v29_v51 = vld [vmem:[%s272_s0 + $0x78] sm:$0xff] }
   0x8   :  { %v52_v24 = vmul.f32 %v35_v13, %v14_v4  ;;  %v53_v25 = vmul.f32 %v39_v15, %v15_v6  ;;  %v56_v26 = vmul.f32 %v35_v13, %v18_v11  ;;  %v57_v27 = vmul.f32 %v39_v15, %v19_v12 }
   0x9   :  { %v54_v28 = vmul.f32 %v43_v20, %v16_v10  ;;  %v55_v29 = vmul.f32 %v47_v22, %v17_v17  ;;  %v58_v30 = vmul.f32 %v43_v20, %v20_v18  ;;  %v59_v31 = vmul.f32 %v47_v22, %v21_v19 }
   0xa   :  { %v90_v32 = vadd.f32 %v183_v14, %v52_v24  ;;  %v91_v33 = vadd.f32 %v77_v16, %v53_v25  ;;  %v94_v34 = vadd.f32 %v183_v14, %v56_v26  ;;  %v95_v35 = vadd.f32 %v77_v16, %v57_v27 }
   0xb   :  { %v92_v39 = vadd.f32 %v81_v21, %v54_v28  ;;  %v93_v40 = vadd.f32 %v85_v23, %v55_v29  ;;  %v96_v41 = vadd.f32 %v81_v21, %v58_v30  ;;  %v97_v42 = vadd.f32 %v85_v23, %v59_v31 }
   0xc   :  { %v106_v46 = vmax.f32 %v90_v32, 0.0  ;;  %v107_v47 = vmax.f32 %v91_v33, 0.0  ;;  %v110_v48 = vmax.f32 %v94_v34, 0.0  ;;  %v111_v49 = vmax.f32 %v95_v35, 0.0 }
   0xd   :  { %v108_v52 = vmax.f32 %v92_v39, 0.0  ;;  %v109_v53 = vmax.f32 %v93_v40, 0.0  ;;  %v112_v54 = vmax.f32 %v96_v41, 0.0  ;;  %v113_v55 = vmax.f32 %v97_v42, 0.0 }
   0xe   :  { %122 = vst [vmem:[%s273_s3] sm:$0xff] %v106_v46  ;;  %123 = vst [vmem:[%s273_s3 + $0x8] sm:$0xff] %v107_v47  ;;  %v60_v56 = vmul.f32 %v35_v13, %v22_v36  ;;  %v61_v57 = vmul.f32 %v39_v15, %v23_v37  ;;  %v62_v58 = vmul.f32 %v43_v20, %v24_v38 }
   0xf   :  { %126 = vst [vmem:[%s273_s3 + $0x20] sm:$0xff] %v110_v48  ;;  %127 = vst [vmem:[%s273_s3 + $0x28] sm:$0xff] %v111_v49  ;;  %v63_v59 = vmul.f32 %v47_v22, %v25_v43  ;;  %v64_v60 = vmul.f32 %v35_v13, %v26_v44  ;;  %v65_v61 = vmul.f32 %v39_v15, %v27_v45 }
  0x10   :  { %124 = vst [vmem:[%s273_s3 + $0x10] sm:$0xff] %v108_v52  ;;  %125 = vst [vmem:[%s273_s3 + $0x18] sm:$0xff] %v109_v53  ;;  %v66_v62 = vmul.f32 %v43_v20, %v28_v50  ;;  %v67_v63 = vmul.f32 %v47_v22, %v29_v51  ;;  %v98_v0 = vadd.f32 %v183_v14, %v60_v56 }
  0x11   :  { %128 = vst [vmem:[%s273_s3 + $0x30] sm:$0xff] %v112_v54  ;;  %129 = vst [vmem:[%s273_s3 + $0x38] sm:$0xff] %v113_v55  ;;  %v99_v1 = vadd.f32 %v77_v16, %v61_v57  ;;  %v100_v2 = vadd.f32 %v81_v21, %v62_v58  ;;  %v101_v3 = vadd.f32 %v85_v23, %v63_v59 }
  0x12   :  { %v102_v4 = vadd.f32 %v183_v14, %v64_v60  ;;  %v103_v5 = vadd.f32 %v77_v16, %v65_v61  ;;  %v104_v6 = vadd.f32 %v81_v21, %v66_v62  ;;  %v105_v7 = vadd.f32 %v85_v23, %v67_v63 }
  0x13   :  { %v114_v8 = vmax.f32 %v98_v0, 0.0  ;;  %v115_v9 = vmax.f32 %v99_v1, 0.0  ;;  %v116_v10 = vmax.f32 %v100_v2, 0.0  ;;  %v117_v11 = vmax.f32 %v101_v3, 0.0 }
  0x14   :  { %v118_v12 = vmax.f32 %v102_v4, 0.0  ;;  %v119_v17 = vmax.f32 %v103_v5, 0.0  ;;  %v120_v13 = vmax.f32 %v104_v6, 0.0  ;;  %v121_v15 = vmax.f32 %v105_v7, 0.0 }
  0x15   :  { %130 = vst [vmem:[%s273_s3 + $0x40] sm:$0xff] %v114_v8  ;;  %131 = vst [vmem:[%s273_s3 + $0x48] sm:$0xff] %v115_v9 }
  0x16   :  { %132 = vst [vmem:[%s273_s3 + $0x50] sm:$0xff] %v116_v10  ;;  %133 = vst [vmem:[%s273_s3 + $0x58] sm:$0xff] %v117_v11 }
  0x17   :  { %134 = vst [vmem:[%s273_s3 + $0x60] sm:$0xff] %v118_v12  ;;  %135 = vst [vmem:[%s273_s3 + $0x68] sm:$0xff] %v119_v17 }
  0x18   :  { %136 = vst [vmem:[%s273_s3 + $0x70] sm:$0xff] %v120_v13  ;;  %137 = vst [vmem:[%s273_s3 + $0x78] sm:$0xff] %v121_v15 }

// kernel: generator_forward.20
= control target key start
LH: loop header
LB: loop body
LE: loop exit
PB: predicated region body
PF: predicated region fallthrough
CT: control target
= control target key end

     0   :  { %vm1109_vm0 = vcmask 1040384   ;;  %vm1112_vm1 = vcmask 1041408   ;;  %s1949_s1 = inlined_call_operand.vmem [shape: bf16[1024,256], index: 1, kind: input, shape index: {}]   ;;  %s1950_s0 = inlined_call_operand.vmem [shape: bf16[24,1024], index: 0, kind: input, shape index: {}]   ;;  %s1951_s2 = inlined_call_operand.vmem [shape: f32[24,256], index: 2, kind: output, shape index: {0}]   ;;  %s1952_s3 = inlined_call_operand.vmem [shape: f32[8,256], index: 3, kind: output, shape index: {1}]  }
   0x1   :  { %v1269_v0 = vld [vmem:[%s1949_s1 + $0x74] ss:$8 sps:$4 sm:$0xff]   ;;  %v1273_v2 = vld [vmem:[%s1949_s1 + $0x70] ss:$8 sps:$4 sm:$0xff]   ;;  %v1275_v4 = vld [vmem:[%s1949_s1 + $0x64] ss:$8 sps:$4 sm:$0xff]  }
   0x2   :  { %v1271_v1 = vld [vmem:[%s1949_s1 + $0x174] ss:$8 sps:$4 sm:$0xff]   ;;  %861 = vmatprep.subr.bf16.mxu0 %v1269_v0  ;;  %v1274_v3 = vld [vmem:[%s1949_s1 + $0x170] ss:$8 sps:$4 sm:$0xff]   ;;  %v1277_v5 = vld [vmem:[%s1949_s1 + $0x164] ss:$8 sps:$4 sm:$0xff]  }
   0x3   :  { %912 = vmatprep.subr.bf16.mxu1 %v1271_v1  ;;  %862 = vmatpush1.bf16.msra.mxu0 %v1273_v2  ;;  %v1279_v6 = vld [vmem:[%s1949_s1 + $0x60] ss:$8 sps:$4 sm:$0xff]   ;;  %v1281_v8 = vld [vmem:[%s1949_s1 + $0x54] ss:$8 sps:$4 sm:$0xff]   ;;  %v1285_v10 = vld [vmem:[%s1949_s1 + $0x50] ss:$8 sps:$4 sm:$0xff]  }
   0x4   :  { %913 = vmatpush1.bf16.msra.mxu1 %v1274_v3  ;;  %863 = vmatprep.subr.bf16.mxu0 %v1275_v4  ;;  %v1280_v7 = vld [vmem:[%s1949_s1 + $0x160] ss:$8 sps:$4 sm:$0xff]   ;;  %v1283_v9 = vld [vmem:[%s1949_s1 + $0x154] ss:$8 sps:$4 sm:$0xff]   ;;  %v1286_v11 = vld [vmem:[%s1949_s1 + $0x150] ss:$8 sps:$4 sm:$0xff]  }
   0x5   :  { %914 = vmatprep.subr.bf16.mxu1 %v1277_v5  ;;  %v1287_v12 = vld [vmem:[%s1949_s1 + $0x44] ss:$8 sps:$4 sm:$0xff]   ;;  %v1291_v14 = vld [vmem:[%s1949_s1 + $0x40] ss:$8 sps:$4 sm:$0xff]   ;;  %v1293_v16 = vld [vmem:[%s1949_s1 + $0x34] ss:$8 sps:$4 sm:$0xff]  }
   0x6   :  { %v1289_v13 = vld [vmem:[%s1949_s1 + $0x144] ss:$8 sps:$4 sm:$0xff]   ;;  %v1292_v15 = vld [vmem:[%s1949_s1 + $0x140] ss:$8 sps:$4 sm:$0xff]   ;;  %v1295_v17 = vld [vmem:[%s1949_s1 + $0x134] ss:$8 sps:$4 sm:$0xff]  }
   0x7   :  { %864 = vmatpush1.bf16.msra.mxu0 %v1279_v6  ;;  %v1297_v18 = vld [vmem:[%s1949_s1 + $0x30] ss:$8 sps:$4 sm:$0xff]   ;;  %v1299_v20 = vld [vmem:[%s1949_s1 + $0x24] ss:$8 sps:$4 sm:$0xff]   ;;  %v1303_v22 = vld [vmem:[%s1949_s1 + $0x20] ss:$8 sps:$4 sm:$0xff]  }
   0x8   :  { %915 = vmatpush1.bf16.msra.mxu1 %v1280_v7  ;;  %865 = vmatprep.subr.bf16.mxu0 %v1281_v8  ;;  %v1298_v19 = vld [vmem:[%s1949_s1 + $0x130] ss:$8 sps:$4 sm:$0xff]   ;;  %v1301_v21 = vld [vmem:[%s1949_s1 + $0x124] ss:$8 sps:$4 sm:$0xff]   ;;  %v1304_v23 = vld [vmem:[%s1949_s1 + $0x120] ss:$8 sps:$4 sm:$0xff]  }
   0x9   :  { %916 = vmatprep.subr.bf16.mxu1 %v1283_v9  ;;  %v1305_v24 = vld [vmem:[%s1949_s1 + $0x14] ss:$8 sps:$4 sm:$0xff]   ;;  %v1309_v26 = vld [vmem:[%s1949_s1 + $0x10] ss:$8 sps:$4 sm:$0xff]   ;;  %v1311_v28 = vld [vmem:[%s1949_s1 + $0x4] ss:$8 sps:$4 sm:$0xff]  }
   0xa   :  { %v1307_v25 = vld [vmem:[%s1949_s1 + $0x114] ss:$8 sps:$4 sm:$0xff]   ;;  %v1310_v27 = vld [vmem:[%s1949_s1 + $0x110] ss:$8 sps:$4 sm:$0xff]   ;;  %v1313_v29 = vld [vmem:[%s1949_s1 + $0x104] ss:$8 sps:$4 sm:$0xff]  }
   0xb   :  { %866 = vmatpush1.bf16.msra.mxu0 %v1285_v10  ;;  %v1315_v30 = vld [vmem:[%s1949_s1] ss:$8 sps:$4 sm:$0xff]   ;;  %v1317_v32 = vld [vmem:[%s1949_s1 + $0xf4] ss:$8 sps:$4 sm:$0xff]   ;;  %v1321_v34 = vld [vmem:[%s1949_s1 + $0xf0] ss:$8 sps:$4 sm:$0xff]  }
   0xc   :  { %917 = vmatpush1.bf16.msra.mxu1 %v1286_v11  ;;  %867 = vmatprep.subr.bf16.mxu0 %v1287_v12  ;;  %v1316_v31 = vld [vmem:[%s1949_s1 + $0x100] ss:$8 sps:$4 sm:$0xff]   ;;  %v1319_v33 = vld [vmem:[%s1949_s1 + $0x1f4] ss:$8 sps:$4 sm:$0xff]   ;;  %v1322_v35 = vld [vmem:[%s1949_s1 + $0x1f0] ss:$8 sps:$4 sm:$0xff]  }
   0xd   :  { %918 = vmatprep.subr.bf16.mxu1 %v1289_v13  ;;  %v1323_v36 = vld [vmem:[%s1949_s1 + $0xe4] ss:$8 sps:$4 sm:$0xff]   ;;  %v1327_v38 = vld [vmem:[%s1949_s1 + $0xe0] ss:$8 sps:$4 sm:$0xff]   ;;  %v1329_v40 = vld [vmem:[%s1949_s1 + $0xd4] ss:$8 sps:$4 sm:$0xff]  }
   0xe   :  { %v1325_v37 = vld [vmem:[%s1949_s1 + $0x1e4] ss:$8 sps:$4 sm:$0xff]   ;;  %v1328_v39 = vld [vmem:[%s1949_s1 + $0x1e0] ss:$8 sps:$4 sm:$0xff]   ;;  %v1331_v41 = vld [vmem:[%s1949_s1 + $0x1d4] ss:$8 sps:$4 sm:$0xff]  }
   0xf   :  { %868 = vmatpush1.bf16.msra.mxu0 %v1291_v14  ;;  %v1333_v42 = vld [vmem:[%s1949_s1 + $0xd0] ss:$8 sps:$4 sm:$0xff]   ;;  %v1335_v44 = vld [vmem:[%s1949_s1 + $0xc4] ss:$8 sps:$4 sm:$0xff]   ;;  %v1339_v46 = vld [vmem:[%s1949_s1 + $0xc0] ss:$8 sps:$4 sm:$0xff]  }
  0x10   :  { %919 = vmatpush1.bf16.msra.mxu1 %v1292_v15  ;;  %869 = vmatprep.subr.bf16.mxu0 %v1293_v16  ;;  %v1334_v43 = vld [vmem:[%s1949_s1 + $0x1d0] ss:$8 sps:$4 sm:$0xff]   ;;  %v1337_v45 = vld [vmem:[%s1949_s1 + $0x1c4] ss:$8 sps:$4 sm:$0xff]   ;;  %v1340_v47 = vld [vmem:[%s1949_s1 + $0x1c0] ss:$8 sps:$4 sm:$0xff]  }
  0x11   :  { %920 = vmatprep.subr.bf16.mxu1 %v1295_v17  ;;  %v13_v48 = vld [vmem:[%s1950_s0] sm:$0xff]  ;;  %v14_v50 = vld [vmem:[%s1950_s0 + $0x8] sm:$0xff]  ;;  %v1341_v52 = vld [vmem:[%s1949_s1 + $0xb4] ss:$8 sps:$4 sm:$0xff]  }
  0x12   :  { %v17_v49 = vld [vmem:[%s1950_s0 + $0x20] sm:$0xff]  ;;  %v18_v51 = vld [vmem:[%s1950_s0 + $0x28] sm:$0xff]  ;;  %v1343_v54 = vld [vmem:[%s1949_s1 + $0x1b4] ss:$8 sps:$4 sm:$0xff]  }
  0x13   :  { %870 = vmatpush1.bf16.msra.mxu0 %v1297_v18  ;;  %v1126_v53 = vcombine.high %v13_v48, %v17_v49  ;;  %v1128_v55 = vcombine.high %v14_v50, %v18_v51  ;;  %v1345_v56 = vld [vmem:[%s1949_s1 + $0xb0] ss:$8 sps:$4 sm:$0xff]   ;;  %v1347_v58 = vld [vmem:[%s1949_s1 + $0xa4] ss:$8 sps:$4 sm:$0xff]   ;;  %v1351_v60 = vld [vmem:[%s1949_s1 + $0xa0] ss:$8 sps:$4 sm:$0xff]   ;;  %v1125_v8 = vcombine.low %v13_v48, %v17_v49  ;;  %v1127_v9 = vcombine.low %v14_v50, %v18_v51 }
  0x14   :  { %921 = vmatpush1.bf16.msra.mxu1 %v1298_v19  ;;  %871 = vmatprep.subr.bf16.mxu0 %v1299_v20  ;;  %v1346_v57 = vld [vmem:[%s1949_s1 + $0x1b0] ss:$8 sps:$4 sm:$0xff]   ;;  %v1349_v59 = vld [vmem:[%s1949_s1 + $0x1a4] ss:$8 sps:$4 sm:$0xff]   ;;  %v1352_v61 = vld [vmem:[%s1949_s1 + $0x1a0] ss:$8 sps:$4 sm:$0xff]  }
  0x15   :  { %922 = vmatprep.subr.bf16.mxu1 %v1301_v21  ;;  %893 = vmatprep.mubr.bf16.mxu0 %v1126_v53  ;;  %v1353_v62 = vld [vmem:[%s1949_s1 + $0x94] ss:$8 sps:$4 sm:$0xff]   ;;  %v1357_v0 = vld [vmem:[%s1949_s1 + $0x90] ss:$8 sps:$4 sm:$0xff]   ;;  %v1359_v2 = vld [vmem:[%s1949_s1 + $0x84] ss:$8 sps:$4 sm:$0xff]  }
  0x16   :  { %944 = vmatprep.mubr.bf16.mxu1 %v1128_v55  ;;  %v1355_v63 = vld [vmem:[%s1949_s1 + $0x194] ss:$8 sps:$4 sm:$0xff]   ;;  %v1358_v1 = vld [vmem:[%s1949_s1 + $0x190] ss:$8 sps:$4 sm:$0xff]   ;;  %v1361_v3 = vld [vmem:[%s1949_s1 + $0x184] ss:$8 sps:$4 sm:$0xff]  }
  0x17   :  { %872 = vmatpush1.bf16.msra.mxu0 %v1303_v22  ;;  %v1363_v4 = vld [vmem:[%s1949_s1 + $0x80] ss:$8 sps:$4 sm:$0xff]   ;;  %v1367_v6 = vld [vmem:[%s1949_s1 + $0x274] ss:$8 sps:$4 sm:$0xff]   ;;  %v1365_v10 = vld [vmem:[%s1949_s1 + $0x270] ss:$8 sps:$4 sm:$0xff]  }
  0x18   :  { %923 = vmatpush1.bf16.msra.mxu1 %v1304_v23  ;;  %873 = vmatprep.subr.bf16.mxu0 %v1305_v24  ;;  %v1364_v5 = vld [vmem:[%s1949_s1 + $0x180] ss:$8 sps:$4 sm:$0xff]   ;;  %v1370_v7 = vld [vmem:[%s1949_s1 + $0x374] ss:$8 sps:$4 sm:$0xff]   ;;  %v1368_v11 = vld [vmem:[%s1949_s1 + $0x370] ss:$8 sps:$4 sm:$0xff]  }
  0x19   :  { %924 = vmatprep.subr.bf16.mxu1 %v1307_v25  ;;  %v1373_v12 = vld [vmem:[%s1949_s1 + $0x264] ss:$8 sps:$4 sm:$0xff]   ;;  %v1371_v14 = vld [vmem:[%s1949_s1 + $0x260] ss:$8 sps:$4 sm:$0xff]   ;;  %v1379_v16 = vld [vmem:[%s1949_s1 + $0x254] ss:$8 sps:$4 sm:$0xff]  }
  0x1a   :  { %v1376_v13 = vld [vmem:[%s1949_s1 + $0x364] ss:$8 sps:$4 sm:$0xff]   ;;  %v1374_v15 = vld [vmem:[%s1949_s1 + $0x360] ss:$8 sps:$4 sm:$0xff]   ;;  %v1382_v17 = vld [vmem:[%s1949_s1 + $0x354] ss:$8 sps:$4 sm:$0xff]  }
  0x1b   :  { %874 = vmatpush1.bf16.msra.mxu0 %v1309_v26  ;;  %v1377_v18 = vld [vmem:[%s1949_s1 + $0x250] ss:$8 sps:$4 sm:$0xff]   ;;  %v1385_v20 = vld [vmem:[%s1949_s1 + $0x244] ss:$8 sps:$4 sm:$0xff]   ;;  %v1383_v22 = vld [vmem:[%s1949_s1 + $0x240] ss:$8 sps:$4 sm:$0xff]  }
  0x1c   :  { %925 = vmatpush1.bf16.msra.mxu1 %v1310_v27  ;;  %875 = vmatprep.subr.bf16.mxu0 %v1311_v28  ;;  %v1380_v19 = vld [vmem:[%s1949_s1 + $0x350] ss:$8 sps:$4 sm:$0xff]   ;;  %v1388_v21 = vld [vmem:[%s1949_s1 + $0x344] ss:$8 sps:$4 sm:$0xff]   ;;  %v1386_v23 = vld [vmem:[%s1949_s1 + $0x340] ss:$8 sps:$4 sm:$0xff]  }
  0x1d   :  { %926 = vmatprep.subr.bf16.mxu1 %v1313_v29  ;;  %v1391_v24 = vld [vmem:[%s1949_s1 + $0x234] ss:$8 sps:$4 sm:$0xff]   ;;  %v21_v26 = vld [vmem:[%s1950_s0 + $0x40] sm:$0xff]  ;;  %v22_v29 = vld [vmem:[%s1950_s0 + $0x48] sm:$0xff] }
  0x1e   :  { %v1394_v25 = vld [vmem:[%s1949_s1 + $0x334] ss:$8 sps:$4 sm:$0xff]   ;;  %v1134_v27 = vcombine.high %v21_v26, %v21_v26  ;;  %v1133_v28 = vcombine.low %v21_v26, %v21_v26  ;;  %v1412_v48 = vld [vmem:[%s1949_s1 + $0x304] ss:$8 sps:$4 sm:$0xff]   ;;  %v1407_v50 = vld [vmem:[%s1949_s1 + $0x200] ss:$8 sps:$4 sm:$0xff]  }
  0x1f   :  { %876 = vmatpush1.bf16.msra.mxu0 %v1315_v30  ;;  %v1389_v30 = vld [vmem:[%s1949_s1 + $0x230] ss:$8 sps:$4 sm:$0xff]   ;;  %v1410_v51 = vld [vmem:[%s1949_s1 + $0x300] ss:$8 sps:$4 sm:$0xff]   ;;  %v1418_v53 = vld [vmem:[%s1949_s1 + $0x3f4] ss:$8 sps:$4 sm:$0xff]  }
  0x20   :  { %927 = vmatpush1.bf16.msra.mxu1 %v1316_v31  ;;  %877 = vmatprep.subr.bf16.mxu0 %v1317_v32  ;;  %v1392_v31 = vld [vmem:[%s1949_s1 + $0x330] ss:$8 sps:$4 sm:$0xff]   ;;  %v1136_v32 = vcombine.high %v22_v29, %v22_v29 }
  0x21   :  { %928 = vmatprep.subr.bf16.mxu1 %v1319_v33  ;;  %v1135_v33 = vcombine.low %v22_v29, %v22_v29  ;;  %v1416_v55 = vld [vmem:[%s1949_s1 + $0x3f0] ss:$8 sps:$4 sm:$0xff]  }
  0x23   :  { %878 = vmatpush2.bf16.msra.mxu0 %v1321_v34  ;;  %v1397_v34 = vld [vmem:[%s1949_s1 + $0x224] ss:$8 sps:$4 sm:$0xff]  }
  0x24   :  { %929 = vmatpush2.bf16.msra.mxu1 %v1322_v35  ;;  %879 = vmatprep.subr.bf16.mxu0 %v1323_v36  ;;  %v1400_v35 = vld [vmem:[%s1949_s1 + $0x324] ss:$8 sps:$4 sm:$0xff]   ;;  %v1395_v36 = vld [vmem:[%s1949_s1 + $0x220] ss:$8 sps:$4 sm:$0xff]  }
  0x25   :  { %930 = vmatprep.subr.bf16.mxu1 %v1325_v37  ;;  %v1398_v37 = vld [vmem:[%s1949_s1 + $0x320] ss:$8 sps:$4 sm:$0xff]  }
  0x27   :  { %880 = vmatpush2.bf16.msra.mxu0 %v1327_v38  ;;  %v1403_v38 = vld [vmem:[%s1949_s1 + $0x214] ss:$8 sps:$4 sm:$0xff]  }
  0x28   :  { %931 = vmatpush2.bf16.msra.mxu1 %v1328_v39  ;;  %881 = vmatprep.subr.bf16.mxu0 %v1329_v40  ;;  %v1406_v39 = vld [vmem:[%s1949_s1 + $0x314] ss:$8 sps:$4 sm:$0xff]   ;;  %v1401_v40 = vld [vmem:[%s1949_s1 + $0x210] ss:$8 sps:$4 sm:$0xff]  }
  0x29   :  { %932 = vmatprep.subr.bf16.mxu1 %v1331_v41  ;;  %v1783_v41 = vld [vmem:[%s1950_s0 + $0x10] sm:$0xff] }
  0x2b   :  { %882 = vmatpush2.bf16.msra.mxu0 %v1333_v42  ;;  %v1788_v42 = vld [vmem:[%s1950_s0 + $0x30] sm:$0xff] }
  0x2c   :  { %933 = vmatpush2.bf16.msra.mxu1 %v1334_v43  ;;  %883 = vmatprep.subr.bf16.mxu0 %v1335_v44  ;;  %v1404_v43 = vld [vmem:[%s1949_s1 + $0x310] ss:$8 sps:$4 sm:$0xff]   ;;  %v1130_v44 = vcombine.high %v1783_v41, %v1788_v42 }
  0x2d   :  { %934 = vmatprep.subr.bf16.mxu1 %v1337_v45  ;;  %v1798_v45 = vld [vmem:[%s1950_s0 + $0x18] sm:$0xff] }
  0x2f   :  { %884 = vmatpush2.bf16.msra.mxu0 %v1339_v46  ;;  %v1803_v46 = vld [vmem:[%s1950_s0 + $0x38] sm:$0xff] }
  0x30   :  { %935 = vmatpush2.bf16.msra.mxu1 %v1340_v47  ;;  %885 = vmatprep.subr.bf16.mxu0 %v1341_v52  ;;  %v1409_v47 = vld [vmem:[%s1949_s1 + $0x204] ss:$8 sps:$4 sm:$0xff]   ;;  %v1132_v49 = vcombine.high %v1798_v45, %v1803_v46  ;;  %v1415_v52 = vld [vmem:[%s1949_s1 + $0x2f4] ss:$8 sps:$4 sm:$0xff]  }
  0x31   :  { %936 = vmatprep.subr.bf16.mxu1 %v1343_v54  ;;  %v1413_v54 = vld [vmem:[%s1949_s1 + $0x2f0] ss:$8 sps:$4 sm:$0xff]  }
  0x33   :  { %886 = vmatpush2.bf16.msra.mxu0 %v1345_v56  ;;  %v1421_v56 = vld [vmem:[%s1949_s1 + $0x2e4] ss:$8 sps:$4 sm:$0xff]  }
  0x34   :  { %937 = vmatpush2.bf16.msra.mxu1 %v1346_v57  ;;  %887 = vmatprep.subr.bf16.mxu0 %v1347_v58  ;;  %v1424_v57 = vld [vmem:[%s1949_s1 + $0x3e4] ss:$8 sps:$4 sm:$0xff]   ;;  %v1419_v58 = vld [vmem:[%s1949_s1 + $0x2e0] ss:$8 sps:$4 sm:$0xff]  }
  0x35   :  { %938 = vmatprep.subr.bf16.mxu1 %v1349_v59  ;;  %v1422_v59 = vld [vmem:[%s1949_s1 + $0x3e0] ss:$8 sps:$4 sm:$0xff]  }
  0x37   :  { %888 = vmatpush2.bf16.msra.mxu0 %v1351_v60  ;;  %v1427_v60 = vld [vmem:[%s1949_s1 + $0x2d4] ss:$8 sps:$4 sm:$0xff]  }
  0x38   :  { %939 = vmatpush2.bf16.msra.mxu1 %v1352_v61  ;;  %889 = vmatprep.subr.bf16.mxu0 %v1353_v62  ;;  %v1430_v61 = vld [vmem:[%s1949_s1 + $0x3d4] ss:$8 sps:$4 sm:$0xff]   ;;  %v1425_v62 = vld [vmem:[%s1949_s1 + $0x2d0] ss:$8 sps:$4 sm:$0xff]  }
  0x39   :  { %940 = vmatprep.subr.bf16.mxu1 %v1355_v63  ;;  %v1428_v63 = vld [vmem:[%s1949_s1 + $0x3d0] ss:$8 sps:$4 sm:$0xff]  }
  0x3b   :  { %890 = vmatpush2.bf16.msra.mxu0 %v1357_v0  ;;  %v1433_v0 = vld [vmem:[%s1949_s1 + $0x2c4] ss:$8 sps:$4 sm:$0xff]  }
  0x3c   :  { %941 = vmatpush2.bf16.msra.mxu1 %v1358_v1  ;;  %891 = vmatprep.subr.bf16.mxu0 %v1359_v2  ;;  %v1436_v1 = vld [vmem:[%s1949_s1 + $0x3c4] ss:$8 sps:$4 sm:$0xff]   ;;  %v1431_v2 = vld [vmem:[%s1949_s1 + $0x2c0] ss:$8 sps:$4 sm:$0xff]  }
  0x3d   :  { %942 = vmatprep.subr.bf16.mxu1 %v1361_v3  ;;  %v1434_v3 = vld [vmem:[%s1949_s1 + $0x3c0] ss:$8 sps:$4 sm:$0xff]  }
  0x3f   :  { %892 = vmatpush2.bf16.msra.mxu0 %v1363_v4  ;;  %v1439_v4 = vld [vmem:[%s1949_s1 + $0x2b4] ss:$8 sps:$4 sm:$0xff]  }
  0x40   :  { %943 = vmatpush2.bf16.msra.mxu1 %v1364_v5  ;;  %963 = vmatprep.subr.bf16.mxu0 %v1367_v6  ;;  %v1442_v5 = vld [vmem:[%s1949_s1 + $0x3b4] ss:$8 sps:$4 sm:$0xff]   ;;  %v1437_v6 = vld [vmem:[%s1949_s1 + $0x2b0] ss:$8 sps:$4 sm:$0xff]  }
  0x41   :  { %1014 = vmatprep.subr.bf16.mxu1 %v1370_v7  ;;  %v1440_v7 = vld [vmem:[%s1949_s1 + $0x3b0] ss:$8 sps:$4 sm:$0xff]  }
  0x42   :  { %894 = vmatmul.mubr.bf16.vlgmr.msra.gmra.mxu0 %v1125_v8  ;;  %v1449_v8 = vld [vmem:[%s1949_s1 + $0x2a4] ss:$8 sps:$4 sm:$0xff]  }
  0x43   :  { %945 = vmatmul.mubr.bf16.vlgmr.msra.gmra.mxu1 %v1127_v9  ;;  %964 = vmatpush1.bf16.msra.mxu0 %v1365_v10  ;;  %v1452_v9 = vld [vmem:[%s1949_s1 + $0x3a4] ss:$8 sps:$4 sm:$0xff]   ;;  %v1447_v10 = vld [vmem:[%s1949_s1 + $0x2a0] ss:$8 sps:$4 sm:$0xff]  }
  0x44   :  { %1015 = vmatpush1.bf16.msra.mxu1 %v1368_v11  ;;  %965 = vmatprep.subr.bf16.mxu0 %v1373_v12  ;;  %v1450_v11 = vld [vmem:[%s1949_s1 + $0x3a0] ss:$8 sps:$4 sm:$0xff]   ;;  %v1455_v12 = vld [vmem:[%s1949_s1 + $0x294] ss:$8 sps:$4 sm:$0xff]  }
  0x45   :  { %1016 = vmatprep.subr.bf16.mxu1 %v1376_v13  ;;  %903 = vmatprep.mubr.bf16.mxu0 %v1134_v27  ;;  %v1458_v13 = vld [vmem:[%s1949_s1 + $0x394] ss:$8 sps:$4 sm:$0xff]  }
  0x46   :  { %954 = vmatprep.mubr.bf16.mxu1 %v1136_v32 }
  0x47   :  { %966 = vmatpush1.bf16.msra.mxu0 %v1371_v14  ;;  %v1453_v14 = vld [vmem:[%s1949_s1 + $0x290] ss:$8 sps:$4 sm:$0xff]  }
  0x48   :  { %1017 = vmatpush1.bf16.msra.mxu1 %v1374_v15  ;;  %967 = vmatprep.subr.bf16.mxu0 %v1379_v16  ;;  %v1456_v15 = vld [vmem:[%s1949_s1 + $0x390] ss:$8 sps:$4 sm:$0xff]   ;;  %v1461_v16 = vld [vmem:[%s1949_s1 + $0x284] ss:$8 sps:$4 sm:$0xff]  }
  0x49   :  { %1018 = vmatprep.subr.bf16.mxu1 %v1382_v17  ;;  %v1464_v17 = vld [vmem:[%s1949_s1 + $0x384] ss:$8 sps:$4 sm:$0xff]  }
  0x4a   :  { %904 = vmatmul.mubr.bf16.gmra.mxu0 %v1133_v28 }
  0x4b   :  { %968 = vmatpush1.bf16.msra.mxu0 %v1377_v18  ;;  %955 = vmatmul.mubr.bf16.gmra.mxu1 %v1135_v33  ;;  %v1459_v18 = vld [vmem:[%s1949_s1 + $0x280] ss:$8 sps:$4 sm:$0xff]  }
  0x4c   :  { %1019 = vmatpush1.bf16.msra.mxu1 %v1380_v19  ;;  %969 = vmatprep.subr.bf16.mxu0 %v1385_v20  ;;  %v1462_v19 = vld [vmem:[%s1949_s1 + $0x380] ss:$8 sps:$4 sm:$0xff]   ;;  %v23_v20 = vld [vmem:[%s1950_s0 + $0x50] sm:$0xff] }
  0x4d   :  { %1020 = vmatprep.subr.bf16.mxu1 %v1388_v21  ;;  %995 = vmatprep.mubr.bf16.mxu0 %v1130_v44  ;;  %v24_v21 = vld [vmem:[%s1950_s0 + $0x58] sm:$0xff]  ;;  %v1137_v26 = vcombine.low %v23_v20, %v23_v20 }
  0x4e   :  { %1046 = vmatprep.mubr.bf16.mxu1 %v1132_v49  ;;  %v1139_v27 = vcombine.low %v24_v21, %v24_v21 }
  0x4f   :  { %970 = vmatpush1.bf16.msra.mxu0 %v1383_v22  ;;  %v1129_v22 = vcombine.low %v1783_v41, %v1788_v42 }
  0x50   :  { %1021 = vmatpush1.bf16.msra.mxu1 %v1386_v23  ;;  %971 = vmatprep.subr.bf16.mxu0 %v1391_v24  ;;  %v1131_v23 = vcombine.low %v1798_v45, %v1803_v46  ;;  %v1138_v24 = vcombine.high %v23_v20, %v23_v20 }
  0x51   :  { %1022 = vmatprep.subr.bf16.mxu1 %v1394_v25  ;;  %v1140_v25 = vcombine.high %v24_v21, %v24_v21 }
  0x53   :  { %972 = vmatpush1.bf16.msra.mxu0 %v1389_v30 }
  0x54   :  { %1023 = vmatpush1.bf16.msra.mxu1 %v1392_v31  ;;  %973 = vmatprep.subr.bf16.mxu0 %v1397_v34 }
  0x55   :  { %1024 = vmatprep.subr.bf16.mxu1 %v1400_v35 }
  0x57   :  { %974 = vmatpush1.bf16.msra.mxu0 %v1395_v36 }
  0x58   :  { %1025 = vmatpush1.bf16.msra.mxu1 %v1398_v37  ;;  %975 = vmatprep.subr.bf16.mxu0 %v1403_v38 }
  0x59   :  { %1026 = vmatprep.subr.bf16.mxu1 %v1406_v39 }
  0x5b   :  { %976 = vmatpush1.bf16.msra.mxu0 %v1401_v40 }
  0x5c   :  { %1027 = vmatpush1.bf16.msra.mxu1 %v1404_v43  ;;  %977 = vmatprep.subr.bf16.mxu0 %v1409_v47 }
  0x5d   :  { %1028 = vmatprep.subr.bf16.mxu1 %v1412_v48 }
  0x5f   :  { %978 = vmatpush1.bf16.msra.mxu0 %v1407_v50 }
  0x60   :  { %1029 = vmatpush1.bf16.msra.mxu1 %v1410_v51  ;;  %979 = vmatprep.subr.bf16.mxu0 %v1415_v52 }
  0x61   :  { %1030 = vmatprep.subr.bf16.mxu1 %v1418_v53 }
  0x63   :  { %980 = vmatpush2.bf16.msra.mxu0 %v1413_v54 }
  0x64   :  { %1031 = vmatpush2.bf16.msra.mxu1 %v1416_v55  ;;  %981 = vmatprep.subr.bf16.mxu0 %v1421_v56 }
  0x65   :  { %1032 = vmatprep.subr.bf16.mxu1 %v1424_v57 }
  0x67   :  { %982 = vmatpush2.bf16.msra.mxu0 %v1419_v58 }
  0x68   :  { %1033 = vmatpush2.bf16.msra.mxu1 %v1422_v59  ;;  %983 = vmatprep.subr.bf16.mxu0 %v1427_v60 }
  0x69   :  { %1034 = vmatprep.subr.bf16.mxu1 %v1430_v61 }
  0x6b   :  { %984 = vmatpush2.bf16.msra.mxu0 %v1425_v62 }
  0x6c   :  { %1035 = vmatpush2.bf16.msra.mxu1 %v1428_v63  ;;  %985 = vmatprep.subr.bf16.mxu0 %v1433_v0 }
  0x6d   :  { %1036 = vmatprep.subr.bf16.mxu1 %v1436_v1 }
  0x6f   :  { %986 = vmatpush2.bf16.msra.mxu0 %v1431_v2 }
  0x70   :  { %1037 = vmatpush2.bf16.msra.mxu1 %v1434_v3  ;;  %987 = vmatprep.subr.bf16.mxu0 %v1439_v4 }
  0x71   :  { %1038 = vmatprep.subr.bf16.mxu1 %v1442_v5 }
  0x73   :  { %988 = vmatpush2.bf16.msra.mxu0 %v1437_v6 }
  0x74   :  { %1039 = vmatpush2.bf16.msra.mxu1 %v1440_v7  ;;  %989 = vmatprep.subr.bf16.mxu0 %v1449_v8 }
  0x75   :  { %1040 = vmatprep.subr.bf16.mxu1 %v1452_v9 }
  0x77   :  { %990 = vmatpush2.bf16.msra.mxu0 %v1447_v10 }
  0x78   :  { %1041 = vmatpush2.bf16.msra.mxu1 %v1450_v11  ;;  %991 = vmatprep.subr.bf16.mxu0 %v1455_v12 }
  0x79   :  { %1042 = vmatprep.subr.bf16.mxu1 %v1458_v13 }
  0x7b   :  { %992 = vmatpush2.bf16.msra.mxu0 %v1453_v14 }
  0x7c   :  { %1043 = vmatpush2.bf16.msra.mxu1 %v1456_v15  ;;  %993 = vmatprep.subr.bf16.mxu0 %v1461_v16 }
  0x7d   :  { %1044 = vmatprep.subr.bf16.mxu1 %v1464_v17 }
  0x7f   :  { %994 = vmatpush2.bf16.msra.mxu0 %v1459_v18 }
  0x80   :  { %1045 = vmatpush2.bf16.msra.mxu1 %v1462_v19 }
  0x82   :  { %996 = vmatmul.mubr.bf16.vlgmr.msra.gmra.mxu0 %v1129_v22 }
  0x83   :  { %1047 = vmatmul.mubr.bf16.vlgmr.msra.gmra.mxu1 %v1131_v23  ;;  %1005 = vmatprep.mubr.bf16.mxu0 %v1138_v24 }
  0x84   :  { %1056 = vmatprep.mubr.bf16.mxu1 %v1140_v25 }
  0x8a   :  { %1006 = vmatmul.mubr.bf16.gmra.mxu0 %v1137_v26 }
  0x8b   :  { %1057 = vmatmul.mubr.bf16.gmra.mxu1 %v1139_v27 }
 0x102   :  { %v895_v28 = vpop.f32.mrf.mxu0 }
 0x103   :  { %v946_v29 = vpop.f32.mrf.mxu1 }
 0x104   :  { %v897_v30 = vpop.f32.mrf.mxu0  ;;  %v947_v44 = vadd.f32 %v946_v29, %v895_v28 }
 0x105   :  { %v948_v31 = vpop.f32.mrf.mxu1 }
 0x106   :  { %v899_v32 = vpop.f32.mrf.mxu0  ;;  %v949_v47 = vadd.f32 %v948_v31, %v897_v30 }
 0x107   :  { %v950_v33 = vpop.f32.mrf.mxu1 }
 0x108   :  { %v901_v34 = vpop.f32.mrf.mxu0  ;;  %v951_v51 = vadd.f32 %v950_v33, %v899_v32 }
 0x109   :  { %v952_v35 = vpop.f32.mrf.mxu1 }
 0x10a   :  { %v905_v36 = vpop.f32.mrf.mxu0  ;;  %v953_v56 = vadd.f32 %v952_v35, %v901_v34 }
 0x10b   :  { %v956_v37 = vpop.f32.mrf.mxu1 }
 0x10c   :  { %v907_v38 = vpop.f32.mrf.mxu0  ;;  %v957_v61 = vadd.f32 %v956_v37, %v905_v36 }
 0x10d   :  { %v958_v39 = vpop.f32.mrf.mxu1 }
 0x10e   :  { %v909_v40 = vpop.f32.mrf.mxu0  ;;  %v959_v5 = vadd.f32 %v958_v39, %v907_v38 }
 0x10f   :  { %v960_v41 = vpop.f32.mrf.mxu1 }
 0x110   :  { %v910_v42 = vpop.f32.mrf.mxu0 }
 0x111   :  { %v961_v43 = vpop.f32.mrf.mxu1 }
 0x142   :  { %v997_v45 = vpop.f32.mrf.mxu0 }
 0x143   :  { %v1048_v46 = vpop.f32.mrf.mxu1  ;;  %v998_v48 = vadd.f32 %v997_v45, %v947_v44 }
 0x144   :  { %v999_v49 = vpop.f32.mrf.mxu0 }
 0x145   :  { %v1050_v50 = vpop.f32.mrf.mxu1  ;;  %v1049_v52 = vadd.f32 %v1048_v46, %v998_v48  ;;  %v1000_v53 = vadd.f32 %v999_v49, %v949_v47 }
 0x146   :  { %v1001_v54 = vpop.f32.mrf.mxu0 }
 0x147   :  { %v1052_v55 = vpop.f32.mrf.mxu1  ;;  %1065 = vst [vmem:[%s1951_s2] sm:$0xff] %v1049_v52  ;;  %v1051_v57 = vadd.f32 %v1050_v50, %v1000_v53  ;;  %v1002_v58 = vadd.f32 %v1001_v54, %v951_v51  ;;  %v1087_v8 = vmul.f32 %v1049_v52, %v1049_v52 }
 0x148   :  { %v1003_v59 = vpop.f32.mrf.mxu0 }
 0x149   :  { %v1054_v60 = vpop.f32.mrf.mxu1  ;;  %1066 = vst [vmem:[%s1951_s2 + $0x8] sm:$0xff] %v1051_v57  ;;  %v1053_v62 = vadd.f32 %v1052_v55, %v1002_v58  ;;  %v1004_v63 = vadd.f32 %v1003_v59, %v953_v56  ;;  %v1088_v18 = vmul.f32 %v1051_v57, %v1051_v57 }
 0x14a   :  { %v1007_v0 = vpop.f32.mrf.mxu0 }
 0x14b   :  { %v1058_v1 = vpop.f32.mrf.mxu1  ;;  %1067 = vst [vmem:[%s1951_s2 + $0x10] sm:$0xff] %v1053_v62  ;;  %v1089_v2 = vmul.f32 %v1053_v62, %v1053_v62  ;;  %v1055_v3 = vadd.f32 %v1054_v60, %v1004_v63  ;;  %v1008_v4 = vadd.f32 %v1007_v0, %v957_v61  ;;  %v1071_v9 = vadd.f32 %v1053_v62, %v1049_v52 }
 0x14c   :  { %v1009_v6 = vpop.f32.mrf.mxu0 }
 0x14d   :  { %v1060_v7 = vpop.f32.mrf.mxu1  ;;  %1068 = vst [vmem:[%s1951_s2 + $0x18] sm:$0xff] %v1055_v3  ;;  %v1059_v10 = vadd.f32 %v1058_v1, %v1008_v4  ;;  %v1090_v11 = vmul.f32 %v1055_v3, %v1055_v3  ;;  %v1010_v12 = vadd.f32 %v1009_v6, %v959_v5  ;;  %v1093_v15 = vadd.f32 %v1089_v2, %v1087_v8 }
 0x14e   :  { %v1011_v13 = vpop.f32.mrf.mxu0  ;;  %v1079_v19 = vadd.f32 %v1055_v3, %v1051_v57 }
 0x14f   :  { %v1062_v14 = vpop.f32.mrf.mxu1  ;;  %1069 = vst [vmem:[%s1951_s2 + $0x20] sm:$0xff] %v1059_v10  ;;  %v1072_v16 = vadd.f32 %v1071_v9, %v1059_v10  ;;  %v1091_v17 = vmul.f32 %v1059_v10, %v1059_v10  ;;  %v1061_v20 = vadd.f32 %v1060_v7, %v1010_v12  ;;  %v1101_v25 = vadd.f32 %v1090_v11, %v1088_v18 }
 0x150   :  { %v1012_v21 = vpop.f32.mrf.mxu0 }
 0x151   :  { %v1063_v22 = vpop.f32.mrf.mxu1  ;;  %v1073_v23 = vrot.slane %v1072_v16, 4  ;;  %v1094_v24 = vadd.f32 %v1093_v15, %v1091_v17  ;;  %1070 = vst [vmem:[%s1951_s2 + $0x28] sm:$0xff] %v1061_v20  ;;  %v1080_v26 = vadd.f32 %v1079_v19, %v1061_v20  ;;  %v1092_v27 = vmul.f32 %v1061_v20, %v1061_v20 }
 0x153   :  { %v1074_v28 = vadd.f32 %v1073_v23, %v1072_v16  ;;  %v1095_v29 = vrot.slane %v1094_v24, 4  ;;  %v1081_v30 = vrot.slane %v1080_v26, 4  ;;  %v1102_v31 = vadd.f32 %v1101_v25, %v1092_v27 }
 0x155   :  { %v1075_v32 = vrot.slane %v1074_v28, 2  ;;  %v1096_v33 = vadd.f32 %v1095_v29, %v1094_v24  ;;  %v1082_v34 = vadd.f32 %v1081_v30, %v1080_v26  ;;  %v1103_v35 = vrot.slane %v1102_v31, 4 }
 0x157   :  { %v1076_v36 = vadd.f32 %v1075_v32, %v1074_v28  ;;  %v1097_v37 = vrot.slane %v1096_v33, 2  ;;  %v1083_v38 = vrot.slane %v1082_v34, 2  ;;  %v1104_v39 = vadd.f32 %v1103_v35, %v1102_v31 }
 0x159   :  { %v1077_v40 = vrot.slane %v1076_v36, 1  ;;  %v1098_v41 = vadd.f32 %v1097_v37, %v1096_v33  ;;  %v1084_v42 = vadd.f32 %v1083_v38, %v1082_v34  ;;  %v1105_v43 = vrot.slane %v1104_v39, 2 }
 0x15b   :  { %v1099_v44 = vrot.slane %v1098_v41, 1  ;;  %v1085_v45 = vrot.slane %v1084_v42, 1  ;;  %v1106_v46 = vadd.f32 %v1105_v43, %v1104_v39  ;;  %v1078_v47 = vadd.f32 %v1077_v40, %v1076_v36 }
 0x15d   :  { %v1100_v48 = vadd.f32 %v1099_v44, %v1098_v41  ;;  %v1107_v49 = vrot.slane %v1106_v46, 1  ;;  %v1086_v52 = vadd.f32 %v1085_v45, %v1084_v42 }
 0x15f   :  { %v1110_v50 = vsel %vm1109_vm0, %v1078_v47, %v1100_v48  ;;  %v1108_v53 = vadd.f32 %v1107_v49, %v1106_v46 }
 0x160   :  { %v1113_v51 = vsel %vm1112_vm1, %v1110_v50, 0.0 }
 0x161   :  { %1115 = vst [vmem:[%s1952_s3] sm:$0xff] %v1113_v51  ;;  %v1111_v54 = vsel %vm1109_vm0, %v1086_v52, %v1108_v53 }
 0x162   :  { %v1114_v55 = vsel %vm1112_vm1, %v1111_v54, 0.0 }
 0x163   :  { %1116 = vst [vmem:[%s1952_s3 + $0x8] sm:$0xff] %v1114_v55 }

// kernel: generator_forward.18
= control target key start
LH: loop header
LB: loop body
LE: loop exit
PB: predicated region body
PF: predicated region fallthrough
CT: control target
= control target key end

     0   :  { %vm603_vm0 = vcmask 1040384   ;;  %vm606_vm1 = vcmask 1041408   ;;  %s1065_s1 = inlined_call_operand.vmem [shape: bf16[512,256], index: 1, kind: input, shape index: {}]   ;;  %s1066_s0 = inlined_call_operand.vmem [shape: bf16[32,512], index: 0, kind: input, shape index: {}]   ;;  %s1067_s2 = inlined_call_operand.vmem [shape: f32[32,256], index: 2, kind: output, shape index: {0}]   ;;  %s1068_s3 = inlined_call_operand.vmem [shape: f32[8,256], index: 3, kind: output, shape index: {1}]  }
   0x1   :  { %v691_v0 = vld [vmem:[%s1065_s1 + $0x74] ss:$8 sps:$4 sm:$0xff]   ;;  %v695_v2 = vld [vmem:[%s1065_s1 + $0x70] ss:$8 sps:$4 sm:$0xff]   ;;  %v697_v4 = vld [vmem:[%s1065_s1 + $0x64] ss:$8 sps:$4 sm:$0xff]  }
   0x2   :  { %v693_v1 = vld [vmem:[%s1065_s1 + $0x174] ss:$8 sps:$4 sm:$0xff]   ;;  %445 = vmatprep.subr.bf16.mxu0 %v691_v0  ;;  %v696_v3 = vld [vmem:[%s1065_s1 + $0x170] ss:$8 sps:$4 sm:$0xff]   ;;  %v699_v5 = vld [vmem:[%s1065_s1 + $0x164] ss:$8 sps:$4 sm:$0xff]  }
   0x3   :  { %498 = vmatprep.subr.bf16.mxu1 %v693_v1  ;;  %446 = vmatpush1.bf16.msra.mxu0 %v695_v2  ;;  %v701_v6 = vld [vmem:[%s1065_s1 + $0x60] ss:$8 sps:$4 sm:$0xff]   ;;  %v703_v8 = vld [vmem:[%s1065_s1 + $0x54] ss:$8 sps:$4 sm:$0xff]   ;;  %v707_v10 = vld [vmem:[%s1065_s1 + $0x50] ss:$8 sps:$4 sm:$0xff]  }
   0x4   :  { %499 = vmatpush1.bf16.msra.mxu1 %v696_v3  ;;  %447 = vmatprep.subr.bf16.mxu0 %v697_v4  ;;  %v702_v7 = vld [vmem:[%s1065_s1 + $0x160] ss:$8 sps:$4 sm:$0xff]   ;;  %v705_v9 = vld [vmem:[%s1065_s1 + $0x154] ss:$8 sps:$4 sm:$0xff]   ;;  %v708_v11 = vld [vmem:[%s1065_s1 + $0x150] ss:$8 sps:$4 sm:$0xff]  }
   0x5   :  { %500 = vmatprep.subr.bf16.mxu1 %v699_v5  ;;  %v709_v12 = vld [vmem:[%s1065_s1 + $0x44] ss:$8 sps:$4 sm:$0xff]   ;;  %v713_v14 = vld [vmem:[%s1065_s1 + $0x40] ss:$8 sps:$4 sm:$0xff]   ;;  %v715_v16 = vld [vmem:[%s1065_s1 + $0x34] ss:$8 sps:$4 sm:$0xff]  }
   0x6   :  { %v711_v13 = vld [vmem:[%s1065_s1 + $0x144] ss:$8 sps:$4 sm:$0xff]   ;;  %v714_v15 = vld [vmem:[%s1065_s1 + $0x140] ss:$8 sps:$4 sm:$0xff]   ;;  %v717_v17 = vld [vmem:[%s1065_s1 + $0x134] ss:$8 sps:$4 sm:$0xff]  }
   0x7   :  { %448 = vmatpush1.bf16.msra.mxu0 %v701_v6  ;;  %v719_v18 = vld [vmem:[%s1065_s1 + $0x30] ss:$8 sps:$4 sm:$0xff]   ;;  %v721_v20 = vld [vmem:[%s1065_s1 + $0x24] ss:$8 sps:$4 sm:$0xff]   ;;  %v725_v22 = vld [vmem:[%s1065_s1 + $0x20] ss:$8 sps:$4 sm:$0xff]  }
   0x8   :  { %501 = vmatpush1.bf16.msra.mxu1 %v702_v7  ;;  %449 = vmatprep.subr.bf16.mxu0 %v703_v8  ;;  %v720_v19 = vld [vmem:[%s1065_s1 + $0x130] ss:$8 sps:$4 sm:$0xff]   ;;  %v723_v21 = vld [vmem:[%s1065_s1 + $0x124] ss:$8 sps:$4 sm:$0xff]   ;;  %v726_v23 = vld [vmem:[%s1065_s1 + $0x120] ss:$8 sps:$4 sm:$0xff]  }
   0x9   :  { %502 = vmatprep.subr.bf16.mxu1 %v705_v9  ;;  %v727_v24 = vld [vmem:[%s1065_s1 + $0x14] ss:$8 sps:$4 sm:$0xff]   ;;  %v731_v26 = vld [vmem:[%s1065_s1 + $0x10] ss:$8 sps:$4 sm:$0xff]   ;;  %v733_v28 = vld [vmem:[%s1065_s1 + $0x4] ss:$8 sps:$4 sm:$0xff]  }
   0xa   :  { %v729_v25 = vld [vmem:[%s1065_s1 + $0x114] ss:$8 sps:$4 sm:$0xff]   ;;  %v732_v27 = vld [vmem:[%s1065_s1 + $0x110] ss:$8 sps:$4 sm:$0xff]   ;;  %v735_v29 = vld [vmem:[%s1065_s1 + $0x104] ss:$8 sps:$4 sm:$0xff]  }
   0xb   :  { %450 = vmatpush1.bf16.msra.mxu0 %v707_v10  ;;  %v737_v30 = vld [vmem:[%s1065_s1] ss:$8 sps:$4 sm:$0xff]   ;;  %v739_v32 = vld [vmem:[%s1065_s1 + $0xf4] ss:$8 sps:$4 sm:$0xff]   ;;  %v743_v34 = vld [vmem:[%s1065_s1 + $0xf0] ss:$8 sps:$4 sm:$0xff]  }
   0xc   :  { %503 = vmatpush1.bf16.msra.mxu1 %v708_v11  ;;  %451 = vmatprep.subr.bf16.mxu0 %v709_v12  ;;  %v738_v31 = vld [vmem:[%s1065_s1 + $0x100] ss:$8 sps:$4 sm:$0xff]   ;;  %v741_v33 = vld [vmem:[%s1065_s1 + $0x1f4] ss:$8 sps:$4 sm:$0xff]   ;;  %v744_v35 = vld [vmem:[%s1065_s1 + $0x1f0] ss:$8 sps:$4 sm:$0xff]  }
   0xd   :  { %504 = vmatprep.subr.bf16.mxu1 %v711_v13  ;;  %v745_v36 = vld [vmem:[%s1065_s1 + $0xe4] ss:$8 sps:$4 sm:$0xff]   ;;  %v749_v38 = vld [vmem:[%s1065_s1 + $0xe0] ss:$8 sps:$4 sm:$0xff]   ;;  %v751_v40 = vld [vmem:[%s1065_s1 + $0xd4] ss:$8 sps:$4 sm:$0xff]  }
   0xe   :  { %v747_v37 = vld [vmem:[%s1065_s1 + $0x1e4] ss:$8 sps:$4 sm:$0xff]   ;;  %v750_v39 = vld [vmem:[%s1065_s1 + $0x1e0] ss:$8 sps:$4 sm:$0xff]   ;;  %v753_v41 = vld [vmem:[%s1065_s1 + $0x1d4] ss:$8 sps:$4 sm:$0xff]  }
   0xf   :  { %452 = vmatpush1.bf16.msra.mxu0 %v713_v14  ;;  %v755_v42 = vld [vmem:[%s1065_s1 + $0xd0] ss:$8 sps:$4 sm:$0xff]   ;;  %v757_v44 = vld [vmem:[%s1065_s1 + $0xc4] ss:$8 sps:$4 sm:$0xff]   ;;  %v761_v46 = vld [vmem:[%s1065_s1 + $0xc0] ss:$8 sps:$4 sm:$0xff]  }
  0x10   :  { %505 = vmatpush1.bf16.msra.mxu1 %v714_v15  ;;  %453 = vmatprep.subr.bf16.mxu0 %v715_v16  ;;  %v756_v43 = vld [vmem:[%s1065_s1 + $0x1d0] ss:$8 sps:$4 sm:$0xff]   ;;  %v759_v45 = vld [vmem:[%s1065_s1 + $0x1c4] ss:$8 sps:$4 sm:$0xff]   ;;  %v762_v47 = vld [vmem:[%s1065_s1 + $0x1c0] ss:$8 sps:$4 sm:$0xff]  }
  0x11   :  { %506 = vmatprep.subr.bf16.mxu1 %v717_v17  ;;  %v763_v48 = vld [vmem:[%s1065_s1 + $0xb4] ss:$8 sps:$4 sm:$0xff]   ;;  %v767_v52 = vld [vmem:[%s1065_s1 + $0xb0] ss:$8 sps:$4 sm:$0xff]   ;;  %v769_v54 = vld [vmem:[%s1065_s1 + $0xa4] ss:$8 sps:$4 sm:$0xff]  }
  0x12   :  { %v789_v49 = vld [vmem:[%s1066_s0 + $0x4] ss:$16 sps:$4 sm:$0xff]   ;;  %v792_v51 = vld [vmem:[%s1066_s0 + $0xc] ss:$16 sps:$4 sm:$0xff]   ;;  %v768_v53 = vld [vmem:[%s1065_s1 + $0x1b0] ss:$8 sps:$4 sm:$0xff]  }
  0x13   :  { %454 = vmatpush1.bf16.msra.mxu0 %v719_v18  ;;  %v765_v50 = vld [vmem:[%s1065_s1 + $0x1b4] ss:$8 sps:$4 sm:$0xff]   ;;  %477 = vmatprep.mubr.bf16.mxu0 %v789_v49  ;;  %v771_v55 = vld [vmem:[%s1065_s1 + $0x1a4] ss:$8 sps:$4 sm:$0xff]   ;;  %v773_v56 = vld [vmem:[%s1065_s1 + $0xa0] ss:$8 sps:$4 sm:$0xff]  }
  0x14   :  { %507 = vmatpush1.bf16.msra.mxu1 %v720_v19  ;;  %455 = vmatprep.subr.bf16.mxu0 %v721_v20  ;;  %v774_v57 = vld [vmem:[%s1065_s1 + $0x1a0] ss:$8 sps:$4 sm:$0xff]   ;;  %v775_v58 = vld [vmem:[%s1065_s1 + $0x94] ss:$8 sps:$4 sm:$0xff]   ;;  %v779_v60 = vld [vmem:[%s1065_s1 + $0x90] ss:$8 sps:$4 sm:$0xff]  }
  0x15   :  { %508 = vmatprep.subr.bf16.mxu1 %v723_v21  ;;  %530 = vmatprep.mubr.bf16.mxu1 %v792_v51  ;;  %v777_v59 = vld [vmem:[%s1065_s1 + $0x194] ss:$8 sps:$4 sm:$0xff]   ;;  %v780_v61 = vld [vmem:[%s1065_s1 + $0x190] ss:$8 sps:$4 sm:$0xff]   ;;  %v781_v62 = vld [vmem:[%s1065_s1 + $0x84] ss:$8 sps:$4 sm:$0xff]  }
  0x16   :  { %v783_v63 = vld [vmem:[%s1065_s1 + $0x184] ss:$8 sps:$4 sm:$0xff]   ;;  %v785_v0 = vld [vmem:[%s1065_s1 + $0x80] ss:$8 sps:$4 sm:$0xff]  }
  0x17   :  { %456 = vmatpush1.bf16.msra.mxu0 %v725_v22  ;;  %v786_v1 = vld [vmem:[%s1065_s1 + $0x180] ss:$8 sps:$4 sm:$0xff]   ;;  %v793_v4 = vld [vmem:[%s1066_s0 + $0x24] ss:$16 sps:$4 sm:$0xff]   ;;  %v795_v5 = vld [vmem:[%s1066_s0 + $0x2c] ss:$16 sps:$4 sm:$0xff]  }
  0x18   :  { %509 = vmatpush1.bf16.msra.mxu1 %v726_v23  ;;  %457 = vmatprep.subr.bf16.mxu0 %v727_v24  ;;  %v787_v2 = vld [vmem:[%s1066_s0] ss:$16 sps:$4 sm:$0xff]   ;;  %v790_v3 = vld [vmem:[%s1066_s0 + $0x8] ss:$16 sps:$4 sm:$0xff]  }
  0x19   :  { %510 = vmatprep.subr.bf16.mxu1 %v729_v25  ;;  %v797_v6 = vld [vmem:[%s1066_s0 + $0x20] ss:$16 sps:$4 sm:$0xff]   ;;  %v798_v7 = vld [vmem:[%s1066_s0 + $0x28] ss:$16 sps:$4 sm:$0xff]  }
  0x1b   :  { %458 = vmatpush1.bf16.msra.mxu0 %v731_v26 }
  0x1c   :  { %511 = vmatpush1.bf16.msra.mxu1 %v732_v27  ;;  %459 = vmatprep.subr.bf16.mxu0 %v733_v28 }
  0x1d   :  { %512 = vmatprep.subr.bf16.mxu1 %v735_v29 }
  0x1f   :  { %460 = vmatpush1.bf16.msra.mxu0 %v737_v30 }
  0x20   :  { %513 = vmatpush1.bf16.msra.mxu1 %v738_v31  ;;  %461 = vmatprep.subr.bf16.mxu0 %v739_v32 }
  0x21   :  { %514 = vmatprep.subr.bf16.mxu1 %v741_v33 }
  0x23   :  { %462 = vmatpush2.bf16.msra.mxu0 %v743_v34 }
  0x24   :  { %515 = vmatpush2.bf16.msra.mxu1 %v744_v35  ;;  %463 = vmatprep.subr.bf16.mxu0 %v745_v36 }
  0x25   :  { %516 = vmatprep.subr.bf16.mxu1 %v747_v37 }
  0x27   :  { %464 = vmatpush2.bf16.msra.mxu0 %v749_v38 }
  0x28   :  { %517 = vmatpush2.bf16.msra.mxu1 %v750_v39  ;;  %465 = vmatprep.subr.bf16.mxu0 %v751_v40 }
  0x29   :  { %518 = vmatprep.subr.bf16.mxu1 %v753_v41 }
  0x2b   :  { %466 = vmatpush2.bf16.msra.mxu0 %v755_v42 }
  0x2c   :  { %519 = vmatpush2.bf16.msra.mxu1 %v756_v43  ;;  %467 = vmatprep.subr.bf16.mxu0 %v757_v44 }
  0x2d   :  { %520 = vmatprep.subr.bf16.mxu1 %v759_v45 }
  0x2f   :  { %468 = vmatpush2.bf16.msra.mxu0 %v761_v46 }
  0x30   :  { %521 = vmatpush2.bf16.msra.mxu1 %v762_v47  ;;  %469 = vmatprep.subr.bf16.mxu0 %v763_v48 }
  0x31   :  { %522 = vmatprep.subr.bf16.mxu1 %v765_v50 }
  0x33   :  { %470 = vmatpush2.bf16.msra.mxu0 %v767_v52 }
  0x34   :  { %523 = vmatpush2.bf16.msra.mxu1 %v768_v53  ;;  %471 = vmatprep.subr.bf16.mxu0 %v769_v54 }
  0x35   :  { %524 = vmatprep.subr.bf16.mxu1 %v771_v55 }
  0x37   :  { %472 = vmatpush2.bf16.msra.mxu0 %v773_v56 }
  0x38   :  { %525 = vmatpush2.bf16.msra.mxu1 %v774_v57  ;;  %473 = vmatprep.subr.bf16.mxu0 %v775_v58 }
  0x39   :  { %526 = vmatprep.subr.bf16.mxu1 %v777_v59 }
  0x3b   :  { %474 = vmatpush2.bf16.msra.mxu0 %v779_v60 }
  0x3c   :  { %527 = vmatpush2.bf16.msra.mxu1 %v780_v61  ;;  %475 = vmatprep.subr.bf16.mxu0 %v781_v62 }
  0x3d   :  { %528 = vmatprep.subr.bf16.mxu1 %v783_v63 }
  0x3f   :  { %476 = vmatpush2.bf16.msra.mxu0 %v785_v0 }
  0x40   :  { %529 = vmatpush2.bf16.msra.mxu1 %v786_v1 }
  0x42   :  { %478 = vmatmul.mubr.bf16.vlgmr.msra.gmra.mxu0 %v787_v2 }
  0x43   :  { %531 = vmatmul.mubr.bf16.vlgmr.msra.gmra.mxu1 %v790_v3  ;;  %487 = vmatprep.mubr.bf16.mxu0 %v793_v4 }
  0x44   :  { %540 = vmatprep.mubr.bf16.mxu1 %v795_v5 }
  0x4a   :  { %488 = vmatmul.mubr.bf16.gmra.mxu0 %v797_v6 }
  0x4b   :  { %541 = vmatmul.mubr.bf16.gmra.mxu1 %v798_v7 }
 0x102   :  { %v479_v8 = vpop.f32.mrf.mxu0 }
 0x103   :  { %v532_v9 = vpop.f32.mrf.mxu1 }
 0x104   :  { %v533_v10 = vadd.f32 %v532_v9, %v479_v8  ;;  %v481_v11 = vpop.f32.mrf.mxu0 }
 0x105   :  { %v534_v12 = vpop.f32.mrf.mxu1 }
 0x106   :  { %551 = vst [vmem:[%s1067_s2] sm:$0xff] %v533_v10  ;;  %v535_v13 = vadd.f32 %v534_v12, %v481_v11  ;;  %v483_v14 = vpop.f32.mrf.mxu0  ;;  %v577_v24 = vmul.f32 %v533_v10, %v533_v10 }
 0x107   :  { %v536_v15 = vpop.f32.mrf.mxu1 }
 0x108   :  { %552 = vst [vmem:[%s1067_s2 + $0x8] sm:$0xff] %v535_v13  ;;  %v537_v16 = vadd.f32 %v536_v15, %v483_v14  ;;  %v485_v17 = vpop.f32.mrf.mxu0  ;;  %v578_v31 = vmul.f32 %v535_v13, %v535_v13 }
 0x109   :  { %v538_v18 = vpop.f32.mrf.mxu1 }
 0x10a   :  { %553 = vst [vmem:[%s1067_s2 + $0x10] sm:$0xff] %v537_v16  ;;  %v539_v19 = vadd.f32 %v538_v18, %v485_v17  ;;  %v579_v20 = vmul.f32 %v537_v16, %v537_v16  ;;  %v489_v21 = vpop.f32.mrf.mxu0  ;;  %v559_v28 = vadd.f32 %v537_v16, %v533_v10 }
 0x10b   :  { %v542_v22 = vpop.f32.mrf.mxu1 }
 0x10c   :  { %554 = vst [vmem:[%s1067_s2 + $0x18] sm:$0xff] %v539_v19  ;;  %v543_v23 = vadd.f32 %v542_v22, %v489_v21  ;;  %v580_v25 = vmul.f32 %v539_v19, %v539_v19  ;;  %v491_v26 = vpop.f32.mrf.mxu0  ;;  %v585_v32 = vadd.f32 %v579_v20, %v577_v24  ;;  %v568_v35 = vadd.f32 %v539_v19, %v535_v13 }
 0x10d   :  { %v544_v27 = vpop.f32.mrf.mxu1 }
 0x10e   :  { %555 = vst [vmem:[%s1067_s2 + $0x20] sm:$0xff] %v543_v23  ;;  %v581_v29 = vmul.f32 %v543_v23, %v543_v23  ;;  %v545_v30 = vadd.f32 %v544_v27, %v491_v26  ;;  %v493_v33 = vpop.f32.mrf.mxu0  ;;  %v560_v36 = vadd.f32 %v559_v28, %v543_v23  ;;  %v594_v39 = vadd.f32 %v580_v25, %v578_v31 }
 0x10f   :  { %v546_v34 = vpop.f32.mrf.mxu1 }
 0x110   :  { %556 = vst [vmem:[%s1067_s2 + $0x28] sm:$0xff] %v545_v30  ;;  %v582_v37 = vmul.f32 %v545_v30, %v545_v30  ;;  %v547_v38 = vadd.f32 %v546_v34, %v493_v33  ;;  %v586_v40 = vadd.f32 %v585_v32, %v581_v29  ;;  %v495_v41 = vpop.f32.mrf.mxu0  ;;  %v569_v43 = vadd.f32 %v568_v35, %v545_v30 }
 0x111   :  { %v548_v42 = vpop.f32.mrf.mxu1 }
 0x112   :  { %557 = vst [vmem:[%s1067_s2 + $0x30] sm:$0xff] %v547_v38  ;;  %v561_v44 = vadd.f32 %v560_v36, %v547_v38  ;;  %v583_v45 = vmul.f32 %v547_v38, %v547_v38  ;;  %v549_v46 = vadd.f32 %v548_v42, %v495_v41  ;;  %v595_v47 = vadd.f32 %v594_v39, %v582_v37 }
 0x114   :  { %v562_v48 = vrot.slane %v561_v44, 4  ;;  %v587_v49 = vadd.f32 %v586_v40, %v583_v45  ;;  %558 = vst [vmem:[%s1067_s2 + $0x38] sm:$0xff] %v549_v46  ;;  %v570_v50 = vadd.f32 %v569_v43, %v549_v46  ;;  %v584_v51 = vmul.f32 %v549_v46, %v549_v46 }
 0x116   :  { %v563_v52 = vadd.f32 %v562_v48, %v561_v44  ;;  %v588_v53 = vrot.slane %v587_v49, 4  ;;  %v571_v54 = vrot.slane %v570_v50, 4  ;;  %v596_v55 = vadd.f32 %v595_v47, %v584_v51 }
 0x118   :  { %v564_v56 = vrot.slane %v563_v52, 2  ;;  %v589_v57 = vadd.f32 %v588_v53, %v587_v49  ;;  %v572_v58 = vadd.f32 %v571_v54, %v570_v50  ;;  %v597_v59 = vrot.slane %v596_v55, 4 }
 0x11a   :  { %v565_v60 = vadd.f32 %v564_v56, %v563_v52  ;;  %v590_v61 = vrot.slane %v589_v57, 2  ;;  %v573_v62 = vrot.slane %v572_v58, 2  ;;  %v598_v63 = vadd.f32 %v597_v59, %v596_v55 }
 0x11c   :  { %v566_v0 = vrot.slane %v565_v60, 1  ;;  %v591_v1 = vadd.f32 %v590_v61, %v589_v57  ;;  %v574_v2 = vadd.f32 %v573_v62, %v572_v58  ;;  %v599_v3 = vrot.slane %v598_v63, 2 }
 0x11e   :  { %v592_v4 = vrot.slane %v591_v1, 1  ;;  %v575_v5 = vrot.slane %v574_v2, 1  ;;  %v600_v6 = vadd.f32 %v599_v3, %v598_v63  ;;  %v567_v7 = vadd.f32 %v566_v0, %v565_v60 }
 0x120   :  { %v593_v8 = vadd.f32 %v592_v4, %v591_v1  ;;  %v601_v9 = vrot.slane %v600_v6, 1  ;;  %v576_v11 = vadd.f32 %v575_v5, %v574_v2 }
 0x122   :  { %v604_v10 = vsel %vm603_vm0, %v567_v7, %v593_v8  ;;  %v602_v12 = vadd.f32 %v601_v9, %v600_v6 }
 0x123   :  { %v607_v13 = vsel %vm606_vm1, %v604_v10, 0.0 }
 0x124   :  { %609 = vst [vmem:[%s1068_s3] sm:$0xff] %v607_v13  ;;  %v605_v14 = vsel %vm603_vm0, %v576_v11, %v602_v12 }
 0x125   :  { %v608_v15 = vsel %vm606_vm1, %v605_v14, 0.0 }
 0x126   :  { %610 = vst [vmem:[%s1068_s3 + $0x8] sm:$0xff] %v608_v15 }

// kernel: generator_forward.21
= control target key start
LH: loop header
LB: loop body
LE: loop exit
PB: predicated region body
PF: predicated region fallthrough
CT: control target
= control target key end

     0   :  { %vm2161_vm0 = vcmask 1040384   ;;  %vm2164_vm1 = vcmask 1041408   ;;  %s3797_s1 = inlined_call_operand.vmem [shape: bf16[2048,256], index: 1, kind: input, shape index: {}]   ;;  %s3798_s0 = inlined_call_operand.vmem [shape: bf16[24,2048], index: 0, kind: input, shape index: {}]   ;;  %s3799_s2 = inlined_call_operand.vmem [shape: f32[24,256], index: 2, kind: output, shape index: {0}]   ;;  %s3800_s3 = inlined_call_operand.vmem [shape: f32[8,256], index: 3, kind: output, shape index: {1}]  }
   0x1   :  { %v2465_v0 = vld [vmem:[%s3797_s1 + $0x74] ss:$8 sps:$4 sm:$0xff]   ;;  %v2469_v2 = vld [vmem:[%s3797_s1 + $0x70] ss:$8 sps:$4 sm:$0xff]   ;;  %v2471_v4 = vld [vmem:[%s3797_s1 + $0x64] ss:$8 sps:$4 sm:$0xff]  }
   0x2   :  { %v2467_v1 = vld [vmem:[%s3797_s1 + $0x174] ss:$8 sps:$4 sm:$0xff]   ;;  %1709 = vmatprep.subr.bf16.mxu0 %v2465_v0  ;;  %v2470_v3 = vld [vmem:[%s3797_s1 + $0x170] ss:$8 sps:$4 sm:$0xff]   ;;  %v2473_v5 = vld [vmem:[%s3797_s1 + $0x164] ss:$8 sps:$4 sm:$0xff]  }
   0x3   :  { %1760 = vmatprep.subr.bf16.mxu1 %v2467_v1  ;;  %1710 = vmatpush1.bf16.msra.mxu0 %v2469_v2  ;;  %v2475_v6 = vld [vmem:[%s3797_s1 + $0x60] ss:$8 sps:$4 sm:$0xff]   ;;  %v2477_v8 = vld [vmem:[%s3797_s1 + $0x54] ss:$8 sps:$4 sm:$0xff]   ;;  %v2481_v10 = vld [vmem:[%s3797_s1 + $0x50] ss:$8 sps:$4 sm:$0xff]  }
   0x4   :  { %1761 = vmatpush1.bf16.msra.mxu1 %v2470_v3  ;;  %1711 = vmatprep.subr.bf16.mxu0 %v2471_v4  ;;  %v2476_v7 = vld [vmem:[%s3797_s1 + $0x160] ss:$8 sps:$4 sm:$0xff]   ;;  %v2479_v9 = vld [vmem:[%s3797_s1 + $0x154] ss:$8 sps:$4 sm:$0xff]   ;;  %v2482_v11 = vld [vmem:[%s3797_s1 + $0x150] ss:$8 sps:$4 sm:$0xff]  }
   0x5   :  { %1762 = vmatprep.subr.bf16.mxu1 %v2473_v5  ;;  %v2483_v12 = vld [vmem:[%s3797_s1 + $0x44] ss:$8 sps:$4 sm:$0xff]   ;;  %v2487_v14 = vld [vmem:[%s3797_s1 + $0x40] ss:$8 sps:$4 sm:$0xff]   ;;  %v2489_v16 = vld [vmem:[%s3797_s1 + $0x34] ss:$8 sps:$4 sm:$0xff]  }
   0x6   :  { %v2485_v13 = vld [vmem:[%s3797_s1 + $0x144] ss:$8 sps:$4 sm:$0xff]   ;;  %v2488_v15 = vld [vmem:[%s3797_s1 + $0x140] ss:$8 sps:$4 sm:$0xff]   ;;  %v2491_v17 = vld [vmem:[%s3797_s1 + $0x134] ss:$8 sps:$4 sm:$0xff]  }
   0x7   :  { %1712 = vmatpush1.bf16.msra.mxu0 %v2475_v6  ;;  %v2493_v18 = vld [vmem:[%s3797_s1 + $0x30] ss:$8 sps:$4 sm:$0xff]   ;;  %v2495_v20 = vld [vmem:[%s3797_s1 + $0x24] ss:$8 sps:$4 sm:$0xff]   ;;  %v2499_v22 = vld [vmem:[%s3797_s1 + $0x20] ss:$8 sps:$4 sm:$0xff]  }
   0x8   :  { %1763 = vmatpush1.bf16.msra.mxu1 %v2476_v7  ;;  %1713 = vmatprep.subr.bf16.mxu0 %v2477_v8  ;;  %v2494_v19 = vld [vmem:[%s3797_s1 + $0x130] ss:$8 sps:$4 sm:$0xff]   ;;  %v2497_v21 = vld [vmem:[%s3797_s1 + $0x124] ss:$8 sps:$4 sm:$0xff]   ;;  %v2500_v23 = vld [vmem:[%s3797_s1 + $0x120] ss:$8 sps:$4 sm:$0xff]  }
   0x9   :  { %1764 = vmatprep.subr.bf16.mxu1 %v2479_v9  ;;  %v2501_v24 = vld [vmem:[%s3797_s1 + $0x14] ss:$8 sps:$4 sm:$0xff]   ;;  %v2505_v26 = vld [vmem:[%s3797_s1 + $0x10] ss:$8 sps:$4 sm:$0xff]   ;;  %v2507_v28 = vld [vmem:[%s3797_s1 + $0x4] ss:$8 sps:$4 sm:$0xff]  }
   0xa   :  { %v2503_v25 = vld [vmem:[%s3797_s1 + $0x114] ss:$8 sps:$4 sm:$0xff]   ;;  %v2506_v27 = vld [vmem:[%s3797_s1 + $0x110] ss:$8 sps:$4 sm:$0xff]   ;;  %v2509_v29 = vld [vmem:[%s3797_s1 + $0x104] ss:$8 sps:$4 sm:$0xff]  }
   0xb   :  { %1714 = vmatpush1.bf16.msra.mxu0 %v2481_v10  ;;  %v2511_v30 = vld [vmem:[%s3797_s1] ss:$8 sps:$4 sm:$0xff]   ;;  %v2513_v32 = vld [vmem:[%s3797_s1 + $0xf4] ss:$8 sps:$4 sm:$0xff]   ;;  %v2517_v34 = vld [vmem:[%s3797_s1 + $0xf0] ss:$8 sps:$4 sm:$0xff]  }
   0xc   :  { %1765 = vmatpush1.bf16.msra.mxu1 %v2482_v11  ;;  %1715 = vmatprep.subr.bf16.mxu0 %v2483_v12  ;;  %v2512_v31 = vld [vmem:[%s3797_s1 + $0x100] ss:$8 sps:$4 sm:$0xff]   ;;  %v2515_v33 = vld [vmem:[%s3797_s1 + $0x1f4] ss:$8 sps:$4 sm:$0xff]   ;;  %v2518_v35 = vld [vmem:[%s3797_s1 + $0x1f0] ss:$8 sps:$4 sm:$0xff]  }
   0xd   :  { %1766 = vmatprep.subr.bf16.mxu1 %v2485_v13  ;;  %v2519_v36 = vld [vmem:[%s3797_s1 + $0xe4] ss:$8 sps:$4 sm:$0xff]   ;;  %v2523_v38 = vld [vmem:[%s3797_s1 + $0xe0] ss:$8 sps:$4 sm:$0xff]   ;;  %v2525_v40 = vld [vmem:[%s3797_s1 + $0xd4] ss:$8 sps:$4 sm:$0xff]  }
   0xe   :  { %v2521_v37 = vld [vmem:[%s3797_s1 + $0x1e4] ss:$8 sps:$4 sm:$0xff]   ;;  %v2524_v39 = vld [vmem:[%s3797_s1 + $0x1e0] ss:$8 sps:$4 sm:$0xff]   ;;  %v2527_v41 = vld [vmem:[%s3797_s1 + $0x1d4] ss:$8 sps:$4 sm:$0xff]  }
   0xf   :  { %1716 = vmatpush1.bf16.msra.mxu0 %v2487_v14  ;;  %v2529_v42 = vld [vmem:[%s3797_s1 + $0xd0] ss:$8 sps:$4 sm:$0xff]   ;;  %v2531_v44 = vld [vmem:[%s3797_s1 + $0xc4] ss:$8 sps:$4 sm:$0xff]   ;;  %v2535_v46 = vld [vmem:[%s3797_s1 + $0xc0] ss:$8 sps:$4 sm:$0xff]  }
  0x10   :  { %1767 = vmatpush1.bf16.msra.mxu1 %v2488_v15  ;;  %1717 = vmatprep.subr.bf16.mxu0 %v2489_v16  ;;  %v2530_v43 = vld [vmem:[%s3797_s1 + $0x1d0] ss:$8 sps:$4 sm:$0xff]   ;;  %v2533_v45 = vld [vmem:[%s3797_s1 + $0x1c4] ss:$8 sps:$4 sm:$0xff]   ;;  %v2536_v47 = vld [vmem:[%s3797_s1 + $0x1c0] ss:$8 sps:$4 sm:$0xff]  }
  0x11   :  { %1768 = vmatprep.subr.bf16.mxu1 %v2491_v17  ;;  %v13_v48 = vld [vmem:[%s3798_s0] sm:$0xff]  ;;  %v14_v50 = vld [vmem:[%s3798_s0 + $0x8] sm:$0xff]  ;;  %v2537_v52 = vld [vmem:[%s3797_s1 + $0xb4] ss:$8 sps:$4 sm:$0xff]  }
  0x12   :  { %v21_v49 = vld [vmem:[%s3798_s0 + $0x40] sm:$0xff]  ;;  %v22_v51 = vld [vmem:[%s3798_s0 + $0x48] sm:$0xff]  ;;  %v2539_v54 = vld [vmem:[%s3797_s1 + $0x1b4] ss:$8 sps:$4 sm:$0xff]  }
  0x13   :  { %1718 = vmatpush1.bf16.msra.mxu0 %v2493_v18  ;;  %v2178_v53 = vcombine.high %v13_v48, %v21_v49  ;;  %v2180_v55 = vcombine.high %v14_v50, %v22_v51  ;;  %v2541_v56 = vld [vmem:[%s3797_s1 + $0xb0] ss:$8 sps:$4 sm:$0xff]   ;;  %v2543_v58 = vld [vmem:[%s3797_s1 + $0xa4] ss:$8 sps:$4 sm:$0xff]   ;;  %v2547_v60 = vld [vmem:[%s3797_s1 + $0xa0] ss:$8 sps:$4 sm:$0xff]   ;;  %v2177_v8 = vcombine.low %v13_v48, %v21_v49  ;;  %v2179_v9 = vcombine.low %v14_v50, %v22_v51 }
  0x14   :  { %1769 = vmatpush1.bf16.msra.mxu1 %v2494_v19  ;;  %1719 = vmatprep.subr.bf16.mxu0 %v2495_v20  ;;  %v2542_v57 = vld [vmem:[%s3797_s1 + $0x1b0] ss:$8 sps:$4 sm:$0xff]   ;;  %v2545_v59 = vld [vmem:[%s3797_s1 + $0x1a4] ss:$8 sps:$4 sm:$0xff]   ;;  %v2548_v61 = vld [vmem:[%s3797_s1 + $0x1a0] ss:$8 sps:$4 sm:$0xff]  }
  0x15   :  { %1770 = vmatprep.subr.bf16.mxu1 %v2497_v21  ;;  %1741 = vmatprep.mubr.bf16.mxu0 %v2178_v53  ;;  %v2549_v62 = vld [vmem:[%s3797_s1 + $0x94] ss:$8 sps:$4 sm:$0xff]   ;;  %v2553_v0 = vld [vmem:[%s3797_s1 + $0x90] ss:$8 sps:$4 sm:$0xff]   ;;  %v2555_v2 = vld [vmem:[%s3797_s1 + $0x84] ss:$8 sps:$4 sm:$0xff]  }
  0x16   :  { %1792 = vmatprep.mubr.bf16.mxu1 %v2180_v55  ;;  %v2551_v63 = vld [vmem:[%s3797_s1 + $0x194] ss:$8 sps:$4 sm:$0xff]   ;;  %v2554_v1 = vld [vmem:[%s3797_s1 + $0x190] ss:$8 sps:$4 sm:$0xff]   ;;  %v2557_v3 = vld [vmem:[%s3797_s1 + $0x184] ss:$8 sps:$4 sm:$0xff]  }
  0x17   :  { %1720 = vmatpush1.bf16.msra.mxu0 %v2499_v22  ;;  %v2559_v4 = vld [vmem:[%s3797_s1 + $0x80] ss:$8 sps:$4 sm:$0xff]   ;;  %v2563_v6 = vld [vmem:[%s3797_s1 + $0x274] ss:$8 sps:$4 sm:$0xff]   ;;  %v2561_v10 = vld [vmem:[%s3797_s1 + $0x270] ss:$8 sps:$4 sm:$0xff]  }
  0x18   :  { %1771 = vmatpush1.bf16.msra.mxu1 %v2500_v23  ;;  %1721 = vmatprep.subr.bf16.mxu0 %v2501_v24  ;;  %v2560_v5 = vld [vmem:[%s3797_s1 + $0x180] ss:$8 sps:$4 sm:$0xff]   ;;  %v2566_v7 = vld [vmem:[%s3797_s1 + $0x374] ss:$8 sps:$4 sm:$0xff]   ;;  %v2564_v11 = vld [vmem:[%s3797_s1 + $0x370] ss:$8 sps:$4 sm:$0xff]  }
  0x19   :  { %1772 = vmatprep.subr.bf16.mxu1 %v2503_v25  ;;  %v2569_v12 = vld [vmem:[%s3797_s1 + $0x264] ss:$8 sps:$4 sm:$0xff]   ;;  %v2567_v14 = vld [vmem:[%s3797_s1 + $0x260] ss:$8 sps:$4 sm:$0xff]   ;;  %v2575_v16 = vld [vmem:[%s3797_s1 + $0x254] ss:$8 sps:$4 sm:$0xff]  }
  0x1a   :  { %v2572_v13 = vld [vmem:[%s3797_s1 + $0x364] ss:$8 sps:$4 sm:$0xff]   ;;  %v2570_v15 = vld [vmem:[%s3797_s1 + $0x360] ss:$8 sps:$4 sm:$0xff]   ;;  %v2578_v17 = vld [vmem:[%s3797_s1 + $0x354] ss:$8 sps:$4 sm:$0xff]  }
  0x1b   :  { %1722 = vmatpush1.bf16.msra.mxu0 %v2505_v26  ;;  %v2573_v18 = vld [vmem:[%s3797_s1 + $0x250] ss:$8 sps:$4 sm:$0xff]   ;;  %v2581_v20 = vld [vmem:[%s3797_s1 + $0x244] ss:$8 sps:$4 sm:$0xff]   ;;  %v2579_v22 = vld [vmem:[%s3797_s1 + $0x240] ss:$8 sps:$4 sm:$0xff]  }
  0x1c   :  { %1773 = vmatpush1.bf16.msra.mxu1 %v2506_v27  ;;  %1723 = vmatprep.subr.bf16.mxu0 %v2507_v28  ;;  %v2576_v19 = vld [vmem:[%s3797_s1 + $0x350] ss:$8 sps:$4 sm:$0xff]   ;;  %v2584_v21 = vld [vmem:[%s3797_s1 + $0x344] ss:$8 sps:$4 sm:$0xff]   ;;  %v2582_v23 = vld [vmem:[%s3797_s1 + $0x340] ss:$8 sps:$4 sm:$0xff]  }
  0x1d   :  { %1774 = vmatprep.subr.bf16.mxu1 %v2509_v29  ;;  %v2587_v24 = vld [vmem:[%s3797_s1 + $0x234] ss:$8 sps:$4 sm:$0xff]   ;;  %v29_v26 = vld [vmem:[%s3798_s0 + $0x80] sm:$0xff]  ;;  %v30_v29 = vld [vmem:[%s3798_s0 + $0x88] sm:$0xff] }
  0x1e   :  { %v2590_v25 = vld [vmem:[%s3797_s1 + $0x334] ss:$8 sps:$4 sm:$0xff]   ;;  %v2194_v27 = vcombine.high %v29_v26, %v29_v26  ;;  %v2193_v28 = vcombine.low %v29_v26, %v29_v26  ;;  %v2608_v48 = vld [vmem:[%s3797_s1 + $0x304] ss:$8 sps:$4 sm:$0xff]   ;;  %v2603_v50 = vld [vmem:[%s3797_s1 + $0x200] ss:$8 sps:$4 sm:$0xff]  }
  0x1f   :  { %1724 = vmatpush1.bf16.msra.mxu0 %v2511_v30  ;;  %v2585_v30 = vld [vmem:[%s3797_s1 + $0x230] ss:$8 sps:$4 sm:$0xff]   ;;  %v2606_v51 = vld [vmem:[%s3797_s1 + $0x300] ss:$8 sps:$4 sm:$0xff]   ;;  %v2614_v53 = vld [vmem:[%s3797_s1 + $0x3f4] ss:$8 sps:$4 sm:$0xff]  }
  0x20   :  { %1775 = vmatpush1.bf16.msra.mxu1 %v2512_v31  ;;  %1725 = vmatprep.subr.bf16.mxu0 %v2513_v32  ;;  %v2588_v31 = vld [vmem:[%s3797_s1 + $0x330] ss:$8 sps:$4 sm:$0xff]   ;;  %v2196_v32 = vcombine.high %v30_v29, %v30_v29 }
  0x21   :  { %1776 = vmatprep.subr.bf16.mxu1 %v2515_v33  ;;  %v2195_v33 = vcombine.low %v30_v29, %v30_v29  ;;  %v2612_v55 = vld [vmem:[%s3797_s1 + $0x3f0] ss:$8 sps:$4 sm:$0xff]   ;;  %v2672_v29 = vld [vmem:[%s3797_s1 + $0x564] ss:$8 sps:$4 sm:$0xff]  }
  0x22   :  { %v31_v26 = vld [vmem:[%s3798_s0 + $0x90] sm:$0xff] }
  0x23   :  { %1726 = vmatpush2.bf16.msra.mxu0 %v2517_v34  ;;  %v2593_v34 = vld [vmem:[%s3797_s1 + $0x224] ss:$8 sps:$4 sm:$0xff]  }
  0x24   :  { %1777 = vmatpush2.bf16.msra.mxu1 %v2518_v35  ;;  %1727 = vmatprep.subr.bf16.mxu0 %v2519_v36  ;;  %v2596_v35 = vld [vmem:[%s3797_s1 + $0x324] ss:$8 sps:$4 sm:$0xff]   ;;  %v2591_v36 = vld [vmem:[%s3797_s1 + $0x220] ss:$8 sps:$4 sm:$0xff]  }
  0x25   :  { %1778 = vmatprep.subr.bf16.mxu1 %v2521_v37  ;;  %v2594_v37 = vld [vmem:[%s3797_s1 + $0x320] ss:$8 sps:$4 sm:$0xff]  }
  0x27   :  { %1728 = vmatpush2.bf16.msra.mxu0 %v2523_v38  ;;  %v2599_v38 = vld [vmem:[%s3797_s1 + $0x214] ss:$8 sps:$4 sm:$0xff]  }
  0x28   :  { %1779 = vmatpush2.bf16.msra.mxu1 %v2524_v39  ;;  %1729 = vmatprep.subr.bf16.mxu0 %v2525_v40  ;;  %v2602_v39 = vld [vmem:[%s3797_s1 + $0x314] ss:$8 sps:$4 sm:$0xff]   ;;  %v2597_v40 = vld [vmem:[%s3797_s1 + $0x210] ss:$8 sps:$4 sm:$0xff]  }
  0x29   :  { %1780 = vmatprep.subr.bf16.mxu1 %v2527_v41  ;;  %v2600_v41 = vld [vmem:[%s3797_s1 + $0x310] ss:$8 sps:$4 sm:$0xff]  }
  0x2b   :  { %1730 = vmatpush2.bf16.msra.mxu0 %v2529_v42  ;;  %v3182_v42 = vld [vmem:[%s3798_s0 + $0x10] sm:$0xff] }
  0x2c   :  { %1781 = vmatpush2.bf16.msra.mxu1 %v2530_v43  ;;  %1731 = vmatprep.subr.bf16.mxu0 %v2531_v44  ;;  %v3187_v43 = vld [vmem:[%s3798_s0 + $0x50] sm:$0xff] }
  0x2d   :  { %1782 = vmatprep.subr.bf16.mxu1 %v2533_v45  ;;  %v2182_v44 = vcombine.high %v3182_v42, %v3187_v43  ;;  %v3194_v45 = vld [vmem:[%s3798_s0 + $0x18] sm:$0xff] }
  0x2f   :  { %1732 = vmatpush2.bf16.msra.mxu0 %v2535_v46  ;;  %v3199_v46 = vld [vmem:[%s3798_s0 + $0x58] sm:$0xff] }
  0x30   :  { %1783 = vmatpush2.bf16.msra.mxu1 %v2536_v47  ;;  %1733 = vmatprep.subr.bf16.mxu0 %v2537_v52  ;;  %v2605_v47 = vld [vmem:[%s3797_s1 + $0x204] ss:$8 sps:$4 sm:$0xff]   ;;  %v2184_v49 = vcombine.high %v3194_v45, %v3199_v46  ;;  %v2611_v52 = vld [vmem:[%s3797_s1 + $0x2f4] ss:$8 sps:$4 sm:$0xff]  }
  0x31   :  { %1784 = vmatprep.subr.bf16.mxu1 %v2539_v54  ;;  %v2609_v54 = vld [vmem:[%s3797_s1 + $0x2f0] ss:$8 sps:$4 sm:$0xff]  }
  0x33   :  { %1734 = vmatpush2.bf16.msra.mxu0 %v2541_v56  ;;  %v2617_v56 = vld [vmem:[%s3797_s1 + $0x2e4] ss:$8 sps:$4 sm:$0xff]  }
  0x34   :  { %1785 = vmatpush2.bf16.msra.mxu1 %v2542_v57  ;;  %1735 = vmatprep.subr.bf16.mxu0 %v2543_v58  ;;  %v2620_v57 = vld [vmem:[%s3797_s1 + $0x3e4] ss:$8 sps:$4 sm:$0xff]   ;;  %v2615_v58 = vld [vmem:[%s3797_s1 + $0x2e0] ss:$8 sps:$4 sm:$0xff]  }
  0x35   :  { %1786 = vmatprep.subr.bf16.mxu1 %v2545_v59  ;;  %v2618_v59 = vld [vmem:[%s3797_s1 + $0x3e0] ss:$8 sps:$4 sm:$0xff]  }
  0x37   :  { %1736 = vmatpush2.bf16.msra.mxu0 %v2547_v60  ;;  %v2623_v60 = vld [vmem:[%s3797_s1 + $0x2d4] ss:$8 sps:$4 sm:$0xff]  }
  0x38   :  { %1787 = vmatpush2.bf16.msra.mxu1 %v2548_v61  ;;  %1737 = vmatprep.subr.bf16.mxu0 %v2549_v62  ;;  %v2626_v61 = vld [vmem:[%s3797_s1 + $0x3d4] ss:$8 sps:$4 sm:$0xff]   ;;  %v2621_v62 = vld [vmem:[%s3797_s1 + $0x2d0] ss:$8 sps:$4 sm:$0xff]  }
  0x39   :  { %1788 = vmatprep.subr.bf16.mxu1 %v2551_v63  ;;  %v2624_v63 = vld [vmem:[%s3797_s1 + $0x3d0] ss:$8 sps:$4 sm:$0xff]  }
  0x3b   :  { %1738 = vmatpush2.bf16.msra.mxu0 %v2553_v0  ;;  %v2629_v0 = vld [vmem:[%s3797_s1 + $0x2c4] ss:$8 sps:$4 sm:$0xff]  }
  0x3c   :  { %1789 = vmatpush2.bf16.msra.mxu1 %v2554_v1  ;;  %1739 = vmatprep.subr.bf16.mxu0 %v2555_v2  ;;  %v2632_v1 = vld [vmem:[%s3797_s1 + $0x3c4] ss:$8 sps:$4 sm:$0xff]   ;;  %v2627_v2 = vld [vmem:[%s3797_s1 + $0x2c0] ss:$8 sps:$4 sm:$0xff]  }
  0x3d   :  { %1790 = vmatprep.subr.bf16.mxu1 %v2557_v3  ;;  %v2630_v3 = vld [vmem:[%s3797_s1 + $0x3c0] ss:$8 sps:$4 sm:$0xff]  }
  0x3f   :  { %1740 = vmatpush2.bf16.msra.mxu0 %v2559_v4  ;;  %v2635_v4 = vld [vmem:[%s3797_s1 + $0x2b4] ss:$8 sps:$4 sm:$0xff]  }
  0x40   :  { %1791 = vmatpush2.bf16.msra.mxu1 %v2560_v5  ;;  %1811 = vmatprep.subr.bf16.mxu0 %v2563_v6  ;;  %v2638_v5 = vld [vmem:[%s3797_s1 + $0x3b4] ss:$8 sps:$4 sm:$0xff]   ;;  %v2633_v6 = vld [vmem:[%s3797_s1 + $0x2b0] ss:$8 sps:$4 sm:$0xff]  }
  0x41   :  { %1862 = vmatprep.subr.bf16.mxu1 %v2566_v7  ;;  %v2636_v7 = vld [vmem:[%s3797_s1 + $0x3b0] ss:$8 sps:$4 sm:$0xff]  }
  0x42   :  { %1742 = vmatmul.mubr.bf16.vlgmr.msra.gmra.mxu0 %v2177_v8  ;;  %v2644_v8 = vld [vmem:[%s3797_s1 + $0x2a4] ss:$8 sps:$4 sm:$0xff]  }
  0x43   :  { %1793 = vmatmul.mubr.bf16.vlgmr.msra.gmra.mxu1 %v2179_v9  ;;  %1812 = vmatpush1.bf16.msra.mxu0 %v2561_v10  ;;  %v2647_v9 = vld [vmem:[%s3797_s1 + $0x3a4] ss:$8 sps:$4 sm:$0xff]   ;;  %v2642_v10 = vld [vmem:[%s3797_s1 + $0x2a0] ss:$8 sps:$4 sm:$0xff]  }
  0x44   :  { %1863 = vmatpush1.bf16.msra.mxu1 %v2564_v11  ;;  %1813 = vmatprep.subr.bf16.mxu0 %v2569_v12  ;;  %v2645_v11 = vld [vmem:[%s3797_s1 + $0x3a0] ss:$8 sps:$4 sm:$0xff]   ;;  %v2651_v12 = vld [vmem:[%s3797_s1 + $0x294] ss:$8 sps:$4 sm:$0xff]  }
  0x45   :  { %1864 = vmatprep.subr.bf16.mxu1 %v2572_v13  ;;  %1751 = vmatprep.mubr.bf16.mxu0 %v2194_v27  ;;  %v2654_v13 = vld [vmem:[%s3797_s1 + $0x394] ss:$8 sps:$4 sm:$0xff]  }
  0x46   :  { %1802 = vmatprep.mubr.bf16.mxu1 %v2196_v32  ;;  %v32_v27 = vld [vmem:[%s3798_s0 + $0x98] sm:$0xff]  ;;  %v2667_v32 = vld [vmem:[%s3797_s1 + $0x460] ss:$8 sps:$4 sm:$0xff]  }
  0x47   :  { %1814 = vmatpush1.bf16.msra.mxu0 %v2567_v14  ;;  %v2649_v14 = vld [vmem:[%s3797_s1 + $0x290] ss:$8 sps:$4 sm:$0xff]  }
  0x48   :  { %1865 = vmatpush1.bf16.msra.mxu1 %v2570_v15  ;;  %1815 = vmatprep.subr.bf16.mxu0 %v2575_v16  ;;  %v2652_v15 = vld [vmem:[%s3797_s1 + $0x390] ss:$8 sps:$4 sm:$0xff]   ;;  %v2657_v16 = vld [vmem:[%s3797_s1 + $0x284] ss:$8 sps:$4 sm:$0xff]  }
  0x49   :  { %1866 = vmatprep.subr.bf16.mxu1 %v2578_v17  ;;  %v2660_v17 = vld [vmem:[%s3797_s1 + $0x384] ss:$8 sps:$4 sm:$0xff]  }
  0x4a   :  { %1752 = vmatmul.mubr.bf16.gmra.mxu0 %v2193_v28  ;;  %v2669_v28 = vld [vmem:[%s3797_s1 + $0x464] ss:$8 sps:$4 sm:$0xff]  }
  0x4b   :  { %1816 = vmatpush1.bf16.msra.mxu0 %v2573_v18  ;;  %1803 = vmatmul.mubr.bf16.gmra.mxu1 %v2195_v33  ;;  %v2655_v18 = vld [vmem:[%s3797_s1 + $0x280] ss:$8 sps:$4 sm:$0xff]  }
  0x4c   :  { %1867 = vmatpush1.bf16.msra.mxu1 %v2576_v19  ;;  %1817 = vmatprep.subr.bf16.mxu0 %v2581_v20  ;;  %v2658_v19 = vld [vmem:[%s3797_s1 + $0x380] ss:$8 sps:$4 sm:$0xff]   ;;  %v2663_v20 = vld [vmem:[%s3797_s1 + $0x474] ss:$8 sps:$4 sm:$0xff]  }
  0x4d   :  { %1868 = vmatprep.subr.bf16.mxu1 %v2584_v21  ;;  %1843 = vmatprep.mubr.bf16.mxu0 %v2182_v44  ;;  %v2666_v21 = vld [vmem:[%s3797_s1 + $0x574] ss:$8 sps:$4 sm:$0xff]   ;;  %v2670_v33 = vld [vmem:[%s3797_s1 + $0x560] ss:$8 sps:$4 sm:$0xff]   ;;  %v2685_v44 = vld [vmem:[%s3797_s1 + $0x444] ss:$8 sps:$4 sm:$0xff]  }
  0x4e   :  { %1894 = vmatprep.mubr.bf16.mxu1 %v2184_v49  ;;  %v2686_v49 = vld [vmem:[%s3797_s1 + $0x540] ss:$8 sps:$4 sm:$0xff]  }
  0x4f   :  { %1818 = vmatpush1.bf16.msra.mxu0 %v2579_v22  ;;  %v2661_v22 = vld [vmem:[%s3797_s1 + $0x470] ss:$8 sps:$4 sm:$0xff]  }
  0x50   :  { %1869 = vmatpush1.bf16.msra.mxu1 %v2582_v23  ;;  %1819 = vmatprep.subr.bf16.mxu0 %v2587_v24  ;;  %v2664_v23 = vld [vmem:[%s3797_s1 + $0x570] ss:$8 sps:$4 sm:$0xff]   ;;  %v2181_v24 = vcombine.low %v3182_v42, %v3187_v43  ;;  %v3370_v42 = vld [vmem:[%s3798_s0 + $0x28] sm:$0xff] }
  0x51   :  { %1870 = vmatprep.subr.bf16.mxu1 %v2590_v25  ;;  %v2183_v25 = vcombine.low %v3194_v45, %v3199_v46  ;;  %v3375_v43 = vld [vmem:[%s3798_s0 + $0x68] sm:$0xff] }
  0x52   :  { %v2688_v45 = vld [vmem:[%s3797_s1 + $0x544] ss:$8 sps:$4 sm:$0xff]  }
  0x53   :  { %1820 = vmatpush1.bf16.msra.mxu0 %v2585_v30  ;;  %v2198_v30 = vcombine.high %v31_v26, %v31_v26 }
  0x54   :  { %1871 = vmatpush1.bf16.msra.mxu1 %v2588_v31  ;;  %1821 = vmatprep.subr.bf16.mxu0 %v2593_v34  ;;  %v2200_v31 = vcombine.high %v32_v27, %v32_v27  ;;  %v2677_v34 = vld [vmem:[%s3797_s1 + $0x454] ss:$8 sps:$4 sm:$0xff]  }
  0x55   :  { %1872 = vmatprep.subr.bf16.mxu1 %v2596_v35  ;;  %v2680_v35 = vld [vmem:[%s3797_s1 + $0x554] ss:$8 sps:$4 sm:$0xff]  }
  0x57   :  { %1822 = vmatpush1.bf16.msra.mxu0 %v2591_v36  ;;  %v2675_v36 = vld [vmem:[%s3797_s1 + $0x450] ss:$8 sps:$4 sm:$0xff]  }
  0x58   :  { %1873 = vmatpush1.bf16.msra.mxu1 %v2594_v37  ;;  %1823 = vmatprep.subr.bf16.mxu0 %v2599_v38  ;;  %v2678_v37 = vld [vmem:[%s3797_s1 + $0x550] ss:$8 sps:$4 sm:$0xff]   ;;  %v3360_v38 = vld [vmem:[%s3798_s0 + $0x20] sm:$0xff] }
  0x59   :  { %1874 = vmatprep.subr.bf16.mxu1 %v2602_v39  ;;  %v3365_v39 = vld [vmem:[%s3798_s0 + $0x60] sm:$0xff] }
  0x5a   :  { %v2186_v46 = vcombine.high %v3360_v38, %v3365_v39 }
  0x5b   :  { %1824 = vmatpush1.bf16.msra.mxu0 %v2597_v40  ;;  %v2197_v40 = vcombine.low %v31_v26, %v31_v26  ;;  %v2751_v26 = vld [vmem:[%s3797_s1 + $0x494] ss:$8 sps:$4 sm:$0xff]  }
  0x5c   :  { %1875 = vmatpush1.bf16.msra.mxu1 %v2600_v41  ;;  %1825 = vmatprep.subr.bf16.mxu0 %v2605_v47  ;;  %v2199_v41 = vcombine.low %v32_v27, %v32_v27  ;;  %v2188_v47 = vcombine.high %v3370_v42, %v3375_v43  ;;  %v2754_v27 = vld [vmem:[%s3797_s1 + $0x594] ss:$8 sps:$4 sm:$0xff]  }
  0x5d   :  { %1876 = vmatprep.subr.bf16.mxu1 %v2608_v48  ;;  %v2683_v48 = vld [vmem:[%s3797_s1 + $0x440] ss:$8 sps:$4 sm:$0xff]  }
  0x5f   :  { %1826 = vmatpush1.bf16.msra.mxu0 %v2603_v50  ;;  %v2691_v50 = vld [vmem:[%s3797_s1 + $0x434] ss:$8 sps:$4 sm:$0xff]  }
  0x60   :  { %1877 = vmatpush1.bf16.msra.mxu1 %v2606_v51  ;;  %1827 = vmatprep.subr.bf16.mxu0 %v2611_v52  ;;  %v2694_v51 = vld [vmem:[%s3797_s1 + $0x534] ss:$8 sps:$4 sm:$0xff]   ;;  %v2689_v52 = vld [vmem:[%s3797_s1 + $0x430] ss:$8 sps:$4 sm:$0xff]  }
  0x61   :  { %1878 = vmatprep.subr.bf16.mxu1 %v2614_v53  ;;  %v2692_v53 = vld [vmem:[%s3797_s1 + $0x530] ss:$8 sps:$4 sm:$0xff]  }
  0x63   :  { %1828 = vmatpush2.bf16.msra.mxu0 %v2609_v54  ;;  %v2697_v54 = vld [vmem:[%s3797_s1 + $0x424] ss:$8 sps:$4 sm:$0xff]  }
  0x64   :  { %1879 = vmatpush2.bf16.msra.mxu1 %v2612_v55  ;;  %1829 = vmatprep.subr.bf16.mxu0 %v2617_v56  ;;  %v2700_v55 = vld [vmem:[%s3797_s1 + $0x524] ss:$8 sps:$4 sm:$0xff]   ;;  %v2695_v56 = vld [vmem:[%s3797_s1 + $0x420] ss:$8 sps:$4 sm:$0xff]  }
  0x65   :  { %1880 = vmatprep.subr.bf16.mxu1 %v2620_v57  ;;  %v2698_v57 = vld [vmem:[%s3797_s1 + $0x520] ss:$8 sps:$4 sm:$0xff]  }
  0x67   :  { %1830 = vmatpush2.bf16.msra.mxu0 %v2615_v58  ;;  %v2703_v58 = vld [vmem:[%s3797_s1 + $0x414] ss:$8 sps:$4 sm:$0xff]  }
  0x68   :  { %1881 = vmatpush2.bf16.msra.mxu1 %v2618_v59  ;;  %1831 = vmatprep.subr.bf16.mxu0 %v2623_v60  ;;  %v2706_v59 = vld [vmem:[%s3797_s1 + $0x514] ss:$8 sps:$4 sm:$0xff]   ;;  %v2701_v60 = vld [vmem:[%s3797_s1 + $0x410] ss:$8 sps:$4 sm:$0xff]  }
  0x69   :  { %1882 = vmatprep.subr.bf16.mxu1 %v2626_v61  ;;  %v2704_v61 = vld [vmem:[%s3797_s1 + $0x510] ss:$8 sps:$4 sm:$0xff]  }
  0x6b   :  { %1832 = vmatpush2.bf16.msra.mxu0 %v2621_v62  ;;  %v2709_v62 = vld [vmem:[%s3797_s1 + $0x404] ss:$8 sps:$4 sm:$0xff]  }
  0x6c   :  { %1883 = vmatpush2.bf16.msra.mxu1 %v2624_v63  ;;  %1833 = vmatprep.subr.bf16.mxu0 %v2629_v0  ;;  %v2712_v63 = vld [vmem:[%s3797_s1 + $0x504] ss:$8 sps:$4 sm:$0xff]   ;;  %v2707_v0 = vld [vmem:[%s3797_s1 + $0x400] ss:$8 sps:$4 sm:$0xff]  }
  0x6d   :  { %1884 = vmatprep.subr.bf16.mxu1 %v2632_v1  ;;  %v2710_v1 = vld [vmem:[%s3797_s1 + $0x500] ss:$8 sps:$4 sm:$0xff]  }
  0x6f   :  { %1834 = vmatpush2.bf16.msra.mxu0 %v2627_v2  ;;  %v2715_v2 = vld [vmem:[%s3797_s1 + $0x4f4] ss:$8 sps:$4 sm:$0xff]  }
  0x70   :  { %1885 = vmatpush2.bf16.msra.mxu1 %v2630_v3  ;;  %1835 = vmatprep.subr.bf16.mxu0 %v2635_v4  ;;  %v2718_v3 = vld [vmem:[%s3797_s1 + $0x5f4] ss:$8 sps:$4 sm:$0xff]   ;;  %v2713_v4 = vld [vmem:[%s3797_s1 + $0x4f0] ss:$8 sps:$4 sm:$0xff]  }
  0x71   :  { %1886 = vmatprep.subr.bf16.mxu1 %v2638_v5  ;;  %v2716_v5 = vld [vmem:[%s3797_s1 + $0x5f0] ss:$8 sps:$4 sm:$0xff]  }
  0x73   :  { %1836 = vmatpush2.bf16.msra.mxu0 %v2633_v6  ;;  %v2721_v6 = vld [vmem:[%s3797_s1 + $0x4e4] ss:$8 sps:$4 sm:$0xff]  }
  0x74   :  { %1887 = vmatpush2.bf16.msra.mxu1 %v2636_v7  ;;  %1837 = vmatprep.subr.bf16.mxu0 %v2644_v8  ;;  %v2724_v7 = vld [vmem:[%s3797_s1 + $0x5e4] ss:$8 sps:$4 sm:$0xff]   ;;  %v2719_v8 = vld [vmem:[%s3797_s1 + $0x4e0] ss:$8 sps:$4 sm:$0xff]  }
  0x75   :  { %1888 = vmatprep.subr.bf16.mxu1 %v2647_v9  ;;  %v2722_v9 = vld [vmem:[%s3797_s1 + $0x5e0] ss:$8 sps:$4 sm:$0xff]  }
  0x77   :  { %1838 = vmatpush2.bf16.msra.mxu0 %v2642_v10  ;;  %v2727_v10 = vld [vmem:[%s3797_s1 + $0x4d4] ss:$8 sps:$4 sm:$0xff]  }
  0x78   :  { %1889 = vmatpush2.bf16.msra.mxu1 %v2645_v11  ;;  %1839 = vmatprep.subr.bf16.mxu0 %v2651_v12  ;;  %v2730_v11 = vld [vmem:[%s3797_s1 + $0x5d4] ss:$8 sps:$4 sm:$0xff]   ;;  %v2725_v12 = vld [vmem:[%s3797_s1 + $0x4d0] ss:$8 sps:$4 sm:$0xff]  }
  0x79   :  { %1890 = vmatprep.subr.bf16.mxu1 %v2654_v13  ;;  %v2728_v13 = vld [vmem:[%s3797_s1 + $0x5d0] ss:$8 sps:$4 sm:$0xff]  }
  0x7b   :  { %1840 = vmatpush2.bf16.msra.mxu0 %v2649_v14  ;;  %v2733_v14 = vld [vmem:[%s3797_s1 + $0x4c4] ss:$8 sps:$4 sm:$0xff]  }
  0x7c   :  { %1891 = vmatpush2.bf16.msra.mxu1 %v2652_v15  ;;  %1841 = vmatprep.subr.bf16.mxu0 %v2657_v16  ;;  %v2736_v15 = vld [vmem:[%s3797_s1 + $0x5c4] ss:$8 sps:$4 sm:$0xff]   ;;  %v2731_v16 = vld [vmem:[%s3797_s1 + $0x4c0] ss:$8 sps:$4 sm:$0xff]  }
  0x7d   :  { %1892 = vmatprep.subr.bf16.mxu1 %v2660_v17  ;;  %v2734_v17 = vld [vmem:[%s3797_s1 + $0x5c0] ss:$8 sps:$4 sm:$0xff]  }
  0x7f   :  { %1842 = vmatpush2.bf16.msra.mxu0 %v2655_v18  ;;  %v2739_v18 = vld [vmem:[%s3797_s1 + $0x4b4] ss:$8 sps:$4 sm:$0xff]  }
  0x80   :  { %1893 = vmatpush2.bf16.msra.mxu1 %v2658_v19  ;;  %1913 = vmatprep.subr.bf16.mxu0 %v2663_v20  ;;  %v2742_v19 = vld [vmem:[%s3797_s1 + $0x5b4] ss:$8 sps:$4 sm:$0xff]   ;;  %v2737_v20 = vld [vmem:[%s3797_s1 + $0x4b0] ss:$8 sps:$4 sm:$0xff]  }
  0x81   :  { %1964 = vmatprep.subr.bf16.mxu1 %v2666_v21  ;;  %v2740_v21 = vld [vmem:[%s3797_s1 + $0x5b0] ss:$8 sps:$4 sm:$0xff]  }
  0x82   :  { %1844 = vmatmul.mubr.bf16.vlgmr.msra.gmra.mxu0 %v2181_v24  ;;  %v2743_v24 = vld [vmem:[%s3797_s1 + $0x4a0] ss:$8 sps:$4 sm:$0xff]  }
  0x83   :  { %1895 = vmatmul.mubr.bf16.vlgmr.msra.gmra.mxu1 %v2183_v25  ;;  %1914 = vmatpush1.bf16.msra.mxu0 %v2661_v22  ;;  %v2745_v22 = vld [vmem:[%s3797_s1 + $0x4a4] ss:$8 sps:$4 sm:$0xff]   ;;  %v2746_v25 = vld [vmem:[%s3797_s1 + $0x5a0] ss:$8 sps:$4 sm:$0xff]  }
  0x84   :  { %1965 = vmatpush1.bf16.msra.mxu1 %v2664_v23  ;;  %1915 = vmatprep.subr.bf16.mxu0 %v2669_v28  ;;  %v2748_v23 = vld [vmem:[%s3797_s1 + $0x5a4] ss:$8 sps:$4 sm:$0xff]   ;;  %v2749_v28 = vld [vmem:[%s3797_s1 + $0x490] ss:$8 sps:$4 sm:$0xff]  }
  0x85   :  { %1966 = vmatprep.subr.bf16.mxu1 %v2672_v29  ;;  %1853 = vmatprep.mubr.bf16.mxu0 %v2198_v30  ;;  %v2752_v29 = vld [vmem:[%s3797_s1 + $0x590] ss:$8 sps:$4 sm:$0xff]   ;;  %v2757_v30 = vld [vmem:[%s3797_s1 + $0x484] ss:$8 sps:$4 sm:$0xff]  }
  0x86   :  { %1904 = vmatprep.mubr.bf16.mxu1 %v2200_v31  ;;  %v2760_v31 = vld [vmem:[%s3797_s1 + $0x584] ss:$8 sps:$4 sm:$0xff]  }
  0x87   :  { %1916 = vmatpush1.bf16.msra.mxu0 %v2667_v32  ;;  %v2755_v32 = vld [vmem:[%s3797_s1 + $0x480] ss:$8 sps:$4 sm:$0xff]  }
  0x88   :  { %1967 = vmatpush1.bf16.msra.mxu1 %v2670_v33  ;;  %1917 = vmatprep.subr.bf16.mxu0 %v2677_v34  ;;  %v2758_v33 = vld [vmem:[%s3797_s1 + $0x580] ss:$8 sps:$4 sm:$0xff]   ;;  %v2763_v34 = vld [vmem:[%s3797_s1 + $0x674] ss:$8 sps:$4 sm:$0xff]  }
  0x89   :  { %1968 = vmatprep.subr.bf16.mxu1 %v2680_v35  ;;  %v2766_v35 = vld [vmem:[%s3797_s1 + $0x774] ss:$8 sps:$4 sm:$0xff]  }
  0x8a   :  { %1854 = vmatmul.mubr.bf16.gmra.mxu0 %v2197_v40  ;;  %v33_v40 = vld [vmem:[%s3798_s0 + $0xa0] sm:$0xff] }
  0x8b   :  { %1905 = vmatmul.mubr.bf16.gmra.mxu1 %v2199_v41  ;;  %1918 = vmatpush1.bf16.msra.mxu0 %v2675_v36  ;;  %v2185_v36 = vcombine.low %v3360_v38, %v3365_v39  ;;  %v34_v41 = vld [vmem:[%s3798_s0 + $0xa8] sm:$0xff]  ;;  %v2764_v38 = vld [vmem:[%s3797_s1 + $0x770] ss:$8 sps:$4 sm:$0xff]  }
  0x8c   :  { %1969 = vmatpush1.bf16.msra.mxu1 %v2678_v37  ;;  %1919 = vmatprep.subr.bf16.mxu0 %v2685_v44  ;;  %v2187_v37 = vcombine.low %v3370_v42, %v3375_v43  ;;  %v2761_v44 = vld [vmem:[%s3797_s1 + $0x670] ss:$8 sps:$4 sm:$0xff]   ;;  %v2769_v39 = vld [vmem:[%s3797_s1 + $0x664] ss:$8 sps:$4 sm:$0xff]   ;;  %v2202_v43 = vcombine.high %v33_v40, %v33_v40 }
  0x8d   :  { %1970 = vmatprep.subr.bf16.mxu1 %v2688_v45  ;;  %1945 = vmatprep.mubr.bf16.mxu0 %v2186_v46  ;;  %v2772_v42 = vld [vmem:[%s3797_s1 + $0x764] ss:$8 sps:$4 sm:$0xff]   ;;  %v2204_v45 = vcombine.high %v34_v41, %v34_v41  ;;  %v2767_v46 = vld [vmem:[%s3797_s1 + $0x660] ss:$8 sps:$4 sm:$0xff]  }
  0x8e   :  { %1996 = vmatprep.mubr.bf16.mxu1 %v2188_v47  ;;  %v2770_v47 = vld [vmem:[%s3797_s1 + $0x760] ss:$8 sps:$4 sm:$0xff]  }
  0x8f   :  { %1920 = vmatpush1.bf16.msra.mxu0 %v2683_v48  ;;  %v2777_v48 = vld [vmem:[%s3797_s1 + $0x654] ss:$8 sps:$4 sm:$0xff]  }
  0x90   :  { %1971 = vmatpush1.bf16.msra.mxu1 %v2686_v49  ;;  %1921 = vmatprep.subr.bf16.mxu0 %v2691_v50  ;;  %v2780_v49 = vld [vmem:[%s3797_s1 + $0x754] ss:$8 sps:$4 sm:$0xff]  }
  0x91   :  { %1972 = vmatprep.subr.bf16.mxu1 %v2694_v51  ;;  %v3580_v50 = vld [vmem:[%s3798_s0 + $0x30] sm:$0xff]  ;;  %v2201_v51 = vcombine.low %v33_v40, %v33_v40  ;;  %v2843_v40 = vld [vmem:[%s3797_s1 + $0x6a0] ss:$8 sps:$4 sm:$0xff]  }
  0x93   :  { %1922 = vmatpush1.bf16.msra.mxu0 %v2689_v52  ;;  %v2203_v52 = vcombine.low %v34_v41, %v34_v41  ;;  %v2846_v41 = vld [vmem:[%s3797_s1 + $0x7a0] ss:$8 sps:$4 sm:$0xff]  }
  0x94   :  { %1973 = vmatpush1.bf16.msra.mxu1 %v2692_v53  ;;  %1923 = vmatprep.subr.bf16.mxu0 %v2697_v54  ;;  %v3585_v53 = vld [vmem:[%s3798_s0 + $0x70] sm:$0xff]  ;;  %v3590_v54 = vld [vmem:[%s3798_s0 + $0x38] sm:$0xff] }
  0x95   :  { %1974 = vmatprep.subr.bf16.mxu1 %v2700_v55  ;;  %v3595_v55 = vld [vmem:[%s3798_s0 + $0x78] sm:$0xff] }
  0x97   :  { %1924 = vmatpush1.bf16.msra.mxu0 %v2695_v56  ;;  %v2775_v56 = vld [vmem:[%s3797_s1 + $0x650] ss:$8 sps:$4 sm:$0xff]  }
  0x98   :  { %1975 = vmatpush1.bf16.msra.mxu1 %v2698_v57  ;;  %1925 = vmatprep.subr.bf16.mxu0 %v2703_v58  ;;  %v2778_v57 = vld [vmem:[%s3797_s1 + $0x750] ss:$8 sps:$4 sm:$0xff]   ;;  %v2785_v58 = vld [vmem:[%s3797_s1 + $0x644] ss:$8 sps:$4 sm:$0xff]  }
  0x99   :  { %1976 = vmatprep.subr.bf16.mxu1 %v2706_v59  ;;  %v2788_v59 = vld [vmem:[%s3797_s1 + $0x744] ss:$8 sps:$4 sm:$0xff]  }
  0x9b   :  { %1926 = vmatpush1.bf16.msra.mxu0 %v2701_v60  ;;  %v2190_v60 = vcombine.high %v3580_v50, %v3585_v53 }
  0x9c   :  { %1977 = vmatpush1.bf16.msra.mxu1 %v2704_v61  ;;  %1927 = vmatprep.subr.bf16.mxu0 %v2709_v62  ;;  %v2192_v61 = vcombine.high %v3590_v54, %v3595_v55  ;;  %v2783_v62 = vld [vmem:[%s3797_s1 + $0x640] ss:$8 sps:$4 sm:$0xff]  }
  0x9d   :  { %1978 = vmatprep.subr.bf16.mxu1 %v2712_v63  ;;  %v2786_v63 = vld [vmem:[%s3797_s1 + $0x740] ss:$8 sps:$4 sm:$0xff]  }
  0x9f   :  { %1928 = vmatpush1.bf16.msra.mxu0 %v2707_v0  ;;  %v2791_v0 = vld [vmem:[%s3797_s1 + $0x634] ss:$8 sps:$4 sm:$0xff]  }
  0xa0   :  { %1979 = vmatpush1.bf16.msra.mxu1 %v2710_v1  ;;  %1929 = vmatprep.subr.bf16.mxu0 %v2715_v2  ;;  %v2794_v1 = vld [vmem:[%s3797_s1 + $0x734] ss:$8 sps:$4 sm:$0xff]   ;;  %v2789_v2 = vld [vmem:[%s3797_s1 + $0x630] ss:$8 sps:$4 sm:$0xff]  }
  0xa1   :  { %1980 = vmatprep.subr.bf16.mxu1 %v2718_v3  ;;  %v2792_v3 = vld [vmem:[%s3797_s1 + $0x730] ss:$8 sps:$4 sm:$0xff]  }
  0xa3   :  { %1930 = vmatpush2.bf16.msra.mxu0 %v2713_v4  ;;  %v2797_v4 = vld [vmem:[%s3797_s1 + $0x624] ss:$8 sps:$4 sm:$0xff]  }
  0xa4   :  { %1981 = vmatpush2.bf16.msra.mxu1 %v2716_v5  ;;  %1931 = vmatprep.subr.bf16.mxu0 %v2721_v6  ;;  %v2800_v5 = vld [vmem:[%s3797_s1 + $0x724] ss:$8 sps:$4 sm:$0xff]   ;;  %v2795_v6 = vld [vmem:[%s3797_s1 + $0x620] ss:$8 sps:$4 sm:$0xff]  }
  0xa5   :  { %1982 = vmatprep.subr.bf16.mxu1 %v2724_v7  ;;  %v2798_v7 = vld [vmem:[%s3797_s1 + $0x720] ss:$8 sps:$4 sm:$0xff]  }
  0xa7   :  { %1932 = vmatpush2.bf16.msra.mxu0 %v2719_v8  ;;  %v2803_v8 = vld [vmem:[%s3797_s1 + $0x614] ss:$8 sps:$4 sm:$0xff]  }
  0xa8   :  { %1983 = vmatpush2.bf16.msra.mxu1 %v2722_v9  ;;  %1933 = vmatprep.subr.bf16.mxu0 %v2727_v10  ;;  %v2806_v9 = vld [vmem:[%s3797_s1 + $0x714] ss:$8 sps:$4 sm:$0xff]   ;;  %v2801_v10 = vld [vmem:[%s3797_s1 + $0x610] ss:$8 sps:$4 sm:$0xff]  }
  0xa9   :  { %1984 = vmatprep.subr.bf16.mxu1 %v2730_v11  ;;  %v2804_v11 = vld [vmem:[%s3797_s1 + $0x710] ss:$8 sps:$4 sm:$0xff]  }
  0xab   :  { %1934 = vmatpush2.bf16.msra.mxu0 %v2725_v12  ;;  %v2809_v12 = vld [vmem:[%s3797_s1 + $0x604] ss:$8 sps:$4 sm:$0xff]  }
  0xac   :  { %1985 = vmatpush2.bf16.msra.mxu1 %v2728_v13  ;;  %1935 = vmatprep.subr.bf16.mxu0 %v2733_v14  ;;  %v2812_v13 = vld [vmem:[%s3797_s1 + $0x704] ss:$8 sps:$4 sm:$0xff]   ;;  %v2807_v14 = vld [vmem:[%s3797_s1 + $0x600] ss:$8 sps:$4 sm:$0xff]  }
  0xad   :  { %1986 = vmatprep.subr.bf16.mxu1 %v2736_v15  ;;  %v2810_v15 = vld [vmem:[%s3797_s1 + $0x700] ss:$8 sps:$4 sm:$0xff]  }
  0xaf   :  { %1936 = vmatpush2.bf16.msra.mxu0 %v2731_v16  ;;  %v2815_v16 = vld [vmem:[%s3797_s1 + $0x6f4] ss:$8 sps:$4 sm:$0xff]  }
  0xb0   :  { %1987 = vmatpush2.bf16.msra.mxu1 %v2734_v17  ;;  %1937 = vmatprep.subr.bf16.mxu0 %v2739_v18  ;;  %v2818_v17 = vld [vmem:[%s3797_s1 + $0x7f4] ss:$8 sps:$4 sm:$0xff]   ;;  %v2813_v18 = vld [vmem:[%s3797_s1 + $0x6f0] ss:$8 sps:$4 sm:$0xff]  }
  0xb1   :  { %1988 = vmatprep.subr.bf16.mxu1 %v2742_v19  ;;  %v2816_v19 = vld [vmem:[%s3797_s1 + $0x7f0] ss:$8 sps:$4 sm:$0xff]  }
  0xb3   :  { %1938 = vmatpush2.bf16.msra.mxu0 %v2737_v20  ;;  %v2821_v20 = vld [vmem:[%s3797_s1 + $0x6e4] ss:$8 sps:$4 sm:$0xff]  }
  0xb4   :  { %1989 = vmatpush2.bf16.msra.mxu1 %v2740_v21  ;;  %1939 = vmatprep.subr.bf16.mxu0 %v2745_v22  ;;  %v2824_v21 = vld [vmem:[%s3797_s1 + $0x7e4] ss:$8 sps:$4 sm:$0xff]   ;;  %v2819_v22 = vld [vmem:[%s3797_s1 + $0x6e0] ss:$8 sps:$4 sm:$0xff]  }
  0xb5   :  { %1990 = vmatprep.subr.bf16.mxu1 %v2748_v23  ;;  %v2822_v23 = vld [vmem:[%s3797_s1 + $0x7e0] ss:$8 sps:$4 sm:$0xff]  }
  0xb7   :  { %1940 = vmatpush2.bf16.msra.mxu0 %v2743_v24  ;;  %v2827_v24 = vld [vmem:[%s3797_s1 + $0x6d4] ss:$8 sps:$4 sm:$0xff]  }
  0xb8   :  { %1991 = vmatpush2.bf16.msra.mxu1 %v2746_v25  ;;  %1941 = vmatprep.subr.bf16.mxu0 %v2751_v26  ;;  %v2830_v25 = vld [vmem:[%s3797_s1 + $0x7d4] ss:$8 sps:$4 sm:$0xff]   ;;  %v2825_v26 = vld [vmem:[%s3797_s1 + $0x6d0] ss:$8 sps:$4 sm:$0xff]  }
  0xb9   :  { %1992 = vmatprep.subr.bf16.mxu1 %v2754_v27  ;;  %v2828_v27 = vld [vmem:[%s3797_s1 + $0x7d0] ss:$8 sps:$4 sm:$0xff]  }
  0xbb   :  { %1942 = vmatpush2.bf16.msra.mxu0 %v2749_v28  ;;  %v2833_v28 = vld [vmem:[%s3797_s1 + $0x6c4] ss:$8 sps:$4 sm:$0xff]  }
  0xbc   :  { %1993 = vmatpush2.bf16.msra.mxu1 %v2752_v29  ;;  %1943 = vmatprep.subr.bf16.mxu0 %v2757_v30  ;;  %v2836_v29 = vld [vmem:[%s3797_s1 + $0x7c4] ss:$8 sps:$4 sm:$0xff]   ;;  %v2831_v30 = vld [vmem:[%s3797_s1 + $0x6c0] ss:$8 sps:$4 sm:$0xff]  }
  0xbd   :  { %1994 = vmatprep.subr.bf16.mxu1 %v2760_v31  ;;  %v2834_v31 = vld [vmem:[%s3797_s1 + $0x7c0] ss:$8 sps:$4 sm:$0xff]  }
  0xbf   :  { %1944 = vmatpush2.bf16.msra.mxu0 %v2755_v32  ;;  %v2839_v32 = vld [vmem:[%s3797_s1 + $0x6b4] ss:$8 sps:$4 sm:$0xff]  }
  0xc0   :  { %1995 = vmatpush2.bf16.msra.mxu1 %v2758_v33  ;;  %2015 = vmatprep.subr.bf16.mxu0 %v2763_v34  ;;  %v2842_v33 = vld [vmem:[%s3797_s1 + $0x7b4] ss:$8 sps:$4 sm:$0xff]   ;;  %v2837_v34 = vld [vmem:[%s3797_s1 + $0x6b0] ss:$8 sps:$4 sm:$0xff]  }
  0xc1   :  { %2066 = vmatprep.subr.bf16.mxu1 %v2766_v35  ;;  %v2840_v35 = vld [vmem:[%s3797_s1 + $0x7b0] ss:$8 sps:$4 sm:$0xff]  }
  0xc2   :  { %1946 = vmatmul.mubr.bf16.vlgmr.msra.gmra.mxu0 %v2185_v36  ;;  %v2845_v36 = vld [vmem:[%s3797_s1 + $0x6a4] ss:$8 sps:$4 sm:$0xff]  }
  0xc3   :  { %1997 = vmatmul.mubr.bf16.vlgmr.msra.gmra.mxu1 %v2187_v37  ;;  %2016 = vmatpush1.bf16.msra.mxu0 %v2761_v44  ;;  %v2848_v37 = vld [vmem:[%s3797_s1 + $0x7a4] ss:$8 sps:$4 sm:$0xff]   ;;  %v2851_v44 = vld [vmem:[%s3797_s1 + $0x694] ss:$8 sps:$4 sm:$0xff]  }
  0xc4   :  { %2067 = vmatpush1.bf16.msra.mxu1 %v2764_v38  ;;  %2017 = vmatprep.subr.bf16.mxu0 %v2769_v39  ;;  %v2854_v38 = vld [vmem:[%s3797_s1 + $0x794] ss:$8 sps:$4 sm:$0xff]   ;;  %v2849_v39 = vld [vmem:[%s3797_s1 + $0x690] ss:$8 sps:$4 sm:$0xff]  }
  0xc5   :  { %2068 = vmatprep.subr.bf16.mxu1 %v2772_v42  ;;  %1955 = vmatprep.mubr.bf16.mxu0 %v2202_v43  ;;  %v2852_v42 = vld [vmem:[%s3797_s1 + $0x790] ss:$8 sps:$4 sm:$0xff]   ;;  %v2857_v43 = vld [vmem:[%s3797_s1 + $0x684] ss:$8 sps:$4 sm:$0xff]  }
  0xc6   :  { %2006 = vmatprep.mubr.bf16.mxu1 %v2204_v45  ;;  %v2860_v45 = vld [vmem:[%s3797_s1 + $0x784] ss:$8 sps:$4 sm:$0xff]  }
  0xc7   :  { %2018 = vmatpush1.bf16.msra.mxu0 %v2767_v46  ;;  %v2855_v46 = vld [vmem:[%s3797_s1 + $0x680] ss:$8 sps:$4 sm:$0xff]  }
  0xc8   :  { %2069 = vmatpush1.bf16.msra.mxu1 %v2770_v47  ;;  %2019 = vmatprep.subr.bf16.mxu0 %v2777_v48  ;;  %v2858_v47 = vld [vmem:[%s3797_s1 + $0x780] ss:$8 sps:$4 sm:$0xff]   ;;  %v35_v48 = vld [vmem:[%s3798_s0 + $0xb0] sm:$0xff] }
  0xc9   :  { %2070 = vmatprep.subr.bf16.mxu1 %v2780_v49  ;;  %v36_v49 = vld [vmem:[%s3798_s0 + $0xb8] sm:$0xff] }
  0xca   :  { %1956 = vmatmul.mubr.bf16.gmra.mxu0 %v2201_v51  ;;  %v2189_v51 = vcombine.low %v3580_v50, %v3585_v53  ;;  %v2205_v50 = vcombine.low %v35_v48, %v35_v48  ;;  %v2207_v53 = vcombine.low %v36_v49, %v36_v49 }
  0xcb   :  { %2007 = vmatmul.mubr.bf16.gmra.mxu1 %v2203_v52  ;;  %2020 = vmatpush1.bf16.msra.mxu0 %v2775_v56  ;;  %v2191_v52 = vcombine.low %v3590_v54, %v3595_v55  ;;  %v2206_v56 = vcombine.high %v35_v48, %v35_v48 }
  0xcc   :  { %2071 = vmatpush1.bf16.msra.mxu1 %v2778_v57  ;;  %2021 = vmatprep.subr.bf16.mxu0 %v2785_v58  ;;  %v2208_v57 = vcombine.high %v36_v49, %v36_v49 }
  0xcd   :  { %2072 = vmatprep.subr.bf16.mxu1 %v2788_v59  ;;  %2047 = vmatprep.mubr.bf16.mxu0 %v2190_v60 }
  0xce   :  { %2098 = vmatprep.mubr.bf16.mxu1 %v2192_v61 }
  0xcf   :  { %2022 = vmatpush1.bf16.msra.mxu0 %v2783_v62 }
  0xd0   :  { %2073 = vmatpush1.bf16.msra.mxu1 %v2786_v63  ;;  %2023 = vmatprep.subr.bf16.mxu0 %v2791_v0 }
  0xd1   :  { %2074 = vmatprep.subr.bf16.mxu1 %v2794_v1 }
  0xd3   :  { %2024 = vmatpush1.bf16.msra.mxu0 %v2789_v2 }
  0xd4   :  { %2075 = vmatpush1.bf16.msra.mxu1 %v2792_v3  ;;  %2025 = vmatprep.subr.bf16.mxu0 %v2797_v4 }
  0xd5   :  { %2076 = vmatprep.subr.bf16.mxu1 %v2800_v5 }
  0xd7   :  { %2026 = vmatpush1.bf16.msra.mxu0 %v2795_v6 }
  0xd8   :  { %2077 = vmatpush1.bf16.msra.mxu1 %v2798_v7  ;;  %2027 = vmatprep.subr.bf16.mxu0 %v2803_v8 }
  0xd9   :  { %2078 = vmatprep.subr.bf16.mxu1 %v2806_v9 }
  0xdb   :  { %2028 = vmatpush1.bf16.msra.mxu0 %v2801_v10 }
  0xdc   :  { %2079 = vmatpush1.bf16.msra.mxu1 %v2804_v11  ;;  %2029 = vmatprep.subr.bf16.mxu0 %v2809_v12 }
  0xdd   :  { %2080 = vmatprep.subr.bf16.mxu1 %v2812_v13 }
  0xdf   :  { %2030 = vmatpush1.bf16.msra.mxu0 %v2807_v14 }
  0xe0   :  { %2081 = vmatpush1.bf16.msra.mxu1 %v2810_v15  ;;  %2031 = vmatprep.subr.bf16.mxu0 %v2815_v16 }
  0xe1   :  { %2082 = vmatprep.subr.bf16.mxu1 %v2818_v17 }
  0xe3   :  { %2032 = vmatpush2.bf16.msra.mxu0 %v2813_v18 }
  0xe4   :  { %2083 = vmatpush2.bf16.msra.mxu1 %v2816_v19  ;;  %2033 = vmatprep.subr.bf16.mxu0 %v2821_v20 }
  0xe5   :  { %2084 = vmatprep.subr.bf16.mxu1 %v2824_v21 }
  0xe7   :  { %2034 = vmatpush2.bf16.msra.mxu0 %v2819_v22 }
  0xe8   :  { %2085 = vmatpush2.bf16.msra.mxu1 %v2822_v23  ;;  %2035 = vmatprep.subr.bf16.mxu0 %v2827_v24 }
  0xe9   :  { %2086 = vmatprep.subr.bf16.mxu1 %v2830_v25 }
  0xeb   :  { %2036 = vmatpush2.bf16.msra.mxu0 %v2825_v26 }
  0xec   :  { %2087 = vmatpush2.bf16.msra.mxu1 %v2828_v27  ;;  %2037 = vmatprep.subr.bf16.mxu0 %v2833_v28 }
  0xed   :  { %2088 = vmatprep.subr.bf16.mxu1 %v2836_v29 }
  0xef   :  { %2038 = vmatpush2.bf16.msra.mxu0 %v2831_v30 }
  0xf0   :  { %2089 = vmatpush2.bf16.msra.mxu1 %v2834_v31  ;;  %2039 = vmatprep.subr.bf16.mxu0 %v2839_v32 }
  0xf1   :  { %2090 = vmatprep.subr.bf16.mxu1 %v2842_v33 }
  0xf3   :  { %2040 = vmatpush2.bf16.msra.mxu0 %v2837_v34 }
  0xf4   :  { %2091 = vmatpush2.bf16.msra.mxu1 %v2840_v35  ;;  %2041 = vmatprep.subr.bf16.mxu0 %v2845_v36 }
  0xf5   :  { %2092 = vmatprep.subr.bf16.mxu1 %v2848_v37 }
  0xf7   :  { %2042 = vmatpush2.bf16.msra.mxu0 %v2843_v40 }
  0xf8   :  { %2093 = vmatpush2.bf16.msra.mxu1 %v2846_v41  ;;  %2043 = vmatprep.subr.bf16.mxu0 %v2851_v44 }
  0xf9   :  { %2094 = vmatprep.subr.bf16.mxu1 %v2854_v38 }
  0xfb   :  { %2044 = vmatpush2.bf16.msra.mxu0 %v2849_v39 }
  0xfc   :  { %2095 = vmatpush2.bf16.msra.mxu1 %v2852_v42  ;;  %2045 = vmatprep.subr.bf16.mxu0 %v2857_v43 }
  0xfd   :  { %2096 = vmatprep.subr.bf16.mxu1 %v2860_v45 }
  0xff   :  { %2046 = vmatpush2.bf16.msra.mxu0 %v2855_v46 }
 0x100   :  { %2097 = vmatpush2.bf16.msra.mxu1 %v2858_v47 }
 0x102   :  { %v1743_v58 = vpop.f32.mrf.mxu0  ;;  %2048 = vmatmul.mubr.bf16.vlgmr.msra.gmra.mxu0 %v2189_v51 }
 0x103   :  { %v1794_v59 = vpop.f32.mrf.mxu1  ;;  %2099 = vmatmul.mubr.bf16.vlgmr.msra.gmra.mxu1 %v2191_v52  ;;  %2057 = vmatprep.mubr.bf16.mxu0 %v2206_v56 }
 0x104   :  { %v1795_v60 = vadd.f32 %v1794_v59, %v1743_v58  ;;  %2108 = vmatprep.mubr.bf16.mxu1 %v2208_v57  ;;  %v1745_v61 = vpop.f32.mrf.mxu0 }
 0x105   :  { %v1796_v62 = vpop.f32.mrf.mxu1 }
 0x106   :  { %v1797_v63 = vadd.f32 %v1796_v62, %v1745_v61  ;;  %v1747_v0 = vpop.f32.mrf.mxu0 }
 0x107   :  { %v1798_v1 = vpop.f32.mrf.mxu1 }
 0x108   :  { %v1799_v2 = vadd.f32 %v1798_v1, %v1747_v0  ;;  %v1749_v54 = vpop.f32.mrf.mxu0 }
 0x109   :  { %v1800_v55 = vpop.f32.mrf.mxu1 }
 0x10a   :  { %v1801_v3 = vadd.f32 %v1800_v55, %v1749_v54  ;;  %2058 = vmatmul.mubr.bf16.gmra.mxu0 %v2205_v50  ;;  %v1753_v4 = vpop.f32.mrf.mxu0 }
 0x10b   :  { %2109 = vmatmul.mubr.bf16.gmra.mxu1 %v2207_v53  ;;  %v1804_v5 = vpop.f32.mrf.mxu1 }
 0x10c   :  { %v1805_v6 = vadd.f32 %v1804_v5, %v1753_v4  ;;  %v1755_v7 = vpop.f32.mrf.mxu0 }
 0x10d   :  { %v1806_v8 = vpop.f32.mrf.mxu1 }
 0x10e   :  { %v1807_v9 = vadd.f32 %v1806_v8, %v1755_v7  ;;  %v1757_v10 = vpop.f32.mrf.mxu0 }
 0x10f   :  { %v1808_v11 = vpop.f32.mrf.mxu1 }
 0x110   :  { %v1758_v12 = vpop.f32.mrf.mxu0 }
 0x111   :  { %v1809_v13 = vpop.f32.mrf.mxu1 }
 0x142   :  { %v1845_v14 = vpop.f32.mrf.mxu0 }
 0x143   :  { %v1896_v15 = vpop.f32.mrf.mxu1  ;;  %v1846_v16 = vadd.f32 %v1845_v14, %v1795_v60 }
 0x144   :  { %v1847_v17 = vpop.f32.mrf.mxu0 }
 0x145   :  { %v1898_v18 = vpop.f32.mrf.mxu1  ;;  %v1897_v19 = vadd.f32 %v1896_v15, %v1846_v16  ;;  %v1848_v20 = vadd.f32 %v1847_v17, %v1797_v63 }
 0x146   :  { %v1849_v21 = vpop.f32.mrf.mxu0 }
 0x147   :  { %v1900_v22 = vpop.f32.mrf.mxu1  ;;  %v1899_v23 = vadd.f32 %v1898_v18, %v1848_v20  ;;  %v1850_v24 = vadd.f32 %v1849_v21, %v1799_v2 }
 0x148   :  { %v1851_v25 = vpop.f32.mrf.mxu0 }
 0x149   :  { %v1902_v26 = vpop.f32.mrf.mxu1  ;;  %v1901_v27 = vadd.f32 %v1900_v22, %v1850_v24  ;;  %v1852_v28 = vadd.f32 %v1851_v25, %v1801_v3 }
 0x14a   :  { %v1855_v29 = vpop.f32.mrf.mxu0 }
 0x14b   :  { %v1906_v30 = vpop.f32.mrf.mxu1  ;;  %v1903_v31 = vadd.f32 %v1902_v26, %v1852_v28  ;;  %v1856_v32 = vadd.f32 %v1855_v29, %v1805_v6 }
 0x14c   :  { %v1857_v33 = vpop.f32.mrf.mxu0 }
 0x14d   :  { %v1908_v34 = vpop.f32.mrf.mxu1  ;;  %v1858_v35 = vadd.f32 %v1857_v33, %v1807_v9  ;;  %v1907_v36 = vadd.f32 %v1906_v30, %v1856_v32 }
 0x14e   :  { %v1859_v37 = vpop.f32.mrf.mxu0 }
 0x14f   :  { %v1910_v40 = vpop.f32.mrf.mxu1  ;;  %v1909_v41 = vadd.f32 %v1908_v34, %v1858_v35 }
 0x150   :  { %v1860_v44 = vpop.f32.mrf.mxu0 }
 0x151   :  { %v1911_v38 = vpop.f32.mrf.mxu1 }
 0x182   :  { %v1947_v39 = vpop.f32.mrf.mxu0 }
 0x183   :  { %v1998_v42 = vpop.f32.mrf.mxu1  ;;  %v1948_v62 = vadd.f32 %v1947_v39, %v1897_v19 }
 0x184   :  { %v1949_v43 = vpop.f32.mrf.mxu0 }
 0x185   :  { %v2000_v45 = vpop.f32.mrf.mxu1  ;;  %v1950_v63 = vadd.f32 %v1949_v43, %v1899_v23  ;;  %v1999_v0 = vadd.f32 %v1998_v42, %v1948_v62 }
 0x186   :  { %v1951_v46 = vpop.f32.mrf.mxu0 }
 0x187   :  { %v2002_v47 = vpop.f32.mrf.mxu1  ;;  %v1952_v1 = vadd.f32 %v1951_v46, %v1901_v27  ;;  %v2001_v2 = vadd.f32 %v2000_v45, %v1950_v63 }
 0x188   :  { %v1953_v48 = vpop.f32.mrf.mxu0 }
 0x189   :  { %v2004_v49 = vpop.f32.mrf.mxu1  ;;  %v1954_v54 = vadd.f32 %v1953_v48, %v1903_v31  ;;  %v2003_v5 = vadd.f32 %v2002_v47, %v1952_v1 }
 0x18a   :  { %v1957_v51 = vpop.f32.mrf.mxu0 }
 0x18b   :  { %v2008_v52 = vpop.f32.mrf.mxu1  ;;  %v1958_v6 = vadd.f32 %v1957_v51, %v1907_v36  ;;  %v2005_v11 = vadd.f32 %v2004_v49, %v1954_v54 }
 0x18c   :  { %v1959_v56 = vpop.f32.mrf.mxu0 }
 0x18d   :  { %v2010_v57 = vpop.f32.mrf.mxu1  ;;  %v1960_v14 = vadd.f32 %v1959_v56, %v1909_v41  ;;  %v2009_v17 = vadd.f32 %v2008_v52, %v1958_v6 }
 0x18e   :  { %v1961_v58 = vpop.f32.mrf.mxu0 }
 0x18f   :  { %v2012_v59 = vpop.f32.mrf.mxu1  ;;  %v2011_v27 = vadd.f32 %v2010_v57, %v1960_v14 }
 0x190   :  { %v1962_v60 = vpop.f32.mrf.mxu0 }
 0x191   :  { %v2013_v61 = vpop.f32.mrf.mxu1 }
 0x1c2   :  { %v2049_v50 = vpop.f32.mrf.mxu0 }
 0x1c3   :  { %v2100_v53 = vpop.f32.mrf.mxu1  ;;  %v2050_v55 = vadd.f32 %v2049_v50, %v1999_v0 }
 0x1c4   :  { %v2051_v3 = vpop.f32.mrf.mxu0 }
 0x1c5   :  { %v2102_v4 = vpop.f32.mrf.mxu1  ;;  %v2101_v7 = vadd.f32 %v2100_v53, %v2050_v55  ;;  %v2052_v8 = vadd.f32 %v2051_v3, %v2001_v2 }
 0x1c6   :  { %v2053_v9 = vpop.f32.mrf.mxu0 }
 0x1c7   :  { %v2104_v10 = vpop.f32.mrf.mxu1  ;;  %2117 = vst [vmem:[%s3799_s2] sm:$0xff] %v2101_v7  ;;  %v2103_v12 = vadd.f32 %v2102_v4, %v2052_v8  ;;  %v2054_v13 = vadd.f32 %v2053_v9, %v2003_v5  ;;  %v2139_v20 = vmul.f32 %v2101_v7, %v2101_v7 }
 0x1c8   :  { %v2055_v15 = vpop.f32.mrf.mxu0 }
 0x1c9   :  { %v2106_v16 = vpop.f32.mrf.mxu1  ;;  %2118 = vst [vmem:[%s3799_s2 + $0x8] sm:$0xff] %v2103_v12  ;;  %v2105_v18 = vadd.f32 %v2104_v10, %v2054_v13  ;;  %v2056_v19 = vadd.f32 %v2055_v15, %v2005_v11  ;;  %v2140_v28 = vmul.f32 %v2103_v12, %v2103_v12 }
 0x1ca   :  { %v2059_v21 = vpop.f32.mrf.mxu0 }
 0x1cb   :  { %v2110_v22 = vpop.f32.mrf.mxu1  ;;  %2119 = vst [vmem:[%s3799_s2 + $0x10] sm:$0xff] %v2105_v18  ;;  %v2123_v23 = vadd.f32 %v2105_v18, %v2101_v7  ;;  %v2141_v24 = vmul.f32 %v2105_v18, %v2105_v18  ;;  %v2107_v25 = vadd.f32 %v2106_v16, %v2056_v19  ;;  %v2060_v26 = vadd.f32 %v2059_v21, %v2009_v17 }
 0x1cc   :  { %v2061_v29 = vpop.f32.mrf.mxu0 }
 0x1cd   :  { %v2112_v30 = vpop.f32.mrf.mxu1  ;;  %v2145_v31 = vadd.f32 %v2141_v24, %v2139_v20  ;;  %2120 = vst [vmem:[%s3799_s2 + $0x18] sm:$0xff] %v2107_v25  ;;  %v2131_v32 = vadd.f32 %v2107_v25, %v2103_v12  ;;  %v2142_v33 = vmul.f32 %v2107_v25, %v2107_v25  ;;  %v2111_v34 = vadd.f32 %v2110_v22, %v2060_v26 }
 0x1ce   :  { %v2062_v35 = vadd.f32 %v2061_v29, %v2011_v27  ;;  %v2063_v36 = vpop.f32.mrf.mxu0 }
 0x1cf   :  { %v2114_v37 = vpop.f32.mrf.mxu1  ;;  %v2153_v40 = vadd.f32 %v2142_v33, %v2140_v28  ;;  %2121 = vst [vmem:[%s3799_s2 + $0x20] sm:$0xff] %v2111_v34  ;;  %v2124_v41 = vadd.f32 %v2123_v23, %v2111_v34  ;;  %v2143_v44 = vmul.f32 %v2111_v34, %v2111_v34 }
 0x1d0   :  { %v2113_v38 = vadd.f32 %v2112_v30, %v2062_v35  ;;  %v2064_v39 = vpop.f32.mrf.mxu0 }
 0x1d1   :  { %v2115_v42 = vpop.f32.mrf.mxu1  ;;  %v2125_v43 = vrot.slane %v2124_v41, 4  ;;  %v2146_v45 = vadd.f32 %v2145_v31, %v2143_v44 }
 0x1d2   :  { %2122 = vst [vmem:[%s3799_s2 + $0x28] sm:$0xff] %v2113_v38  ;;  %v2132_v46 = vadd.f32 %v2131_v32, %v2113_v38  ;;  %v2144_v47 = vmul.f32 %v2113_v38, %v2113_v38 }
 0x1d3   :  { %v2126_v48 = vadd.f32 %v2125_v43, %v2124_v41  ;;  %v2147_v49 = vrot.slane %v2146_v45, 4 }
 0x1d4   :  { %v2133_v51 = vrot.slane %v2132_v46, 4  ;;  %v2154_v52 = vadd.f32 %v2153_v40, %v2144_v47 }
 0x1d5   :  { %v2127_v56 = vrot.slane %v2126_v48, 2  ;;  %v2148_v57 = vadd.f32 %v2147_v49, %v2146_v45 }
 0x1d6   :  { %v2134_v58 = vadd.f32 %v2133_v51, %v2132_v46  ;;  %v2155_v59 = vrot.slane %v2154_v52, 4 }
 0x1d7   :  { %v2128_v60 = vadd.f32 %v2127_v56, %v2126_v48  ;;  %v2149_v61 = vrot.slane %v2148_v57, 2 }
 0x1d8   :  { %v2135_v62 = vrot.slane %v2134_v58, 2  ;;  %v2156_v63 = vadd.f32 %v2155_v59, %v2154_v52 }
 0x1d9   :  { %v2129_v0 = vrot.slane %v2128_v60, 1  ;;  %v2150_v1 = vadd.f32 %v2149_v61, %v2148_v57 }
 0x1da   :  { %v2136_v50 = vadd.f32 %v2135_v62, %v2134_v58  ;;  %v2157_v53 = vrot.slane %v2156_v63, 2 }
 0x1db   :  { %v2151_v2 = vrot.slane %v2150_v1, 1  ;;  %v2130_v3 = vadd.f32 %v2129_v0, %v2128_v60 }
 0x1dc   :  { %v2137_v54 = vrot.slane %v2136_v50, 1  ;;  %v2158_v55 = vadd.f32 %v2157_v53, %v2156_v63 }
 0x1dd   :  { %v2152_v4 = vadd.f32 %v2151_v2, %v2150_v1 }
 0x1de   :  { %v2159_v5 = vrot.slane %v2158_v55, 1  ;;  %v2138_v8 = vadd.f32 %v2137_v54, %v2136_v50 }
 0x1df   :  { %v2162_v6 = vsel %vm2161_vm0, %v2130_v3, %v2152_v4 }
 0x1e0   :  { %v2165_v7 = vsel %vm2164_vm1, %v2162_v6, 0.0  ;;  %v2160_v9 = vadd.f32 %v2159_v5, %v2158_v55 }
 0x1e1   :  { %2167 = vst [vmem:[%s3800_s3] sm:$0xff] %v2165_v7 }
 0x1e2   :  { %v2163_v10 = vsel %vm2161_vm0, %v2138_v8, %v2160_v9 }
 0x1e3   :  { %v2166_v11 = vsel %vm2164_vm1, %v2163_v10, 0.0 }
 0x1e4   :  { %2168 = vst [vmem:[%s3800_s3 + $0x8] sm:$0xff] %v2166_v11 }

// kernel: generator_forward.16
= control target key start
LH: loop header
LB: loop body
LE: loop exit
PB: predicated region body
PF: predicated region fallthrough
CT: control target
= control target key end

     0   :  { %9 = vsyncpa [#allocation3], 0  ;;  %s6053_s12 = smov [#allocation2]   ;;  %s7327_s0 = inlined_call_operand.vmem [shape: bf16[8,128], index: 0, kind: input, shape index: {}]   ;;  %s7328_s1 = inlined_call_operand.hbm [shape: bf16[128,8192], index: 1, kind: input, shape index: {}]   ;;  %s7329_s2 = inlined_call_operand.vmem [shape: f32[8,8192], index: 2, kind: output, shape index: {0}]   ;;  %s7330_s3 = inlined_call_operand.vmem [shape: f32[8,8192], index: 3, kind: output, shape index: {1}]  }
   0x1   :  { %s17_s13 = sshll.u32 %s6053_s12, 4  ;;  %s18_s13 = int_to_ptr.vmem [resolvable:$true] %s17_s13 }
   0x2   :  { %s6039_s14 = scalar_lea.vmem %s18_s13, 65536  ;;  %p6044_p1 = scmp.lt.s32.totalorder %s18_s13, %s18_s13 }
   0x3   :  { %p6040_p0 = scmp.ne.s32.totalorder %s18_s13, %s6039_s14  ;;  %p6045_p2 = scmp.lt.s32.totalorder %s6039_s14, %s6039_s14 }
   0x5   :  { %p6046_p3 = por %p6045_p2, %p6044_p1 }
   0x7   :  { %p6047_p4 = pnand %p6046_p3, %p6040_p0 }
   0x9   :  { %6050 = shalt.err (!%p6047_p4)
}
   0xa   :  { %s6054_s15 = smov 4096   ;;  %s6055_s16 = smov 256  }
   0xb   :  { %23 = dma.hbm_to_vmem [thread:$0]  %s7328_s1, 65536, %s18_s13, [#allocation3], %s6054_s15, %s6054_s15, %s6055_s16  }
   0xc   :  { %6051 = dma.done.wait [#allocation3], 65536  }
   0xd   :  { %6052 = vsyncadd [#allocation3], 4294901760  ;;  %v6056_v0 = vmov 0   ;;  %v477_v1 = vld [vmem:[#allocation2 + $0xe00] sm:$0xff]  ;;  %v478_v3 = vld [vmem:[#allocation2 + $0xe08] sm:$0xff]  ;;  %vm5309_vm0 = vcmask 1040384  }
   0xe   :  { %3133 = vmatprep.mubr.bf16.mxu0 %v6056_v0  ;;  %3174 = vmatprep.mubr.bf16.mxu1 %v6056_v0  ;;  %v509_v2 = vld [vmem:[#allocation2 + $0xf00] sm:$0xff]  ;;  %v510_v5 = vld [vmem:[#allocation2 + $0xf08] sm:$0xff]  ;;  %v479_v63 = vld [vmem:[#allocation2 + $0xe10] sm:$0xff]  ;;  %vm5374_vm1 = vcmask 1041408  }
   0xf   :  { %v5961_v4 = vcombine.high %v477_v1, %v509_v2  ;;  %v5960_v6 = vcombine.low %v477_v1, %v509_v2  ;;  %v413_v7 = vld [vmem:[#allocation2 + $0xc00] sm:$0xff]  ;;  %v5963_v9 = vcombine.high %v478_v3, %v510_v5  ;;  %v5962_v10 = vcombine.low %v478_v3, %v510_v5  ;;  %v414_v12 = vld [vmem:[#allocation2 + $0xc08] sm:$0xff]  ;;  %v511_v1 = vld [vmem:[#allocation2 + $0xf10] sm:$0xff] }
  0x10   :  { %v445_v8 = vld [vmem:[#allocation2 + $0xd00] sm:$0xff]  ;;  %v446_v13 = vld [vmem:[#allocation2 + $0xd08] sm:$0xff]  ;;  %v480_v2 = vld [vmem:[#allocation2 + $0xe18] sm:$0xff] }
  0x11   :  { %v5897_v11 = vcombine.high %v413_v7, %v445_v8  ;;  %v349_v14 = vld [vmem:[#allocation2 + $0xa00] sm:$0xff]  ;;  %3101 = vmatprep.subr.bf16.mxu0 %v5961_v4  ;;  %v5899_v15 = vcombine.high %v414_v12, %v446_v13  ;;  %v350_v17 = vld [vmem:[#allocation2 + $0xa08] sm:$0xff]  ;;  %3142 = vmatprep.subr.bf16.mxu1 %v5963_v9  ;;  %v5896_v19 = vcombine.low %v413_v7, %v445_v8  ;;  %v512_v3 = vld [vmem:[#allocation2 + $0xf18] sm:$0xff] }
  0x12   :  { %v381_v16 = vld [vmem:[#allocation2 + $0xb00] sm:$0xff]  ;;  %v382_v18 = vld [vmem:[#allocation2 + $0xb08] sm:$0xff]  ;;  %3102 = vmatpush1.bf16.msra.mxu0 %v5960_v6  ;;  %3143 = vmatpush1.bf16.msra.mxu1 %v5962_v10  ;;  %v5898_v20 = vcombine.low %v414_v12, %v446_v13  ;;  %v5965_v6 = vcombine.high %v479_v63, %v511_v1  ;;  %v5967_v7 = vcombine.high %v480_v2, %v512_v3  ;;  %v415_v8 = vld [vmem:[#allocation2 + $0xc10] sm:$0xff] }
  0x13   :  { %3103 = vmatprep.subr.bf16.mxu0 %v5897_v11  ;;  %v5833_v21 = vcombine.high %v349_v14, %v381_v16  ;;  %3144 = vmatprep.subr.bf16.mxu1 %v5899_v15  ;;  %v5835_v22 = vcombine.high %v350_v17, %v382_v18  ;;  %v285_v23 = vld [vmem:[#allocation2 + $0x800] sm:$0xff]  ;;  %v286_v25 = vld [vmem:[#allocation2 + $0x808] sm:$0xff]  ;;  %v5832_v27 = vcombine.low %v349_v14, %v381_v16  ;;  %v447_v9 = vld [vmem:[#allocation2 + $0xd10] sm:$0xff] }
  0x14   :  { %v317_v24 = vld [vmem:[#allocation2 + $0x900] sm:$0xff]  ;;  %v318_v26 = vld [vmem:[#allocation2 + $0x908] sm:$0xff]  ;;  %v5834_v28 = vcombine.low %v350_v17, %v382_v18  ;;  %v416_v10 = vld [vmem:[#allocation2 + $0xc18] sm:$0xff]  ;;  %v5964_v13 = vcombine.low %v479_v63, %v511_v1  ;;  %v5966_v14 = vcombine.low %v480_v2, %v512_v3  ;;  %v5901_v15 = vcombine.high %v415_v8, %v447_v9 }
  0x15   :  { %v5769_v29 = vcombine.high %v285_v23, %v317_v24  ;;  %v5771_v30 = vcombine.high %v286_v25, %v318_v26  ;;  %v221_v31 = vld [vmem:[#allocation2 + $0x600] sm:$0xff]  ;;  %v222_v33 = vld [vmem:[#allocation2 + $0x608] sm:$0xff]  ;;  %v5768_v35 = vcombine.low %v285_v23, %v317_v24  ;;  %v5770_v36 = vcombine.low %v286_v25, %v318_v26  ;;  %v448_v11 = vld [vmem:[#allocation2 + $0xd18] sm:$0xff] }
  0x16   :  { %3104 = vmatpush1.bf16.msra.mxu0 %v5896_v19  ;;  %3145 = vmatpush1.bf16.msra.mxu1 %v5898_v20  ;;  %v253_v32 = vld [vmem:[#allocation2 + $0x700] sm:$0xff]  ;;  %v254_v34 = vld [vmem:[#allocation2 + $0x708] sm:$0xff]  ;;  %v5903_v16 = vcombine.high %v416_v10, %v448_v11  ;;  %v351_v17 = vld [vmem:[#allocation2 + $0xa10] sm:$0xff] }
  0x17   :  { %3105 = vmatprep.subr.bf16.mxu0 %v5833_v21  ;;  %3146 = vmatprep.subr.bf16.mxu1 %v5835_v22  ;;  %v5705_v37 = vcombine.high %v221_v31, %v253_v32  ;;  %v5707_v38 = vcombine.high %v222_v33, %v254_v34  ;;  %v157_v39 = vld [vmem:[#allocation2 + $0x400] sm:$0xff]  ;;  %v158_v41 = vld [vmem:[#allocation2 + $0x408] sm:$0xff]  ;;  %v5704_v43 = vcombine.low %v221_v31, %v253_v32  ;;  %v383_v18 = vld [vmem:[#allocation2 + $0xb10] sm:$0xff] }
  0x18   :  { %v189_v40 = vld [vmem:[#allocation2 + $0x500] sm:$0xff]  ;;  %v190_v42 = vld [vmem:[#allocation2 + $0x508] sm:$0xff]  ;;  %v5706_v44 = vcombine.low %v222_v33, %v254_v34  ;;  %v352_v19 = vld [vmem:[#allocation2 + $0xa18] sm:$0xff]  ;;  %v5900_v21 = vcombine.low %v415_v8, %v447_v9  ;;  %v5902_v22 = vcombine.low %v416_v10, %v448_v11  ;;  %v5837_v23 = vcombine.high %v351_v17, %v383_v18 }
  0x19   :  { %v5641_v45 = vcombine.high %v157_v39, %v189_v40  ;;  %v5643_v46 = vcombine.high %v158_v41, %v190_v42  ;;  %v93_v47 = vld [vmem:[#allocation2 + $0x200] sm:$0xff]  ;;  %v94_v49 = vld [vmem:[#allocation2 + $0x208] sm:$0xff]  ;;  %v5640_v51 = vcombine.low %v157_v39, %v189_v40  ;;  %v5642_v52 = vcombine.low %v158_v41, %v190_v42  ;;  %v384_v20 = vld [vmem:[#allocation2 + $0xb18] sm:$0xff] }
  0x1a   :  { %3106 = vmatpush1.bf16.msra.mxu0 %v5832_v27  ;;  %3147 = vmatpush1.bf16.msra.mxu1 %v5834_v28  ;;  %v125_v48 = vld [vmem:[#allocation2 + $0x300] sm:$0xff]  ;;  %v126_v50 = vld [vmem:[#allocation2 + $0x308] sm:$0xff]  ;;  %v5839_v24 = vcombine.high %v352_v19, %v384_v20  ;;  %v287_v25 = vld [vmem:[#allocation2 + $0x810] sm:$0xff] }
  0x1b   :  { %3107 = vmatprep.subr.bf16.mxu0 %v5769_v29  ;;  %3148 = vmatprep.subr.bf16.mxu1 %v5771_v30  ;;  %v5577_v53 = vcombine.high %v93_v47, %v125_v48  ;;  %v5579_v54 = vcombine.high %v94_v49, %v126_v50  ;;  %v29_v55 = vld [vmem:[#allocation2] sm:$0xff]  ;;  %v30_v57 = vld [vmem:[#allocation2 + $0x8] sm:$0xff]  ;;  %v5576_v59 = vcombine.low %v93_v47, %v125_v48  ;;  %v319_v26 = vld [vmem:[#allocation2 + $0x910] sm:$0xff] }
  0x1c   :  { %v61_v56 = vld [vmem:[#allocation2 + $0x100] sm:$0xff]  ;;  %v62_v58 = vld [vmem:[#allocation2 + $0x108] sm:$0xff]  ;;  %v5578_v60 = vcombine.low %v94_v49, %v126_v50  ;;  %v288_v27 = vld [vmem:[#allocation2 + $0x818] sm:$0xff]  ;;  %v5836_v29 = vcombine.low %v351_v17, %v383_v18  ;;  %v5838_v30 = vcombine.low %v352_v19, %v384_v20  ;;  %v5773_v31 = vcombine.high %v287_v25, %v319_v26 }
  0x1d   :  { %v5513_v61 = vcombine.high %v29_v55, %v61_v56  ;;  %v5515_v62 = vcombine.high %v30_v57, %v62_v58  ;;  %v5512_v4 = vcombine.low %v29_v55, %v61_v56  ;;  %v5514_v5 = vcombine.low %v30_v57, %v62_v58  ;;  %v6085_v12 = vld [vmem:[%s7327_s0] sm:$0xf]  ;;  %v320_v28 = vld [vmem:[#allocation2 + $0x918] sm:$0xff]  ;;  %v223_v33 = vld [vmem:[#allocation2 + $0x610] sm:$0xff] }
  0x1e   :  { %3108 = vmatpush1.bf16.msra.mxu0 %v5768_v35  ;;  %3149 = vmatpush1.bf16.msra.mxu1 %v5770_v36  ;;  %v5775_v32 = vcombine.high %v288_v27, %v320_v28  ;;  %v255_v34 = vld [vmem:[#allocation2 + $0x710] sm:$0xff]  ;;  %v224_v35 = vld [vmem:[#allocation2 + $0x618] sm:$0xff]  ;;  %v481_v2 = vld [vmem:[#allocation2 + $0xe20] sm:$0xff] }
  0x1f   :  { %3109 = vmatprep.subr.bf16.mxu0 %v5705_v37  ;;  %3150 = vmatprep.subr.bf16.mxu1 %v5707_v38  ;;  %v256_v36 = vld [vmem:[#allocation2 + $0x718] sm:$0xff]  ;;  %v5772_v37 = vcombine.low %v287_v25, %v319_v26  ;;  %v5774_v38 = vcombine.low %v288_v27, %v320_v28  ;;  %v5709_v39 = vcombine.high %v223_v33, %v255_v34  ;;  %v159_v41 = vld [vmem:[#allocation2 + $0x410] sm:$0xff]  ;;  %v513_v3 = vld [vmem:[#allocation2 + $0xf20] sm:$0xff] }
  0x20   :  { %v5711_v40 = vcombine.high %v224_v35, %v256_v36  ;;  %v191_v42 = vld [vmem:[#allocation2 + $0x510] sm:$0xff]  ;;  %v5969_v8 = vcombine.high %v481_v2, %v513_v3  ;;  %v417_v10 = vld [vmem:[#allocation2 + $0xc20] sm:$0xff] }
  0x21   :  { %v5645_v47 = vcombine.high %v159_v41, %v191_v42  ;;  %v95_v49 = vld [vmem:[#allocation2 + $0x210] sm:$0xff]  ;;  %v449_v11 = vld [vmem:[#allocation2 + $0xd20] sm:$0xff] }
  0x22   :  { %3110 = vmatpush1.bf16.msra.mxu0 %v5704_v43  ;;  %3151 = vmatpush1.bf16.msra.mxu1 %v5706_v44  ;;  %v160_v43 = vld [vmem:[#allocation2 + $0x418] sm:$0xff]  ;;  %v127_v50 = vld [vmem:[#allocation2 + $0x310] sm:$0xff]  ;;  %v5905_v17 = vcombine.high %v417_v10, %v449_v11  ;;  %v353_v19 = vld [vmem:[#allocation2 + $0xa20] sm:$0xff] }
  0x23   :  { %3111 = vmatprep.subr.bf16.mxu0 %v5641_v45  ;;  %3152 = vmatprep.subr.bf16.mxu1 %v5643_v46  ;;  %v192_v44 = vld [vmem:[#allocation2 + $0x518] sm:$0xff]  ;;  %v5708_v45 = vcombine.low %v223_v33, %v255_v34  ;;  %v5710_v46 = vcombine.low %v224_v35, %v256_v36  ;;  %v5581_v55 = vcombine.high %v95_v49, %v127_v50  ;;  %v31_v57 = vld [vmem:[#allocation2 + $0x10] sm:$0xff]  ;;  %v385_v20 = vld [vmem:[#allocation2 + $0xb20] sm:$0xff] }
  0x24   :  { %v5647_v48 = vcombine.high %v160_v43, %v192_v44  ;;  %v63_v58 = vld [vmem:[#allocation2 + $0x110] sm:$0xff]  ;;  %v5841_v25 = vcombine.high %v353_v19, %v385_v20  ;;  %v289_v27 = vld [vmem:[#allocation2 + $0x820] sm:$0xff] }
  0x25   :  { %v5517_v63 = vcombine.high %v31_v57, %v63_v58  ;;  %v321_v28 = vld [vmem:[#allocation2 + $0x920] sm:$0xff] }
  0x26   :  { %3112 = vmatpush1.bf16.msra.mxu0 %v5640_v51  ;;  %3153 = vmatpush1.bf16.msra.mxu1 %v5642_v52  ;;  %v96_v51 = vld [vmem:[#allocation2 + $0x218] sm:$0xff]  ;;  %v5777_v33 = vcombine.high %v289_v27, %v321_v28  ;;  %v225_v35 = vld [vmem:[#allocation2 + $0x620] sm:$0xff] }
  0x27   :  { %3113 = vmatprep.subr.bf16.mxu0 %v5577_v53  ;;  %3154 = vmatprep.subr.bf16.mxu1 %v5579_v54  ;;  %v128_v52 = vld [vmem:[#allocation2 + $0x318] sm:$0xff]  ;;  %v5644_v53 = vcombine.low %v159_v41, %v191_v42  ;;  %v5646_v54 = vcombine.low %v160_v43, %v192_v44  ;;  %v257_v36 = vld [vmem:[#allocation2 + $0x720] sm:$0xff] }
  0x28   :  { %v5583_v56 = vcombine.high %v96_v51, %v128_v52  ;;  %v5713_v41 = vcombine.high %v225_v35, %v257_v36  ;;  %v161_v43 = vld [vmem:[#allocation2 + $0x420] sm:$0xff] }
  0x29   :  { %v193_v44 = vld [vmem:[#allocation2 + $0x520] sm:$0xff] }
  0x2a   :  { %3114 = vmatpush1.bf16.msra.mxu0 %v5576_v59  ;;  %3155 = vmatpush1.bf16.msra.mxu1 %v5578_v60  ;;  %v32_v59 = vld [vmem:[#allocation2 + $0x18] sm:$0xff] }
  0x2b   :  { %3115 = vmatprep.subr.bf16.mxu0 %v5513_v61  ;;  %3156 = vmatprep.subr.bf16.mxu1 %v5515_v62  ;;  %v64_v60 = vld [vmem:[#allocation2 + $0x118] sm:$0xff]  ;;  %v5580_v61 = vcombine.low %v95_v49, %v127_v50  ;;  %v5582_v62 = vcombine.low %v96_v51, %v128_v52  ;;  %v5649_v49 = vcombine.high %v161_v43, %v193_v44  ;;  %v97_v51 = vld [vmem:[#allocation2 + $0x220] sm:$0xff] }
  0x2c   :  { %v5519_v1 = vcombine.high %v32_v59, %v64_v60  ;;  %v129_v52 = vld [vmem:[#allocation2 + $0x320] sm:$0xff] }
  0x2e   :  { %3116 = vmatpush1.bf16.msra.mxu0 %v5512_v4  ;;  %3157 = vmatpush1.bf16.msra.mxu1 %v5514_v5  ;;  %v482_v4 = vld [vmem:[#allocation2 + $0xe28] sm:$0xff] }
  0x2f   :  { %3183 = vmatprep.subr.bf16.mxu0 %v5965_v6  ;;  %3224 = vmatprep.subr.bf16.mxu1 %v5967_v7  ;;  %v514_v5 = vld [vmem:[#allocation2 + $0xf28] sm:$0xff]  ;;  %v5516_v6 = vcombine.low %v31_v57, %v63_v58  ;;  %v5518_v7 = vcombine.low %v32_v59, %v64_v60  ;;  %v5585_v57 = vcombine.high %v97_v51, %v129_v52  ;;  %v33_v59 = vld [vmem:[#allocation2 + $0x20] sm:$0xff] }
  0x30   :  { %v5971_v9 = vcombine.high %v482_v4, %v514_v5  ;;  %v65_v60 = vld [vmem:[#allocation2 + $0x120] sm:$0xff] }
  0x31   :  { %3134 = vmatmul.mubr.bf16.vlgmr.msra.gmra.mxu0 %v6085_v12  ;;  %3175 = vmatmul.mubr.bf16.vlgmr.msra.gmra.mxu1 %v6085_v12 }
  0x32   :  { %3184 = vmatpush1.bf16.msra.mxu0 %v5964_v13  ;;  %3225 = vmatpush1.bf16.msra.mxu1 %v5966_v14  ;;  %v418_v13 = vld [vmem:[#allocation2 + $0xc28] sm:$0xff] }
  0x33   :  { %3185 = vmatprep.subr.bf16.mxu0 %v5901_v15  ;;  %3226 = vmatprep.subr.bf16.mxu1 %v5903_v16  ;;  %v450_v14 = vld [vmem:[#allocation2 + $0xd28] sm:$0xff]  ;;  %v5968_v15 = vcombine.low %v481_v2, %v513_v3  ;;  %v5970_v16 = vcombine.low %v482_v4, %v514_v5  ;;  %v5521_v2 = vcombine.high %v33_v59, %v65_v60  ;;  %v483_v4 = vld [vmem:[#allocation2 + $0xe30] sm:$0xff] }
  0x34   :  { %3215 = vmatprep.mubr.bf16.mxu0 %v6056_v0  ;;  %3256 = vmatprep.mubr.bf16.mxu1 %v6056_v0  ;;  %v5907_v18 = vcombine.high %v418_v13, %v450_v14  ;;  %v515_v5 = vld [vmem:[#allocation2 + $0xf30] sm:$0xff] }
  0x36   :  { %3186 = vmatpush1.bf16.msra.mxu0 %v5900_v21  ;;  %3227 = vmatpush1.bf16.msra.mxu1 %v5902_v22  ;;  %v354_v21 = vld [vmem:[#allocation2 + $0xa28] sm:$0xff] }
  0x37   :  { %3187 = vmatprep.subr.bf16.mxu0 %v5837_v23  ;;  %3228 = vmatprep.subr.bf16.mxu1 %v5839_v24  ;;  %v386_v22 = vld [vmem:[#allocation2 + $0xb28] sm:$0xff]  ;;  %v5904_v23 = vcombine.low %v417_v10, %v449_v11  ;;  %v5906_v24 = vcombine.low %v418_v13, %v450_v14  ;;  %v5973_v10 = vcombine.high %v483_v4, %v515_v5  ;;  %v419_v13 = vld [vmem:[#allocation2 + $0xc30] sm:$0xff] }
  0x38   :  { %v5843_v26 = vcombine.high %v354_v21, %v386_v22  ;;  %v451_v14 = vld [vmem:[#allocation2 + $0xd30] sm:$0xff] }
  0x3a   :  { %3188 = vmatpush1.bf16.msra.mxu0 %v5836_v29  ;;  %3229 = vmatpush1.bf16.msra.mxu1 %v5838_v30  ;;  %v290_v29 = vld [vmem:[#allocation2 + $0x828] sm:$0xff] }
  0x3b   :  { %3189 = vmatprep.subr.bf16.mxu0 %v5773_v31  ;;  %3230 = vmatprep.subr.bf16.mxu1 %v5775_v32  ;;  %v322_v30 = vld [vmem:[#allocation2 + $0x928] sm:$0xff]  ;;  %v5840_v31 = vcombine.low %v353_v19, %v385_v20  ;;  %v5842_v32 = vcombine.low %v354_v21, %v386_v22  ;;  %v5909_v19 = vcombine.high %v419_v13, %v451_v14  ;;  %v355_v21 = vld [vmem:[#allocation2 + $0xa30] sm:$0xff] }
  0x3c   :  { %v5779_v34 = vcombine.high %v290_v29, %v322_v30  ;;  %v387_v22 = vld [vmem:[#allocation2 + $0xb30] sm:$0xff] }
  0x3e   :  { %3190 = vmatpush1.bf16.msra.mxu0 %v5772_v37  ;;  %3231 = vmatpush1.bf16.msra.mxu1 %v5774_v38  ;;  %v226_v37 = vld [vmem:[#allocation2 + $0x628] sm:$0xff] }
  0x3f   :  { %3191 = vmatprep.subr.bf16.mxu0 %v5709_v39  ;;  %3232 = vmatprep.subr.bf16.mxu1 %v5711_v40  ;;  %v258_v38 = vld [vmem:[#allocation2 + $0x728] sm:$0xff]  ;;  %v5776_v39 = vcombine.low %v289_v27, %v321_v28  ;;  %v5778_v40 = vcombine.low %v290_v29, %v322_v30  ;;  %v5845_v27 = vcombine.high %v355_v21, %v387_v22  ;;  %v291_v29 = vld [vmem:[#allocation2 + $0x830] sm:$0xff] }
  0x40   :  { %v5715_v42 = vcombine.high %v226_v37, %v258_v38  ;;  %v323_v30 = vld [vmem:[#allocation2 + $0x930] sm:$0xff] }
  0x42   :  { %3192 = vmatpush1.bf16.msra.mxu0 %v5708_v45  ;;  %3233 = vmatpush1.bf16.msra.mxu1 %v5710_v46  ;;  %v162_v45 = vld [vmem:[#allocation2 + $0x428] sm:$0xff] }
  0x43   :  { %3193 = vmatprep.subr.bf16.mxu0 %v5645_v47  ;;  %3234 = vmatprep.subr.bf16.mxu1 %v5647_v48  ;;  %v194_v46 = vld [vmem:[#allocation2 + $0x528] sm:$0xff]  ;;  %v5712_v47 = vcombine.low %v225_v35, %v257_v36  ;;  %v5714_v48 = vcombine.low %v226_v37, %v258_v38  ;;  %v5781_v35 = vcombine.high %v291_v29, %v323_v30  ;;  %v227_v37 = vld [vmem:[#allocation2 + $0x630] sm:$0xff] }
  0x44   :  { %v5651_v50 = vcombine.high %v162_v45, %v194_v46  ;;  %v259_v38 = vld [vmem:[#allocation2 + $0x730] sm:$0xff] }
  0x46   :  { %3194 = vmatpush1.bf16.msra.mxu0 %v5644_v53  ;;  %3235 = vmatpush1.bf16.msra.mxu1 %v5646_v54  ;;  %v98_v53 = vld [vmem:[#allocation2 + $0x228] sm:$0xff] }
  0x47   :  { %3195 = vmatprep.subr.bf16.mxu0 %v5581_v55  ;;  %3236 = vmatprep.subr.bf16.mxu1 %v5583_v56  ;;  %v130_v54 = vld [vmem:[#allocation2 + $0x328] sm:$0xff]  ;;  %v5648_v55 = vcombine.low %v161_v43, %v193_v44  ;;  %v5650_v56 = vcombine.low %v162_v45, %v194_v46  ;;  %v5717_v43 = vcombine.high %v227_v37, %v259_v38  ;;  %v163_v45 = vld [vmem:[#allocation2 + $0x430] sm:$0xff] }
  0x48   :  { %v5587_v58 = vcombine.high %v98_v53, %v130_v54  ;;  %v195_v46 = vld [vmem:[#allocation2 + $0x530] sm:$0xff] }
  0x4a   :  { %3196 = vmatpush1.bf16.msra.mxu0 %v5580_v61  ;;  %3237 = vmatpush1.bf16.msra.mxu1 %v5582_v62  ;;  %v34_v61 = vld [vmem:[#allocation2 + $0x28] sm:$0xff] }
  0x4b   :  { %3197 = vmatprep.subr.bf16.mxu0 %v5517_v63  ;;  %3238 = vmatprep.subr.bf16.mxu1 %v5519_v1  ;;  %v66_v62 = vld [vmem:[#allocation2 + $0x128] sm:$0xff]  ;;  %v5584_v63 = vcombine.low %v97_v51, %v129_v52  ;;  %v5586_v1 = vcombine.low %v98_v53, %v130_v54  ;;  %v5653_v51 = vcombine.high %v163_v45, %v195_v46  ;;  %v99_v53 = vld [vmem:[#allocation2 + $0x230] sm:$0xff] }
  0x4c   :  { %v5523_v3 = vcombine.high %v34_v61, %v66_v62  ;;  %v131_v54 = vld [vmem:[#allocation2 + $0x330] sm:$0xff] }
  0x4e   :  { %3198 = vmatpush1.bf16.msra.mxu0 %v5516_v6  ;;  %3239 = vmatpush1.bf16.msra.mxu1 %v5518_v7  ;;  %v484_v6 = vld [vmem:[#allocation2 + $0xe38] sm:$0xff] }
  0x4f   :  { %3265 = vmatprep.subr.bf16.mxu0 %v5969_v8  ;;  %3306 = vmatprep.subr.bf16.mxu1 %v5971_v9  ;;  %v516_v7 = vld [vmem:[#allocation2 + $0xf38] sm:$0xff]  ;;  %v5520_v8 = vcombine.low %v33_v59, %v65_v60  ;;  %v5522_v9 = vcombine.low %v34_v61, %v66_v62  ;;  %v5589_v59 = vcombine.high %v99_v53, %v131_v54  ;;  %v35_v61 = vld [vmem:[#allocation2 + $0x30] sm:$0xff] }
  0x50   :  { %v5975_v11 = vcombine.high %v484_v6, %v516_v7  ;;  %v67_v62 = vld [vmem:[#allocation2 + $0x130] sm:$0xff] }
  0x51   :  { %3216 = vmatmul.mubr.bf16.vlgmr.msra.gmra.mxu0 %v6085_v12  ;;  %3257 = vmatmul.mubr.bf16.vlgmr.msra.gmra.mxu1 %v6085_v12 }
  0x52   :  { %3266 = vmatpush1.bf16.msra.mxu0 %v5968_v15  ;;  %3307 = vmatpush1.bf16.msra.mxu1 %v5970_v16  ;;  %v420_v15 = vld [vmem:[#allocation2 + $0xc38] sm:$0xff] }
  0x53   :  { %3267 = vmatprep.subr.bf16.mxu0 %v5905_v17  ;;  %3308 = vmatprep.subr.bf16.mxu1 %v5907_v18  ;;  %v452_v16 = vld [vmem:[#allocation2 + $0xd38] sm:$0xff]  ;;  %v5972_v17 = vcombine.low %v483_v4, %v515_v5  ;;  %v5974_v18 = vcombine.low %v484_v6, %v516_v7  ;;  %v5525_v4 = vcombine.high %v35_v61, %v67_v62  ;;  %v485_v6 = vld [vmem:[#allocation2 + $0xe40] sm:$0xff] }
  0x54   :  { %3297 = vmatprep.mubr.bf16.mxu0 %v6056_v0  ;;  %3338 = vmatprep.mubr.bf16.mxu1 %v6056_v0  ;;  %v5911_v20 = vcombine.high %v420_v15, %v452_v16  ;;  %v517_v7 = vld [vmem:[#allocation2 + $0xf40] sm:$0xff] }
  0x56   :  { %3268 = vmatpush1.bf16.msra.mxu0 %v5904_v23  ;;  %3309 = vmatpush1.bf16.msra.mxu1 %v5906_v24  ;;  %v356_v23 = vld [vmem:[#allocation2 + $0xa38] sm:$0xff] }
  0x57   :  { %3269 = vmatprep.subr.bf16.mxu0 %v5841_v25  ;;  %3310 = vmatprep.subr.bf16.mxu1 %v5843_v26  ;;  %v388_v24 = vld [vmem:[#allocation2 + $0xb38] sm:$0xff]  ;;  %v5908_v25 = vcombine.low %v419_v13, %v451_v14  ;;  %v5910_v26 = vcombine.low %v420_v15, %v452_v16  ;;  %v5977_v13 = vcombine.high %v485_v6, %v517_v7  ;;  %v421_v15 = vld [vmem:[#allocation2 + $0xc40] sm:$0xff] }
  0x58   :  { %v5847_v28 = vcombine.high %v356_v23, %v388_v24  ;;  %v453_v16 = vld [vmem:[#allocation2 + $0xd40] sm:$0xff] }
  0x5a   :  { %3270 = vmatpush1.bf16.msra.mxu0 %v5840_v31  ;;  %3311 = vmatpush1.bf16.msra.mxu1 %v5842_v32  ;;  %v292_v31 = vld [vmem:[#allocation2 + $0x838] sm:$0xff] }
  0x5b   :  { %3271 = vmatprep.subr.bf16.mxu0 %v5777_v33  ;;  %3312 = vmatprep.subr.bf16.mxu1 %v5779_v34  ;;  %v324_v32 = vld [vmem:[#allocation2 + $0x938] sm:$0xff]  ;;  %v5844_v33 = vcombine.low %v355_v21, %v387_v22  ;;  %v5846_v34 = vcombine.low %v356_v23, %v388_v24  ;;  %v5913_v21 = vcombine.high %v421_v15, %v453_v16  ;;  %v357_v23 = vld [vmem:[#allocation2 + $0xa40] sm:$0xff] }
  0x5c   :  { %v5783_v36 = vcombine.high %v292_v31, %v324_v32  ;;  %v389_v24 = vld [vmem:[#allocation2 + $0xb40] sm:$0xff] }
  0x5e   :  { %3272 = vmatpush1.bf16.msra.mxu0 %v5776_v39  ;;  %3313 = vmatpush1.bf16.msra.mxu1 %v5778_v40  ;;  %v228_v39 = vld [vmem:[#allocation2 + $0x638] sm:$0xff] }
  0x5f   :  { %3273 = vmatprep.subr.bf16.mxu0 %v5713_v41  ;;  %3314 = vmatprep.subr.bf16.mxu1 %v5715_v42  ;;  %v260_v40 = vld [vmem:[#allocation2 + $0x738] sm:$0xff]  ;;  %v5780_v41 = vcombine.low %v291_v29, %v323_v30  ;;  %v5782_v42 = vcombine.low %v292_v31, %v324_v32  ;;  %v5849_v29 = vcombine.high %v357_v23, %v389_v24  ;;  %v293_v31 = vld [vmem:[#allocation2 + $0x840] sm:$0xff] }
  0x60   :  { %v5719_v44 = vcombine.high %v228_v39, %v260_v40  ;;  %v325_v32 = vld [vmem:[#allocation2 + $0x940] sm:$0xff] }
  0x62   :  { %3274 = vmatpush1.bf16.msra.mxu0 %v5712_v47  ;;  %3315 = vmatpush1.bf16.msra.mxu1 %v5714_v48  ;;  %v164_v47 = vld [vmem:[#allocation2 + $0x438] sm:$0xff] }
  0x63   :  { %3275 = vmatprep.subr.bf16.mxu0 %v5649_v49  ;;  %3316 = vmatprep.subr.bf16.mxu1 %v5651_v50  ;;  %v196_v48 = vld [vmem:[#allocation2 + $0x538] sm:$0xff]  ;;  %v5716_v49 = vcombine.low %v227_v37, %v259_v38  ;;  %v5718_v50 = vcombine.low %v228_v39, %v260_v40  ;;  %v5785_v37 = vcombine.high %v293_v31, %v325_v32  ;;  %v229_v39 = vld [vmem:[#allocation2 + $0x640] sm:$0xff] }
  0x64   :  { %v5655_v52 = vcombine.high %v164_v47, %v196_v48  ;;  %v261_v40 = vld [vmem:[#allocation2 + $0x740] sm:$0xff] }
  0x66   :  { %3276 = vmatpush1.bf16.msra.mxu0 %v5648_v55  ;;  %3317 = vmatpush1.bf16.msra.mxu1 %v5650_v56  ;;  %v100_v55 = vld [vmem:[#allocation2 + $0x238] sm:$0xff] }
  0x67   :  { %3277 = vmatprep.subr.bf16.mxu0 %v5585_v57  ;;  %3318 = vmatprep.subr.bf16.mxu1 %v5587_v58  ;;  %v132_v56 = vld [vmem:[#allocation2 + $0x338] sm:$0xff]  ;;  %v5652_v57 = vcombine.low %v163_v45, %v195_v46  ;;  %v5654_v58 = vcombine.low %v164_v47, %v196_v48  ;;  %v5721_v45 = vcombine.high %v229_v39, %v261_v40  ;;  %v165_v47 = vld [vmem:[#allocation2 + $0x440] sm:$0xff] }
  0x68   :  { %v5591_v60 = vcombine.high %v100_v55, %v132_v56  ;;  %v197_v48 = vld [vmem:[#allocation2 + $0x540] sm:$0xff] }
  0x6a   :  { %3278 = vmatpush1.bf16.msra.mxu0 %v5584_v63  ;;  %3319 = vmatpush1.bf16.msra.mxu1 %v5586_v1  ;;  %v36_v63 = vld [vmem:[#allocation2 + $0x38] sm:$0xff] }
  0x6b   :  { %3279 = vmatprep.subr.bf16.mxu0 %v5521_v2  ;;  %3320 = vmatprep.subr.bf16.mxu1 %v5523_v3  ;;  %v68_v1 = vld [vmem:[#allocation2 + $0x138] sm:$0xff]  ;;  %v5588_v2 = vcombine.low %v99_v53, %v131_v54  ;;  %v5590_v3 = vcombine.low %v100_v55, %v132_v56  ;;  %v5657_v53 = vcombine.high %v165_v47, %v197_v48  ;;  %v101_v55 = vld [vmem:[#allocation2 + $0x240] sm:$0xff] }
  0x6c   :  { %v5527_v5 = vcombine.high %v36_v63, %v68_v1  ;;  %v133_v56 = vld [vmem:[#allocation2 + $0x340] sm:$0xff] }
  0x6e   :  { %3280 = vmatpush1.bf16.msra.mxu0 %v5520_v8  ;;  %3321 = vmatpush1.bf16.msra.mxu1 %v5522_v9  ;;  %v486_v8 = vld [vmem:[#allocation2 + $0xe48] sm:$0xff] }
  0x6f   :  { %3347 = vmatprep.subr.bf16.mxu0 %v5973_v10  ;;  %3388 = vmatprep.subr.bf16.mxu1 %v5975_v11  ;;  %v518_v9 = vld [vmem:[#allocation2 + $0xf48] sm:$0xff]  ;;  %v5524_v10 = vcombine.low %v35_v61, %v67_v62  ;;  %v5526_v11 = vcombine.low %v36_v63, %v68_v1  ;;  %v5593_v61 = vcombine.high %v101_v55, %v133_v56  ;;  %v37_v63 = vld [vmem:[#allocation2 + $0x40] sm:$0xff] }
  0x70   :  { %v5979_v14 = vcombine.high %v486_v8, %v518_v9  ;;  %v69_v1 = vld [vmem:[#allocation2 + $0x140] sm:$0xff] }
  0x71   :  { %3298 = vmatmul.mubr.bf16.vlgmr.msra.gmra.mxu0 %v6085_v12  ;;  %3339 = vmatmul.mubr.bf16.vlgmr.msra.gmra.mxu1 %v6085_v12 }
  0x72   :  { %3348 = vmatpush1.bf16.msra.mxu0 %v5972_v17  ;;  %3389 = vmatpush1.bf16.msra.mxu1 %v5974_v18  ;;  %v422_v17 = vld [vmem:[#allocation2 + $0xc48] sm:$0xff] }
  0x73   :  { %3349 = vmatprep.subr.bf16.mxu0 %v5909_v19  ;;  %3390 = vmatprep.subr.bf16.mxu1 %v5911_v20  ;;  %v454_v18 = vld [vmem:[#allocation2 + $0xd48] sm:$0xff]  ;;  %v5976_v19 = vcombine.low %v485_v6, %v517_v7  ;;  %v5978_v20 = vcombine.low %v486_v8, %v518_v9  ;;  %v5529_v6 = vcombine.high %v37_v63, %v69_v1  ;;  %v487_v8 = vld [vmem:[#allocation2 + $0xe50] sm:$0xff] }
  0x74   :  { %3379 = vmatprep.mubr.bf16.mxu0 %v6056_v0  ;;  %3420 = vmatprep.mubr.bf16.mxu1 %v6056_v0  ;;  %v5915_v22 = vcombine.high %v422_v17, %v454_v18  ;;  %v519_v9 = vld [vmem:[#allocation2 + $0xf50] sm:$0xff] }
  0x76   :  { %3350 = vmatpush1.bf16.msra.mxu0 %v5908_v25  ;;  %3391 = vmatpush1.bf16.msra.mxu1 %v5910_v26  ;;  %v358_v25 = vld [vmem:[#allocation2 + $0xa48] sm:$0xff] }
  0x77   :  { %3351 = vmatprep.subr.bf16.mxu0 %v5845_v27  ;;  %3392 = vmatprep.subr.bf16.mxu1 %v5847_v28  ;;  %v390_v26 = vld [vmem:[#allocation2 + $0xb48] sm:$0xff]  ;;  %v5912_v27 = vcombine.low %v421_v15, %v453_v16  ;;  %v5914_v28 = vcombine.low %v422_v17, %v454_v18  ;;  %v5981_v15 = vcombine.high %v487_v8, %v519_v9  ;;  %v423_v17 = vld [vmem:[#allocation2 + $0xc50] sm:$0xff] }
  0x78   :  { %v5851_v30 = vcombine.high %v358_v25, %v390_v26  ;;  %v455_v18 = vld [vmem:[#allocation2 + $0xd50] sm:$0xff] }
  0x7a   :  { %3352 = vmatpush1.bf16.msra.mxu0 %v5844_v33  ;;  %3393 = vmatpush1.bf16.msra.mxu1 %v5846_v34  ;;  %v294_v33 = vld [vmem:[#allocation2 + $0x848] sm:$0xff] }
  0x7b   :  { %3353 = vmatprep.subr.bf16.mxu0 %v5781_v35  ;;  %3394 = vmatprep.subr.bf16.mxu1 %v5783_v36  ;;  %v326_v34 = vld [vmem:[#allocation2 + $0x948] sm:$0xff]  ;;  %v5848_v35 = vcombine.low %v357_v23, %v389_v24  ;;  %v5850_v36 = vcombine.low %v358_v25, %v390_v26  ;;  %v5917_v23 = vcombine.high %v423_v17, %v455_v18  ;;  %v359_v25 = vld [vmem:[#allocation2 + $0xa50] sm:$0xff] }
  0x7c   :  { %v5787_v38 = vcombine.high %v294_v33, %v326_v34  ;;  %v391_v26 = vld [vmem:[#allocation2 + $0xb50] sm:$0xff] }
  0x7e   :  { %3354 = vmatpush1.bf16.msra.mxu0 %v5780_v41  ;;  %3395 = vmatpush1.bf16.msra.mxu1 %v5782_v42  ;;  %v230_v41 = vld [vmem:[#allocation2 + $0x648] sm:$0xff] }
  0x7f   :  { %3355 = vmatprep.subr.bf16.mxu0 %v5717_v43  ;;  %3396 = vmatprep.subr.bf16.mxu1 %v5719_v44  ;;  %v262_v42 = vld [vmem:[#allocation2 + $0x748] sm:$0xff]  ;;  %v5784_v43 = vcombine.low %v293_v31, %v325_v32  ;;  %v5786_v44 = vcombine.low %v294_v33, %v326_v34  ;;  %v5853_v31 = vcombine.high %v359_v25, %v391_v26  ;;  %v295_v33 = vld [vmem:[#allocation2 + $0x850] sm:$0xff] }
  0x80   :  { %v5723_v46 = vcombine.high %v230_v41, %v262_v42  ;;  %v327_v34 = vld [vmem:[#allocation2 + $0x950] sm:$0xff] }
  0x82   :  { %3356 = vmatpush1.bf16.msra.mxu0 %v5716_v49  ;;  %3397 = vmatpush1.bf16.msra.mxu1 %v5718_v50  ;;  %v166_v49 = vld [vmem:[#allocation2 + $0x448] sm:$0xff] }
  0x83   :  { %3357 = vmatprep.subr.bf16.mxu0 %v5653_v51  ;;  %3398 = vmatprep.subr.bf16.mxu1 %v5655_v52  ;;  %v198_v50 = vld [vmem:[#allocation2 + $0x548] sm:$0xff]  ;;  %v5720_v51 = vcombine.low %v229_v39, %v261_v40  ;;  %v5722_v52 = vcombine.low %v230_v41, %v262_v42  ;;  %v5789_v39 = vcombine.high %v295_v33, %v327_v34  ;;  %v231_v41 = vld [vmem:[#allocation2 + $0x650] sm:$0xff] }
  0x84   :  { %v5659_v54 = vcombine.high %v166_v49, %v198_v50  ;;  %v263_v42 = vld [vmem:[#allocation2 + $0x750] sm:$0xff] }
  0x86   :  { %3358 = vmatpush1.bf16.msra.mxu0 %v5652_v57  ;;  %3399 = vmatpush1.bf16.msra.mxu1 %v5654_v58  ;;  %v102_v57 = vld [vmem:[#allocation2 + $0x248] sm:$0xff] }
  0x87   :  { %3359 = vmatprep.subr.bf16.mxu0 %v5589_v59  ;;  %3400 = vmatprep.subr.bf16.mxu1 %v5591_v60  ;;  %v134_v58 = vld [vmem:[#allocation2 + $0x348] sm:$0xff]  ;;  %v5656_v59 = vcombine.low %v165_v47, %v197_v48  ;;  %v5658_v60 = vcombine.low %v166_v49, %v198_v50  ;;  %v5725_v47 = vcombine.high %v231_v41, %v263_v42  ;;  %v167_v49 = vld [vmem:[#allocation2 + $0x450] sm:$0xff] }
  0x88   :  { %v5595_v62 = vcombine.high %v102_v57, %v134_v58  ;;  %v199_v50 = vld [vmem:[#allocation2 + $0x550] sm:$0xff] }
  0x8a   :  { %3360 = vmatpush1.bf16.msra.mxu0 %v5588_v2  ;;  %3401 = vmatpush1.bf16.msra.mxu1 %v5590_v3  ;;  %v38_v2 = vld [vmem:[#allocation2 + $0x48] sm:$0xff] }
  0x8b   :  { %3361 = vmatprep.subr.bf16.mxu0 %v5525_v4  ;;  %3402 = vmatprep.subr.bf16.mxu1 %v5527_v5  ;;  %v70_v3 = vld [vmem:[#allocation2 + $0x148] sm:$0xff]  ;;  %v5592_v4 = vcombine.low %v101_v55, %v133_v56  ;;  %v5594_v5 = vcombine.low %v102_v57, %v134_v58  ;;  %v5661_v55 = vcombine.high %v167_v49, %v199_v50  ;;  %v103_v57 = vld [vmem:[#allocation2 + $0x250] sm:$0xff] }
  0x8c   :  { %v5531_v7 = vcombine.high %v38_v2, %v70_v3  ;;  %v135_v58 = vld [vmem:[#allocation2 + $0x350] sm:$0xff] }
  0x8e   :  { %3362 = vmatpush1.bf16.msra.mxu0 %v5524_v10  ;;  %3403 = vmatpush1.bf16.msra.mxu1 %v5526_v11  ;;  %v488_v10 = vld [vmem:[#allocation2 + $0xe58] sm:$0xff] }
  0x8f   :  { %3429 = vmatprep.subr.bf16.mxu0 %v5977_v13  ;;  %3470 = vmatprep.subr.bf16.mxu1 %v5979_v14  ;;  %v520_v11 = vld [vmem:[#allocation2 + $0xf58] sm:$0xff]  ;;  %v5528_v13 = vcombine.low %v37_v63, %v69_v1  ;;  %v5530_v14 = vcombine.low %v38_v2, %v70_v3  ;;  %v5597_v63 = vcombine.high %v103_v57, %v135_v58  ;;  %v39_v2 = vld [vmem:[#allocation2 + $0x50] sm:$0xff] }
  0x90   :  { %v5983_v16 = vcombine.high %v488_v10, %v520_v11  ;;  %v71_v3 = vld [vmem:[#allocation2 + $0x150] sm:$0xff] }
  0x91   :  { %3380 = vmatmul.mubr.bf16.vlgmr.msra.gmra.mxu0 %v6085_v12  ;;  %3421 = vmatmul.mubr.bf16.vlgmr.msra.gmra.mxu1 %v6085_v12 }
  0x92   :  { %3430 = vmatpush1.bf16.msra.mxu0 %v5976_v19  ;;  %3471 = vmatpush1.bf16.msra.mxu1 %v5978_v20  ;;  %v424_v19 = vld [vmem:[#allocation2 + $0xc58] sm:$0xff] }
  0x93   :  { %3431 = vmatprep.subr.bf16.mxu0 %v5913_v21  ;;  %3472 = vmatprep.subr.bf16.mxu1 %v5915_v22  ;;  %v456_v20 = vld [vmem:[#allocation2 + $0xd58] sm:$0xff]  ;;  %v5980_v21 = vcombine.low %v487_v8, %v519_v9  ;;  %v5982_v22 = vcombine.low %v488_v10, %v520_v11  ;;  %v5533_v8 = vcombine.high %v39_v2, %v71_v3  ;;  %v489_v10 = vld [vmem:[#allocation2 + $0xe60] sm:$0xff] }
  0x94   :  { %3461 = vmatprep.mubr.bf16.mxu0 %v6056_v0  ;;  %3502 = vmatprep.mubr.bf16.mxu1 %v6056_v0  ;;  %v5919_v24 = vcombine.high %v424_v19, %v456_v20  ;;  %v521_v11 = vld [vmem:[#allocation2 + $0xf60] sm:$0xff] }
  0x96   :  { %3432 = vmatpush1.bf16.msra.mxu0 %v5912_v27  ;;  %3473 = vmatpush1.bf16.msra.mxu1 %v5914_v28  ;;  %v360_v27 = vld [vmem:[#allocation2 + $0xa58] sm:$0xff] }
  0x97   :  { %3433 = vmatprep.subr.bf16.mxu0 %v5849_v29  ;;  %3474 = vmatprep.subr.bf16.mxu1 %v5851_v30  ;;  %v392_v28 = vld [vmem:[#allocation2 + $0xb58] sm:$0xff]  ;;  %v5916_v29 = vcombine.low %v423_v17, %v455_v18  ;;  %v5918_v30 = vcombine.low %v424_v19, %v456_v20  ;;  %v5985_v17 = vcombine.high %v489_v10, %v521_v11  ;;  %v425_v19 = vld [vmem:[#allocation2 + $0xc60] sm:$0xff] }
  0x98   :  { %v5855_v32 = vcombine.high %v360_v27, %v392_v28  ;;  %v457_v20 = vld [vmem:[#allocation2 + $0xd60] sm:$0xff] }
  0x9a   :  { %3434 = vmatpush1.bf16.msra.mxu0 %v5848_v35  ;;  %3475 = vmatpush1.bf16.msra.mxu1 %v5850_v36  ;;  %v296_v35 = vld [vmem:[#allocation2 + $0x858] sm:$0xff] }
  0x9b   :  { %3435 = vmatprep.subr.bf16.mxu0 %v5785_v37  ;;  %3476 = vmatprep.subr.bf16.mxu1 %v5787_v38  ;;  %v328_v36 = vld [vmem:[#allocation2 + $0x958] sm:$0xff]  ;;  %v5852_v37 = vcombine.low %v359_v25, %v391_v26  ;;  %v5854_v38 = vcombine.low %v360_v27, %v392_v28  ;;  %v5921_v25 = vcombine.high %v425_v19, %v457_v20  ;;  %v361_v27 = vld [vmem:[#allocation2 + $0xa60] sm:$0xff] }
  0x9c   :  { %v5791_v40 = vcombine.high %v296_v35, %v328_v36  ;;  %v393_v28 = vld [vmem:[#allocation2 + $0xb60] sm:$0xff] }
  0x9e   :  { %3436 = vmatpush1.bf16.msra.mxu0 %v5784_v43  ;;  %3477 = vmatpush1.bf16.msra.mxu1 %v5786_v44  ;;  %v232_v43 = vld [vmem:[#allocation2 + $0x658] sm:$0xff] }
  0x9f   :  { %3437 = vmatprep.subr.bf16.mxu0 %v5721_v45  ;;  %3478 = vmatprep.subr.bf16.mxu1 %v5723_v46  ;;  %v264_v44 = vld [vmem:[#allocation2 + $0x758] sm:$0xff]  ;;  %v5788_v45 = vcombine.low %v295_v33, %v327_v34  ;;  %v5790_v46 = vcombine.low %v296_v35, %v328_v36  ;;  %v5857_v34 = vcombine.high %v361_v27, %v393_v28  ;;  %v297_v36 = vld [vmem:[#allocation2 + $0x860] sm:$0xff] }
  0xa0   :  { %v5727_v48 = vcombine.high %v232_v43, %v264_v44 }
  0xa2   :  { %3438 = vmatpush1.bf16.msra.mxu0 %v5720_v51  ;;  %3479 = vmatpush1.bf16.msra.mxu1 %v5722_v52  ;;  %v168_v51 = vld [vmem:[#allocation2 + $0x458] sm:$0xff] }
  0xa3   :  { %3439 = vmatprep.subr.bf16.mxu0 %v5657_v53  ;;  %3480 = vmatprep.subr.bf16.mxu1 %v5659_v54  ;;  %v200_v52 = vld [vmem:[#allocation2 + $0x558] sm:$0xff]  ;;  %v5724_v53 = vcombine.low %v231_v41, %v263_v42  ;;  %v5726_v54 = vcombine.low %v232_v43, %v264_v44  ;;  %v233_v43 = vld [vmem:[#allocation2 + $0x660] sm:$0xff] }
  0xa4   :  { %v5663_v56 = vcombine.high %v168_v51, %v200_v52  ;;  %v265_v44 = vld [vmem:[#allocation2 + $0x760] sm:$0xff] }
  0xa6   :  { %3440 = vmatpush1.bf16.msra.mxu0 %v5656_v59  ;;  %3481 = vmatpush1.bf16.msra.mxu1 %v5658_v60  ;;  %v104_v59 = vld [vmem:[#allocation2 + $0x258] sm:$0xff] }
  0xa7   :  { %3441 = vmatprep.subr.bf16.mxu0 %v5593_v61  ;;  %3482 = vmatprep.subr.bf16.mxu1 %v5595_v62  ;;  %v136_v60 = vld [vmem:[#allocation2 + $0x358] sm:$0xff]  ;;  %v5660_v61 = vcombine.low %v167_v49, %v199_v50  ;;  %v5662_v62 = vcombine.low %v168_v51, %v200_v52  ;;  %v5729_v49 = vcombine.high %v233_v43, %v265_v44  ;;  %v169_v51 = vld [vmem:[#allocation2 + $0x460] sm:$0xff] }
  0xa8   :  { %v5599_v1 = vcombine.high %v104_v59, %v136_v60  ;;  %v201_v52 = vld [vmem:[#allocation2 + $0x560] sm:$0xff] }
  0xaa   :  { %3442 = vmatpush1.bf16.msra.mxu0 %v5592_v4  ;;  %3483 = vmatpush1.bf16.msra.mxu1 %v5594_v5  ;;  %v40_v4 = vld [vmem:[#allocation2 + $0x58] sm:$0xff] }
  0xab   :  { %3443 = vmatprep.subr.bf16.mxu0 %v5529_v6  ;;  %3484 = vmatprep.subr.bf16.mxu1 %v5531_v7  ;;  %v72_v5 = vld [vmem:[#allocation2 + $0x158] sm:$0xff]  ;;  %v5596_v6 = vcombine.low %v103_v57, %v135_v58  ;;  %v5598_v7 = vcombine.low %v104_v59, %v136_v60  ;;  %v5665_v57 = vcombine.high %v169_v51, %v201_v52  ;;  %v105_v59 = vld [vmem:[#allocation2 + $0x260] sm:$0xff] }
  0xac   :  { %v5535_v9 = vcombine.high %v40_v4, %v72_v5  ;;  %v137_v60 = vld [vmem:[#allocation2 + $0x360] sm:$0xff] }
  0xae   :  { %3444 = vmatpush1.bf16.msra.mxu0 %v5528_v13  ;;  %3485 = vmatpush1.bf16.msra.mxu1 %v5530_v14  ;;  %v490_v13 = vld [vmem:[#allocation2 + $0xe68] sm:$0xff] }
  0xaf   :  { %3511 = vmatprep.subr.bf16.mxu0 %v5981_v15  ;;  %3552 = vmatprep.subr.bf16.mxu1 %v5983_v16  ;;  %v522_v14 = vld [vmem:[#allocation2 + $0xf68] sm:$0xff]  ;;  %v5532_v15 = vcombine.low %v39_v2, %v71_v3  ;;  %v5534_v16 = vcombine.low %v40_v4, %v72_v5  ;;  %v5601_v2 = vcombine.high %v105_v59, %v137_v60  ;;  %v41_v4 = vld [vmem:[#allocation2 + $0x60] sm:$0xff] }
  0xb0   :  { %v5987_v18 = vcombine.high %v490_v13, %v522_v14  ;;  %v73_v5 = vld [vmem:[#allocation2 + $0x160] sm:$0xff] }
  0xb1   :  { %3462 = vmatmul.mubr.bf16.vlgmr.msra.gmra.mxu0 %v6085_v12  ;;  %3503 = vmatmul.mubr.bf16.vlgmr.msra.gmra.mxu1 %v6085_v12 }
  0xb2   :  { %3512 = vmatpush1.bf16.msra.mxu0 %v5980_v21  ;;  %3553 = vmatpush1.bf16.msra.mxu1 %v5982_v22  ;;  %v426_v21 = vld [vmem:[#allocation2 + $0xc68] sm:$0xff] }
  0xb3   :  { %3513 = vmatprep.subr.bf16.mxu0 %v5917_v23  ;;  %3554 = vmatprep.subr.bf16.mxu1 %v5919_v24  ;;  %v458_v22 = vld [vmem:[#allocation2 + $0xd68] sm:$0xff]  ;;  %v5984_v23 = vcombine.low %v489_v10, %v521_v11  ;;  %v5986_v24 = vcombine.low %v490_v13, %v522_v14  ;;  %v5537_v10 = vcombine.high %v41_v4, %v73_v5  ;;  %v491_v13 = vld [vmem:[#allocation2 + $0xe70] sm:$0xff] }
  0xb4   :  { %3543 = vmatprep.mubr.bf16.mxu0 %v6056_v0  ;;  %3584 = vmatprep.mubr.bf16.mxu1 %v6056_v0  ;;  %v5923_v26 = vcombine.high %v426_v21, %v458_v22  ;;  %v5922_v33 = vcombine.low %v426_v21, %v458_v22  ;;  %v523_v14 = vld [vmem:[#allocation2 + $0xf70] sm:$0xff] }
  0xb5   :  { %v6118_v22 = vld [vmem:[#allocation2 + $0xd70] sm:$0xff] }
  0xb6   :  { %3514 = vmatpush1.bf16.msra.mxu0 %v5916_v29  ;;  %3555 = vmatpush1.bf16.msra.mxu1 %v5918_v30  ;;  %v362_v29 = vld [vmem:[#allocation2 + $0xa68] sm:$0xff] }
  0xb7   :  { %3515 = vmatprep.subr.bf16.mxu0 %v5853_v31  ;;  %3556 = vmatprep.subr.bf16.mxu1 %v5855_v32  ;;  %v394_v30 = vld [vmem:[#allocation2 + $0xb68] sm:$0xff]  ;;  %v6111_v31 = vld [vmem:[%s7327_s0] sm:$0xf]  ;;  %v5920_v32 = vcombine.low %v425_v19, %v457_v20  ;;  %v5989_v19 = vcombine.high %v491_v13, %v523_v14  ;;  %v6116_v20 = vld [vmem:[#allocation2 + $0xc70] sm:$0xff] }
  0xb8   :  { %v5859_v35 = vcombine.high %v362_v29, %v394_v30 }
  0xba   :  { %3516 = vmatpush1.bf16.msra.mxu0 %v5852_v37  ;;  %3557 = vmatpush1.bf16.msra.mxu1 %v5854_v38  ;;  %v329_v37 = vld [vmem:[#allocation2 + $0x960] sm:$0xff]  ;;  %v330_v38 = vld [vmem:[#allocation2 + $0x968] sm:$0xff] }
  0xbb   :  { %3517 = vmatprep.subr.bf16.mxu0 %v5789_v39  ;;  %3558 = vmatprep.subr.bf16.mxu1 %v5791_v40  ;;  %v5856_v39 = vcombine.low %v361_v27, %v393_v28  ;;  %v5858_v40 = vcombine.low %v362_v29, %v394_v30  ;;  %v5793_v41 = vcombine.high %v297_v36, %v329_v37  ;;  %v6128_v27 = vld [vmem:[#allocation2 + $0xa78] sm:$0xff]  ;;  %v6132_v30 = vld [vmem:[#allocation2 + $0x870] sm:$0xff] }
  0xbc   :  { %v5988_v28 = vcombine.low %v491_v13, %v523_v14  ;;  %v6130_v29 = vld [vmem:[#allocation2 + $0xb78] sm:$0xff] }
  0xbe   :  { %3518 = vmatpush1.bf16.msra.mxu0 %v5788_v45  ;;  %3559 = vmatpush1.bf16.msra.mxu1 %v5790_v46  ;;  %v234_v45 = vld [vmem:[#allocation2 + $0x668] sm:$0xff] }
  0xbf   :  { %3519 = vmatprep.subr.bf16.mxu0 %v5725_v47  ;;  %3560 = vmatprep.subr.bf16.mxu1 %v5727_v48  ;;  %v266_v46 = vld [vmem:[#allocation2 + $0x768] sm:$0xff]  ;;  %v5792_v47 = vcombine.low %v297_v36, %v329_v37  ;;  %v6140_v36 = vld [vmem:[#allocation2 + $0x978] sm:$0xff]  ;;  %v5924_v37 = vcombine.low %v6116_v20, %v6118_v22 }
  0xc0   :  { %v5731_v50 = vcombine.high %v234_v45, %v266_v46 }
  0xc2   :  { %3520 = vmatpush1.bf16.msra.mxu0 %v5724_v53  ;;  %3561 = vmatpush1.bf16.msra.mxu1 %v5726_v54  ;;  %v170_v53 = vld [vmem:[#allocation2 + $0x468] sm:$0xff] }
  0xc3   :  { %3521 = vmatprep.subr.bf16.mxu0 %v5661_v55  ;;  %3562 = vmatprep.subr.bf16.mxu1 %v5663_v56  ;;  %v202_v54 = vld [vmem:[#allocation2 + $0x568] sm:$0xff]  ;;  %v5728_v55 = vcombine.low %v233_v43, %v265_v44  ;;  %v5730_v56 = vcombine.low %v234_v45, %v266_v46  ;;  %v5862_v44 = vcombine.low %v6128_v27, %v6130_v29 }
  0xc4   :  { %v5667_v58 = vcombine.high %v170_v53, %v202_v54  ;;  %v5863_v45 = vcombine.high %v6128_v27, %v6130_v29  ;;  %v204_v27 = vld [vmem:[#allocation2 + $0x578] sm:$0xff] }
  0xc6   :  { %3522 = vmatpush1.bf16.msra.mxu0 %v5660_v61  ;;  %3563 = vmatpush1.bf16.msra.mxu1 %v5662_v62  ;;  %v106_v61 = vld [vmem:[#allocation2 + $0x268] sm:$0xff] }
  0xc7   :  { %3523 = vmatprep.subr.bf16.mxu0 %v5597_v63  ;;  %3564 = vmatprep.subr.bf16.mxu1 %v5599_v1  ;;  %v138_v62 = vld [vmem:[#allocation2 + $0x368] sm:$0xff]  ;;  %v5664_v63 = vcombine.low %v169_v51, %v201_v52  ;;  %v5666_v1 = vcombine.low %v170_v53, %v202_v54 }
  0xc8   :  { %v5603_v3 = vcombine.high %v106_v61, %v138_v62 }
  0xca   :  { %3524 = vmatpush1.bf16.msra.mxu0 %v5596_v6  ;;  %3565 = vmatpush1.bf16.msra.mxu1 %v5598_v7  ;;  %v42_v6 = vld [vmem:[#allocation2 + $0x68] sm:$0xff] }
  0xcb   :  { %3525 = vmatprep.subr.bf16.mxu0 %v5533_v8  ;;  %3566 = vmatprep.subr.bf16.mxu1 %v5535_v9  ;;  %v74_v7 = vld [vmem:[#allocation2 + $0x168] sm:$0xff]  ;;  %v5600_v8 = vcombine.low %v105_v59, %v137_v60  ;;  %v5602_v9 = vcombine.low %v106_v61, %v138_v62 }
  0xcc   :  { %v5539_v11 = vcombine.high %v42_v6, %v74_v7 }
  0xce   :  { %3526 = vmatpush1.bf16.msra.mxu0 %v5532_v15  ;;  %3567 = vmatpush1.bf16.msra.mxu1 %v5534_v16  ;;  %v492_v15 = vld [vmem:[#allocation2 + $0xe78] sm:$0xff] }
  0xcf   :  { %3593 = vmatprep.subr.bf16.mxu0 %v5985_v17  ;;  %3634 = vmatprep.subr.bf16.mxu1 %v5987_v18  ;;  %v524_v16 = vld [vmem:[#allocation2 + $0xf78] sm:$0xff]  ;;  %v5536_v17 = vcombine.low %v41_v4, %v73_v5  ;;  %v5538_v18 = vcombine.low %v42_v6, %v74_v7 }
  0xd0   :  { %v5991_v21 = vcombine.high %v492_v15, %v524_v16 }
  0xd1   :  { %3544 = vmatmul.mubr.bf16.vlgmr.msra.gmra.mxu0 %v6085_v12  ;;  %3585 = vmatmul.mubr.bf16.vlgmr.msra.gmra.mxu1 %v6111_v31  ;;  %v298_v12 = vld [vmem:[#allocation2 + $0x868] sm:$0xff] }
  0xd2   :  { %3594 = vmatpush1.bf16.msra.mxu0 %v5984_v23  ;;  %3635 = vmatpush1.bf16.msra.mxu1 %v5986_v24  ;;  %v5795_v42 = vcombine.high %v298_v12, %v330_v38  ;;  %v5794_v48 = vcombine.low %v298_v12, %v330_v38  ;;  %v6120_v23 = vld [vmem:[#allocation2 + $0xc78] sm:$0xff] }
  0xd3   :  { %3595 = vmatprep.subr.bf16.mxu0 %v5921_v25  ;;  %3636 = vmatprep.subr.bf16.mxu1 %v5923_v26  ;;  %v6122_v24 = vld [vmem:[#allocation2 + $0xd78] sm:$0xff]  ;;  %v6124_v25 = vld [vmem:[#allocation2 + $0xa70] sm:$0xff] }
  0xd4   :  { %3625 = vmatprep.mubr.bf16.mxu0 %v6056_v0  ;;  %3666 = vmatprep.mubr.bf16.mxu1 %v6056_v0  ;;  %v6126_v26 = vld [vmem:[#allocation2 + $0xb70] sm:$0xff]  ;;  %v5926_v12 = vcombine.low %v6120_v23, %v6122_v24  ;;  %v5927_v38 = vcombine.high %v6120_v23, %v6122_v24  ;;  %v236_v24 = vld [vmem:[#allocation2 + $0x678] sm:$0xff] }
  0xd5   :  { %v5860_v43 = vcombine.low %v6124_v25, %v6126_v26 }
  0xd6   :  { %3596 = vmatpush1.bf16.msra.mxu0 %v5920_v32  ;;  %3637 = vmatpush1.bf16.msra.mxu1 %v5922_v33  ;;  %v6134_v32 = vld [vmem:[#allocation2 + $0x970] sm:$0xff]  ;;  %v5990_v33 = vcombine.low %v492_v15, %v524_v16 }
  0xd7   :  { %3597 = vmatprep.subr.bf16.mxu0 %v5857_v34  ;;  %3638 = vmatprep.subr.bf16.mxu1 %v5859_v35  ;;  %v5925_v34 = vcombine.high %v6116_v20, %v6118_v22  ;;  %v6138_v35 = vld [vmem:[#allocation2 + $0x878] sm:$0xff]  ;;  %v5797_v46 = vcombine.high %v6132_v30, %v6134_v32 }
  0xd8   :  { %v5798_v51 = vcombine.low %v6138_v35, %v6140_v36 }
  0xda   :  { %3598 = vmatpush1.bf16.msra.mxu0 %v5856_v39  ;;  %3639 = vmatpush1.bf16.msra.mxu1 %v5858_v40  ;;  %v5861_v39 = vcombine.high %v6124_v25, %v6126_v26  ;;  %v6150_v40 = vld [vmem:[#allocation2 + $0x670] sm:$0xff] }
  0xdb   :  { %3599 = vmatprep.subr.bf16.mxu0 %v5793_v41  ;;  %3640 = vmatprep.subr.bf16.mxu1 %v5795_v42  ;;  %v6152_v41 = vld [vmem:[#allocation2 + $0x770] sm:$0xff] }
  0xdc   :  { %v203_v25 = vld [vmem:[#allocation2 + $0x570] sm:$0xff] }
  0xde   :  { %3600 = vmatpush1.bf16.msra.mxu0 %v5792_v47  ;;  %3641 = vmatpush1.bf16.msra.mxu1 %v5794_v48 }
  0xdf   :  { %3601 = vmatprep.subr.bf16.mxu0 %v5729_v49  ;;  %3642 = vmatprep.subr.bf16.mxu1 %v5731_v50  ;;  %v5796_v50 = vcombine.low %v6132_v30, %v6134_v32  ;;  %v107_v32 = vld [vmem:[#allocation2 + $0x270] sm:$0xff] }
  0xe2   :  { %3602 = vmatpush1.bf16.msra.mxu0 %v5728_v55  ;;  %3643 = vmatpush1.bf16.msra.mxu1 %v5730_v56  ;;  %v5799_v55 = vcombine.high %v6138_v35, %v6140_v36  ;;  %v5733_v56 = vcombine.high %v6150_v40, %v6152_v41  ;;  %v108_v36 = vld [vmem:[#allocation2 + $0x278] sm:$0xff] }
  0xe3   :  { %3603 = vmatprep.subr.bf16.mxu0 %v5665_v57  ;;  %3644 = vmatprep.subr.bf16.mxu1 %v5667_v58 }
  0xe6   :  { %3604 = vmatpush1.bf16.msra.mxu0 %v5664_v63  ;;  %3645 = vmatpush1.bf16.msra.mxu1 %v5666_v1 }
  0xe7   :  { %3605 = vmatprep.subr.bf16.mxu0 %v5601_v2  ;;  %3646 = vmatprep.subr.bf16.mxu1 %v5603_v3 }
  0xea   :  { %3606 = vmatpush1.bf16.msra.mxu0 %v5600_v8  ;;  %3647 = vmatpush1.bf16.msra.mxu1 %v5602_v9 }
  0xeb   :  { %3607 = vmatprep.subr.bf16.mxu0 %v5537_v10  ;;  %3648 = vmatprep.subr.bf16.mxu1 %v5539_v11 }
  0xee   :  { %3608 = vmatpush1.bf16.msra.mxu0 %v5536_v17  ;;  %3649 = vmatpush1.bf16.msra.mxu1 %v5538_v18 }
  0xef   :  { %3675 = vmatprep.subr.bf16.mxu0 %v5989_v19  ;;  %3716 = vmatprep.subr.bf16.mxu1 %v5991_v21 }
  0xf1   :  { %v3135_v42 = vpop.f32.mrf.mxu0  ;;  %3626 = vmatmul.mubr.bf16.vlgmr.msra.gmra.mxu0 %v6111_v31  ;;  %v3176_v49 = vpop.f32.mrf.mxu1  ;;  %3667 = vmatmul.mubr.bf16.vlgmr.msra.gmra.mxu1 %v6111_v31 }
  0xf2   :  { %4413 = vst [vmem:[%s7329_s2] sm:$0xff] %v3135_v42  ;;  %v4477_v47 = vrot.slane %v3135_v42, 4  ;;  %v4861_v48 = vmul.f32 %v3135_v42, %v3135_v42  ;;  %3676 = vmatpush1.bf16.msra.mxu0 %v5988_v28  ;;  %4415 = vst [vmem:[%s7329_s2 + $0x10] sm:$0xff] %v3176_v49  ;;  %v4489_v52 = vrot.slane %v3176_v49, 4  ;;  %v4863_v53 = vmul.f32 %v3176_v49, %v3176_v49  ;;  %v268_v28 = vld [vmem:[#allocation2 + $0x778] sm:$0xff] }
  0xf3   :  { %3717 = vmatpush1.bf16.msra.mxu1 %v5990_v33  ;;  %v3137_v54 = vpop.f32.mrf.mxu0  ;;  %3677 = vmatprep.subr.bf16.mxu0 %v5925_v34  ;;  %v3178_v61 = vpop.f32.mrf.mxu1 }
  0xf4   :  { %v4478_v57 = vadd.f32 %v4477_v47, %v3135_v42  ;;  %v4925_v58 = vrot.slane %v4861_v48, 4  ;;  %4414 = vst [vmem:[%s7329_s2 + $0x8] sm:$0xff] %v3137_v54  ;;  %v4483_v59 = vrot.slane %v3137_v54, 4  ;;  %v4862_v60 = vmul.f32 %v3137_v54, %v3137_v54  ;;  %3718 = vmatprep.subr.bf16.mxu1 %v5927_v38  ;;  %3707 = vmatprep.mubr.bf16.mxu0 %v6056_v0 }
  0xf5   :  { %v4490_v62 = vadd.f32 %v4489_v52, %v3176_v49  ;;  %v4937_v63 = vrot.slane %v4863_v53, 4  ;;  %4416 = vst [vmem:[%s7329_s2 + $0x18] sm:$0xff] %v3178_v61  ;;  %v4495_v1 = vrot.slane %v3178_v61, 4  ;;  %v4864_v2 = vmul.f32 %v3178_v61, %v3178_v61  ;;  %v3139_v3 = vpop.f32.mrf.mxu0  ;;  %3748 = vmatprep.mubr.bf16.mxu1 %v6056_v0  ;;  %v3180_v8 = vpop.f32.mrf.mxu1 }
  0xf6   :  { %v4479_v4 = vrot.slane %v4478_v57, 2  ;;  %v4926_v5 = vadd.f32 %v4925_v58, %v4861_v48  ;;  %v4484_v6 = vadd.f32 %v4483_v59, %v3137_v54  ;;  %v4931_v7 = vrot.slane %v4862_v60, 4  ;;  %3678 = vmatpush1.bf16.msra.mxu0 %v5924_v37  ;;  %v172_v58 = vld [vmem:[#allocation2 + $0x478] sm:$0xff] }
  0xf7   :  { %v4491_v9 = vrot.slane %v4490_v62, 2  ;;  %v4938_v10 = vadd.f32 %v4937_v63, %v4863_v53  ;;  %v4496_v11 = vadd.f32 %v4495_v1, %v3178_v61  ;;  %v4943_v13 = vrot.slane %v4864_v2, 4  ;;  %3719 = vmatpush1.bf16.msra.mxu1 %v5926_v12  ;;  %v3140_v14 = vpop.f32.mrf.mxu0  ;;  %3679 = vmatprep.subr.bf16.mxu0 %v5861_v39  ;;  %v3181_v19 = vpop.f32.mrf.mxu1  ;;  %v171_v53 = vld [vmem:[#allocation2 + $0x470] sm:$0xff] }
  0xf8   :  { %v4480_v15 = vadd.f32 %v4479_v4, %v4478_v57  ;;  %v4927_v16 = vrot.slane %v4926_v5, 2  ;;  %v4485_v17 = vrot.slane %v4484_v6, 2  ;;  %v4932_v18 = vadd.f32 %v4931_v7, %v4862_v60  ;;  %3720 = vmatprep.subr.bf16.mxu1 %v5863_v45  ;;  %v75_v14 = vld [vmem:[#allocation2 + $0x170] sm:$0xff] }
  0xf9   :  { %v4492_v20 = vadd.f32 %v4491_v9, %v4490_v62  ;;  %v4939_v21 = vrot.slane %v4938_v10, 2  ;;  %v4497_v22 = vrot.slane %v4496_v11, 2  ;;  %v4944_v23 = vadd.f32 %v4943_v13, %v4864_v2  ;;  %v43_v13 = vld [vmem:[#allocation2 + $0x70] sm:$0xff] }
  0xfa   :  { %v4481_v33 = vrot.slane %v4480_v15, 1  ;;  %v4928_v34 = vadd.f32 %v4927_v16, %v4926_v5  ;;  %v4486_v37 = vadd.f32 %v4485_v17, %v4484_v6  ;;  %v4933_v38 = vrot.slane %v4932_v18, 2  ;;  %3680 = vmatpush1.bf16.msra.mxu0 %v5860_v43  ;;  %v76_v16 = vld [vmem:[#allocation2 + $0x178] sm:$0xff] }
  0xfb   :  { %v4493_v12 = vrot.slane %v4492_v20, 1  ;;  %v4940_v39 = vadd.f32 %v4939_v21, %v4938_v10  ;;  %v4498_v42 = vadd.f32 %v4497_v22, %v4496_v11  ;;  %v4945_v47 = vrot.slane %v4944_v23, 2  ;;  %3721 = vmatpush1.bf16.msra.mxu1 %v5862_v44  ;;  %3681 = vmatprep.subr.bf16.mxu0 %v5797_v46  ;;  %v493_v21 = vld [vmem:[#allocation2 + $0xe80] sm:$0xff] }
  0xfc   :  { %v4929_v45 = vrot.slane %v4928_v34, 1  ;;  %v4487_v48 = vrot.slane %v4486_v37, 1  ;;  %v4934_v49 = vadd.f32 %v4933_v38, %v4932_v18  ;;  %3722 = vmatprep.subr.bf16.mxu1 %v5799_v55  ;;  %v5735_v52 = vcombine.high %v236_v24, %v268_v28  ;;  %v525_v22 = vld [vmem:[#allocation2 + $0xf80] sm:$0xff] }
  0xfd   :  { %v4941_v26 = vrot.slane %v4940_v39, 1  ;;  %v4499_v43 = vrot.slane %v4498_v42, 1  ;;  %v4946_v54 = vadd.f32 %v4945_v47, %v4944_v23  ;;  %v5732_v57 = vcombine.low %v6150_v40, %v6152_v41  ;;  %v494_v23 = vld [vmem:[#allocation2 + $0xe88] sm:$0xff]  ;;  %v6234_v47 = vld [vmem:[#allocation2 + $0xa80] sm:$0xff] }
  0xfe   :  { %v4482_v29 = vadd.f32 %v4481_v33, %v4480_v15  ;;  %v4930_v44 = vadd.f32 %v4929_v45, %v4928_v34  ;;  %v4935_v59 = vrot.slane %v4934_v49, 1  ;;  %3682 = vmatpush1.bf16.msra.mxu0 %v5796_v50  ;;  %v5734_v46 = vcombine.low %v236_v24, %v268_v28  ;;  %v139_v50 = vld [vmem:[#allocation2 + $0x370] sm:$0xff]  ;;  %v44_v15 = vld [vmem:[#allocation2 + $0x78] sm:$0xff]  ;;  %v526_v24 = vld [vmem:[#allocation2 + $0xf88] sm:$0xff] }
  0xff   :  { %v4494_v55 = vadd.f32 %v4493_v12, %v4492_v20  ;;  %v4942_v60 = vadd.f32 %v4941_v26, %v4940_v39  ;;  %v4947_v61 = vrot.slane %v4946_v54, 1  ;;  %3723 = vmatpush1.bf16.msra.mxu1 %v5798_v51  ;;  %3683 = vmatprep.subr.bf16.mxu0 %v5733_v56  ;;  %v5669_v62 = vcombine.high %v171_v53, %v203_v25  ;;  %v140_v51 = vld [vmem:[#allocation2 + $0x378] sm:$0xff]  ;;  %v6228_v12 = vld [vmem:[#allocation2 + $0xd80] sm:$0xff]  ;;  %v6230_v39 = vld [vmem:[#allocation2 + $0xc88] sm:$0xff] }
 0x100   :  { %v5310_v63 = vsel %vm5309_vm0, %v4482_v29, %v4930_v44  ;;  %v4488_v1 = vadd.f32 %v4487_v48, %v4486_v37  ;;  %v4936_v2 = vadd.f32 %v4935_v59, %v4934_v49  ;;  %3724 = vmatprep.subr.bf16.mxu1 %v5735_v52  ;;  %v5671_v30 = vcombine.high %v172_v58, %v204_v27  ;;  %v6226_v37 = vld [vmem:[#allocation2 + $0xc80] sm:$0xff]  ;;  %v6238_v48 = vld [vmem:[#allocation2 + $0xa88] sm:$0xff] }
 0x101   :  { %v5375_v3 = vsel %vm5374_vm1, %v5310_v63, 0.0  ;;  %v5312_v4 = vsel %vm5309_vm0, %v4494_v55, %v4942_v60  ;;  %v4500_v5 = vadd.f32 %v4499_v43, %v4498_v42  ;;  %v4948_v35 = vadd.f32 %v4947_v61, %v4946_v54  ;;  %v6232_v42 = vld [vmem:[#allocation2 + $0xd88] sm:$0xff]  ;;  %v6236_v45 = vld [vmem:[#allocation2 + $0xb80] sm:$0xff] }
 0x102   :  { %5439 = vst [vmem:[%s7330_s3] sm:$0xff] %v5375_v3  ;;  %v5377_v40 = vsel %vm5374_vm1, %v5312_v4, 0.0  ;;  %v5311_v41 = vsel %vm5309_vm0, %v4488_v1, %v4936_v2  ;;  %3684 = vmatpush1.bf16.msra.mxu0 %v5732_v57  ;;  %v5668_v56 = vcombine.low %v171_v53, %v203_v25  ;;  %v5670_v8 = vcombine.low %v172_v58, %v204_v27  ;;  %v6240_v52 = vld [vmem:[#allocation2 + $0xb88] sm:$0xff]  ;;  %v6242_v53 = vld [vmem:[#allocation2 + $0x880] sm:$0xff] }
 0x103   :  { %5441 = vst [vmem:[%s7330_s3 + $0x10] sm:$0xff] %v5377_v40  ;;  %v5376_v6 = vsel %vm5374_vm1, %v5311_v41, 0.0  ;;  %v5313_v7 = vsel %vm5309_vm0, %v4500_v5, %v4948_v35  ;;  %3725 = vmatpush1.bf16.msra.mxu1 %v5734_v46  ;;  %3685 = vmatprep.subr.bf16.mxu0 %v5669_v62  ;;  %v5605_v9 = vcombine.high %v107_v32, %v139_v50  ;;  %v6244_v25 = vld [vmem:[#allocation2 + $0x980] sm:$0xff]  ;;  %v6248_v54 = vld [vmem:[#allocation2 + $0x888] sm:$0xff] }
 0x104   :  { %5440 = vst [vmem:[%s7330_s3 + $0x8] sm:$0xff] %v5376_v6  ;;  %v5378_v10 = vsel %vm5374_vm1, %v5313_v7, 0.0  ;;  %3726 = vmatprep.subr.bf16.mxu1 %v5671_v30  ;;  %v5607_v11 = vcombine.high %v108_v36, %v140_v51  ;;  %v5604_v17 = vcombine.low %v107_v32, %v139_v50  ;;  %v5606_v18 = vcombine.low %v108_v36, %v140_v51  ;;  %v6250_v57 = vld [vmem:[#allocation2 + $0x988] sm:$0xff]  ;;  %v6260_v59 = vld [vmem:[#allocation2 + $0x680] sm:$0xff] }
 0x105   :  { %5442 = vst [vmem:[%s7330_s3 + $0x18] sm:$0xff] %v5378_v10  ;;  %v5541_v19 = vcombine.high %v43_v13, %v75_v14  ;;  %v5543_v20 = vcombine.high %v44_v15, %v76_v16  ;;  %v5540_v28 = vcombine.low %v43_v13, %v75_v14  ;;  %v5542_v33 = vcombine.low %v44_v15, %v76_v16  ;;  %v6262_v46 = vld [vmem:[#allocation2 + $0x780] sm:$0xff] }
 0x106   :  { %3686 = vmatpush1.bf16.msra.mxu0 %v5668_v56  ;;  %v5993_v34 = vcombine.high %v493_v21, %v525_v22  ;;  %v5995_v38 = vcombine.high %v494_v23, %v526_v24  ;;  %v5992_v49 = vcombine.low %v493_v21, %v525_v22  ;;  %v5994_v26 = vcombine.low %v494_v23, %v526_v24 }
 0x107   :  { %3727 = vmatpush1.bf16.msra.mxu1 %v5670_v8  ;;  %3687 = vmatprep.subr.bf16.mxu0 %v5605_v9  ;;  %v5929_v43 = vcombine.high %v6226_v37, %v6228_v12  ;;  %v5928_v58 = vcombine.low %v6226_v37, %v6228_v12  ;;  %v5930_v27 = vcombine.low %v6230_v39, %v6232_v42 }
 0x108   :  { %3728 = vmatprep.subr.bf16.mxu1 %v5607_v11  ;;  %v5931_v29 = vcombine.high %v6230_v39, %v6232_v42  ;;  %v5865_v44 = vcombine.high %v6234_v47, %v6236_v45  ;;  %v5864_v60 = vcombine.low %v6234_v47, %v6236_v45  ;;  %v5866_v61 = vcombine.low %v6238_v48, %v6240_v52  ;;  %v238_v42 = vld [vmem:[#allocation2 + $0x688] sm:$0xff]  ;;  %v205_v47 = vld [vmem:[#allocation2 + $0x580] sm:$0xff] }
 0x109   :  { %v5867_v62 = vcombine.high %v6238_v48, %v6240_v52  ;;  %v5801_v63 = vcombine.high %v6242_v53, %v6244_v25  ;;  %v5800_v32 = vcombine.low %v6242_v53, %v6244_v25  ;;  %v5802_v50 = vcombine.low %v6248_v54, %v6250_v57  ;;  %v206_v48 = vld [vmem:[#allocation2 + $0x588] sm:$0xff]  ;;  %v109_v25 = vld [vmem:[#allocation2 + $0x280] sm:$0xff] }
 0x10a   :  { %3688 = vmatpush1.bf16.msra.mxu0 %v5604_v17  ;;  %v5803_v35 = vcombine.high %v6248_v54, %v6250_v57  ;;  %v5737_v36 = vcombine.high %v6260_v59, %v6262_v46  ;;  %v110_v57 = vld [vmem:[#allocation2 + $0x288] sm:$0xff] }
 0x10b   :  { %3729 = vmatpush1.bf16.msra.mxu1 %v5606_v18  ;;  %3689 = vmatprep.subr.bf16.mxu0 %v5541_v19 }
 0x10c   :  { %3730 = vmatprep.subr.bf16.mxu1 %v5543_v20 }
 0x10e   :  { %3690 = vmatpush1.bf16.msra.mxu0 %v5540_v28 }
 0x10f   :  { %3731 = vmatpush1.bf16.msra.mxu1 %v5542_v33  ;;  %3757 = vmatprep.subr.bf16.mxu0 %v5993_v34 }
 0x110   :  { %3798 = vmatprep.subr.bf16.mxu1 %v5995_v38 }
 0x111   :  { %v3217_v55 = vpop.f32.mrf.mxu0  ;;  %3708 = vmatmul.mubr.bf16.vlgmr.msra.gmra.mxu0 %v6111_v31  ;;  %v3258_v30 = vpop.f32.mrf.mxu1 }
 0x112   :  { %4417 = vst [vmem:[%s7329_s2 + $0x20] sm:$0xff] %v3217_v55  ;;  %v4501_v1 = vrot.slane %v3217_v55, 4  ;;  %v4865_v2 = vmul.f32 %v3217_v55, %v3217_v55  ;;  %3749 = vmatmul.mubr.bf16.vlgmr.msra.gmra.mxu1 %v6111_v31  ;;  %3758 = vmatpush1.bf16.msra.mxu0 %v5992_v49  ;;  %4419 = vst [vmem:[%s7329_s2 + $0x30] sm:$0xff] %v3258_v30  ;;  %v4513_v3 = vrot.slane %v3258_v30, 4  ;;  %v270_v49 = vld [vmem:[#allocation2 + $0x788] sm:$0xff] }
 0x113   :  { %v4867_v4 = vmul.f32 %v3258_v30, %v3258_v30  ;;  %3799 = vmatpush1.bf16.msra.mxu1 %v5994_v26  ;;  %v3219_v5 = vpop.f32.mrf.mxu0  ;;  %3759 = vmatprep.subr.bf16.mxu0 %v5929_v43  ;;  %v3260_v6 = vpop.f32.mrf.mxu1 }
 0x114   :  { %v4502_v51 = vadd.f32 %v4501_v1, %v3217_v55  ;;  %v4949_v40 = vrot.slane %v4865_v2, 4  ;;  %4418 = vst [vmem:[%s7329_s2 + $0x28] sm:$0xff] %v3219_v5  ;;  %v4507_v41 = vrot.slane %v3219_v5, 4  ;;  %v4866_v56 = vmul.f32 %v3219_v5, %v3219_v5  ;;  %3800 = vmatprep.subr.bf16.mxu1 %v5931_v29  ;;  %3789 = vmatprep.mubr.bf16.mxu0 %v6056_v0 }
 0x115   :  { %v4514_v7 = vadd.f32 %v4513_v3, %v3258_v30  ;;  %v4961_v8 = vrot.slane %v4867_v4, 4  ;;  %4420 = vst [vmem:[%s7329_s2 + $0x38] sm:$0xff] %v3260_v6  ;;  %v4519_v9 = vrot.slane %v3260_v6, 4  ;;  %v4868_v10 = vmul.f32 %v3260_v6, %v3260_v6  ;;  %v3221_v11 = vpop.f32.mrf.mxu0  ;;  %3830 = vmatprep.mubr.bf16.mxu1 %v6056_v0  ;;  %v3262_v17 = vpop.f32.mrf.mxu1 }
 0x116   :  { %v4503_v13 = vrot.slane %v4502_v51, 2  ;;  %v4950_v14 = vadd.f32 %v4949_v40, %v4865_v2  ;;  %v4508_v15 = vadd.f32 %v4507_v41, %v3219_v5  ;;  %v4955_v16 = vrot.slane %v4866_v56, 4  ;;  %3760 = vmatpush1.bf16.msra.mxu0 %v5928_v58  ;;  %v174_v40 = vld [vmem:[#allocation2 + $0x488] sm:$0xff] }
 0x117   :  { %v4515_v18 = vrot.slane %v4514_v7, 2  ;;  %v4962_v19 = vadd.f32 %v4961_v8, %v4867_v4  ;;  %v4520_v20 = vadd.f32 %v4519_v9, %v3260_v6  ;;  %v4967_v21 = vrot.slane %v4868_v10, 4  ;;  %3801 = vmatpush1.bf16.msra.mxu1 %v5930_v27  ;;  %v3222_v22 = vpop.f32.mrf.mxu0  ;;  %3761 = vmatprep.subr.bf16.mxu0 %v5865_v44  ;;  %v3263_v34 = vpop.f32.mrf.mxu1  ;;  %v173_v4 = vld [vmem:[#allocation2 + $0x480] sm:$0xff] }
 0x118   :  { %v4504_v23 = vadd.f32 %v4503_v13, %v4502_v51  ;;  %v4951_v24 = vrot.slane %v4950_v14, 2  ;;  %v4509_v28 = vrot.slane %v4508_v15, 2  ;;  %v4956_v33 = vadd.f32 %v4955_v16, %v4866_v56  ;;  %3802 = vmatprep.subr.bf16.mxu1 %v5867_v62  ;;  %v77_v22 = vld [vmem:[#allocation2 + $0x180] sm:$0xff] }
 0x119   :  { %v4516_v37 = vadd.f32 %v4515_v18, %v4514_v7  ;;  %v4963_v38 = vrot.slane %v4962_v19, 2  ;;  %v4521_v12 = vrot.slane %v4520_v20, 2  ;;  %v4968_v39 = vadd.f32 %v4967_v21, %v4868_v10  ;;  %v45_v21 = vld [vmem:[#allocation2 + $0x80] sm:$0xff] }
 0x11a   :  { %v4505_v26 = vrot.slane %v4504_v23, 1  ;;  %v4952_v43 = vadd.f32 %v4951_v24, %v4950_v14  ;;  %v4510_v58 = vadd.f32 %v4509_v28, %v4508_v15  ;;  %v4957_v29 = vrot.slane %v4956_v33, 2  ;;  %3762 = vmatpush1.bf16.msra.mxu0 %v5864_v60  ;;  %v78_v24 = vld [vmem:[#allocation2 + $0x188] sm:$0xff] }
 0x11b   :  { %v4517_v27 = vrot.slane %v4516_v37, 1  ;;  %v4964_v44 = vadd.f32 %v4963_v38, %v4962_v19  ;;  %v4522_v55 = vadd.f32 %v4521_v12, %v4520_v20  ;;  %v4969_v1 = vrot.slane %v4968_v39, 2  ;;  %3803 = vmatpush1.bf16.msra.mxu1 %v5866_v61  ;;  %3763 = vmatprep.subr.bf16.mxu0 %v5801_v63  ;;  %v495_v38 = vld [vmem:[#allocation2 + $0xe90] sm:$0xff] }
 0x11c   :  { %v4953_v62 = vrot.slane %v4952_v43, 1  ;;  %v4511_v2 = vrot.slane %v4510_v58, 1  ;;  %v4958_v30 = vadd.f32 %v4957_v29, %v4956_v33  ;;  %3804 = vmatprep.subr.bf16.mxu1 %v5803_v35  ;;  %v5739_v3 = vcombine.high %v238_v42, %v270_v49  ;;  %v527_v12 = vld [vmem:[#allocation2 + $0xf90] sm:$0xff] }
 0x11d   :  { %v4965_v45 = vrot.slane %v4964_v44, 1  ;;  %v4523_v60 = vrot.slane %v4522_v55, 1  ;;  %v4970_v5 = vadd.f32 %v4969_v1, %v4968_v39  ;;  %v5736_v51 = vcombine.low %v6260_v59, %v6262_v46  ;;  %v496_v39 = vld [vmem:[#allocation2 + $0xe98] sm:$0xff]  ;;  %v6344_v1 = vld [vmem:[#allocation2 + $0xa90] sm:$0xff] }
 0x11e   :  { %v4506_v52 = vadd.f32 %v4505_v26, %v4504_v23  ;;  %v4954_v61 = vadd.f32 %v4953_v62, %v4952_v43  ;;  %v4959_v41 = vrot.slane %v4958_v30, 1  ;;  %3764 = vmatpush1.bf16.msra.mxu0 %v5800_v32  ;;  %v5738_v63 = vcombine.low %v238_v42, %v270_v49  ;;  %v141_v32 = vld [vmem:[#allocation2 + $0x380] sm:$0xff]  ;;  %v46_v23 = vld [vmem:[#allocation2 + $0x88] sm:$0xff]  ;;  %v528_v42 = vld [vmem:[#allocation2 + $0xf98] sm:$0xff] }
 0x11f   :  { %v4518_v35 = vadd.f32 %v4517_v27, %v4516_v37  ;;  %v4966_v56 = vadd.f32 %v4965_v45, %v4964_v44  ;;  %v4971_v6 = vrot.slane %v4970_v5, 1  ;;  %3805 = vmatpush1.bf16.msra.mxu1 %v5802_v50  ;;  %3765 = vmatprep.subr.bf16.mxu0 %v5737_v36  ;;  %v5673_v7 = vcombine.high %v173_v4, %v205_v47  ;;  %v142_v50 = vld [vmem:[#allocation2 + $0x388] sm:$0xff]  ;;  %v6338_v27 = vld [vmem:[#allocation2 + $0xd90] sm:$0xff]  ;;  %v6340_v44 = vld [vmem:[#allocation2 + $0xc98] sm:$0xff] }
 0x120   :  { %v5314_v8 = vsel %vm5309_vm0, %v4506_v52, %v4954_v61  ;;  %v4512_v9 = vadd.f32 %v4511_v2, %v4510_v58  ;;  %v4960_v10 = vadd.f32 %v4959_v41, %v4958_v30  ;;  %3806 = vmatprep.subr.bf16.mxu1 %v5739_v3  ;;  %v5675_v53 = vcombine.high %v174_v40, %v206_v48  ;;  %v6336_v58 = vld [vmem:[#allocation2 + $0xc90] sm:$0xff]  ;;  %v6348_v2 = vld [vmem:[#allocation2 + $0xa98] sm:$0xff] }
 0x121   :  { %v5379_v11 = vsel %vm5374_vm1, %v5314_v8, 0.0  ;;  %v5316_v13 = vsel %vm5309_vm0, %v4518_v35, %v4966_v56  ;;  %v4524_v14 = vadd.f32 %v4523_v60, %v4522_v55  ;;  %v4972_v54 = vadd.f32 %v4971_v6, %v4970_v5  ;;  %v6342_v55 = vld [vmem:[#allocation2 + $0xd98] sm:$0xff]  ;;  %v6346_v62 = vld [vmem:[#allocation2 + $0xb90] sm:$0xff] }
 0x122   :  { %5443 = vst [vmem:[%s7330_s3 + $0x20] sm:$0xff] %v5379_v11  ;;  %v5381_v59 = vsel %vm5374_vm1, %v5316_v13, 0.0  ;;  %v5315_v46 = vsel %vm5309_vm0, %v4512_v9, %v4960_v10  ;;  %3766 = vmatpush1.bf16.msra.mxu0 %v5736_v51  ;;  %v5672_v36 = vcombine.low %v173_v4, %v205_v47  ;;  %v5674_v17 = vcombine.low %v174_v40, %v206_v48  ;;  %v6350_v3 = vld [vmem:[#allocation2 + $0xb98] sm:$0xff]  ;;  %v6352_v4 = vld [vmem:[#allocation2 + $0x890] sm:$0xff] }
 0x123   :  { %5445 = vst [vmem:[%s7330_s3 + $0x30] sm:$0xff] %v5381_v59  ;;  %v5380_v15 = vsel %vm5374_vm1, %v5315_v46, 0.0  ;;  %v5317_v16 = vsel %vm5309_vm0, %v4524_v14, %v4972_v54  ;;  %3807 = vmatpush1.bf16.msra.mxu1 %v5738_v63  ;;  %3767 = vmatprep.subr.bf16.mxu0 %v5673_v7  ;;  %v5609_v18 = vcombine.high %v109_v25, %v141_v32  ;;  %v6354_v47 = vld [vmem:[#allocation2 + $0x990] sm:$0xff]  ;;  %v6358_v5 = vld [vmem:[#allocation2 + $0x898] sm:$0xff] }
 0x124   :  { %5444 = vst [vmem:[%s7330_s3 + $0x28] sm:$0xff] %v5380_v15  ;;  %v5382_v19 = vsel %vm5374_vm1, %v5317_v16, 0.0  ;;  %3808 = vmatprep.subr.bf16.mxu1 %v5675_v53  ;;  %v5611_v20 = vcombine.high %v110_v57, %v142_v50  ;;  %v5608_v28 = vcombine.low %v109_v25, %v141_v32  ;;  %v5610_v33 = vcombine.low %v110_v57, %v142_v50  ;;  %v6360_v51 = vld [vmem:[#allocation2 + $0x998] sm:$0xff]  ;;  %v6370_v41 = vld [vmem:[#allocation2 + $0x690] sm:$0xff] }
 0x125   :  { %5446 = vst [vmem:[%s7330_s3 + $0x38] sm:$0xff] %v5382_v19  ;;  %v5545_v34 = vcombine.high %v45_v21, %v77_v22  ;;  %v5547_v37 = vcombine.high %v46_v23, %v78_v24  ;;  %v5544_v49 = vcombine.low %v45_v21, %v77_v22  ;;  %v5546_v26 = vcombine.low %v46_v23, %v78_v24  ;;  %v6372_v63 = vld [vmem:[#allocation2 + $0x790] sm:$0xff] }
 0x126   :  { %3768 = vmatpush1.bf16.msra.mxu0 %v5672_v36  ;;  %v5997_v43 = vcombine.high %v495_v38, %v527_v12  ;;  %v5999_v29 = vcombine.high %v496_v39, %v528_v42  ;;  %v5996_v30 = vcombine.low %v495_v38, %v527_v12  ;;  %v5998_v45 = vcombine.low %v496_v39, %v528_v42 }
 0x127   :  { %3809 = vmatpush1.bf16.msra.mxu1 %v5674_v17  ;;  %3769 = vmatprep.subr.bf16.mxu0 %v5609_v18  ;;  %v5933_v60 = vcombine.high %v6336_v58, %v6338_v27  ;;  %v5932_v40 = vcombine.low %v6336_v58, %v6338_v27  ;;  %v5934_v48 = vcombine.low %v6340_v44, %v6342_v55 }
 0x128   :  { %3810 = vmatprep.subr.bf16.mxu1 %v5611_v20  ;;  %v5935_v52 = vcombine.high %v6340_v44, %v6342_v55  ;;  %v5869_v61 = vcombine.high %v6344_v1, %v6346_v62  ;;  %v5868_v56 = vcombine.low %v6344_v1, %v6346_v62  ;;  %v5870_v6 = vcombine.low %v6348_v2, %v6350_v3  ;;  %v240_v44 = vld [vmem:[#allocation2 + $0x698] sm:$0xff]  ;;  %v207_v1 = vld [vmem:[#allocation2 + $0x590] sm:$0xff] }
 0x129   :  { %v5871_v7 = vcombine.high %v6348_v2, %v6350_v3  ;;  %v5805_v8 = vcombine.high %v6352_v4, %v6354_v47  ;;  %v5804_v25 = vcombine.low %v6352_v4, %v6354_v47  ;;  %v5806_v32 = vcombine.low %v6358_v5, %v6360_v51  ;;  %v272_v55 = vld [vmem:[#allocation2 + $0x798] sm:$0xff]  ;;  %v111_v47 = vld [vmem:[#allocation2 + $0x290] sm:$0xff] }
 0x12a   :  { %3770 = vmatpush1.bf16.msra.mxu0 %v5608_v28  ;;  %v5807_v54 = vcombine.high %v6358_v5, %v6360_v51  ;;  %v208_v2 = vld [vmem:[#allocation2 + $0x598] sm:$0xff] }
 0x12b   :  { %3811 = vmatpush1.bf16.msra.mxu1 %v5610_v33  ;;  %3771 = vmatprep.subr.bf16.mxu0 %v5545_v34  ;;  %v112_v51 = vld [vmem:[#allocation2 + $0x298] sm:$0xff] }
 0x12c   :  { %3812 = vmatprep.subr.bf16.mxu1 %v5547_v37 }
 0x12e   :  { %3772 = vmatpush1.bf16.msra.mxu0 %v5544_v49 }
 0x12f   :  { %3813 = vmatpush1.bf16.msra.mxu1 %v5546_v26  ;;  %3839 = vmatprep.subr.bf16.mxu0 %v5997_v43 }
 0x130   :  { %3880 = vmatprep.subr.bf16.mxu1 %v5999_v29 }
 0x131   :  { %v3299_v35 = vpop.f32.mrf.mxu0  ;;  %3790 = vmatmul.mubr.bf16.vlgmr.msra.gmra.mxu0 %v6111_v31  ;;  %v3340_v53 = vpop.f32.mrf.mxu1 }
 0x132   :  { %4421 = vst [vmem:[%s7329_s2 + $0x40] sm:$0xff] %v3299_v35  ;;  %v4525_v9 = vrot.slane %v3299_v35, 4  ;;  %v4869_v10 = vmul.f32 %v3299_v35, %v3299_v35  ;;  %3831 = vmatmul.mubr.bf16.vlgmr.msra.gmra.mxu1 %v6111_v31  ;;  %3840 = vmatpush1.bf16.msra.mxu0 %v5996_v30  ;;  %4423 = vst [vmem:[%s7329_s2 + $0x50] sm:$0xff] %v3340_v53  ;;  %v4537_v11 = vrot.slane %v3340_v53, 4 }
 0x133   :  { %v4871_v13 = vmul.f32 %v3340_v53, %v3340_v53  ;;  %3881 = vmatpush1.bf16.msra.mxu1 %v5998_v45  ;;  %v3301_v14 = vpop.f32.mrf.mxu0  ;;  %3841 = vmatprep.subr.bf16.mxu0 %v5933_v60  ;;  %v5741_v31 = vcombine.high %v6370_v41, %v6372_v63  ;;  %v3342_v36 = vpop.f32.mrf.mxu1 }
 0x134   :  { %v4526_v57 = vadd.f32 %v4525_v9, %v3299_v35  ;;  %v4973_v50 = vrot.slane %v4869_v10, 4  ;;  %4422 = vst [vmem:[%s7329_s2 + $0x48] sm:$0xff] %v3301_v14  ;;  %v4531_v59 = vrot.slane %v3301_v14, 4  ;;  %v4870_v46 = vmul.f32 %v3301_v14, %v3301_v14  ;;  %3882 = vmatprep.subr.bf16.mxu1 %v5935_v52  ;;  %3871 = vmatprep.mubr.bf16.mxu0 %v6056_v0 }
 0x135   :  { %v4538_v15 = vadd.f32 %v4537_v11, %v3340_v53  ;;  %v4985_v16 = vrot.slane %v4871_v13, 4  ;;  %4424 = vst [vmem:[%s7329_s2 + $0x58] sm:$0xff] %v3342_v36  ;;  %v4543_v17 = vrot.slane %v3342_v36, 4  ;;  %v4872_v18 = vmul.f32 %v3342_v36, %v3342_v36  ;;  %v3303_v19 = vpop.f32.mrf.mxu0  ;;  %3912 = vmatprep.mubr.bf16.mxu1 %v6056_v0  ;;  %v3344_v24 = vpop.f32.mrf.mxu1  ;;  %v175_v11 = vld [vmem:[#allocation2 + $0x490] sm:$0xff] }
 0x136   :  { %v4527_v20 = vrot.slane %v4526_v57, 2  ;;  %v4974_v21 = vadd.f32 %v4973_v50, %v4869_v10  ;;  %v4532_v22 = vadd.f32 %v4531_v59, %v3301_v14  ;;  %v4979_v23 = vrot.slane %v4870_v46, 4  ;;  %3842 = vmatpush1.bf16.msra.mxu0 %v5932_v40 }
 0x137   :  { %v4539_v28 = vrot.slane %v4538_v15, 2  ;;  %v4986_v33 = vadd.f32 %v4985_v16, %v4871_v13  ;;  %v4544_v34 = vadd.f32 %v4543_v17, %v3342_v36  ;;  %v4991_v37 = vrot.slane %v4872_v18, 4  ;;  %3883 = vmatpush1.bf16.msra.mxu1 %v5934_v48  ;;  %v3304_v38 = vpop.f32.mrf.mxu0  ;;  %3843 = vmatprep.subr.bf16.mxu0 %v5869_v61  ;;  %v3345_v26 = vpop.f32.mrf.mxu1 }
 0x138   :  { %v4528_v12 = vadd.f32 %v4527_v20, %v4526_v57  ;;  %v4975_v39 = vrot.slane %v4974_v21, 2  ;;  %v4533_v42 = vrot.slane %v4532_v22, 2  ;;  %v4980_v49 = vadd.f32 %v4979_v23, %v4870_v46  ;;  %3884 = vmatprep.subr.bf16.mxu1 %v5871_v7  ;;  %v176_v57 = vld [vmem:[#allocation2 + $0x498] sm:$0xff] }
 0x139   :  { %v4540_v43 = vadd.f32 %v4539_v28, %v4538_v15  ;;  %v4987_v58 = vrot.slane %v4986_v33, 2  ;;  %v4545_v29 = vrot.slane %v4544_v34, 2  ;;  %v4992_v27 = vadd.f32 %v4991_v37, %v4872_v18  ;;  %v79_v37 = vld [vmem:[#allocation2 + $0x190] sm:$0xff]  ;;  %v48_v38 = vld [vmem:[#allocation2 + $0x98] sm:$0xff] }
 0x13a   :  { %v4529_v30 = vrot.slane %v4528_v12, 1  ;;  %v4976_v45 = vadd.f32 %v4975_v39, %v4974_v21  ;;  %v4534_v60 = vadd.f32 %v4533_v42, %v4532_v22  ;;  %v4981_v40 = vrot.slane %v4980_v49, 2  ;;  %3844 = vmatpush1.bf16.msra.mxu0 %v5868_v56 }
 0x13b   :  { %v4541_v48 = vrot.slane %v4540_v43, 1  ;;  %v4988_v52 = vadd.f32 %v4987_v58, %v4986_v33  ;;  %v4546_v61 = vadd.f32 %v4545_v29, %v4544_v34  ;;  %v4993_v35 = vrot.slane %v4992_v27, 2  ;;  %3885 = vmatpush1.bf16.msra.mxu1 %v5870_v6  ;;  %3845 = vmatprep.subr.bf16.mxu0 %v5805_v8  ;;  %v47_v34 = vld [vmem:[#allocation2 + $0x90] sm:$0xff]  ;;  %v529_v58 = vld [vmem:[#allocation2 + $0xfa0] sm:$0xff]  ;;  %v498_v29 = vld [vmem:[#allocation2 + $0xea8] sm:$0xff] }
 0x13c   :  { %v4977_v7 = vrot.slane %v4976_v45, 1  ;;  %v4535_v9 = vrot.slane %v4534_v60, 1  ;;  %v4982_v10 = vadd.f32 %v4981_v40, %v4980_v49  ;;  %3886 = vmatprep.subr.bf16.mxu1 %v5807_v54  ;;  %v5743_v53 = vcombine.high %v240_v44, %v272_v55  ;;  %v6448_v40 = vld [vmem:[#allocation2 + $0xda0] sm:$0xff] }
 0x13d   :  { %v4989_v62 = vrot.slane %v4988_v52, 1  ;;  %v4547_v56 = vrot.slane %v4546_v61, 1  ;;  %v4994_v13 = vadd.f32 %v4993_v35, %v4992_v27  ;;  %v5740_v14 = vcombine.low %v6370_v41, %v6372_v63  ;;  %v530_v27 = vld [vmem:[#allocation2 + $0xfa8] sm:$0xff]  ;;  %v6456_v35 = vld [vmem:[#allocation2 + $0xba0] sm:$0xff] }
 0x13e   :  { %v4530_v3 = vadd.f32 %v4529_v30, %v4528_v12  ;;  %v4978_v6 = vadd.f32 %v4977_v7, %v4976_v45  ;;  %v4983_v50 = vrot.slane %v4982_v10, 1  ;;  %3846 = vmatpush1.bf16.msra.mxu0 %v5804_v25  ;;  %v5742_v8 = vcombine.low %v240_v44, %v272_v55  ;;  %v143_v25 = vld [vmem:[#allocation2 + $0x390] sm:$0xff]  ;;  %v80_v12 = vld [vmem:[#allocation2 + $0x198] sm:$0xff]  ;;  %v6446_v45 = vld [vmem:[#allocation2 + $0xca0] sm:$0xff] }
 0x13f   :  { %v4542_v54 = vadd.f32 %v4541_v48, %v4540_v43  ;;  %v4990_v59 = vadd.f32 %v4989_v62, %v4988_v52  ;;  %v4995_v46 = vrot.slane %v4994_v13, 1  ;;  %3887 = vmatpush1.bf16.msra.mxu1 %v5806_v32  ;;  %3847 = vmatprep.subr.bf16.mxu0 %v5741_v31  ;;  %v5677_v36 = vcombine.high %v175_v11, %v207_v1  ;;  %v144_v32 = vld [vmem:[#allocation2 + $0x398] sm:$0xff]  ;;  %v497_v43 = vld [vmem:[#allocation2 + $0xea0] sm:$0xff]  ;;  %v6450_v48 = vld [vmem:[#allocation2 + $0xca8] sm:$0xff] }
 0x140   :  { %v5318_v15 = vsel %vm5309_vm0, %v4530_v3, %v4978_v6  ;;  %v4536_v16 = vadd.f32 %v4535_v9, %v4534_v60  ;;  %v4984_v17 = vadd.f32 %v4983_v50, %v4982_v10  ;;  %3888 = vmatprep.subr.bf16.mxu1 %v5743_v53  ;;  %v5679_v4 = vcombine.high %v176_v57, %v208_v2  ;;  %v6452_v52 = vld [vmem:[#allocation2 + $0xda8] sm:$0xff]  ;;  %v6462_v53 = vld [vmem:[#allocation2 + $0x8a0] sm:$0xff] }
 0x141   :  { %v5383_v18 = vsel %vm5374_vm1, %v5318_v15, 0.0  ;;  %v5320_v19 = vsel %vm5309_vm0, %v4542_v54, %v4990_v59  ;;  %v4548_v20 = vadd.f32 %v4547_v56, %v4546_v61  ;;  %v4996_v5 = vadd.f32 %v4995_v46, %v4994_v13  ;;  %v6454_v61 = vld [vmem:[#allocation2 + $0xaa0] sm:$0xff]  ;;  %v6458_v7 = vld [vmem:[#allocation2 + $0xaa8] sm:$0xff] }
 0x142   :  { %5447 = vst [vmem:[%s7330_s3 + $0x40] sm:$0xff] %v5383_v18  ;;  %v5385_v41 = vsel %vm5374_vm1, %v5320_v19, 0.0  ;;  %v5319_v63 = vsel %vm5309_vm0, %v4536_v16, %v4984_v17  ;;  %3848 = vmatpush1.bf16.msra.mxu0 %v5740_v14  ;;  %v5676_v31 = vcombine.low %v175_v11, %v207_v1  ;;  %v5678_v23 = vcombine.low %v176_v57, %v208_v2  ;;  %v6460_v10 = vld [vmem:[#allocation2 + $0xba8] sm:$0xff]  ;;  %v6464_v11 = vld [vmem:[#allocation2 + $0x9a0] sm:$0xff] }
 0x143   :  { %5449 = vst [vmem:[%s7330_s3 + $0x50] sm:$0xff] %v5385_v41  ;;  %v5384_v21 = vsel %vm5374_vm1, %v5319_v63, 0.0  ;;  %v5321_v22 = vsel %vm5309_vm0, %v4548_v20, %v4996_v5  ;;  %3889 = vmatpush1.bf16.msra.mxu1 %v5742_v8  ;;  %3849 = vmatprep.subr.bf16.mxu0 %v5677_v36  ;;  %v5613_v24 = vcombine.high %v111_v47, %v143_v25  ;;  %v6468_v56 = vld [vmem:[#allocation2 + $0x8a8] sm:$0xff]  ;;  %v6480_v6 = vld [vmem:[#allocation2 + $0x6a0] sm:$0xff] }
 0x144   :  { %5448 = vst [vmem:[%s7330_s3 + $0x48] sm:$0xff] %v5384_v21  ;;  %v5386_v28 = vsel %vm5374_vm1, %v5321_v22, 0.0  ;;  %3890 = vmatprep.subr.bf16.mxu1 %v5679_v4  ;;  %v5615_v33 = vcombine.high %v112_v51, %v144_v32  ;;  %v5612_v39 = vcombine.low %v111_v47, %v143_v25  ;;  %v5614_v42 = vcombine.low %v112_v51, %v144_v32  ;;  %v6470_v13 = vld [vmem:[#allocation2 + $0x9a8] sm:$0xff]  ;;  %v6482_v50 = vld [vmem:[#allocation2 + $0x7a0] sm:$0xff] }
 0x145   :  { %5450 = vst [vmem:[%s7330_s3 + $0x58] sm:$0xff] %v5386_v28  ;;  %v5549_v49 = vcombine.high %v47_v34, %v79_v37  ;;  %v5551_v26 = vcombine.high %v48_v38, %v80_v12  ;;  %v5548_v44 = vcombine.low %v47_v34, %v79_v37  ;;  %v5550_v55 = vcombine.low %v48_v38, %v80_v12  ;;  %v6487_v54 = vld [vmem:[%s7327_s0] sm:$0xf] }
 0x146   :  { %3850 = vmatpush1.bf16.msra.mxu0 %v5676_v31  ;;  %v6001_v30 = vcombine.high %v497_v43, %v529_v58  ;;  %v6003_v60 = vcombine.high %v498_v29, %v530_v27  ;;  %v6000_v9 = vcombine.low %v497_v43, %v529_v58  ;;  %v6002_v1 = vcombine.low %v498_v29, %v530_v27 }
 0x147   :  { %3891 = vmatpush1.bf16.msra.mxu1 %v5678_v23  ;;  %3851 = vmatprep.subr.bf16.mxu0 %v5613_v24  ;;  %v5937_v62 = vcombine.high %v6446_v45, %v6448_v40  ;;  %v5936_v14 = vcombine.low %v6446_v45, %v6448_v40  ;;  %v5938_v57 = vcombine.low %v6450_v48, %v6452_v52 }
 0x148   :  { %3892 = vmatprep.subr.bf16.mxu1 %v5615_v33  ;;  %v5939_v2 = vcombine.high %v6450_v48, %v6452_v52  ;;  %v5873_v3 = vcombine.high %v6454_v61, %v6456_v35  ;;  %v5872_v59 = vcombine.low %v6454_v61, %v6456_v35  ;;  %v5874_v46 = vcombine.low %v6458_v7, %v6460_v10  ;;  %v242_v52 = vld [vmem:[#allocation2 + $0x6a8] sm:$0xff]  ;;  %v209_v61 = vld [vmem:[#allocation2 + $0x5a0] sm:$0xff] }
 0x149   :  { %v5875_v36 = vcombine.high %v6458_v7, %v6460_v10  ;;  %v5809_v15 = vcombine.high %v6462_v53, %v6464_v11  ;;  %v5808_v47 = vcombine.low %v6462_v53, %v6464_v11  ;;  %v5810_v25 = vcombine.low %v6468_v56, %v6470_v13  ;;  %v210_v7 = vld [vmem:[#allocation2 + $0x5a8] sm:$0xff]  ;;  %v113_v11 = vld [vmem:[#allocation2 + $0x2a0] sm:$0xff] }
 0x14a   :  { %3852 = vmatpush1.bf16.msra.mxu0 %v5612_v39  ;;  %v5811_v5 = vcombine.high %v6468_v56, %v6470_v13  ;;  %v5745_v51 = vcombine.high %v6480_v6, %v6482_v50  ;;  %v114_v13 = vld [vmem:[#allocation2 + $0x2a8] sm:$0xff] }
 0x14b   :  { %3893 = vmatpush1.bf16.msra.mxu1 %v5614_v42  ;;  %3853 = vmatprep.subr.bf16.mxu0 %v5549_v49 }
 0x14c   :  { %3894 = vmatprep.subr.bf16.mxu1 %v5551_v26 }
 0x14e   :  { %3854 = vmatpush1.bf16.msra.mxu0 %v5548_v44 }
 0x14f   :  { %3895 = vmatpush1.bf16.msra.mxu1 %v5550_v55  ;;  %3921 = vmatprep.subr.bf16.mxu0 %v6001_v30 }
 0x150   :  { %3962 = vmatprep.subr.bf16.mxu1 %v6003_v60 }
 0x151   :  { %v3381_v8 = vpop.f32.mrf.mxu0  ;;  %3872 = vmatmul.mubr.bf16.vlgmr.msra.gmra.mxu0 %v6487_v54  ;;  %v3422_v4 = vpop.f32.mrf.mxu1 }
 0x152   :  { %4425 = vst [vmem:[%s7329_s2 + $0x60] sm:$0xff] %v3381_v8  ;;  %v4549_v16 = vrot.slane %v3381_v8, 4  ;;  %v4873_v17 = vmul.f32 %v3381_v8, %v3381_v8  ;;  %3913 = vmatmul.mubr.bf16.vlgmr.msra.gmra.mxu1 %v6487_v54  ;;  %3922 = vmatpush1.bf16.msra.mxu0 %v6000_v9  ;;  %4427 = vst [vmem:[%s7329_s2 + $0x70] sm:$0xff] %v3422_v4  ;;  %v4561_v18 = vrot.slane %v3422_v4, 4  ;;  %v274_v9 = vld [vmem:[#allocation2 + $0x7a8] sm:$0xff] }
 0x153   :  { %v4875_v19 = vmul.f32 %v3422_v4, %v3422_v4  ;;  %3963 = vmatpush1.bf16.msra.mxu1 %v6002_v1  ;;  %v3383_v20 = vpop.f32.mrf.mxu0  ;;  %3923 = vmatprep.subr.bf16.mxu0 %v5937_v62  ;;  %v3424_v21 = vpop.f32.mrf.mxu1 }
 0x154   :  { %v4550_v32 = vadd.f32 %v4549_v16, %v3381_v8  ;;  %v4997_v41 = vrot.slane %v4873_v17, 4  ;;  %4426 = vst [vmem:[%s7329_s2 + $0x68] sm:$0xff] %v3383_v20  ;;  %v4555_v63 = vrot.slane %v3383_v20, 4  ;;  %v4874_v31 = vmul.f32 %v3383_v20, %v3383_v20  ;;  %3964 = vmatprep.subr.bf16.mxu1 %v5939_v2  ;;  %3953 = vmatprep.mubr.bf16.mxu0 %v6056_v0 }
 0x155   :  { %v4562_v22 = vadd.f32 %v4561_v18, %v3422_v4  ;;  %v5009_v23 = vrot.slane %v4875_v19, 4  ;;  %4428 = vst [vmem:[%s7329_s2 + $0x78] sm:$0xff] %v3424_v21  ;;  %v4567_v24 = vrot.slane %v3424_v21, 4  ;;  %v4876_v28 = vmul.f32 %v3424_v21, %v3424_v21  ;;  %v3385_v33 = vpop.f32.mrf.mxu0  ;;  %3994 = vmatprep.mubr.bf16.mxu1 %v6056_v0  ;;  %v3426_v39 = vpop.f32.mrf.mxu1 }
 0x156   :  { %v4551_v34 = vrot.slane %v4550_v32, 2  ;;  %v4998_v37 = vadd.f32 %v4997_v41, %v4873_v17  ;;  %v4556_v38 = vadd.f32 %v4555_v63, %v3383_v20  ;;  %v5003_v12 = vrot.slane %v4874_v31, 4  ;;  %3924 = vmatpush1.bf16.msra.mxu0 %v5936_v14  ;;  %v178_v41 = vld [vmem:[#allocation2 + $0x4a8] sm:$0xff] }
 0x157   :  { %v4563_v42 = vrot.slane %v4562_v22, 2  ;;  %v5010_v49 = vadd.f32 %v5009_v23, %v4875_v19  ;;  %v4568_v26 = vadd.f32 %v4567_v24, %v3424_v21  ;;  %v5015_v43 = vrot.slane %v4876_v28, 4  ;;  %3965 = vmatpush1.bf16.msra.mxu1 %v5938_v57  ;;  %v3386_v58 = vpop.f32.mrf.mxu0  ;;  %3925 = vmatprep.subr.bf16.mxu0 %v5873_v3  ;;  %v3427_v30 = vpop.f32.mrf.mxu1  ;;  %v177_v19 = vld [vmem:[#allocation2 + $0x4a0] sm:$0xff] }
 0x158   :  { %v4552_v29 = vadd.f32 %v4551_v34, %v4550_v32  ;;  %v4999_v27 = vrot.slane %v4998_v37, 2  ;;  %v4557_v44 = vrot.slane %v4556_v38, 2  ;;  %v5004_v55 = vadd.f32 %v5003_v12, %v4874_v31  ;;  %3966 = vmatprep.subr.bf16.mxu1 %v5875_v36  ;;  %v81_v58 = vld [vmem:[#allocation2 + $0x1a0] sm:$0xff] }
 0x159   :  { %v4564_v45 = vadd.f32 %v4563_v42, %v4562_v22  ;;  %v5011_v60 = vrot.slane %v5010_v49, 2  ;;  %v4569_v40 = vrot.slane %v4568_v26, 2  ;;  %v5016_v48 = vadd.f32 %v5015_v43, %v4876_v28  ;;  %v49_v43 = vld [vmem:[#allocation2 + $0xa0] sm:$0xff] }
 0x15a   :  { %v4553_v1 = vrot.slane %v4552_v29, 1  ;;  %v5000_v62 = vadd.f32 %v4999_v27, %v4998_v37  ;;  %v4558_v14 = vadd.f32 %v4557_v44, %v4556_v38  ;;  %v5005_v2 = vrot.slane %v5004_v55, 2  ;;  %3926 = vmatpush1.bf16.msra.mxu0 %v5872_v59  ;;  %v82_v27 = vld [vmem:[#allocation2 + $0x1a8] sm:$0xff] }
 0x15b   :  { %v4565_v57 = vrot.slane %v4564_v45, 1  ;;  %v5012_v3 = vadd.f32 %v5011_v60, %v5010_v49  ;;  %v4570_v8 = vadd.f32 %v4569_v40, %v4568_v26  ;;  %v5017_v16 = vrot.slane %v5016_v48, 2  ;;  %3967 = vmatpush1.bf16.msra.mxu1 %v5874_v46  ;;  %3927 = vmatprep.subr.bf16.mxu0 %v5809_v15  ;;  %v499_v60 = vld [vmem:[#allocation2 + $0xeb0] sm:$0xff] }
 0x15c   :  { %v5001_v36 = vrot.slane %v5000_v62, 1  ;;  %v4559_v17 = vrot.slane %v4558_v14, 1  ;;  %v5006_v4 = vadd.f32 %v5005_v2, %v5004_v55  ;;  %3968 = vmatprep.subr.bf16.mxu1 %v5811_v5  ;;  %v5747_v18 = vcombine.high %v242_v52, %v274_v9  ;;  %v531_v40 = vld [vmem:[#allocation2 + $0xfb0] sm:$0xff] }
 0x15d   :  { %v5013_v35 = vrot.slane %v5012_v3, 1  ;;  %v4571_v59 = vrot.slane %v4570_v8, 1  ;;  %v5018_v20 = vadd.f32 %v5017_v16, %v5016_v48  ;;  %v5744_v32 = vcombine.low %v6480_v6, %v6482_v50  ;;  %v500_v48 = vld [vmem:[#allocation2 + $0xeb8] sm:$0xff]  ;;  %v6569_v16 = vld [vmem:[#allocation2 + $0xab0] sm:$0xff] }
 0x15e   :  { %v4554_v10 = vadd.f32 %v4553_v1, %v4552_v29  ;;  %v5002_v46 = vadd.f32 %v5001_v36, %v5000_v62  ;;  %v5007_v63 = vrot.slane %v5006_v4, 1  ;;  %3928 = vmatpush1.bf16.msra.mxu0 %v5808_v47  ;;  %v5746_v15 = vcombine.low %v242_v52, %v274_v9  ;;  %v145_v47 = vld [vmem:[#allocation2 + $0x3a0] sm:$0xff]  ;;  %v50_v29 = vld [vmem:[#allocation2 + $0xa8] sm:$0xff]  ;;  %v532_v52 = vld [vmem:[#allocation2 + $0xfb8] sm:$0xff] }
 0x15f   :  { %v4566_v5 = vadd.f32 %v4565_v57, %v4564_v45  ;;  %v5014_v31 = vadd.f32 %v5013_v35, %v5012_v3  ;;  %v5019_v21 = vrot.slane %v5018_v20, 1  ;;  %3969 = vmatpush1.bf16.msra.mxu1 %v5810_v25  ;;  %3929 = vmatprep.subr.bf16.mxu0 %v5745_v51  ;;  %v5681_v22 = vcombine.high %v177_v19, %v209_v61  ;;  %v146_v25 = vld [vmem:[#allocation2 + $0x3a8] sm:$0xff]  ;;  %v6563_v57 = vld [vmem:[#allocation2 + $0xdb0] sm:$0xff]  ;;  %v6565_v3 = vld [vmem:[#allocation2 + $0xcb8] sm:$0xff] }
 0x160   :  { %v5322_v23 = vsel %vm5309_vm0, %v4554_v10, %v5002_v46  ;;  %v4560_v24 = vadd.f32 %v4559_v17, %v4558_v14  ;;  %v5008_v28 = vadd.f32 %v5007_v63, %v5006_v4  ;;  %3970 = vmatprep.subr.bf16.mxu1 %v5747_v18  ;;  %v5683_v53 = vcombine.high %v178_v41, %v210_v7  ;;  %v6561_v14 = vld [vmem:[#allocation2 + $0xcb0] sm:$0xff]  ;;  %v6573_v17 = vld [vmem:[#allocation2 + $0xab8] sm:$0xff] }
 0x161   :  { %v5387_v33 = vsel %vm5374_vm1, %v5322_v23, 0.0  ;;  %v5324_v34 = vsel %vm5309_vm0, %v4566_v5, %v5014_v31  ;;  %v4572_v37 = vadd.f32 %v4571_v59, %v4570_v8  ;;  %v5020_v56 = vadd.f32 %v5019_v21, %v5018_v20  ;;  %v6567_v8 = vld [vmem:[#allocation2 + $0xdb8] sm:$0xff]  ;;  %v6571_v36 = vld [vmem:[#allocation2 + $0xbb0] sm:$0xff] }
 0x162   :  { %5451 = vst [vmem:[%s7330_s3 + $0x60] sm:$0xff] %v5387_v33  ;;  %v5389_v6 = vsel %vm5374_vm1, %v5324_v34, 0.0  ;;  %v5323_v50 = vsel %vm5309_vm0, %v4560_v24, %v5008_v28  ;;  %3930 = vmatpush1.bf16.msra.mxu0 %v5744_v32  ;;  %v5680_v51 = vcombine.low %v177_v19, %v209_v61  ;;  %v5682_v39 = vcombine.low %v178_v41, %v210_v7  ;;  %v6575_v18 = vld [vmem:[#allocation2 + $0xbb8] sm:$0xff]  ;;  %v6577_v19 = vld [vmem:[#allocation2 + $0x8b0] sm:$0xff] }
 0x163   :  { %5453 = vst [vmem:[%s7330_s3 + $0x70] sm:$0xff] %v5389_v6  ;;  %v5388_v38 = vsel %vm5374_vm1, %v5323_v50, 0.0  ;;  %v5325_v12 = vsel %vm5309_vm0, %v4572_v37, %v5020_v56  ;;  %3971 = vmatpush1.bf16.msra.mxu1 %v5746_v15  ;;  %3931 = vmatprep.subr.bf16.mxu0 %v5681_v22  ;;  %v5617_v42 = vcombine.high %v113_v11, %v145_v47  ;;  %v6579_v61 = vld [vmem:[#allocation2 + $0x9b0] sm:$0xff]  ;;  %v6583_v20 = vld [vmem:[#allocation2 + $0x8b8] sm:$0xff] }
 0x164   :  { %5452 = vst [vmem:[%s7330_s3 + $0x68] sm:$0xff] %v5388_v38  ;;  %v5390_v49 = vsel %vm5374_vm1, %v5325_v12, 0.0  ;;  %3972 = vmatprep.subr.bf16.mxu1 %v5683_v53  ;;  %v5619_v26 = vcombine.high %v114_v13, %v146_v25  ;;  %v5616_v44 = vcombine.low %v113_v11, %v145_v47  ;;  %v5618_v55 = vcombine.low %v114_v13, %v146_v25  ;;  %v6585_v32 = vld [vmem:[#allocation2 + $0x9b8] sm:$0xff]  ;;  %v6595_v63 = vld [vmem:[#allocation2 + $0x6b0] sm:$0xff] }
 0x165   :  { %5454 = vst [vmem:[%s7330_s3 + $0x78] sm:$0xff] %v5390_v49  ;;  %v5553_v30 = vcombine.high %v49_v43, %v81_v58  ;;  %v5555_v45 = vcombine.high %v50_v29, %v82_v27  ;;  %v5552_v9 = vcombine.low %v49_v43, %v81_v58  ;;  %v5554_v1 = vcombine.low %v50_v29, %v82_v27  ;;  %v6597_v15 = vld [vmem:[#allocation2 + $0x7b0] sm:$0xff] }
 0x166   :  { %3932 = vmatpush1.bf16.msra.mxu0 %v5680_v51  ;;  %v6005_v62 = vcombine.high %v499_v60, %v531_v40  ;;  %v6007_v2 = vcombine.high %v500_v48, %v532_v52  ;;  %v6004_v4 = vcombine.low %v499_v60, %v531_v40  ;;  %v6006_v35 = vcombine.low %v500_v48, %v532_v52 }
 0x167   :  { %3973 = vmatpush1.bf16.msra.mxu1 %v5682_v39  ;;  %3933 = vmatprep.subr.bf16.mxu0 %v5617_v42  ;;  %v5941_v59 = vcombine.high %v6561_v14, %v6563_v57  ;;  %v5940_v41 = vcombine.low %v6561_v14, %v6563_v57  ;;  %v5942_v7 = vcombine.low %v6565_v3, %v6567_v8 }
 0x168   :  { %3974 = vmatprep.subr.bf16.mxu1 %v5619_v26  ;;  %v5943_v10 = vcombine.high %v6565_v3, %v6567_v8  ;;  %v5876_v46 = vcombine.low %v6569_v16, %v6571_v36  ;;  %v5877_v31 = vcombine.high %v6569_v16, %v6571_v36  ;;  %v5878_v21 = vcombine.low %v6573_v17, %v6575_v18  ;;  %v244_v8 = vld [vmem:[#allocation2 + $0x6b8] sm:$0xff] }
 0x169   :  { %v5879_v22 = vcombine.high %v6573_v17, %v6575_v18  ;;  %v5812_v23 = vcombine.low %v6577_v19, %v6579_v61  ;;  %v5813_v11 = vcombine.high %v6577_v19, %v6579_v61  ;;  %v5814_v47 = vcombine.low %v6583_v20, %v6585_v32  ;;  %v115_v61 = vld [vmem:[#allocation2 + $0x2b0] sm:$0xff] }
 0x16a   :  { %3934 = vmatpush1.bf16.msra.mxu0 %v5616_v44  ;;  %v5815_v56 = vcombine.high %v6583_v20, %v6585_v32  ;;  %v5749_v13 = vcombine.high %v6595_v63, %v6597_v15  ;;  %v5748_v36 = vcombine.low %v6595_v63, %v6597_v15  ;;  %v116_v32 = vld [vmem:[#allocation2 + $0x2b8] sm:$0xff] }
 0x16b   :  { %3975 = vmatpush1.bf16.msra.mxu1 %v5618_v55  ;;  %3935 = vmatprep.subr.bf16.mxu0 %v5553_v30 }
 0x16c   :  { %3976 = vmatprep.subr.bf16.mxu1 %v5555_v45 }
 0x16e   :  { %3936 = vmatpush1.bf16.msra.mxu0 %v5552_v9 }
 0x16f   :  { %3977 = vmatpush1.bf16.msra.mxu1 %v5554_v1  ;;  %4003 = vmatprep.subr.bf16.mxu0 %v6005_v62 }
 0x170   :  { %4044 = vmatprep.subr.bf16.mxu1 %v6007_v2 }
 0x171   :  { %v3463_v5 = vpop.f32.mrf.mxu0  ;;  %3954 = vmatmul.mubr.bf16.vlgmr.msra.gmra.mxu0 %v6487_v54  ;;  %v3504_v53 = vpop.f32.mrf.mxu1 }
 0x172   :  { %4429 = vst [vmem:[%s7329_s2 + $0x80] sm:$0xff] %v3463_v5  ;;  %v4573_v24 = vrot.slane %v3463_v5, 4  ;;  %v4877_v28 = vmul.f32 %v3463_v5, %v3463_v5  ;;  %3995 = vmatmul.mubr.bf16.vlgmr.msra.gmra.mxu1 %v6487_v54  ;;  %4004 = vmatpush1.bf16.msra.mxu0 %v6004_v4  ;;  %4431 = vst [vmem:[%s7329_s2 + $0x90] sm:$0xff] %v3504_v53  ;;  %v4585_v33 = vrot.slane %v3504_v53, 4  ;;  %v276_v4 = vld [vmem:[#allocation2 + $0x7b8] sm:$0xff] }
 0x173   :  { %v4879_v34 = vmul.f32 %v3504_v53, %v3504_v53  ;;  %4045 = vmatpush1.bf16.msra.mxu1 %v6006_v35  ;;  %v3465_v37 = vpop.f32.mrf.mxu0  ;;  %4005 = vmatprep.subr.bf16.mxu0 %v5941_v59  ;;  %v3506_v38 = vpop.f32.mrf.mxu1  ;;  %v5750_v18 = vcombine.low %v244_v8, %v276_v4 }
 0x174   :  { %v4574_v25 = vadd.f32 %v4573_v24, %v3463_v5  ;;  %v5021_v6 = vrot.slane %v4877_v28, 4  ;;  %4430 = vst [vmem:[%s7329_s2 + $0x88] sm:$0xff] %v3465_v37  ;;  %v4579_v50 = vrot.slane %v3465_v37, 4  ;;  %v4878_v51 = vmul.f32 %v3465_v37, %v3465_v37  ;;  %4046 = vmatprep.subr.bf16.mxu1 %v5943_v10  ;;  %4035 = vmatprep.mubr.bf16.mxu0 %v6056_v0 }
 0x175   :  { %v4586_v12 = vadd.f32 %v4585_v33, %v3504_v53  ;;  %v5033_v39 = vrot.slane %v4879_v34, 4  ;;  %4432 = vst [vmem:[%s7329_s2 + $0x98] sm:$0xff] %v3506_v38  ;;  %v4591_v42 = vrot.slane %v3506_v38, 4  ;;  %v4880_v49 = vmul.f32 %v3506_v38, %v3506_v38  ;;  %v3467_v26 = vpop.f32.mrf.mxu0  ;;  %4076 = vmatprep.mubr.bf16.mxu1 %v6056_v0  ;;  %v3508_v44 = vpop.f32.mrf.mxu1 }
 0x176   :  { %v4575_v43 = vrot.slane %v4574_v25, 2  ;;  %v5022_v58 = vadd.f32 %v5021_v6, %v4877_v28  ;;  %v4580_v29 = vadd.f32 %v4579_v50, %v3465_v37  ;;  %v5027_v27 = vrot.slane %v4878_v51, 4  ;;  %4006 = vmatpush1.bf16.msra.mxu0 %v5940_v41  ;;  %v211_v37 = vld [vmem:[#allocation2 + $0x5b0] sm:$0xff]  ;;  %v212_v50 = vld [vmem:[#allocation2 + $0x5b8] sm:$0xff] }
 0x177   :  { %v4587_v55 = vrot.slane %v4586_v12, 2  ;;  %v5034_v30 = vadd.f32 %v5033_v39, %v4879_v34  ;;  %v4592_v45 = vadd.f32 %v4591_v42, %v3506_v38  ;;  %v5039_v60 = vrot.slane %v4880_v49, 4  ;;  %4047 = vmatpush1.bf16.msra.mxu1 %v5942_v7  ;;  %v3468_v40 = vpop.f32.mrf.mxu0  ;;  %4007 = vmatprep.subr.bf16.mxu0 %v5877_v31  ;;  %v3509_v62 = vpop.f32.mrf.mxu1  ;;  %v179_v34 = vld [vmem:[#allocation2 + $0x4b0] sm:$0xff] }
 0x178   :  { %v4576_v48 = vadd.f32 %v4575_v43, %v4574_v25  ;;  %v5023_v52 = vrot.slane %v5022_v58, 2  ;;  %v4581_v9 = vrot.slane %v4580_v29, 2  ;;  %v5028_v1 = vadd.f32 %v5027_v27, %v4878_v51  ;;  %4048 = vmatprep.subr.bf16.mxu1 %v5879_v22  ;;  %v83_v40 = vld [vmem:[#allocation2 + $0x1b0] sm:$0xff] }
 0x179   :  { %v4588_v14 = vadd.f32 %v4587_v55, %v4586_v12  ;;  %v5035_v2 = vrot.slane %v5034_v30, 2  ;;  %v4593_v57 = vrot.slane %v4592_v45, 2  ;;  %v5040_v3 = vadd.f32 %v5039_v60, %v4880_v49  ;;  %v51_v60 = vld [vmem:[#allocation2 + $0xb0] sm:$0xff] }
 0x17a   :  { %v4577_v35 = vrot.slane %v4576_v48, 1  ;;  %v5024_v59 = vadd.f32 %v5023_v52, %v5022_v58  ;;  %v4582_v41 = vadd.f32 %v4581_v9, %v4580_v29  ;;  %v5029_v10 = vrot.slane %v5028_v1, 2  ;;  %4008 = vmatpush1.bf16.msra.mxu0 %v5876_v46  ;;  %v180_v46 = vld [vmem:[#allocation2 + $0x4b8] sm:$0xff] }
 0x17b   :  { %v4589_v7 = vrot.slane %v4588_v14, 1  ;;  %v5036_v5 = vadd.f32 %v5035_v2, %v5034_v30  ;;  %v4594_v31 = vadd.f32 %v4593_v57, %v4592_v45  ;;  %v5041_v24 = vrot.slane %v5040_v3, 2  ;;  %4049 = vmatpush1.bf16.msra.mxu1 %v5878_v21  ;;  %4009 = vmatprep.subr.bf16.mxu0 %v5813_v11  ;;  %v84_v52 = vld [vmem:[#allocation2 + $0x1b8] sm:$0xff]  ;;  %v501_v2 = vld [vmem:[#allocation2 + $0xec0] sm:$0xff] }
 0x17c   :  { %v5025_v22 = vrot.slane %v5024_v59, 1  ;;  %v4583_v28 = vrot.slane %v4582_v41, 1  ;;  %v5030_v53 = vadd.f32 %v5029_v10, %v5028_v1  ;;  %4050 = vmatprep.subr.bf16.mxu1 %v5815_v56  ;;  %v5751_v33 = vcombine.high %v244_v8, %v276_v4  ;;  %v533_v57 = vld [vmem:[#allocation2 + $0xfc0] sm:$0xff]  ;;  %v534_v8 = vld [vmem:[#allocation2 + $0xfc8] sm:$0xff] }
 0x17d   :  { %v5037_v25 = vrot.slane %v5036_v5, 1  ;;  %v4595_v6 = vrot.slane %v4594_v31, 1  ;;  %v5042_v16 = vadd.f32 %v5041_v24, %v5040_v3  ;;  %v4578_v51 = vadd.f32 %v4577_v35, %v4576_v48  ;;  %v52_v48 = vld [vmem:[#allocation2 + $0xb8] sm:$0xff]  ;;  %v502_v3 = vld [vmem:[#allocation2 + $0xec8] sm:$0xff]  ;;  %v6676_v24 = vld [vmem:[#allocation2 + $0xac0] sm:$0xff] }
 0x17e   :  { %v5026_v38 = vadd.f32 %v5025_v22, %v5024_v59  ;;  %v5031_v17 = vrot.slane %v5030_v53, 1  ;;  %4010 = vmatpush1.bf16.msra.mxu0 %v5812_v23  ;;  %v4590_v21 = vadd.f32 %v4589_v7, %v4588_v14  ;;  %v5685_v12 = vcombine.high %v179_v34, %v211_v37  ;;  %v147_v23 = vld [vmem:[#allocation2 + $0x3b0] sm:$0xff]  ;;  %v6670_v7 = vld [vmem:[#allocation2 + $0xdc0] sm:$0xff] }
 0x17f   :  { %v5038_v11 = vadd.f32 %v5037_v25, %v5036_v5  ;;  %v5043_v56 = vrot.slane %v5042_v16, 1  ;;  %4051 = vmatpush1.bf16.msra.mxu1 %v5814_v47  ;;  %4011 = vmatprep.subr.bf16.mxu0 %v5749_v13  ;;  %v4584_v42 = vadd.f32 %v4583_v28, %v4582_v41  ;;  %v5687_v19 = vcombine.high %v180_v46, %v212_v50  ;;  %v148_v47 = vld [vmem:[#allocation2 + $0x3b8] sm:$0xff]  ;;  %v6668_v41 = vld [vmem:[#allocation2 + $0xcc0] sm:$0xff]  ;;  %v6672_v5 = vld [vmem:[#allocation2 + $0xcc8] sm:$0xff] }
 0x180   :  { %v5326_v39 = vsel %vm5309_vm0, %v4578_v51, %v5026_v38  ;;  %v5032_v49 = vadd.f32 %v5031_v17, %v5030_v53  ;;  %4052 = vmatprep.subr.bf16.mxu1 %v5751_v33  ;;  %v4596_v58 = vadd.f32 %v4595_v6, %v4594_v31  ;;  %v5684_v13 = vcombine.low %v179_v34, %v211_v37  ;;  %v6674_v31 = vld [vmem:[#allocation2 + $0xdc8] sm:$0xff]  ;;  %v6678_v22 = vld [vmem:[#allocation2 + $0xbc0] sm:$0xff] }
 0x181   :  { %v5391_v26 = vsel %vm5374_vm1, %v5326_v39, 0.0  ;;  %v5328_v43 = vsel %vm5309_vm0, %v4590_v21, %v5038_v11  ;;  %v5044_v20 = vadd.f32 %v5043_v56, %v5042_v16  ;;  %v5686_v44 = vcombine.low %v180_v46, %v212_v50  ;;  %v6680_v28 = vld [vmem:[#allocation2 + $0xac8] sm:$0xff]  ;;  %v6684_v34 = vld [vmem:[#allocation2 + $0x8c0] sm:$0xff] }
 0x182   :  { %5455 = vst [vmem:[%s7330_s3 + $0x80] sm:$0xff] %v5391_v26  ;;  %v5393_v63 = vsel %vm5374_vm1, %v5328_v43, 0.0  ;;  %v5327_v15 = vsel %vm5309_vm0, %v4584_v42, %v5032_v49  ;;  %4012 = vmatpush1.bf16.msra.mxu0 %v5748_v36  ;;  %v5621_v55 = vcombine.high %v115_v61, %v147_v23  ;;  %v5623_v45 = vcombine.high %v116_v32, %v148_v47  ;;  %v6682_v33 = vld [vmem:[#allocation2 + $0xbc8] sm:$0xff]  ;;  %v6686_v37 = vld [vmem:[#allocation2 + $0x9c0] sm:$0xff] }
 0x183   :  { %5457 = vst [vmem:[%s7330_s3 + $0x90] sm:$0xff] %v5393_v63  ;;  %v5392_v29 = vsel %vm5374_vm1, %v5327_v15, 0.0  ;;  %v5329_v27 = vsel %vm5309_vm0, %v4596_v58, %v5044_v20  ;;  %4053 = vmatpush1.bf16.msra.mxu1 %v5750_v18  ;;  %4013 = vmatprep.subr.bf16.mxu0 %v5685_v12  ;;  %v5620_v9 = vcombine.low %v115_v61, %v147_v23  ;;  %v6690_v16 = vld [vmem:[#allocation2 + $0x8c8] sm:$0xff]  ;;  %v6702_v17 = vld [vmem:[#allocation2 + $0x6c0] sm:$0xff] }
 0x184   :  { %5456 = vst [vmem:[%s7330_s3 + $0x88] sm:$0xff] %v5392_v29  ;;  %v5394_v30 = vsel %vm5374_vm1, %v5329_v27, 0.0  ;;  %4054 = vmatprep.subr.bf16.mxu1 %v5687_v19  ;;  %v5622_v1 = vcombine.low %v116_v32, %v148_v47  ;;  %v5557_v62 = vcombine.high %v51_v60, %v83_v40  ;;  %v5559_v14 = vcombine.high %v52_v48, %v84_v52  ;;  %v6692_v36 = vld [vmem:[#allocation2 + $0x9c8] sm:$0xff]  ;;  %v6704_v18 = vld [vmem:[#allocation2 + $0x7c0] sm:$0xff] }
 0x185   :  { %5458 = vst [vmem:[%s7330_s3 + $0x98] sm:$0xff] %v5394_v30  ;;  %v5556_v4 = vcombine.low %v51_v60, %v83_v40  ;;  %v5558_v35 = vcombine.low %v52_v48, %v84_v52  ;;  %v6009_v59 = vcombine.high %v501_v2, %v533_v57  ;;  %v6011_v10 = vcombine.high %v502_v3, %v534_v8 }
 0x186   :  { %4014 = vmatpush1.bf16.msra.mxu0 %v5684_v13  ;;  %v6008_v53 = vcombine.low %v501_v2, %v533_v57  ;;  %v6010_v25 = vcombine.low %v502_v3, %v534_v8  ;;  %v5945_v6 = vcombine.high %v6668_v41, %v6670_v7  ;;  %v5944_v46 = vcombine.low %v6668_v41, %v6670_v7 }
 0x187   :  { %4055 = vmatpush1.bf16.msra.mxu1 %v5686_v44  ;;  %4015 = vmatprep.subr.bf16.mxu0 %v5621_v55  ;;  %v5946_v50 = vcombine.low %v6672_v5, %v6674_v31  ;;  %v5947_v51 = vcombine.high %v6672_v5, %v6674_v31  ;;  %v5880_v38 = vcombine.low %v6676_v24, %v6678_v22  ;;  %v246_v5 = vld [vmem:[#allocation2 + $0x6c8] sm:$0xff] }
 0x188   :  { %4056 = vmatprep.subr.bf16.mxu1 %v5623_v45  ;;  %v5881_v11 = vcombine.high %v6676_v24, %v6678_v22  ;;  %v5882_v56 = vcombine.low %v6680_v28, %v6682_v33  ;;  %v5883_v12 = vcombine.high %v6680_v28, %v6682_v33  ;;  %v5816_v39 = vcombine.low %v6684_v34, %v6686_v37  ;;  %v278_v31 = vld [vmem:[#allocation2 + $0x7c8] sm:$0xff] }
 0x189   :  { %v5817_v61 = vcombine.high %v6684_v34, %v6686_v37  ;;  %v5818_v23 = vcombine.low %v6690_v16, %v6692_v36  ;;  %v5819_v20 = vcombine.high %v6690_v16, %v6692_v36  ;;  %v5752_v22 = vcombine.low %v6702_v17, %v6704_v18  ;;  %v117_v37 = vld [vmem:[#allocation2 + $0x2c0] sm:$0xff]  ;;  %v118_v36 = vld [vmem:[#allocation2 + $0x2c8] sm:$0xff] }
 0x18a   :  { %4016 = vmatpush1.bf16.msra.mxu0 %v5620_v9  ;;  %v5754_v33 = vcombine.low %v246_v5, %v278_v31 }
 0x18b   :  { %4057 = vmatpush1.bf16.msra.mxu1 %v5622_v1  ;;  %4017 = vmatprep.subr.bf16.mxu0 %v5557_v62 }
 0x18c   :  { %4058 = vmatprep.subr.bf16.mxu1 %v5559_v14 }
 0x18e   :  { %4018 = vmatpush1.bf16.msra.mxu0 %v5556_v4 }
 0x18f   :  { %4059 = vmatpush1.bf16.msra.mxu1 %v5558_v35  ;;  %4085 = vmatprep.subr.bf16.mxu0 %v6009_v59 }
 0x190   :  { %4126 = vmatprep.subr.bf16.mxu1 %v6011_v10 }
 0x191   :  { %v3545_v21 = vpop.f32.mrf.mxu0  ;;  %4036 = vmatmul.mubr.bf16.vlgmr.msra.gmra.mxu0 %v6487_v54  ;;  %v3586_v19 = vpop.f32.mrf.mxu1 }
 0x192   :  { %4433 = vst [vmem:[%s7329_s2 + $0xa0] sm:$0xff] %v3545_v21  ;;  %v4597_v42 = vrot.slane %v3545_v21, 4  ;;  %v4881_v49 = vmul.f32 %v3545_v21, %v3545_v21  ;;  %4077 = vmatmul.mubr.bf16.vlgmr.msra.gmra.mxu1 %v6487_v54  ;;  %4086 = vmatpush1.bf16.msra.mxu0 %v6008_v53  ;;  %4435 = vst [vmem:[%s7329_s2 + $0xb0] sm:$0xff] %v3586_v19  ;;  %v4609_v26 = vrot.slane %v3586_v19, 4 }
 0x193   :  { %v4883_v43 = vmul.f32 %v3586_v19, %v3586_v19  ;;  %4127 = vmatpush1.bf16.msra.mxu1 %v6010_v25  ;;  %v3547_v58 = vpop.f32.mrf.mxu0  ;;  %4087 = vmatprep.subr.bf16.mxu0 %v5945_v6  ;;  %v5753_v54 = vcombine.high %v6702_v17, %v6704_v18  ;;  %v3588_v13 = vpop.f32.mrf.mxu1 }
 0x194   :  { %v4598_v32 = vadd.f32 %v4597_v42, %v3545_v21  ;;  %v5045_v47 = vrot.slane %v4881_v49, 4  ;;  %4434 = vst [vmem:[%s7329_s2 + $0xa8] sm:$0xff] %v3547_v58  ;;  %v4603_v63 = vrot.slane %v3547_v58, 4  ;;  %v4882_v15 = vmul.f32 %v3547_v58, %v3547_v58  ;;  %4128 = vmatprep.subr.bf16.mxu1 %v5947_v51  ;;  %4117 = vmatprep.mubr.bf16.mxu0 %v6056_v0 }
 0x195   :  { %v4610_v29 = vadd.f32 %v4609_v26, %v3586_v19  ;;  %v5057_v27 = vrot.slane %v4883_v43, 4  ;;  %4436 = vst [vmem:[%s7329_s2 + $0xb8] sm:$0xff] %v3588_v13  ;;  %v4615_v44 = vrot.slane %v3588_v13, 4  ;;  %v4884_v55 = vmul.f32 %v3588_v13, %v3588_v13  ;;  %v3549_v30 = vpop.f32.mrf.mxu0  ;;  %4158 = vmatprep.mubr.bf16.mxu1 %v6056_v0  ;;  %v3590_v52 = vpop.f32.mrf.mxu1  ;;  %v181_v26 = vld [vmem:[#allocation2 + $0x4c0] sm:$0xff] }
 0x196   :  { %v4599_v45 = vrot.slane %v4598_v32, 2  ;;  %v5046_v60 = vadd.f32 %v5045_v47, %v4881_v49  ;;  %v4604_v40 = vadd.f32 %v4603_v63, %v3547_v58  ;;  %v5051_v48 = vrot.slane %v4882_v15, 4  ;;  %4088 = vmatpush1.bf16.msra.mxu0 %v5944_v46  ;;  %v214_v47 = vld [vmem:[#allocation2 + $0x5c8] sm:$0xff] }
 0x197   :  { %v4611_v9 = vrot.slane %v4610_v29, 2  ;;  %v5058_v1 = vadd.f32 %v5057_v27, %v4883_v43  ;;  %v4616_v62 = vadd.f32 %v4615_v44, %v3588_v13  ;;  %v5063_v14 = vrot.slane %v4884_v55, 4  ;;  %4129 = vmatpush1.bf16.msra.mxu1 %v5946_v50  ;;  %v3550_v2 = vpop.f32.mrf.mxu0  ;;  %4089 = vmatprep.subr.bf16.mxu0 %v5881_v11  ;;  %v3591_v35 = vpop.f32.mrf.mxu1  ;;  %v213_v43 = vld [vmem:[#allocation2 + $0x5c0] sm:$0xff] }
 0x198   :  { %v4600_v57 = vadd.f32 %v4599_v45, %v4598_v32  ;;  %v5047_v3 = vrot.slane %v5046_v60, 2  ;;  %v4605_v8 = vrot.slane %v4604_v40, 2  ;;  %v5052_v4 = vadd.f32 %v5051_v48, %v4882_v15  ;;  %4130 = vmatprep.subr.bf16.mxu1 %v5883_v12  ;;  %v54_v2 = vld [vmem:[#allocation2 + $0xc8] sm:$0xff] }
 0x199   :  { %v4612_v59 = vadd.f32 %v4611_v9, %v4610_v29  ;;  %v5059_v41 = vrot.slane %v5058_v1, 2  ;;  %v4617_v10 = vrot.slane %v4616_v62, 2  ;;  %v5064_v7 = vadd.f32 %v5063_v14, %v4884_v55  ;;  %v85_v14 = vld [vmem:[#allocation2 + $0x1c0] sm:$0xff] }
 0x19a   :  { %v4601_v53 = vrot.slane %v4600_v57, 1  ;;  %v5048_v25 = vadd.f32 %v5047_v3, %v5046_v60  ;;  %v4606_v6 = vadd.f32 %v4605_v8, %v4604_v40  ;;  %v5053_v46 = vrot.slane %v5052_v4, 2  ;;  %4090 = vmatpush1.bf16.msra.mxu0 %v5880_v38  ;;  %v182_v38 = vld [vmem:[#allocation2 + $0x4c8] sm:$0xff] }
 0x19b   :  { %v4613_v50 = vrot.slane %v4612_v59, 1  ;;  %v5060_v51 = vadd.f32 %v5059_v41, %v5058_v1  ;;  %v4618_v21 = vadd.f32 %v4617_v10, %v4616_v62  ;;  %v5065_v11 = vrot.slane %v5064_v7, 2  ;;  %4131 = vmatpush1.bf16.msra.mxu1 %v5882_v56  ;;  %4091 = vmatprep.subr.bf16.mxu0 %v5817_v61  ;;  %v53_v62 = vld [vmem:[#allocation2 + $0xc0] sm:$0xff]  ;;  %v535_v41 = vld [vmem:[#allocation2 + $0xfd0] sm:$0xff]  ;;  %v504_v10 = vld [vmem:[#allocation2 + $0xed8] sm:$0xff] }
 0x19c   :  { %v5049_v12 = vrot.slane %v5048_v25, 1  ;;  %v4607_v42 = vrot.slane %v4606_v6, 1  ;;  %v5054_v49 = vadd.f32 %v5053_v46, %v5052_v4  ;;  %4132 = vmatprep.subr.bf16.mxu1 %v5819_v20  ;;  %v5755_v19 = vcombine.high %v246_v5, %v278_v31  ;;  %v6777_v46 = vld [vmem:[#allocation2 + $0xdd0] sm:$0xff] }
 0x19d   :  { %v5061_v58 = vrot.slane %v5060_v51, 1  ;;  %v4619_v32 = vrot.slane %v4618_v21, 1  ;;  %v5066_v24 = vadd.f32 %v5065_v11, %v5064_v7  ;;  %v4602_v63 = vadd.f32 %v4601_v53, %v4600_v57  ;;  %v86_v57 = vld [vmem:[#allocation2 + $0x1c8] sm:$0xff]  ;;  %v536_v7 = vld [vmem:[#allocation2 + $0xfd8] sm:$0xff]  ;;  %v6785_v11 = vld [vmem:[#allocation2 + $0xbd0] sm:$0xff] }
 0x19e   :  { %v5050_v15 = vadd.f32 %v5049_v12, %v5048_v25  ;;  %v5055_v28 = vrot.slane %v5054_v49, 1  ;;  %4092 = vmatpush1.bf16.msra.mxu0 %v5816_v39  ;;  %v4614_v56 = vadd.f32 %v4613_v50, %v4612_v59  ;;  %v5689_v13 = vcombine.high %v181_v26, %v213_v43  ;;  %v149_v39 = vld [vmem:[#allocation2 + $0x3c0] sm:$0xff]  ;;  %v503_v59 = vld [vmem:[#allocation2 + $0xed0] sm:$0xff]  ;;  %v6779_v50 = vld [vmem:[#allocation2 + $0xcd8] sm:$0xff] }
 0x19f   :  { %v5062_v61 = vadd.f32 %v5061_v58, %v5060_v51  ;;  %v5067_v20 = vrot.slane %v5066_v24, 1  ;;  %4133 = vmatpush1.bf16.msra.mxu1 %v5818_v23  ;;  %4093 = vmatprep.subr.bf16.mxu0 %v5753_v54  ;;  %v4608_v27 = vadd.f32 %v4607_v42, %v4606_v6  ;;  %v5691_v34 = vcombine.high %v182_v38, %v214_v47  ;;  %v150_v23 = vld [vmem:[#allocation2 + $0x3c8] sm:$0xff]  ;;  %v6775_v25 = vld [vmem:[#allocation2 + $0xcd0] sm:$0xff]  ;;  %v6781_v51 = vld [vmem:[#allocation2 + $0xdd8] sm:$0xff] }
 0x1a0   :  { %v5330_v29 = vsel %vm5309_vm0, %v4602_v63, %v5050_v15  ;;  %v5056_v44 = vadd.f32 %v5055_v28, %v5054_v49  ;;  %4134 = vmatprep.subr.bf16.mxu1 %v5755_v19  ;;  %v4620_v45 = vadd.f32 %v4619_v32, %v4618_v21  ;;  %v5688_v54 = vcombine.low %v181_v26, %v213_v43  ;;  %v6783_v21 = vld [vmem:[#allocation2 + $0xad0] sm:$0xff]  ;;  %v6787_v12 = vld [vmem:[#allocation2 + $0xad8] sm:$0xff] }
 0x1a1   :  { %v5395_v55 = vsel %vm5374_vm1, %v5330_v29, 0.0  ;;  %v5332_v30 = vsel %vm5309_vm0, %v4614_v56, %v5062_v61  ;;  %v5068_v16 = vadd.f32 %v5067_v20, %v5066_v24  ;;  %v5690_v48 = vcombine.low %v182_v38, %v214_v47  ;;  %v6789_v49 = vld [vmem:[#allocation2 + $0xbd8] sm:$0xff]  ;;  %v6791_v19 = vld [vmem:[#allocation2 + $0x8d0] sm:$0xff]  ;;  %v6816_v56 = vld [vmem:[%s7327_s0] sm:$0xf] }
 0x1a2   :  { %5459 = vst [vmem:[%s7330_s3 + $0xa0] sm:$0xff] %v5395_v55  ;;  %v5397_v17 = vsel %vm5374_vm1, %v5332_v30, 0.0  ;;  %v5331_v18 = vsel %vm5309_vm0, %v4608_v27, %v5056_v44  ;;  %4094 = vmatpush1.bf16.msra.mxu0 %v5752_v22  ;;  %v5625_v52 = vcombine.high %v117_v37, %v149_v39  ;;  %v5627_v1 = vcombine.high %v118_v36, %v150_v23  ;;  %v6793_v26 = vld [vmem:[#allocation2 + $0x9d0] sm:$0xff]  ;;  %v6797_v32 = vld [vmem:[#allocation2 + $0x8d8] sm:$0xff] }
 0x1a3   :  { %5461 = vst [vmem:[%s7330_s3 + $0xb0] sm:$0xff] %v5397_v17  ;;  %v5396_v60 = vsel %vm5374_vm1, %v5331_v18, 0.0  ;;  %v5333_v40 = vsel %vm5309_vm0, %v4620_v45, %v5068_v16  ;;  %4135 = vmatpush1.bf16.msra.mxu1 %v5754_v33  ;;  %4095 = vmatprep.subr.bf16.mxu0 %v5689_v13  ;;  %v5624_v3 = vcombine.low %v117_v37, %v149_v39  ;;  %v6799_v24 = vld [vmem:[#allocation2 + $0x9d8] sm:$0xff]  ;;  %v6809_v15 = vld [vmem:[#allocation2 + $0x6d0] sm:$0xff] }
 0x1a4   :  { %5460 = vst [vmem:[%s7330_s3 + $0xa8] sm:$0xff] %v5396_v60  ;;  %v5398_v9 = vsel %vm5374_vm1, %v5333_v40, 0.0  ;;  %4136 = vmatprep.subr.bf16.mxu1 %v5691_v34  ;;  %v5626_v8 = vcombine.low %v118_v36, %v150_v23  ;;  %v5561_v4 = vcombine.high %v53_v62, %v85_v14  ;;  %v5563_v35 = vcombine.high %v54_v2, %v86_v57  ;;  %v6811_v28 = vld [vmem:[#allocation2 + $0x7d0] sm:$0xff] }
 0x1a5   :  { %5462 = vst [vmem:[%s7330_s3 + $0xb8] sm:$0xff] %v5398_v9  ;;  %v5560_v5 = vcombine.low %v53_v62, %v85_v14  ;;  %v5562_v31 = vcombine.low %v54_v2, %v86_v57  ;;  %v6013_v53 = vcombine.high %v503_v59, %v535_v41  ;;  %v6015_v6 = vcombine.high %v504_v10, %v536_v7 }
 0x1a6   :  { %4096 = vmatpush1.bf16.msra.mxu0 %v5688_v54  ;;  %v6012_v42 = vcombine.low %v503_v59, %v535_v41  ;;  %v6014_v43 = vcombine.low %v504_v10, %v536_v7  ;;  %v5949_v58 = vcombine.high %v6775_v25, %v6777_v46  ;;  %v5948_v22 = vcombine.low %v6775_v25, %v6777_v46 }
 0x1a7   :  { %4137 = vmatpush1.bf16.msra.mxu1 %v5690_v48  ;;  %4097 = vmatprep.subr.bf16.mxu0 %v5625_v52  ;;  %v5950_v38 = vcombine.low %v6779_v50, %v6781_v51  ;;  %v5951_v47 = vcombine.high %v6779_v50, %v6781_v51  ;;  %v5884_v63 = vcombine.low %v6783_v21, %v6785_v11  ;;  %v248_v51 = vld [vmem:[#allocation2 + $0x6d8] sm:$0xff] }
 0x1a8   :  { %4138 = vmatprep.subr.bf16.mxu1 %v5627_v1  ;;  %v5885_v61 = vcombine.high %v6783_v21, %v6785_v11  ;;  %v5886_v20 = vcombine.low %v6787_v12, %v6789_v49  ;;  %v5887_v13 = vcombine.high %v6787_v12, %v6789_v49  ;;  %v5820_v29 = vcombine.low %v6791_v19, %v6793_v26 }
 0x1a9   :  { %v5821_v37 = vcombine.high %v6791_v19, %v6793_v26  ;;  %v5822_v39 = vcombine.low %v6797_v32, %v6799_v24  ;;  %v5823_v16 = vcombine.high %v6797_v32, %v6799_v24  ;;  %v5757_v36 = vcombine.high %v6809_v15, %v6811_v28  ;;  %v119_v26 = vld [vmem:[#allocation2 + $0x2d0] sm:$0xff]  ;;  %v120_v24 = vld [vmem:[#allocation2 + $0x2d8] sm:$0xff] }
 0x1aa   :  { %4098 = vmatpush1.bf16.msra.mxu0 %v5624_v3  ;;  %v5756_v11 = vcombine.low %v6809_v15, %v6811_v28 }
 0x1ab   :  { %4139 = vmatpush1.bf16.msra.mxu1 %v5626_v8  ;;  %4099 = vmatprep.subr.bf16.mxu0 %v5561_v4 }
 0x1ac   :  { %4140 = vmatprep.subr.bf16.mxu1 %v5563_v35 }
 0x1ae   :  { %4100 = vmatpush1.bf16.msra.mxu0 %v5560_v5 }
 0x1af   :  { %4141 = vmatpush1.bf16.msra.mxu1 %v5562_v31  ;;  %4167 = vmatprep.subr.bf16.mxu0 %v6013_v53 }
 0x1b0   :  { %4208 = vmatprep.subr.bf16.mxu1 %v6015_v6 }
 0x1b1   :  { %v3627_v33 = vpop.f32.mrf.mxu0  ;;  %4118 = vmatmul.mubr.bf16.vlgmr.msra.gmra.mxu0 %v6816_v56  ;;  %v3668_v34 = vpop.f32.mrf.mxu1 }
 0x1b2   :  { %4437 = vst [vmem:[%s7329_s2 + $0xc0] sm:$0xff] %v3627_v33  ;;  %v4621_v27 = vrot.slane %v3627_v33, 4  ;;  %v4885_v44 = vmul.f32 %v3627_v33, %v3627_v33  ;;  %4159 = vmatmul.mubr.bf16.vlgmr.msra.gmra.mxu1 %v6816_v56  ;;  %4168 = vmatpush1.bf16.msra.mxu0 %v6012_v42  ;;  %4439 = vst [vmem:[%s7329_s2 + $0xd0] sm:$0xff] %v3668_v34  ;;  %v4633_v55 = vrot.slane %v3668_v34, 4  ;;  %v280_v42 = vld [vmem:[#allocation2 + $0x7d8] sm:$0xff] }
 0x1b3   :  { %v4887_v30 = vmul.f32 %v3668_v34, %v3668_v34  ;;  %4209 = vmatpush1.bf16.msra.mxu1 %v6014_v43  ;;  %v3629_v45 = vpop.f32.mrf.mxu0  ;;  %4169 = vmatprep.subr.bf16.mxu0 %v5949_v58  ;;  %v3670_v60 = vpop.f32.mrf.mxu1  ;;  %v5758_v49 = vcombine.low %v248_v51, %v280_v42 }
 0x1b4   :  { %v4622_v23 = vadd.f32 %v4621_v27, %v3627_v33  ;;  %v5069_v17 = vrot.slane %v4885_v44, 4  ;;  %4438 = vst [vmem:[%s7329_s2 + $0xc8] sm:$0xff] %v3629_v45  ;;  %v4627_v18 = vrot.slane %v3629_v45, 4  ;;  %v4886_v54 = vmul.f32 %v3629_v45, %v3629_v45  ;;  %4210 = vmatprep.subr.bf16.mxu1 %v5951_v47  ;;  %4199 = vmatprep.mubr.bf16.mxu0 %v6056_v0 }
 0x1b5   :  { %v4634_v40 = vadd.f32 %v4633_v55, %v3668_v34  ;;  %v5081_v48 = vrot.slane %v4887_v30, 4  ;;  %4440 = vst [vmem:[%s7329_s2 + $0xd8] sm:$0xff] %v3670_v60  ;;  %v4639_v52 = vrot.slane %v3670_v60, 4  ;;  %v4888_v9 = vmul.f32 %v3670_v60, %v3670_v60  ;;  %v3631_v1 = vpop.f32.mrf.mxu0  ;;  %4240 = vmatprep.mubr.bf16.mxu1 %v6056_v0  ;;  %v3672_v3 = vpop.f32.mrf.mxu1 }
 0x1b6   :  { %v4623_v62 = vrot.slane %v4622_v23, 2  ;;  %v5070_v14 = vadd.f32 %v5069_v17, %v4885_v44  ;;  %v4628_v2 = vadd.f32 %v4627_v18, %v3629_v45  ;;  %v5075_v57 = vrot.slane %v4886_v54, 4  ;;  %4170 = vmatpush1.bf16.msra.mxu0 %v5948_v22  ;;  %v215_v45 = vld [vmem:[#allocation2 + $0x5d0] sm:$0xff]  ;;  %v216_v18 = vld [vmem:[#allocation2 + $0x5d8] sm:$0xff] }
 0x1b7   :  { %v4635_v8 = vrot.slane %v4634_v40, 2  ;;  %v5082_v4 = vadd.f32 %v5081_v48, %v4887_v30  ;;  %v4640_v35 = vadd.f32 %v4639_v52, %v3670_v60  ;;  %v5087_v59 = vrot.slane %v4888_v9, 4  ;;  %4211 = vmatpush1.bf16.msra.mxu1 %v5950_v38  ;;  %v3632_v41 = vpop.f32.mrf.mxu0  ;;  %4171 = vmatprep.subr.bf16.mxu0 %v5885_v61  ;;  %v3673_v53 = vpop.f32.mrf.mxu1  ;;  %v183_v30 = vld [vmem:[#allocation2 + $0x4d0] sm:$0xff] }
 0x1b8   :  { %v4624_v10 = vadd.f32 %v4623_v62, %v4622_v23  ;;  %v5071_v7 = vrot.slane %v5070_v14, 2  ;;  %v4629_v5 = vrot.slane %v4628_v2, 2  ;;  %v5076_v31 = vadd.f32 %v5075_v57, %v4886_v54  ;;  %4212 = vmatprep.subr.bf16.mxu1 %v5887_v13  ;;  %v87_v41 = vld [vmem:[#allocation2 + $0x1d0] sm:$0xff] }
 0x1b9   :  { %v4636_v25 = vadd.f32 %v4635_v8, %v4634_v40  ;;  %v5083_v6 = vrot.slane %v5082_v4, 2  ;;  %v4641_v46 = vrot.slane %v4640_v35, 2  ;;  %v5088_v50 = vadd.f32 %v5087_v59, %v4888_v9  ;;  %v55_v59 = vld [vmem:[#allocation2 + $0xd0] sm:$0xff] }
 0x1ba   :  { %v4625_v43 = vrot.slane %v4624_v10, 1  ;;  %v5072_v58 = vadd.f32 %v5071_v7, %v5070_v14  ;;  %v4630_v22 = vadd.f32 %v4629_v5, %v4628_v2  ;;  %v5077_v47 = vrot.slane %v5076_v31, 2  ;;  %4172 = vmatpush1.bf16.msra.mxu0 %v5884_v63  ;;  %v184_v63 = vld [vmem:[#allocation2 + $0x4d8] sm:$0xff] }
 0x1bb   :  { %v4637_v38 = vrot.slane %v4636_v25, 1  ;;  %v5084_v33 = vadd.f32 %v5083_v6, %v5082_v4  ;;  %v4642_v61 = vadd.f32 %v4641_v46, %v4640_v35  ;;  %v5089_v27 = vrot.slane %v5088_v50, 2  ;;  %4213 = vmatpush1.bf16.msra.mxu1 %v5886_v20  ;;  %4173 = vmatprep.subr.bf16.mxu0 %v5821_v37  ;;  %v88_v7 = vld [vmem:[#allocation2 + $0x1d8] sm:$0xff]  ;;  %v505_v6 = vld [vmem:[#allocation2 + $0xee0] sm:$0xff] }
 0x1bc   :  { %v5073_v13 = vrot.slane %v5072_v58, 1  ;;  %v4631_v44 = vrot.slane %v4630_v22, 1  ;;  %v5078_v34 = vadd.f32 %v5077_v47, %v5076_v31  ;;  %4214 = vmatprep.subr.bf16.mxu1 %v5823_v16  ;;  %v5759_v55 = vcombine.high %v248_v51, %v280_v42  ;;  %v537_v46 = vld [vmem:[#allocation2 + $0xfe0] sm:$0xff]  ;;  %v538_v51 = vld [vmem:[#allocation2 + $0xfe8] sm:$0xff] }
 0x1bd   :  { %v5085_v23 = vrot.slane %v5084_v33, 1  ;;  %v4643_v17 = vrot.slane %v4642_v61, 1  ;;  %v5090_v21 = vadd.f32 %v5089_v27, %v5088_v50  ;;  %v4626_v54 = vadd.f32 %v4625_v43, %v4624_v10  ;;  %v56_v10 = vld [vmem:[#allocation2 + $0xd8] sm:$0xff]  ;;  %v506_v50 = vld [vmem:[#allocation2 + $0xee8] sm:$0xff]  ;;  %v6895_v27 = vld [vmem:[#allocation2 + $0xae0] sm:$0xff] }
 0x1be   :  { %v5074_v60 = vadd.f32 %v5073_v13, %v5072_v58  ;;  %v5079_v12 = vrot.slane %v5078_v34, 1  ;;  %4174 = vmatpush1.bf16.msra.mxu0 %v5820_v29  ;;  %v4638_v20 = vadd.f32 %v4637_v38, %v4636_v25  ;;  %v5693_v40 = vcombine.high %v183_v30, %v215_v45  ;;  %v151_v29 = vld [vmem:[#allocation2 + $0x3d0] sm:$0xff]  ;;  %v6889_v38 = vld [vmem:[#allocation2 + $0xde0] sm:$0xff] }
 0x1bf   :  { %v5086_v37 = vadd.f32 %v5085_v23, %v5084_v33  ;;  %v5091_v16 = vrot.slane %v5090_v21, 1  ;;  %4215 = vmatpush1.bf16.msra.mxu1 %v5822_v39  ;;  %4175 = vmatprep.subr.bf16.mxu0 %v5757_v36  ;;  %v4632_v52 = vadd.f32 %v4631_v44, %v4630_v22  ;;  %v5695_v19 = vcombine.high %v184_v63, %v216_v18  ;;  %v152_v39 = vld [vmem:[#allocation2 + $0x3d8] sm:$0xff]  ;;  %v6887_v22 = vld [vmem:[#allocation2 + $0xce0] sm:$0xff]  ;;  %v6891_v33 = vld [vmem:[#allocation2 + $0xce8] sm:$0xff] }
 0x1c0   :  { %v5334_v48 = vsel %vm5309_vm0, %v4626_v54, %v5074_v60  ;;  %v5080_v9 = vadd.f32 %v5079_v12, %v5078_v34  ;;  %4216 = vmatprep.subr.bf16.mxu1 %v5759_v55  ;;  %v4644_v14 = vadd.f32 %v4643_v17, %v4642_v61  ;;  %v5692_v36 = vcombine.low %v183_v30, %v215_v45  ;;  %v6893_v61 = vld [vmem:[#allocation2 + $0xde8] sm:$0xff]  ;;  %v6897_v13 = vld [vmem:[#allocation2 + $0xbe0] sm:$0xff] }
 0x1c1   :  { %v5399_v1 = vsel %vm5374_vm1, %v5334_v48, 0.0  ;;  %v5336_v62 = vsel %vm5309_vm0, %v4638_v20, %v5086_v37  ;;  %v5092_v32 = vadd.f32 %v5091_v16, %v5090_v21  ;;  %v5694_v3 = vcombine.low %v184_v63, %v216_v18  ;;  %v6899_v44 = vld [vmem:[#allocation2 + $0xae8] sm:$0xff]  ;;  %v6903_v30 = vld [vmem:[#allocation2 + $0x8e0] sm:$0xff] }
 0x1c2   :  { %5463 = vst [vmem:[%s7330_s3 + $0xc0] sm:$0xff] %v5399_v1  ;;  %v5401_v15 = vsel %vm5374_vm1, %v5336_v62, 0.0  ;;  %v5335_v28 = vsel %vm5309_vm0, %v4632_v52, %v5080_v9  ;;  %4176 = vmatpush1.bf16.msra.mxu0 %v5756_v11  ;;  %v5629_v8 = vcombine.high %v119_v26, %v151_v29  ;;  %v5631_v35 = vcombine.high %v120_v24, %v152_v39  ;;  %v6901_v55 = vld [vmem:[#allocation2 + $0xbe8] sm:$0xff]  ;;  %v6905_v45 = vld [vmem:[#allocation2 + $0x9e0] sm:$0xff] }
 0x1c3   :  { %5465 = vst [vmem:[%s7330_s3 + $0xd0] sm:$0xff] %v5401_v15  ;;  %v5400_v2 = vsel %vm5374_vm1, %v5335_v28, 0.0  ;;  %v5337_v57 = vsel %vm5309_vm0, %v4644_v14, %v5092_v32  ;;  %4217 = vmatpush1.bf16.msra.mxu1 %v5758_v49  ;;  %4177 = vmatprep.subr.bf16.mxu0 %v5693_v40  ;;  %v5628_v5 = vcombine.low %v119_v26, %v151_v29  ;;  %v6909_v21 = vld [vmem:[#allocation2 + $0x8e8] sm:$0xff]  ;;  %v6921_v12 = vld [vmem:[#allocation2 + $0x6e0] sm:$0xff] }
 0x1c4   :  { %5464 = vst [vmem:[%s7330_s3 + $0xc8] sm:$0xff] %v5400_v2  ;;  %v5402_v4 = vsel %vm5374_vm1, %v5337_v57, 0.0  ;;  %4218 = vmatprep.subr.bf16.mxu1 %v5695_v19  ;;  %v5630_v31 = vcombine.low %v120_v24, %v152_v39  ;;  %v5565_v53 = vcombine.high %v55_v59, %v87_v41  ;;  %v5567_v25 = vcombine.high %v56_v10, %v88_v7  ;;  %v6911_v11 = vld [vmem:[#allocation2 + $0x9e8] sm:$0xff]  ;;  %v6923_v49 = vld [vmem:[#allocation2 + $0x7e0] sm:$0xff] }
 0x1c5   :  { %5466 = vst [vmem:[%s7330_s3 + $0xd8] sm:$0xff] %v5402_v4  ;;  %v5564_v42 = vcombine.low %v55_v59, %v87_v41  ;;  %v5566_v43 = vcombine.low %v56_v10, %v88_v7  ;;  %v6017_v58 = vcombine.high %v505_v6, %v537_v46  ;;  %v6019_v47 = vcombine.high %v506_v50, %v538_v51 }
 0x1c6   :  { %4178 = vmatpush1.bf16.msra.mxu0 %v5692_v36  ;;  %v6016_v34 = vcombine.low %v505_v6, %v537_v46  ;;  %v6018_v23 = vcombine.low %v506_v50, %v538_v51  ;;  %v5953_v17 = vcombine.high %v6887_v22, %v6889_v38  ;;  %v5952_v63 = vcombine.low %v6887_v22, %v6889_v38 }
 0x1c7   :  { %4219 = vmatpush1.bf16.msra.mxu1 %v5694_v3  ;;  %4179 = vmatprep.subr.bf16.mxu0 %v5629_v8  ;;  %v5954_v18 = vcombine.low %v6891_v33, %v6893_v61  ;;  %v5955_v54 = vcombine.high %v6891_v33, %v6893_v61  ;;  %v5888_v60 = vcombine.low %v6895_v27, %v6897_v13  ;;  %v250_v61 = vld [vmem:[#allocation2 + $0x6e8] sm:$0xff] }
 0x1c8   :  { %4220 = vmatprep.subr.bf16.mxu1 %v5631_v35  ;;  %v5889_v37 = vcombine.high %v6895_v27, %v6897_v13  ;;  %v5890_v16 = vcombine.low %v6899_v44, %v6901_v55  ;;  %v5891_v40 = vcombine.high %v6899_v44, %v6901_v55  ;;  %v5824_v48 = vcombine.low %v6903_v30, %v6905_v45 }
 0x1c9   :  { %v5825_v26 = vcombine.high %v6903_v30, %v6905_v45  ;;  %v5826_v29 = vcombine.low %v6909_v21, %v6911_v11  ;;  %v5827_v32 = vcombine.high %v6909_v21, %v6911_v11  ;;  %v5761_v24 = vcombine.high %v6921_v12, %v6923_v49  ;;  %v121_v45 = vld [vmem:[#allocation2 + $0x2e0] sm:$0xff]  ;;  %v122_v11 = vld [vmem:[#allocation2 + $0x2e8] sm:$0xff] }
 0x1ca   :  { %4180 = vmatpush1.bf16.msra.mxu0 %v5628_v5  ;;  %v5760_v13 = vcombine.low %v6921_v12, %v6923_v49 }
 0x1cb   :  { %4221 = vmatpush1.bf16.msra.mxu1 %v5630_v31  ;;  %4181 = vmatprep.subr.bf16.mxu0 %v5565_v53 }
 0x1cc   :  { %4222 = vmatprep.subr.bf16.mxu1 %v5567_v25 }
 0x1ce   :  { %4182 = vmatpush1.bf16.msra.mxu0 %v5564_v42 }
 0x1cf   :  { %4223 = vmatpush1.bf16.msra.mxu1 %v5566_v43  ;;  %4249 = vmatprep.subr.bf16.mxu0 %v6017_v58 }
 0x1d0   :  { %4290 = vmatprep.subr.bf16.mxu1 %v6019_v47 }
 0x1d1   :  { %v3709_v20 = vpop.f32.mrf.mxu0  ;;  %4200 = vmatmul.mubr.bf16.vlgmr.msra.gmra.mxu0 %v6816_v56 }
 0x1d2   :  { %4441 = vst [vmem:[%s7329_s2 + $0xe0] sm:$0xff] %v3709_v20  ;;  %v4645_v52 = vrot.slane %v3709_v20, 4  ;;  %v4889_v9 = vmul.f32 %v3709_v20, %v3709_v20  ;;  %v3750_v19 = vpop.f32.mrf.mxu1  ;;  %4241 = vmatmul.mubr.bf16.vlgmr.msra.gmra.mxu1 %v6816_v56  ;;  %4250 = vmatpush1.bf16.msra.mxu0 %v6016_v34  ;;  %v282_v34 = vld [vmem:[#allocation2 + $0x7e8] sm:$0xff] }
 0x1d3   :  { %4443 = vst [vmem:[%s7329_s2 + $0xf0] sm:$0xff] %v3750_v19  ;;  %v4657_v1 = vrot.slane %v3750_v19, 4  ;;  %v4891_v62 = vmul.f32 %v3750_v19, %v3750_v19  ;;  %4291 = vmatpush1.bf16.msra.mxu1 %v6018_v23  ;;  %v3711_v14 = vpop.f32.mrf.mxu0  ;;  %4251 = vmatprep.subr.bf16.mxu0 %v5953_v17  ;;  %v5762_v55 = vcombine.low %v250_v61, %v282_v34 }
 0x1d4   :  { %v4646_v39 = vadd.f32 %v4645_v52, %v3709_v20  ;;  %v5093_v15 = vrot.slane %v4889_v9, 4  ;;  %4442 = vst [vmem:[%s7329_s2 + $0xe8] sm:$0xff] %v3711_v14  ;;  %v4651_v28 = vrot.slane %v3711_v14, 4  ;;  %v4890_v36 = vmul.f32 %v3711_v14, %v3711_v14  ;;  %v3752_v2 = vpop.f32.mrf.mxu1  ;;  %4292 = vmatprep.subr.bf16.mxu1 %v5955_v54  ;;  %4281 = vmatprep.mubr.bf16.mxu0 %v6056_v0 }
 0x1d5   :  { %v4658_v57 = vadd.f32 %v4657_v1, %v3750_v19  ;;  %v5105_v3 = vrot.slane %v4891_v62, 4  ;;  %4444 = vst [vmem:[%s7329_s2 + $0xf8] sm:$0xff] %v3752_v2  ;;  %v4663_v8 = vrot.slane %v3752_v2, 4  ;;  %v4892_v4 = vmul.f32 %v3752_v2, %v3752_v2  ;;  %v3713_v35 = vpop.f32.mrf.mxu0  ;;  %4322 = vmatprep.mubr.bf16.mxu1 %v6056_v0 }
 0x1d6   :  { %v4647_v59 = vrot.slane %v4646_v39, 2  ;;  %v5094_v41 = vadd.f32 %v5093_v15, %v4889_v9  ;;  %v4652_v10 = vadd.f32 %v4651_v28, %v3711_v14  ;;  %v5099_v7 = vrot.slane %v4890_v36, 4  ;;  %v3754_v5 = vpop.f32.mrf.mxu1  ;;  %4252 = vmatpush1.bf16.msra.mxu0 %v5952_v63  ;;  %v217_v14 = vld [vmem:[#allocation2 + $0x5e0] sm:$0xff]  ;;  %v218_v28 = vld [vmem:[#allocation2 + $0x5e8] sm:$0xff] }
 0x1d7   :  { %v4659_v31 = vrot.slane %v4658_v57, 2  ;;  %v5106_v53 = vadd.f32 %v5105_v3, %v4891_v62  ;;  %v4664_v25 = vadd.f32 %v4663_v8, %v3752_v2  ;;  %v5111_v6 = vrot.slane %v4892_v4, 4  ;;  %4293 = vmatpush1.bf16.msra.mxu1 %v5954_v18  ;;  %v3714_v46 = vpop.f32.mrf.mxu0  ;;  %4253 = vmatprep.subr.bf16.mxu0 %v5889_v37  ;;  %v185_v62 = vld [vmem:[#allocation2 + $0x4e0] sm:$0xff] }
 0x1d8   :  { %v4648_v50 = vadd.f32 %v4647_v59, %v4646_v39  ;;  %v5095_v51 = vrot.slane %v5094_v41, 2  ;;  %v4653_v42 = vrot.slane %v4652_v10, 2  ;;  %v5100_v43 = vadd.f32 %v5099_v7, %v4890_v36  ;;  %v3755_v58 = vpop.f32.mrf.mxu1  ;;  %4294 = vmatprep.subr.bf16.mxu1 %v5891_v40  ;;  %v89_v46 = vld [vmem:[#allocation2 + $0x1e0] sm:$0xff] }
 0x1d9   :  { %v4660_v22 = vadd.f32 %v4659_v31, %v4658_v57  ;;  %v5107_v47 = vrot.slane %v5106_v53, 2  ;;  %v4665_v38 = vrot.slane %v4664_v25, 2  ;;  %v5112_v33 = vadd.f32 %v5111_v6, %v4892_v4  ;;  %v57_v6 = vld [vmem:[#allocation2 + $0xe0] sm:$0xff] }
 0x1da   :  { %v4649_v23 = vrot.slane %v4648_v50, 1  ;;  %v5096_v17 = vadd.f32 %v5095_v51, %v5094_v41  ;;  %v4654_v63 = vadd.f32 %v4653_v42, %v4652_v10  ;;  %v5101_v54 = vrot.slane %v5100_v43, 2  ;;  %4254 = vmatpush1.bf16.msra.mxu0 %v5888_v60  ;;  %v186_v60 = vld [vmem:[#allocation2 + $0x4e8] sm:$0xff] }
 0x1db   :  { %v4661_v18 = vrot.slane %v4660_v22, 1  ;;  %v5108_v20 = vadd.f32 %v5107_v47, %v5106_v53  ;;  %v4666_v37 = vadd.f32 %v4665_v38, %v4664_v25  ;;  %v5113_v52 = vrot.slane %v5112_v33, 2  ;;  %4295 = vmatpush1.bf16.msra.mxu1 %v5890_v16  ;;  %4255 = vmatprep.subr.bf16.mxu0 %v5825_v26  ;;  %v90_v51 = vld [vmem:[#allocation2 + $0x1e8] sm:$0xff]  ;;  %v507_v47 = vld [vmem:[#allocation2 + $0xef0] sm:$0xff] }
 0x1dc   :  { %v5097_v40 = vrot.slane %v5096_v17, 1  ;;  %v4655_v9 = vrot.slane %v4654_v63, 1  ;;  %v5102_v19 = vadd.f32 %v5101_v54, %v5100_v43  ;;  %4296 = vmatprep.subr.bf16.mxu1 %v5827_v32  ;;  %v5763_v1 = vcombine.high %v250_v61, %v282_v34  ;;  %v539_v38 = vld [vmem:[#allocation2 + $0xff0] sm:$0xff]  ;;  %v540_v61 = vld [vmem:[#allocation2 + $0xff8] sm:$0xff] }
 0x1dd   :  { %v5109_v39 = vrot.slane %v5108_v20, 1  ;;  %v4667_v15 = vrot.slane %v4666_v37, 1  ;;  %v5114_v27 = vadd.f32 %v5113_v52, %v5112_v33  ;;  %v4650_v36 = vadd.f32 %v4649_v23, %v4648_v50  ;;  %v58_v50 = vld [vmem:[#allocation2 + $0xe8] sm:$0xff]  ;;  %v508_v33 = vld [vmem:[#allocation2 + $0xef8] sm:$0xff]  ;;  %v7002_v52 = vld [vmem:[#allocation2 + $0xaf0] sm:$0xff] }
 0x1de   :  { %v5098_v2 = vadd.f32 %v5097_v40, %v5096_v17  ;;  %v5103_v44 = vrot.slane %v5102_v19, 1  ;;  %4256 = vmatpush1.bf16.msra.mxu0 %v5824_v48  ;;  %v4662_v16 = vadd.f32 %v4661_v18, %v4660_v22  ;;  %v5697_v57 = vcombine.high %v185_v62, %v217_v14  ;;  %v153_v48 = vld [vmem:[#allocation2 + $0x3e0] sm:$0xff]  ;;  %v6996_v18 = vld [vmem:[#allocation2 + $0xdf0] sm:$0xff] }
 0x1df   :  { %v5110_v26 = vadd.f32 %v5109_v39, %v5108_v20  ;;  %v5115_v32 = vrot.slane %v5114_v27, 1  ;;  %4297 = vmatpush1.bf16.msra.mxu1 %v5826_v29  ;;  %4257 = vmatprep.subr.bf16.mxu0 %v5761_v24  ;;  %v4656_v8 = vadd.f32 %v4655_v9, %v4654_v63  ;;  %v5699_v30 = vcombine.high %v186_v60, %v218_v28  ;;  %v154_v29 = vld [vmem:[#allocation2 + $0x3e8] sm:$0xff]  ;;  %v6994_v63 = vld [vmem:[#allocation2 + $0xcf0] sm:$0xff]  ;;  %v6998_v20 = vld [vmem:[#allocation2 + $0xcf8] sm:$0xff] }
 0x1e0   :  { %v5338_v3 = vsel %vm5309_vm0, %v4650_v36, %v5098_v2  ;;  %v5104_v4 = vadd.f32 %v5103_v44, %v5102_v19  ;;  %4298 = vmatprep.subr.bf16.mxu1 %v5763_v1  ;;  %v4668_v41 = vadd.f32 %v4667_v15, %v4666_v37  ;;  %v5696_v24 = vcombine.low %v185_v62, %v217_v14  ;;  %v7000_v37 = vld [vmem:[#allocation2 + $0xdf8] sm:$0xff]  ;;  %v7004_v40 = vld [vmem:[#allocation2 + $0xbf0] sm:$0xff] }
 0x1e1   :  { %v5403_v35 = vsel %vm5374_vm1, %v5338_v3, 0.0  ;;  %v5340_v59 = vsel %vm5309_vm0, %v4662_v16, %v5110_v26  ;;  %v5116_v21 = vadd.f32 %v5115_v32, %v5114_v27  ;;  %v5698_v5 = vcombine.low %v186_v60, %v218_v28  ;;  %v7006_v9 = vld [vmem:[#allocation2 + $0xaf8] sm:$0xff]  ;;  %v7010_v62 = vld [vmem:[#allocation2 + $0x8f0] sm:$0xff] }
 0x1e2   :  { %5467 = vst [vmem:[%s7330_s3 + $0xe0] sm:$0xff] %v5403_v35  ;;  %v5405_v12 = vsel %vm5374_vm1, %v5340_v59, 0.0  ;;  %v5339_v49 = vsel %vm5309_vm0, %v4656_v8, %v5104_v4  ;;  %4258 = vmatpush1.bf16.msra.mxu0 %v5760_v13  ;;  %v5633_v31 = vcombine.high %v121_v45, %v153_v48  ;;  %v5635_v25 = vcombine.high %v122_v11, %v154_v29  ;;  %v7008_v1 = vld [vmem:[#allocation2 + $0xbf8] sm:$0xff]  ;;  %v7012_v14 = vld [vmem:[#allocation2 + $0x9f0] sm:$0xff] }
 0x1e3   :  { %5469 = vst [vmem:[%s7330_s3 + $0xf0] sm:$0xff] %v5405_v12  ;;  %v5404_v10 = vsel %vm5374_vm1, %v5339_v49, 0.0  ;;  %v5341_v7 = vsel %vm5309_vm0, %v4668_v41, %v5116_v21  ;;  %4299 = vmatpush1.bf16.msra.mxu1 %v5762_v55  ;;  %4259 = vmatprep.subr.bf16.mxu0 %v5697_v57  ;;  %v5632_v42 = vcombine.low %v121_v45, %v153_v48  ;;  %v7016_v27 = vld [vmem:[#allocation2 + $0x8f8] sm:$0xff]  ;;  %v7028_v44 = vld [vmem:[#allocation2 + $0x6f0] sm:$0xff] }
 0x1e4   :  { %5468 = vst [vmem:[%s7330_s3 + $0xe8] sm:$0xff] %v5404_v10  ;;  %v5406_v53 = vsel %vm5374_vm1, %v5341_v7, 0.0  ;;  %4300 = vmatprep.subr.bf16.mxu1 %v5699_v30  ;;  %v5634_v43 = vcombine.low %v122_v11, %v154_v29  ;;  %v5569_v58 = vcombine.high %v57_v6, %v89_v46  ;;  %v5571_v22 = vcombine.high %v58_v50, %v90_v51  ;;  %v7018_v13 = vld [vmem:[#allocation2 + $0x9f8] sm:$0xff]  ;;  %v7030_v55 = vld [vmem:[#allocation2 + $0x7f0] sm:$0xff] }
 0x1e5   :  { %5470 = vst [vmem:[%s7330_s3 + $0xf8] sm:$0xff] %v5406_v53  ;;  %v5568_v34 = vcombine.low %v57_v6, %v89_v46  ;;  %v5570_v23 = vcombine.low %v58_v50, %v90_v51  ;;  %v6021_v17 = vcombine.high %v507_v47, %v539_v38  ;;  %v6023_v54 = vcombine.high %v508_v33, %v540_v61 }
 0x1e6   :  { %4260 = vmatpush1.bf16.msra.mxu0 %v5696_v24  ;;  %v6020_v19 = vcombine.low %v507_v47, %v539_v38  ;;  %v6022_v39 = vcombine.low %v508_v33, %v540_v61  ;;  %v5957_v15 = vcombine.high %v6994_v63, %v6996_v18  ;;  %v5956_v60 = vcombine.low %v6994_v63, %v6996_v18 }
 0x1e7   :  { %4301 = vmatpush1.bf16.msra.mxu1 %v5698_v5  ;;  %4261 = vmatprep.subr.bf16.mxu0 %v5633_v31  ;;  %v5958_v28 = vcombine.low %v6998_v20, %v7000_v37  ;;  %v5959_v36 = vcombine.high %v6998_v20, %v7000_v37  ;;  %v5892_v2 = vcombine.low %v7002_v52, %v7004_v40  ;;  %v252_v20 = vld [vmem:[#allocation2 + $0x6f8] sm:$0xff] }
 0x1e8   :  { %4302 = vmatprep.subr.bf16.mxu1 %v5635_v25  ;;  %v5893_v26 = vcombine.high %v7002_v52, %v7004_v40  ;;  %v5894_v32 = vcombine.low %v7006_v9, %v7008_v1  ;;  %v5895_v57 = vcombine.high %v7006_v9, %v7008_v1  ;;  %v5828_v3 = vcombine.low %v7010_v62, %v7012_v14  ;;  %v284_v37 = vld [vmem:[#allocation2 + $0x7f8] sm:$0xff] }
 0x1e9   :  { %v5829_v45 = vcombine.high %v7010_v62, %v7012_v14  ;;  %v5830_v48 = vcombine.low %v7016_v27, %v7018_v13  ;;  %v5831_v21 = vcombine.high %v7016_v27, %v7018_v13  ;;  %v5765_v11 = vcombine.high %v7028_v44, %v7030_v55  ;;  %v123_v14 = vld [vmem:[#allocation2 + $0x2f0] sm:$0xff]  ;;  %v124_v13 = vld [vmem:[#allocation2 + $0x2f8] sm:$0xff] }
 0x1ea   :  { %4262 = vmatpush1.bf16.msra.mxu0 %v5632_v42  ;;  %v5764_v40 = vcombine.low %v7028_v44, %v7030_v55  ;;  %v5766_v1 = vcombine.low %v252_v20, %v284_v37 }
 0x1eb   :  { %4303 = vmatpush1.bf16.msra.mxu1 %v5634_v43  ;;  %4263 = vmatprep.subr.bf16.mxu0 %v5569_v58 }
 0x1ec   :  { %4304 = vmatprep.subr.bf16.mxu1 %v5571_v22 }
 0x1ee   :  { %4264 = vmatpush1.bf16.msra.mxu0 %v5568_v34 }
 0x1ef   :  { %4305 = vmatpush1.bf16.msra.mxu1 %v5570_v23  ;;  %4331 = vmatprep.subr.bf16.mxu0 %v6021_v17 }
 0x1f0   :  { %4372 = vmatprep.subr.bf16.mxu1 %v6023_v54 }
 0x1f1   :  { %v3791_v16 = vpop.f32.mrf.mxu0  ;;  %4282 = vmatmul.mubr.bf16.vlgmr.msra.gmra.mxu0 %v6816_v56 }
 0x1f2   :  { %4445 = vst [vmem:[%s7329_s2 + $0x100] sm:$0xff] %v3791_v16  ;;  %v4669_v8 = vrot.slane %v3791_v16, 4  ;;  %v4893_v4 = vmul.f32 %v3791_v16, %v3791_v16  ;;  %v3832_v30 = vpop.f32.mrf.mxu1  ;;  %4323 = vmatmul.mubr.bf16.vlgmr.msra.gmra.mxu1 %v6816_v56  ;;  %4332 = vmatpush1.bf16.msra.mxu0 %v6020_v19 }
 0x1f3   :  { %4447 = vst [vmem:[%s7329_s2 + $0x110] sm:$0xff] %v3832_v30  ;;  %v4681_v35 = vrot.slane %v3832_v30, 4  ;;  %v4895_v59 = vmul.f32 %v3832_v30, %v3832_v30  ;;  %4373 = vmatpush1.bf16.msra.mxu1 %v6022_v39  ;;  %v3793_v41 = vpop.f32.mrf.mxu0  ;;  %4333 = vmatprep.subr.bf16.mxu0 %v5957_v15 }
 0x1f4   :  { %v4670_v29 = vadd.f32 %v4669_v8, %v3791_v16  ;;  %v5117_v12 = vrot.slane %v4893_v4, 4  ;;  %4446 = vst [vmem:[%s7329_s2 + $0x108] sm:$0xff] %v3793_v41  ;;  %v4675_v49 = vrot.slane %v3793_v41, 4  ;;  %v4894_v24 = vmul.f32 %v3793_v41, %v3793_v41  ;;  %v3834_v10 = vpop.f32.mrf.mxu1  ;;  %4374 = vmatprep.subr.bf16.mxu1 %v5959_v36  ;;  %4363 = vmatprep.mubr.bf16.mxu0 %v6056_v0 }
 0x1f5   :  { %v4682_v7 = vadd.f32 %v4681_v35, %v3832_v30  ;;  %v5129_v5 = vrot.slane %v4895_v59, 4  ;;  %4448 = vst [vmem:[%s7329_s2 + $0x118] sm:$0xff] %v3834_v10  ;;  %v4687_v31 = vrot.slane %v3834_v10, 4  ;;  %v4896_v53 = vmul.f32 %v3834_v10, %v3834_v10  ;;  %v3795_v25 = vpop.f32.mrf.mxu0  ;;  %4404 = vmatprep.mubr.bf16.mxu1 %v6056_v0  ;;  %v187_v35 = vld [vmem:[#allocation2 + $0x4f0] sm:$0xff] }
 0x1f6   :  { %v4671_v6 = vrot.slane %v4670_v29, 2  ;;  %v5118_v46 = vadd.f32 %v5117_v12, %v4893_v4  ;;  %v4676_v50 = vadd.f32 %v4675_v49, %v3793_v41  ;;  %v5123_v51 = vrot.slane %v4894_v24, 4  ;;  %v3836_v42 = vpop.f32.mrf.mxu1  ;;  %4334 = vmatpush1.bf16.msra.mxu0 %v5956_v60  ;;  %v220_v12 = vld [vmem:[#allocation2 + $0x5f8] sm:$0xff] }
 0x1f7   :  { %v4683_v43 = vrot.slane %v4682_v7, 2  ;;  %v5130_v58 = vadd.f32 %v5129_v5, %v4895_v59  ;;  %v4688_v22 = vadd.f32 %v4687_v31, %v3834_v10  ;;  %v5135_v47 = vrot.slane %v4896_v53, 4  ;;  %4375 = vmatpush1.bf16.msra.mxu1 %v5958_v28  ;;  %v3796_v38 = vpop.f32.mrf.mxu0  ;;  %4335 = vmatprep.subr.bf16.mxu0 %v5893_v26  ;;  %v219_v59 = vld [vmem:[#allocation2 + $0x5f0] sm:$0xff] }
 0x1f8   :  { %v4672_v33 = vadd.f32 %v4671_v6, %v4670_v29  ;;  %v5119_v61 = vrot.slane %v5118_v46, 2  ;;  %v4677_v34 = vrot.slane %v4676_v50, 2  ;;  %v5124_v23 = vadd.f32 %v5123_v51, %v4894_v24  ;;  %v3837_v17 = vpop.f32.mrf.mxu1  ;;  %4376 = vmatprep.subr.bf16.mxu1 %v5895_v57  ;;  %v60_v38 = vld [vmem:[#allocation2 + $0xf8] sm:$0xff] }
 0x1f9   :  { %v4684_v0 = vadd.f32 %v4683_v43, %v4682_v7  ;;  %v5131_v63 = vrot.slane %v5130_v58, 2  ;;  %v4689_v54 = vrot.slane %v4688_v22, 2  ;;  %v5136_v18 = vadd.f32 %v5135_v47, %v4896_v53  ;;  %v91_v47 = vld [vmem:[#allocation2 + $0x1f0] sm:$0xff] }
 0x1fa   :  { %v4673_v19 = vrot.slane %v4672_v33, 1  ;;  %v5120_v39 = vadd.f32 %v5119_v61, %v5118_v46  ;;  %v4678_v15 = vadd.f32 %v4677_v34, %v4676_v50  ;;  %v5125_v60 = vrot.slane %v5124_v23, 2  ;;  %4336 = vmatpush1.bf16.msra.mxu0 %v5892_v2  ;;  %v188_v2 = vld [vmem:[#allocation2 + $0x4f8] sm:$0xff] }
 0x1fb   :  { %v4685_v28 = vrot.slane %v4684_v0, 1  ;;  %v5132_v36 = vadd.f32 %v5131_v63, %v5130_v58  ;;  %v4690_v16 = vadd.f32 %v4689_v54, %v4688_v22  ;;  %v5137_v26 = vrot.slane %v5136_v18, 2  ;;  %4377 = vmatpush1.bf16.msra.mxu1 %v5894_v32  ;;  %4337 = vmatprep.subr.bf16.mxu0 %v5829_v45  ;;  %v59_v22 = vld [vmem:[#allocation2 + $0xf0] sm:$0xff] }
 0x1fc   :  { %v5121_v57 = vrot.slane %v5120_v39, 1  ;;  %v4679_v8 = vrot.slane %v4678_v15, 1  ;;  %v5126_v4 = vadd.f32 %v5125_v60, %v5124_v23  ;;  %4378 = vmatprep.subr.bf16.mxu1 %v5831_v21  ;;  %v5767_v30 = vcombine.high %v252_v20, %v284_v37 }
 0x1fd   :  { %v5133_v41 = vrot.slane %v5132_v36, 1  ;;  %v4691_v29 = vrot.slane %v4690_v16, 1  ;;  %v5138_v52 = vadd.f32 %v5137_v26, %v5136_v18  ;;  %v4674_v49 = vadd.f32 %v4673_v19, %v4672_v33  ;;  %v92_v33 = vld [vmem:[#allocation2 + $0x1f8] sm:$0xff] }
 0x1fe   :  { %v5122_v24 = vadd.f32 %v5121_v57, %v5120_v39  ;;  %v5127_v9 = vrot.slane %v5126_v4, 1  ;;  %4338 = vmatpush1.bf16.msra.mxu0 %v5828_v3  ;;  %v4686_v32 = vadd.f32 %v4685_v28, %v4684_v0  ;;  %v5701_v10 = vcombine.high %v187_v35, %v219_v59  ;;  %v155_v3 = vld [vmem:[#allocation2 + $0x3f0] sm:$0xff] }
 0x1ff   :  { %v5134_v45 = vadd.f32 %v5133_v41, %v5132_v36  ;;  %v5139_v21 = vrot.slane %v5138_v52, 1  ;;  %4379 = vmatpush1.bf16.msra.mxu1 %v5830_v48  ;;  %4339 = vmatprep.subr.bf16.mxu0 %v5765_v11  ;;  %v4680_v5 = vadd.f32 %v4679_v8, %v4678_v15  ;;  %v5703_v62 = vcombine.high %v188_v2, %v220_v12  ;;  %v156_v48 = vld [vmem:[#allocation2 + $0x3f8] sm:$0xff] }
 0x200   :  { %v5342_v7 = vsel %vm5309_vm0, %v4674_v49, %v5122_v24  ;;  %v5128_v31 = vadd.f32 %v5127_v9, %v5126_v4  ;;  %4380 = vmatprep.subr.bf16.mxu1 %v5767_v30  ;;  %v4692_v6 = vadd.f32 %v4691_v29, %v4690_v16  ;;  %v5700_v11 = vcombine.low %v187_v35, %v219_v59 }
 0x201   :  { %v5407_v53 = vsel %vm5374_vm1, %v5342_v7, 0.0  ;;  %v5344_v25 = vsel %vm5309_vm0, %v4686_v32, %v5134_v45  ;;  %v5140_v27 = vadd.f32 %v5139_v21, %v5138_v52  ;;  %v5702_v51 = vcombine.low %v188_v2, %v220_v12 }
 0x202   :  { %5471 = vst [vmem:[%s7330_s3 + $0x100] sm:$0xff] %v5407_v53  ;;  %v5409_v44 = vsel %vm5374_vm1, %v5344_v25, 0.0  ;;  %v5343_v55 = vsel %vm5309_vm0, %v4680_v5, %v5128_v31  ;;  %4340 = vmatpush1.bf16.msra.mxu0 %v5764_v40  ;;  %v5637_v42 = vcombine.high %v123_v14, %v155_v3  ;;  %v5639_v58 = vcombine.high %v124_v13, %v156_v48 }
 0x203   :  { %5473 = vst [vmem:[%s7330_s3 + $0x110] sm:$0xff] %v5409_v44  ;;  %v5408_v46 = vsel %vm5374_vm1, %v5343_v55, 0.0  ;;  %v5345_v50 = vsel %vm5309_vm0, %v4692_v6, %v5140_v27  ;;  %4381 = vmatpush1.bf16.msra.mxu1 %v5766_v1  ;;  %4341 = vmatprep.subr.bf16.mxu0 %v5701_v10  ;;  %v5636_v61 = vcombine.low %v123_v14, %v155_v3 }
 0x204   :  { %5472 = vst [vmem:[%s7330_s3 + $0x108] sm:$0xff] %v5408_v46  ;;  %v5410_v43 = vsel %vm5374_vm1, %v5345_v50, 0.0  ;;  %4382 = vmatprep.subr.bf16.mxu1 %v5703_v62  ;;  %v5638_v34 = vcombine.low %v124_v13, %v156_v48  ;;  %v5573_v23 = vcombine.high %v59_v22, %v91_v47  ;;  %v5575_v17 = vcombine.high %v60_v38, %v92_v33 }
 0x205   :  { %5474 = vst [vmem:[%s7330_s3 + $0x118] sm:$0xff] %v5410_v43  ;;  %v5572_v0 = vcombine.low %v59_v22, %v91_v47  ;;  %v5574_v63 = vcombine.low %v60_v38, %v92_v33 }
 0x206   :  { %4342 = vmatpush1.bf16.msra.mxu0 %v5700_v11 }
 0x207   :  { %4383 = vmatpush1.bf16.msra.mxu1 %v5702_v51  ;;  %4343 = vmatprep.subr.bf16.mxu0 %v5637_v42 }
 0x208   :  { %4384 = vmatprep.subr.bf16.mxu1 %v5639_v58 }
 0x20a   :  { %4344 = vmatpush1.bf16.msra.mxu0 %v5636_v61 }
 0x20b   :  { %4385 = vmatpush1.bf16.msra.mxu1 %v5638_v34  ;;  %4345 = vmatprep.subr.bf16.mxu0 %v5573_v23 }
 0x20c   :  { %4386 = vmatprep.subr.bf16.mxu1 %v5575_v17 }
 0x20e   :  { %4346 = vmatpush1.bf16.msra.mxu0 %v5572_v0 }
 0x20f   :  { %4387 = vmatpush1.bf16.msra.mxu1 %v5574_v63 }
 0x211   :  { %v3873_v54 = vpop.f32.mrf.mxu0  ;;  %4364 = vmatmul.mubr.bf16.vlgmr.msra.gmra.mxu0 %v6816_v56 }
 0x212   :  { %4449 = vst [vmem:[%s7329_s2 + $0x120] sm:$0xff] %v3873_v54  ;;  %v4693_v18 = vrot.slane %v3873_v54, 4  ;;  %v4897_v20 = vmul.f32 %v3873_v54, %v3873_v54  ;;  %v3914_v37 = vpop.f32.mrf.mxu1  ;;  %4405 = vmatmul.mubr.bf16.vlgmr.msra.gmra.mxu1 %v6816_v56 }
 0x213   :  { %4451 = vst [vmem:[%s7329_s2 + $0x130] sm:$0xff] %v3914_v37  ;;  %v4705_v19 = vrot.slane %v3914_v37, 4  ;;  %v4899_v39 = vmul.f32 %v3914_v37, %v3914_v37  ;;  %v3875_v15 = vpop.f32.mrf.mxu0 }
 0x214   :  { %v4694_v60 = vadd.f32 %v4693_v18, %v3873_v54  ;;  %v5141_v28 = vrot.slane %v4897_v20, 4  ;;  %4450 = vst [vmem:[%s7329_s2 + $0x128] sm:$0xff] %v3875_v15  ;;  %v4699_v36 = vrot.slane %v3875_v15, 4  ;;  %v4898_v16 = vmul.f32 %v3875_v15, %v3875_v15  ;;  %v3916_v26 = vpop.f32.mrf.mxu1 }
 0x215   :  { %v4706_v57 = vadd.f32 %v4705_v19, %v3914_v37  ;;  %v5153_v8 = vrot.slane %v4899_v39, 4  ;;  %4452 = vst [vmem:[%s7329_s2 + $0x138] sm:$0xff] %v3916_v26  ;;  %v4711_v56 = vrot.slane %v3916_v26, 4  ;;  %v4900_v4 = vmul.f32 %v3916_v26, %v3916_v26  ;;  %v3877_v30 = vpop.f32.mrf.mxu0 }
 0x216   :  { %v4695_v35 = vrot.slane %v4694_v60, 2  ;;  %v5142_v59 = vadd.f32 %v5141_v28, %v4897_v20  ;;  %v4700_v41 = vadd.f32 %v4699_v36, %v3875_v15  ;;  %v5147_v29 = vrot.slane %v4898_v16, 4  ;;  %v3918_v52 = vpop.f32.mrf.mxu1 }
 0x217   :  { %v4707_v40 = vrot.slane %v4706_v57, 2  ;;  %v5154_v2 = vadd.f32 %v5153_v8, %v4899_v39  ;;  %v4712_v12 = vadd.f32 %v4711_v56, %v3916_v26  ;;  %v5159_v49 = vrot.slane %v4900_v4, 4  ;;  %v3878_v24 = vpop.f32.mrf.mxu0 }
 0x218   :  { %v4696_v9 = vadd.f32 %v4695_v35, %v4694_v60  ;;  %v5143_v1 = vrot.slane %v5142_v59, 2  ;;  %v4701_v32 = vrot.slane %v4700_v41, 2  ;;  %v5148_v45 = vadd.f32 %v5147_v29, %v4898_v16  ;;  %v3919_v21 = vpop.f32.mrf.mxu1 }
 0x219   :  { %v4708_v10 = vadd.f32 %v4707_v40, %v4706_v57  ;;  %v5155_v7 = vrot.slane %v5154_v2, 2  ;;  %v4713_v5 = vrot.slane %v4712_v12, 2  ;;  %v5160_v31 = vadd.f32 %v5159_v49, %v4900_v4 }
 0x21a   :  { %v4697_v62 = vrot.slane %v4696_v9, 1  ;;  %v5144_v14 = vadd.f32 %v5143_v1, %v5142_v59  ;;  %v4702_v3 = vadd.f32 %v4701_v32, %v4700_v41  ;;  %v5149_v53 = vrot.slane %v5148_v45, 2 }
 0x21b   :  { %v4709_v25 = vrot.slane %v4708_v10, 1  ;;  %v5156_v6 = vadd.f32 %v5155_v7, %v5154_v2  ;;  %v4714_v27 = vadd.f32 %v4713_v5, %v4712_v12  ;;  %v5161_v13 = vrot.slane %v5160_v31, 2 }
 0x21c   :  { %v5145_v48 = vrot.slane %v5144_v14, 1  ;;  %v4703_v44 = vrot.slane %v4702_v3, 1  ;;  %v5150_v55 = vadd.f32 %v5149_v53, %v5148_v45  ;;  %v4698_v51 = vadd.f32 %v4697_v62, %v4696_v9 }
 0x21d   :  { %v5157_v11 = vrot.slane %v5156_v6, 1  ;;  %v4715_v46 = vrot.slane %v4714_v27, 1  ;;  %v5162_v50 = vadd.f32 %v5161_v13, %v5160_v31  ;;  %v4710_v58 = vadd.f32 %v4709_v25, %v4708_v10 }
 0x21e   :  { %v5146_v42 = vadd.f32 %v5145_v48, %v5144_v14  ;;  %v5151_v43 = vrot.slane %v5150_v55, 1  ;;  %v4704_v33 = vadd.f32 %v4703_v44, %v4702_v3 }
 0x21f   :  { %v5158_v22 = vadd.f32 %v5157_v11, %v5156_v6  ;;  %v5163_v47 = vrot.slane %v5162_v50, 1  ;;  %v4716_v17 = vadd.f32 %v4715_v46, %v4714_v27 }
 0x220   :  { %v5346_v38 = vsel %vm5309_vm0, %v4698_v51, %v5146_v42  ;;  %v5152_v61 = vadd.f32 %v5151_v43, %v5150_v55 }
 0x221   :  { %v5411_v34 = vsel %vm5374_vm1, %v5346_v38, 0.0  ;;  %v5348_v23 = vsel %vm5309_vm0, %v4710_v58, %v5158_v22  ;;  %v5164_v0 = vadd.f32 %v5163_v47, %v5162_v50 }
 0x222   :  { %5475 = vst [vmem:[%s7330_s3 + $0x120] sm:$0xff] %v5411_v34  ;;  %v5413_v63 = vsel %vm5374_vm1, %v5348_v23, 0.0  ;;  %v5347_v54 = vsel %vm5309_vm0, %v4704_v33, %v5152_v61 }
 0x223   :  { %5477 = vst [vmem:[%s7330_s3 + $0x130] sm:$0xff] %v5413_v63  ;;  %v5412_v18 = vsel %vm5374_vm1, %v5347_v54, 0.0  ;;  %v5349_v20 = vsel %vm5309_vm0, %v4716_v17, %v5164_v0 }
 0x224   :  { %5476 = vst [vmem:[%s7330_s3 + $0x128] sm:$0xff] %v5412_v18  ;;  %v5414_v37 = vsel %vm5374_vm1, %v5349_v20, 0.0 }
 0x225   :  { %5478 = vst [vmem:[%s7330_s3 + $0x138] sm:$0xff] %v5414_v37 }
 0x231   :  { %v3955_v19 = vpop.f32.mrf.mxu0 }
 0x232   :  { %4453 = vst [vmem:[%s7329_s2 + $0x140] sm:$0xff] %v3955_v19  ;;  %v4717_v39 = vrot.slane %v3955_v19, 4  ;;  %v4901_v15 = vmul.f32 %v3955_v19, %v3955_v19  ;;  %v3996_v60 = vpop.f32.mrf.mxu1 }
 0x233   :  { %4455 = vst [vmem:[%s7329_s2 + $0x150] sm:$0xff] %v3996_v60  ;;  %v4729_v28 = vrot.slane %v3996_v60, 4  ;;  %v4903_v36 = vmul.f32 %v3996_v60, %v3996_v60  ;;  %v3957_v16 = vpop.f32.mrf.mxu0 }
 0x234   :  { %v4718_v26 = vadd.f32 %v4717_v39, %v3955_v19  ;;  %v5165_v57 = vrot.slane %v4901_v15, 4  ;;  %4454 = vst [vmem:[%s7329_s2 + $0x148] sm:$0xff] %v3957_v16  ;;  %v4723_v8 = vrot.slane %v3957_v16, 4  ;;  %v4902_v56 = vmul.f32 %v3957_v16, %v3957_v16  ;;  %v3998_v4 = vpop.f32.mrf.mxu1 }
 0x235   :  { %v4730_v30 = vadd.f32 %v4729_v28, %v3996_v60  ;;  %v5177_v35 = vrot.slane %v4903_v36, 4  ;;  %4456 = vst [vmem:[%s7329_s2 + $0x158] sm:$0xff] %v3998_v4  ;;  %v4735_v59 = vrot.slane %v3998_v4, 4  ;;  %v4904_v41 = vmul.f32 %v3998_v4, %v3998_v4  ;;  %v3959_v29 = vpop.f32.mrf.mxu0 }
 0x236   :  { %v4719_v52 = vrot.slane %v4718_v26, 2  ;;  %v5166_v40 = vadd.f32 %v5165_v57, %v4901_v15  ;;  %v4724_v2 = vadd.f32 %v4723_v8, %v3957_v16  ;;  %v5171_v12 = vrot.slane %v4902_v56, 4  ;;  %v4000_v49 = vpop.f32.mrf.mxu1 }
 0x237   :  { %v4731_v24 = vrot.slane %v4730_v30, 2  ;;  %v5178_v9 = vadd.f32 %v5177_v35, %v4903_v36  ;;  %v4736_v1 = vadd.f32 %v4735_v59, %v3998_v4  ;;  %v5183_v32 = vrot.slane %v4904_v41, 4  ;;  %v3960_v45 = vpop.f32.mrf.mxu0 }
 0x238   :  { %v4720_v21 = vadd.f32 %v4719_v52, %v4718_v26  ;;  %v5167_v10 = vrot.slane %v5166_v40, 2  ;;  %v4725_v7 = vrot.slane %v4724_v2, 2  ;;  %v5172_v5 = vadd.f32 %v5171_v12, %v4902_v56  ;;  %v4001_v31 = vpop.f32.mrf.mxu1 }
 0x239   :  { %v4732_v62 = vadd.f32 %v4731_v24, %v4730_v30  ;;  %v5179_v14 = vrot.slane %v5178_v9, 2  ;;  %v4737_v3 = vrot.slane %v4736_v1, 2  ;;  %v5184_v53 = vadd.f32 %v5183_v32, %v4904_v41 }
 0x23a   :  { %v4721_v25 = vrot.slane %v4720_v21, 1  ;;  %v5168_v6 = vadd.f32 %v5167_v10, %v5166_v40  ;;  %v4726_v27 = vadd.f32 %v4725_v7, %v4724_v2  ;;  %v5173_v13 = vrot.slane %v5172_v5, 2 }
 0x23b   :  { %v4733_v48 = vrot.slane %v4732_v62, 1  ;;  %v5180_v44 = vadd.f32 %v5179_v14, %v5178_v9  ;;  %v4738_v55 = vadd.f32 %v4737_v3, %v4736_v1  ;;  %v5185_v11 = vrot.slane %v5184_v53, 2 }
 0x23c   :  { %v5169_v46 = vrot.slane %v5168_v6, 1  ;;  %v4727_v50 = vrot.slane %v4726_v27, 1  ;;  %v5174_v51 = vadd.f32 %v5173_v13, %v5172_v5  ;;  %v4722_v22 = vadd.f32 %v4721_v25, %v4720_v21 }
 0x23d   :  { %v5181_v42 = vrot.slane %v5180_v44, 1  ;;  %v4739_v43 = vrot.slane %v4738_v55, 1  ;;  %v5186_v58 = vadd.f32 %v5185_v11, %v5184_v53  ;;  %v4734_v33 = vadd.f32 %v4733_v48, %v4732_v62 }
 0x23e   :  { %v5170_v47 = vadd.f32 %v5169_v46, %v5168_v6  ;;  %v5175_v38 = vrot.slane %v5174_v51, 1  ;;  %v4728_v17 = vadd.f32 %v4727_v50, %v4726_v27 }
 0x23f   :  { %v5182_v61 = vadd.f32 %v5181_v42, %v5180_v44  ;;  %v5187_v34 = vrot.slane %v5186_v58, 1  ;;  %v4740_v18 = vadd.f32 %v4739_v43, %v4738_v55 }
 0x240   :  { %v5350_v23 = vsel %vm5309_vm0, %v4722_v22, %v5170_v47  ;;  %v5176_v0 = vadd.f32 %v5175_v38, %v5174_v51 }
 0x241   :  { %v5415_v63 = vsel %vm5374_vm1, %v5350_v23, 0.0  ;;  %v5352_v54 = vsel %vm5309_vm0, %v4734_v33, %v5182_v61  ;;  %v5188_v20 = vadd.f32 %v5187_v34, %v5186_v58 }
 0x242   :  { %5479 = vst [vmem:[%s7330_s3 + $0x140] sm:$0xff] %v5415_v63  ;;  %v5417_v37 = vsel %vm5374_vm1, %v5352_v54, 0.0  ;;  %v5351_v19 = vsel %vm5309_vm0, %v4728_v17, %v5176_v0 }
 0x243   :  { %5481 = vst [vmem:[%s7330_s3 + $0x150] sm:$0xff] %v5417_v37  ;;  %v5416_v39 = vsel %vm5374_vm1, %v5351_v19, 0.0  ;;  %v5353_v15 = vsel %vm5309_vm0, %v4740_v18, %v5188_v20 }
 0x244   :  { %5480 = vst [vmem:[%s7330_s3 + $0x148] sm:$0xff] %v5416_v39  ;;  %v5418_v60 = vsel %vm5374_vm1, %v5353_v15, 0.0 }
 0x245   :  { %5482 = vst [vmem:[%s7330_s3 + $0x158] sm:$0xff] %v5418_v60 }
 0x251   :  { %v4037_v28 = vpop.f32.mrf.mxu0 }
 0x252   :  { %4457 = vst [vmem:[%s7329_s2 + $0x160] sm:$0xff] %v4037_v28  ;;  %v4741_v36 = vrot.slane %v4037_v28, 4  ;;  %v4905_v16 = vmul.f32 %v4037_v28, %v4037_v28  ;;  %v4078_v26 = vpop.f32.mrf.mxu1 }
 0x253   :  { %4459 = vst [vmem:[%s7329_s2 + $0x170] sm:$0xff] %v4078_v26  ;;  %v4753_v57 = vrot.slane %v4078_v26, 4  ;;  %v4907_v8 = vmul.f32 %v4078_v26, %v4078_v26  ;;  %v4039_v56 = vpop.f32.mrf.mxu0 }
 0x254   :  { %v4742_v4 = vadd.f32 %v4741_v36, %v4037_v28  ;;  %v5189_v30 = vrot.slane %v4905_v16, 4  ;;  %4458 = vst [vmem:[%s7329_s2 + $0x168] sm:$0xff] %v4039_v56  ;;  %v4747_v35 = vrot.slane %v4039_v56, 4  ;;  %v4906_v59 = vmul.f32 %v4039_v56, %v4039_v56  ;;  %v4080_v41 = vpop.f32.mrf.mxu1 }
 0x255   :  { %v4754_v29 = vadd.f32 %v4753_v57, %v4078_v26  ;;  %v5201_v52 = vrot.slane %v4907_v8, 4  ;;  %4460 = vst [vmem:[%s7329_s2 + $0x178] sm:$0xff] %v4080_v41  ;;  %v4759_v40 = vrot.slane %v4080_v41, 4  ;;  %v4908_v2 = vmul.f32 %v4080_v41, %v4080_v41  ;;  %v4041_v12 = vpop.f32.mrf.mxu0 }
 0x256   :  { %v4743_v49 = vrot.slane %v4742_v4, 2  ;;  %v5190_v24 = vadd.f32 %v5189_v30, %v4905_v16  ;;  %v4748_v9 = vadd.f32 %v4747_v35, %v4039_v56  ;;  %v5195_v1 = vrot.slane %v4906_v59, 4  ;;  %v4082_v32 = vpop.f32.mrf.mxu1 }
 0x257   :  { %v4755_v45 = vrot.slane %v4754_v29, 2  ;;  %v5202_v21 = vadd.f32 %v5201_v52, %v4907_v8  ;;  %v4760_v10 = vadd.f32 %v4759_v40, %v4080_v41  ;;  %v5207_v7 = vrot.slane %v4908_v2, 4  ;;  %v4042_v5 = vpop.f32.mrf.mxu0 }
 0x258   :  { %v4744_v31 = vadd.f32 %v4743_v49, %v4742_v4  ;;  %v5191_v62 = vrot.slane %v5190_v24, 2  ;;  %v4749_v14 = vrot.slane %v4748_v9, 2  ;;  %v5196_v3 = vadd.f32 %v5195_v1, %v4906_v59  ;;  %v4083_v53 = vpop.f32.mrf.mxu1 }
 0x259   :  { %v4756_v25 = vadd.f32 %v4755_v45, %v4754_v29  ;;  %v5203_v6 = vrot.slane %v5202_v21, 2  ;;  %v4761_v27 = vrot.slane %v4760_v10, 2  ;;  %v5208_v13 = vadd.f32 %v5207_v7, %v4908_v2 }
 0x25a   :  { %v4745_v48 = vrot.slane %v4744_v31, 1  ;;  %v5192_v44 = vadd.f32 %v5191_v62, %v5190_v24  ;;  %v4750_v55 = vadd.f32 %v4749_v14, %v4748_v9  ;;  %v5197_v11 = vrot.slane %v5196_v3, 2 }
 0x25b   :  { %v4757_v46 = vrot.slane %v4756_v25, 1  ;;  %v5204_v50 = vadd.f32 %v5203_v6, %v5202_v21  ;;  %v4762_v51 = vadd.f32 %v4761_v27, %v4760_v10  ;;  %v5209_v42 = vrot.slane %v5208_v13, 2 }
 0x25c   :  { %v5193_v43 = vrot.slane %v5192_v44, 1  ;;  %v4751_v58 = vrot.slane %v4750_v55, 1  ;;  %v5198_v22 = vadd.f32 %v5197_v11, %v5196_v3  ;;  %v4746_v61 = vadd.f32 %v4745_v48, %v4744_v31 }
 0x25d   :  { %v5205_v47 = vrot.slane %v5204_v50, 1  ;;  %v4763_v38 = vrot.slane %v4762_v51, 1  ;;  %v5210_v33 = vadd.f32 %v5209_v42, %v5208_v13  ;;  %v4758_v17 = vadd.f32 %v4757_v46, %v4756_v25 }
 0x25e   :  { %v5194_v34 = vadd.f32 %v5193_v43, %v5192_v44  ;;  %v5199_v23 = vrot.slane %v5198_v22, 1  ;;  %v4752_v18 = vadd.f32 %v4751_v58, %v4750_v55 }
 0x25f   :  { %v5206_v0 = vadd.f32 %v5205_v47, %v5204_v50  ;;  %v5211_v63 = vrot.slane %v5210_v33, 1  ;;  %v4764_v39 = vadd.f32 %v4763_v38, %v4762_v51 }
 0x260   :  { %v5354_v54 = vsel %vm5309_vm0, %v4746_v61, %v5194_v34  ;;  %v5200_v20 = vadd.f32 %v5199_v23, %v5198_v22 }
 0x261   :  { %v5419_v37 = vsel %vm5374_vm1, %v5354_v54, 0.0  ;;  %v5356_v19 = vsel %vm5309_vm0, %v4758_v17, %v5206_v0  ;;  %v5212_v15 = vadd.f32 %v5211_v63, %v5210_v33 }
 0x262   :  { %5483 = vst [vmem:[%s7330_s3 + $0x160] sm:$0xff] %v5419_v37  ;;  %v5421_v60 = vsel %vm5374_vm1, %v5356_v19, 0.0  ;;  %v5355_v28 = vsel %vm5309_vm0, %v4752_v18, %v5200_v20 }
 0x263   :  { %5485 = vst [vmem:[%s7330_s3 + $0x170] sm:$0xff] %v5421_v60  ;;  %v5420_v36 = vsel %vm5374_vm1, %v5355_v28, 0.0  ;;  %v5357_v16 = vsel %vm5309_vm0, %v4764_v39, %v5212_v15 }
 0x264   :  { %5484 = vst [vmem:[%s7330_s3 + $0x168] sm:$0xff] %v5420_v36  ;;  %v5422_v26 = vsel %vm5374_vm1, %v5357_v16, 0.0 }
 0x265   :  { %5486 = vst [vmem:[%s7330_s3 + $0x178] sm:$0xff] %v5422_v26 }
 0x271   :  { %v4119_v57 = vpop.f32.mrf.mxu0 }
 0x272   :  { %4461 = vst [vmem:[%s7329_s2 + $0x180] sm:$0xff] %v4119_v57  ;;  %v4765_v8 = vrot.slane %v4119_v57, 4  ;;  %v4909_v56 = vmul.f32 %v4119_v57, %v4119_v57  ;;  %v4160_v4 = vpop.f32.mrf.mxu1 }
 0x273   :  { %4463 = vst [vmem:[%s7329_s2 + $0x190] sm:$0xff] %v4160_v4  ;;  %v4777_v30 = vrot.slane %v4160_v4, 4  ;;  %v4911_v35 = vmul.f32 %v4160_v4, %v4160_v4  ;;  %v4121_v59 = vpop.f32.mrf.mxu0 }
 0x274   :  { %v4766_v41 = vadd.f32 %v4765_v8, %v4119_v57  ;;  %v5213_v29 = vrot.slane %v4909_v56, 4  ;;  %4462 = vst [vmem:[%s7329_s2 + $0x188] sm:$0xff] %v4121_v59  ;;  %v4771_v52 = vrot.slane %v4121_v59, 4  ;;  %v4910_v40 = vmul.f32 %v4121_v59, %v4121_v59  ;;  %v4162_v2 = vpop.f32.mrf.mxu1 }
 0x275   :  { %v4778_v12 = vadd.f32 %v4777_v30, %v4160_v4  ;;  %v5225_v49 = vrot.slane %v4911_v35, 4  ;;  %4464 = vst [vmem:[%s7329_s2 + $0x198] sm:$0xff] %v4162_v2  ;;  %v4783_v24 = vrot.slane %v4162_v2, 4  ;;  %v4912_v9 = vmul.f32 %v4162_v2, %v4162_v2  ;;  %v4123_v1 = vpop.f32.mrf.mxu0 }
 0x276   :  { %v4767_v32 = vrot.slane %v4766_v41, 2  ;;  %v5214_v45 = vadd.f32 %v5213_v29, %v4909_v56  ;;  %v4772_v21 = vadd.f32 %v4771_v52, %v4121_v59  ;;  %v5219_v10 = vrot.slane %v4910_v40, 4  ;;  %v4164_v7 = vpop.f32.mrf.mxu1 }
 0x277   :  { %v4779_v5 = vrot.slane %v4778_v12, 2  ;;  %v5226_v31 = vadd.f32 %v5225_v49, %v4911_v35  ;;  %v4784_v62 = vadd.f32 %v4783_v24, %v4162_v2  ;;  %v5231_v14 = vrot.slane %v4912_v9, 4  ;;  %v4124_v3 = vpop.f32.mrf.mxu0 }
 0x278   :  { %v4768_v53 = vadd.f32 %v4767_v32, %v4766_v41  ;;  %v5215_v25 = vrot.slane %v5214_v45, 2  ;;  %v4773_v6 = vrot.slane %v4772_v21, 2  ;;  %v5220_v27 = vadd.f32 %v5219_v10, %v4910_v40  ;;  %v4165_v13 = vpop.f32.mrf.mxu1 }
 0x279   :  { %v4780_v48 = vadd.f32 %v4779_v5, %v4778_v12  ;;  %v5227_v44 = vrot.slane %v5226_v31, 2  ;;  %v4785_v55 = vrot.slane %v4784_v62, 2  ;;  %v5232_v11 = vadd.f32 %v5231_v14, %v4912_v9 }
 0x27a   :  { %v4769_v46 = vrot.slane %v4768_v53, 1  ;;  %v5216_v50 = vadd.f32 %v5215_v25, %v5214_v45  ;;  %v4774_v51 = vadd.f32 %v4773_v6, %v4772_v21  ;;  %v5221_v42 = vrot.slane %v5220_v27, 2 }
 0x27b   :  { %v4781_v43 = vrot.slane %v4780_v48, 1  ;;  %v5228_v58 = vadd.f32 %v5227_v44, %v5226_v31  ;;  %v4786_v22 = vadd.f32 %v4785_v55, %v4784_v62  ;;  %v5233_v47 = vrot.slane %v5232_v11, 2 }
 0x27c   :  { %v5217_v38 = vrot.slane %v5216_v50, 1  ;;  %v4775_v33 = vrot.slane %v4774_v51, 1  ;;  %v5222_v61 = vadd.f32 %v5221_v42, %v5220_v27  ;;  %v4770_v0 = vadd.f32 %v4769_v46, %v4768_v53 }
 0x27d   :  { %v5229_v34 = vrot.slane %v5228_v58, 1  ;;  %v4787_v23 = vrot.slane %v4786_v22, 1  ;;  %v5234_v17 = vadd.f32 %v5233_v47, %v5232_v11  ;;  %v4782_v18 = vadd.f32 %v4781_v43, %v4780_v48 }
 0x27e   :  { %v5218_v63 = vadd.f32 %v5217_v38, %v5216_v50  ;;  %v5223_v54 = vrot.slane %v5222_v61, 1  ;;  %v4776_v39 = vadd.f32 %v4775_v33, %v4774_v51 }
 0x27f   :  { %v5230_v20 = vadd.f32 %v5229_v34, %v5228_v58  ;;  %v5235_v37 = vrot.slane %v5234_v17, 1  ;;  %v4788_v36 = vadd.f32 %v4787_v23, %v4786_v22 }
 0x280   :  { %v5358_v19 = vsel %vm5309_vm0, %v4770_v0, %v5218_v63  ;;  %v5224_v15 = vadd.f32 %v5223_v54, %v5222_v61 }
 0x281   :  { %v5423_v60 = vsel %vm5374_vm1, %v5358_v19, 0.0  ;;  %v5360_v28 = vsel %vm5309_vm0, %v4782_v18, %v5230_v20  ;;  %v5236_v16 = vadd.f32 %v5235_v37, %v5234_v17 }
 0x282   :  { %5487 = vst [vmem:[%s7330_s3 + $0x180] sm:$0xff] %v5423_v60  ;;  %v5425_v26 = vsel %vm5374_vm1, %v5360_v28, 0.0  ;;  %v5359_v57 = vsel %vm5309_vm0, %v4776_v39, %v5224_v15 }
 0x283   :  { %5489 = vst [vmem:[%s7330_s3 + $0x190] sm:$0xff] %v5425_v26  ;;  %v5424_v8 = vsel %vm5374_vm1, %v5359_v57, 0.0  ;;  %v5361_v56 = vsel %vm5309_vm0, %v4788_v36, %v5236_v16 }
 0x284   :  { %5488 = vst [vmem:[%s7330_s3 + $0x188] sm:$0xff] %v5424_v8  ;;  %v5426_v4 = vsel %vm5374_vm1, %v5361_v56, 0.0 }
 0x285   :  { %5490 = vst [vmem:[%s7330_s3 + $0x198] sm:$0xff] %v5426_v4 }
 0x291   :  { %v4201_v30 = vpop.f32.mrf.mxu0 }
 0x292   :  { %4465 = vst [vmem:[%s7329_s2 + $0x1a0] sm:$0xff] %v4201_v30  ;;  %v4789_v35 = vrot.slane %v4201_v30, 4  ;;  %v4913_v59 = vmul.f32 %v4201_v30, %v4201_v30  ;;  %v4242_v41 = vpop.f32.mrf.mxu1 }
 0x293   :  { %4467 = vst [vmem:[%s7329_s2 + $0x1b0] sm:$0xff] %v4242_v41  ;;  %v4801_v29 = vrot.slane %v4242_v41, 4  ;;  %v4915_v52 = vmul.f32 %v4242_v41, %v4242_v41  ;;  %v4203_v40 = vpop.f32.mrf.mxu0 }
 0x294   :  { %v4790_v2 = vadd.f32 %v4789_v35, %v4201_v30  ;;  %v5237_v12 = vrot.slane %v4913_v59, 4  ;;  %4466 = vst [vmem:[%s7329_s2 + $0x1a8] sm:$0xff] %v4203_v40  ;;  %v4795_v49 = vrot.slane %v4203_v40, 4  ;;  %v4914_v24 = vmul.f32 %v4203_v40, %v4203_v40  ;;  %v4244_v9 = vpop.f32.mrf.mxu1 }
 0x295   :  { %v4802_v1 = vadd.f32 %v4801_v29, %v4242_v41  ;;  %v5249_v32 = vrot.slane %v4915_v52, 4  ;;  %4468 = vst [vmem:[%s7329_s2 + $0x1b8] sm:$0xff] %v4244_v9  ;;  %v4807_v45 = vrot.slane %v4244_v9, 4  ;;  %v4916_v21 = vmul.f32 %v4244_v9, %v4244_v9  ;;  %v4205_v10 = vpop.f32.mrf.mxu0 }
 0x296   :  { %v4791_v7 = vrot.slane %v4790_v2, 2  ;;  %v5238_v5 = vadd.f32 %v5237_v12, %v4913_v59  ;;  %v4796_v31 = vadd.f32 %v4795_v49, %v4203_v40  ;;  %v5243_v62 = vrot.slane %v4914_v24, 4  ;;  %v4246_v14 = vpop.f32.mrf.mxu1 }
 0x297   :  { %v4803_v3 = vrot.slane %v4802_v1, 2  ;;  %v5250_v53 = vadd.f32 %v5249_v32, %v4915_v52  ;;  %v4808_v25 = vadd.f32 %v4807_v45, %v4244_v9  ;;  %v5255_v6 = vrot.slane %v4916_v21, 4  ;;  %v4206_v27 = vpop.f32.mrf.mxu0 }
 0x298   :  { %v4792_v13 = vadd.f32 %v4791_v7, %v4790_v2  ;;  %v5239_v48 = vrot.slane %v5238_v5, 2  ;;  %v4797_v44 = vrot.slane %v4796_v31, 2  ;;  %v5244_v55 = vadd.f32 %v5243_v62, %v4914_v24  ;;  %v4247_v11 = vpop.f32.mrf.mxu1 }
 0x299   :  { %v4804_v46 = vadd.f32 %v4803_v3, %v4802_v1  ;;  %v5251_v50 = vrot.slane %v5250_v53, 2  ;;  %v4809_v51 = vrot.slane %v4808_v25, 2  ;;  %v5256_v42 = vadd.f32 %v5255_v6, %v4916_v21 }
 0x29a   :  { %v4793_v43 = vrot.slane %v4792_v13, 1  ;;  %v5240_v58 = vadd.f32 %v5239_v48, %v5238_v5  ;;  %v4798_v22 = vadd.f32 %v4797_v44, %v4796_v31  ;;  %v5245_v47 = vrot.slane %v5244_v55, 2 }
 0x29b   :  { %v4805_v38 = vrot.slane %v4804_v46, 1  ;;  %v5252_v33 = vadd.f32 %v5251_v50, %v5250_v53  ;;  %v4810_v61 = vadd.f32 %v4809_v51, %v4808_v25  ;;  %v5257_v34 = vrot.slane %v5256_v42, 2 }
 0x29c   :  { %v5241_v23 = vrot.slane %v5240_v58, 1  ;;  %v4799_v17 = vrot.slane %v4798_v22, 1  ;;  %v5246_v0 = vadd.f32 %v5245_v47, %v5244_v55  ;;  %v4794_v20 = vadd.f32 %v4793_v43, %v4792_v13 }
 0x29d   :  { %v5253_v63 = vrot.slane %v5252_v33, 1  ;;  %v4811_v54 = vrot.slane %v4810_v61, 1  ;;  %v5258_v18 = vadd.f32 %v5257_v34, %v5256_v42  ;;  %v4806_v39 = vadd.f32 %v4805_v38, %v4804_v46 }
 0x29e   :  { %v5242_v37 = vadd.f32 %v5241_v23, %v5240_v58  ;;  %v5247_v19 = vrot.slane %v5246_v0, 1  ;;  %v4800_v36 = vadd.f32 %v4799_v17, %v4798_v22 }
 0x29f   :  { %v5254_v15 = vadd.f32 %v5253_v63, %v5252_v33  ;;  %v5259_v60 = vrot.slane %v5258_v18, 1  ;;  %v4812_v8 = vadd.f32 %v4811_v54, %v4810_v61 }
 0x2a0   :  { %v5362_v28 = vsel %vm5309_vm0, %v4794_v20, %v5242_v37  ;;  %v5248_v16 = vadd.f32 %v5247_v19, %v5246_v0 }
 0x2a1   :  { %v5427_v26 = vsel %vm5374_vm1, %v5362_v28, 0.0  ;;  %v5364_v57 = vsel %vm5309_vm0, %v4806_v39, %v5254_v15  ;;  %v5260_v56 = vadd.f32 %v5259_v60, %v5258_v18 }
 0x2a2   :  { %5491 = vst [vmem:[%s7330_s3 + $0x1a0] sm:$0xff] %v5427_v26  ;;  %v5429_v4 = vsel %vm5374_vm1, %v5364_v57, 0.0  ;;  %v5363_v30 = vsel %vm5309_vm0, %v4800_v36, %v5248_v16 }
 0x2a3   :  { %5493 = vst [vmem:[%s7330_s3 + $0x1b0] sm:$0xff] %v5429_v4  ;;  %v5428_v35 = vsel %vm5374_vm1, %v5363_v30, 0.0  ;;  %v5365_v59 = vsel %vm5309_vm0, %v4812_v8, %v5260_v56 }
 0x2a4   :  { %5492 = vst [vmem:[%s7330_s3 + $0x1a8] sm:$0xff] %v5428_v35  ;;  %v5430_v41 = vsel %vm5374_vm1, %v5365_v59, 0.0 }
 0x2a5   :  { %5494 = vst [vmem:[%s7330_s3 + $0x1b8] sm:$0xff] %v5430_v41 }
 0x2b1   :  { %v4283_v29 = vpop.f32.mrf.mxu0 }
 0x2b2   :  { %4469 = vst [vmem:[%s7329_s2 + $0x1c0] sm:$0xff] %v4283_v29  ;;  %v4813_v52 = vrot.slane %v4283_v29, 4  ;;  %v4917_v40 = vmul.f32 %v4283_v29, %v4283_v29  ;;  %v4324_v2 = vpop.f32.mrf.mxu1 }
 0x2b3   :  { %4471 = vst [vmem:[%s7329_s2 + $0x1d0] sm:$0xff] %v4324_v2  ;;  %v4825_v12 = vrot.slane %v4324_v2, 4  ;;  %v4919_v49 = vmul.f32 %v4324_v2, %v4324_v2  ;;  %v4285_v24 = vpop.f32.mrf.mxu0 }
 0x2b4   :  { %v4814_v9 = vadd.f32 %v4813_v52, %v4283_v29  ;;  %v5261_v1 = vrot.slane %v4917_v40, 4  ;;  %4470 = vst [vmem:[%s7329_s2 + $0x1c8] sm:$0xff] %v4285_v24  ;;  %v4819_v32 = vrot.slane %v4285_v24, 4  ;;  %v4918_v45 = vmul.f32 %v4285_v24, %v4285_v24  ;;  %v4326_v21 = vpop.f32.mrf.mxu1 }
 0x2b5   :  { %v4826_v10 = vadd.f32 %v4825_v12, %v4324_v2  ;;  %v5273_v7 = vrot.slane %v4919_v49, 4  ;;  %4472 = vst [vmem:[%s7329_s2 + $0x1d8] sm:$0xff] %v4326_v21  ;;  %v4831_v5 = vrot.slane %v4326_v21, 4  ;;  %v4920_v31 = vmul.f32 %v4326_v21, %v4326_v21  ;;  %v4287_v62 = vpop.f32.mrf.mxu0 }
 0x2b6   :  { %v4815_v14 = vrot.slane %v4814_v9, 2  ;;  %v5262_v3 = vadd.f32 %v5261_v1, %v4917_v40  ;;  %v4820_v53 = vadd.f32 %v4819_v32, %v4285_v24  ;;  %v5267_v25 = vrot.slane %v4918_v45, 4  ;;  %v4328_v6 = vpop.f32.mrf.mxu1 }
 0x2b7   :  { %v4827_v27 = vrot.slane %v4826_v10, 2  ;;  %v5274_v13 = vadd.f32 %v5273_v7, %v4919_v49  ;;  %v4832_v48 = vadd.f32 %v4831_v5, %v4326_v21  ;;  %v5279_v44 = vrot.slane %v4920_v31, 4  ;;  %v4288_v55 = vpop.f32.mrf.mxu0 }
 0x2b8   :  { %v4816_v11 = vadd.f32 %v4815_v14, %v4814_v9  ;;  %v5263_v46 = vrot.slane %v5262_v3, 2  ;;  %v4821_v50 = vrot.slane %v4820_v53, 2  ;;  %v5268_v51 = vadd.f32 %v5267_v25, %v4918_v45  ;;  %v4329_v42 = vpop.f32.mrf.mxu1 }
 0x2b9   :  { %v4828_v43 = vadd.f32 %v4827_v27, %v4826_v10  ;;  %v5275_v58 = vrot.slane %v5274_v13, 2  ;;  %v4833_v22 = vrot.slane %v4832_v48, 2  ;;  %v5280_v47 = vadd.f32 %v5279_v44, %v4920_v31 }
 0x2ba   :  { %v4817_v38 = vrot.slane %v4816_v11, 1  ;;  %v5264_v33 = vadd.f32 %v5263_v46, %v5262_v3  ;;  %v4822_v61 = vadd.f32 %v4821_v50, %v4820_v53  ;;  %v5269_v34 = vrot.slane %v5268_v51, 2 }
 0x2bb   :  { %v4829_v23 = vrot.slane %v4828_v43, 1  ;;  %v5276_v17 = vadd.f32 %v5275_v58, %v5274_v13  ;;  %v4834_v0 = vadd.f32 %v4833_v22, %v4832_v48  ;;  %v5281_v63 = vrot.slane %v5280_v47, 2 }
 0x2bc   :  { %v5265_v54 = vrot.slane %v5264_v33, 1  ;;  %v4823_v18 = vrot.slane %v4822_v61, 1  ;;  %v5270_v20 = vadd.f32 %v5269_v34, %v5268_v51  ;;  %v4818_v15 = vadd.f32 %v4817_v38, %v4816_v11 }
 0x2bd   :  { %v5277_v37 = vrot.slane %v5276_v17, 1  ;;  %v4835_v19 = vrot.slane %v4834_v0, 1  ;;  %v5282_v39 = vadd.f32 %v5281_v63, %v5280_v47  ;;  %v4830_v36 = vadd.f32 %v4829_v23, %v4828_v43 }
 0x2be   :  { %v5266_v60 = vadd.f32 %v5265_v54, %v5264_v33  ;;  %v5271_v28 = vrot.slane %v5270_v20, 1  ;;  %v4824_v8 = vadd.f32 %v4823_v18, %v4822_v61 }
 0x2bf   :  { %v5278_v16 = vadd.f32 %v5277_v37, %v5276_v17  ;;  %v5283_v26 = vrot.slane %v5282_v39, 1  ;;  %v4836_v35 = vadd.f32 %v4835_v19, %v4834_v0 }
 0x2c0   :  { %v5366_v57 = vsel %vm5309_vm0, %v4818_v15, %v5266_v60  ;;  %v5272_v56 = vadd.f32 %v5271_v28, %v5270_v20 }
 0x2c1   :  { %v5431_v4 = vsel %vm5374_vm1, %v5366_v57, 0.0  ;;  %v5368_v30 = vsel %vm5309_vm0, %v4830_v36, %v5278_v16  ;;  %v5284_v59 = vadd.f32 %v5283_v26, %v5282_v39 }
 0x2c2   :  { %5495 = vst [vmem:[%s7330_s3 + $0x1c0] sm:$0xff] %v5431_v4  ;;  %v5433_v41 = vsel %vm5374_vm1, %v5368_v30, 0.0  ;;  %v5367_v29 = vsel %vm5309_vm0, %v4824_v8, %v5272_v56 }
 0x2c3   :  { %5497 = vst [vmem:[%s7330_s3 + $0x1d0] sm:$0xff] %v5433_v41  ;;  %v5432_v52 = vsel %vm5374_vm1, %v5367_v29, 0.0  ;;  %v5369_v40 = vsel %vm5309_vm0, %v4836_v35, %v5284_v59 }
 0x2c4   :  { %5496 = vst [vmem:[%s7330_s3 + $0x1c8] sm:$0xff] %v5432_v52  ;;  %v5434_v2 = vsel %vm5374_vm1, %v5369_v40, 0.0 }
 0x2c5   :  { %5498 = vst [vmem:[%s7330_s3 + $0x1d8] sm:$0xff] %v5434_v2 }
 0x2d1   :  { %v4365_v12 = vpop.f32.mrf.mxu0 }
 0x2d2   :  { %4473 = vst [vmem:[%s7329_s2 + $0x1e0] sm:$0xff] %v4365_v12  ;;  %v4837_v49 = vrot.slane %v4365_v12, 4  ;;  %v4921_v24 = vmul.f32 %v4365_v12, %v4365_v12  ;;  %v4406_v9 = vpop.f32.mrf.mxu1 }
 0x2d3   :  { %4475 = vst [vmem:[%s7329_s2 + $0x1f0] sm:$0xff] %v4406_v9  ;;  %v4849_v1 = vrot.slane %v4406_v9, 4  ;;  %v4923_v32 = vmul.f32 %v4406_v9, %v4406_v9  ;;  %v4367_v45 = vpop.f32.mrf.mxu0 }
 0x2d4   :  { %v4838_v21 = vadd.f32 %v4837_v49, %v4365_v12  ;;  %v5285_v10 = vrot.slane %v4921_v24, 4  ;;  %4474 = vst [vmem:[%s7329_s2 + $0x1e8] sm:$0xff] %v4367_v45  ;;  %v4843_v7 = vrot.slane %v4367_v45, 4  ;;  %v4922_v5 = vmul.f32 %v4367_v45, %v4367_v45  ;;  %v4408_v31 = vpop.f32.mrf.mxu1 }
 0x2d5   :  { %v4850_v62 = vadd.f32 %v4849_v1, %v4406_v9  ;;  %v5297_v14 = vrot.slane %v4923_v32, 4  ;;  %4476 = vst [vmem:[%s7329_s2 + $0x1f8] sm:$0xff] %v4408_v31  ;;  %v4855_v3 = vrot.slane %v4408_v31, 4  ;;  %v4924_v53 = vmul.f32 %v4408_v31, %v4408_v31  ;;  %v4369_v25 = vpop.f32.mrf.mxu0 }
 0x2d6   :  { %v4839_v6 = vrot.slane %v4838_v21, 2  ;;  %v5286_v27 = vadd.f32 %v5285_v10, %v4921_v24  ;;  %v4844_v13 = vadd.f32 %v4843_v7, %v4367_v45  ;;  %v5291_v48 = vrot.slane %v4922_v5, 4  ;;  %v4410_v44 = vpop.f32.mrf.mxu1 }
 0x2d7   :  { %v4851_v55 = vrot.slane %v4850_v62, 2  ;;  %v5298_v11 = vadd.f32 %v5297_v14, %v4923_v32  ;;  %v4856_v46 = vadd.f32 %v4855_v3, %v4408_v31  ;;  %v5303_v50 = vrot.slane %v4924_v53, 4  ;;  %v4370_v51 = vpop.f32.mrf.mxu0 }
 0x2d8   :  { %v4840_v42 = vadd.f32 %v4839_v6, %v4838_v21  ;;  %v5287_v43 = vrot.slane %v5286_v27, 2  ;;  %v4845_v58 = vrot.slane %v4844_v13, 2  ;;  %v5292_v22 = vadd.f32 %v5291_v48, %v4922_v5  ;;  %v4411_v47 = vpop.f32.mrf.mxu1 }
 0x2d9   :  { %v4852_v38 = vadd.f32 %v4851_v55, %v4850_v62  ;;  %v5299_v33 = vrot.slane %v5298_v11, 2  ;;  %v4857_v61 = vrot.slane %v4856_v46, 2  ;;  %v5304_v34 = vadd.f32 %v5303_v50, %v4924_v53 }
 0x2da   :  { %v4841_v23 = vrot.slane %v4840_v42, 1  ;;  %v5288_v17 = vadd.f32 %v5287_v43, %v5286_v27  ;;  %v4846_v0 = vadd.f32 %v4845_v58, %v4844_v13  ;;  %v5293_v63 = vrot.slane %v5292_v22, 2 }
 0x2db   :  { %v4853_v54 = vrot.slane %v4852_v38, 1  ;;  %v5300_v18 = vadd.f32 %v5299_v33, %v5298_v11  ;;  %v4858_v20 = vadd.f32 %v4857_v61, %v4856_v46  ;;  %v5305_v37 = vrot.slane %v5304_v34, 2 }
 0x2dc   :  { %v5289_v19 = vrot.slane %v5288_v17, 1  ;;  %v4847_v39 = vrot.slane %v4846_v0, 1  ;;  %v5294_v15 = vadd.f32 %v5293_v63, %v5292_v22  ;;  %v4842_v16 = vadd.f32 %v4841_v23, %v4840_v42 }
 0x2dd   :  { %v5301_v60 = vrot.slane %v5300_v18, 1  ;;  %v4859_v28 = vrot.slane %v4858_v20, 1  ;;  %v5306_v36 = vadd.f32 %v5305_v37, %v5304_v34  ;;  %v4854_v8 = vadd.f32 %v4853_v54, %v4852_v38 }
 0x2de   :  { %v5290_v26 = vadd.f32 %v5289_v19, %v5288_v17  ;;  %v5295_v57 = vrot.slane %v5294_v15, 1  ;;  %v4848_v35 = vadd.f32 %v4847_v39, %v4846_v0 }
 0x2df   :  { %v5302_v56 = vadd.f32 %v5301_v60, %v5300_v18  ;;  %v5307_v4 = vrot.slane %v5306_v36, 1  ;;  %v4860_v52 = vadd.f32 %v4859_v28, %v4858_v20 }
 0x2e0   :  { %v5370_v30 = vsel %vm5309_vm0, %v4842_v16, %v5290_v26  ;;  %v5296_v59 = vadd.f32 %v5295_v57, %v5294_v15 }
 0x2e1   :  { %v5435_v41 = vsel %vm5374_vm1, %v5370_v30, 0.0  ;;  %v5372_v29 = vsel %vm5309_vm0, %v4854_v8, %v5302_v56  ;;  %v5308_v40 = vadd.f32 %v5307_v4, %v5306_v36 }
 0x2e2   :  { %5499 = vst [vmem:[%s7330_s3 + $0x1e0] sm:$0xff] %v5435_v41  ;;  %v5437_v2 = vsel %vm5374_vm1, %v5372_v29, 0.0  ;;  %v5371_v12 = vsel %vm5309_vm0, %v4848_v35, %v5296_v59 }
 0x2e3   :  { %5501 = vst [vmem:[%s7330_s3 + $0x1f0] sm:$0xff] %v5437_v2  ;;  %v5436_v49 = vsel %vm5374_vm1, %v5371_v12, 0.0  ;;  %v5373_v24 = vsel %vm5309_vm0, %v4860_v52, %v5308_v40 }
 0x2e4   :  { %5500 = vst [vmem:[%s7330_s3 + $0x1e8] sm:$0xff] %v5436_v49  ;;  %v5438_v9 = vsel %vm5374_vm1, %v5373_v24, 0.0 }
 0x2e5   :  { %5502 = vst [vmem:[%s7330_s3 + $0x1f8] sm:$0xff] %v5438_v9 }
 0x2e6   :  { %5511 = vsyncpa [#allocation3], 1 }

// kernel: generator_forward.22
= control target key start
LH: loop header
LB: loop body
LE: loop exit
PB: predicated region body
PF: predicated region fallthrough
CT: control target
= control target key end

     0   :  { %v42_v0 = vlaneseq  ;;  %s414_s1 = inlined_call_operand.vmem [shape: f32[1,256], index: 1, kind: input, shape index: {}]   ;;  %s415_s2 = inlined_call_operand.vmem [shape: f32[1,256], index: 2, kind: input, shape index: {}]   ;;  %s416_s0 = inlined_call_operand.vmem [shape: f32[104,256], index: 0, kind: input, shape index: {}]   ;;  %s417_s3 = inlined_call_operand.vmem [shape: f32[104,256], index: 3, kind: output, shape index: {}]  }
   0x1   :  { %v40_v2 = vld [vmem:[%s414_s1] sm:$0x3]  ;;  %v15_v6 = vld [vmem:[%s416_s0 + $0x8] sm:$0xff]  ;;  %v16_v8 = vld [vmem:[%s416_s0 + $0x10] sm:$0xff] }
   0x2   :  { %v43_v1 = vshrl.u32 %v42_v0, 7  ;;  %v78_v3 = vld [vmem:[%s415_s2] sm:$0x3]  ;;  %v17_v9 = vld [vmem:[%s416_s0 + $0x18] sm:$0xff]  ;;  %v19_v15 = vld [vmem:[%s416_s0 + $0x28] sm:$0xff] }
   0x3   :  { %v14_v4 = vld [vmem:[%s416_s0] sm:$0xff]  ;;  %v20_v16 = vld [vmem:[%s416_s0 + $0x30] sm:$0xff]  ;;  %v21_v17 = vld [vmem:[%s416_s0 + $0x38] sm:$0xff] }
   0x4   :  { %v44_v5 = vsub.s32 0, %v43_v1  ;;  %v48_v7 = vsub.s32 1, %v43_v1  ;;  %v18_v10 = vld [vmem:[%s416_s0 + $0x20] sm:$0xff]  ;;  %v23_v31 = vld [vmem:[%s416_s0 + $0x48] sm:$0xff]  ;;  %v24_v32 = vld [vmem:[%s416_s0 + $0x50] sm:$0xff] }
   0x5   :  { %v22_v30 = vld [vmem:[%s416_s0 + $0x40] sm:$0xff]  ;;  %v25_v37 = vld [vmem:[%s416_s0 + $0x58] sm:$0xff]  ;;  %v27_v39 = vld [vmem:[%s416_s0 + $0x68] sm:$0xff] }
   0x6   :  { %v213_v11 = vrot.slane %v40_v2, %v44_v5  ;;  %v215_v12 = vrot.slane %v78_v3, %v44_v5  ;;  %v217_v13 = vrot.slane %v40_v2, %v48_v7  ;;  %v219_v14 = vrot.slane %v78_v3, %v48_v7  ;;  %v26_v38 = vld [vmem:[%s416_s0 + $0x60] sm:$0xff]  ;;  %v28_v44 = vld [vmem:[%s416_s0 + $0x70] sm:$0xff]  ;;  %v29_v45 = vld [vmem:[%s416_s0 + $0x78] sm:$0xff] }
   0x7   :  { %v30_v62 = vld [vmem:[%s416_s0 + $0x80] sm:$0xff]  ;;  %v31_v63 = vld [vmem:[%s416_s0 + $0x88] sm:$0xff]  ;;  %v32_v0 = vld [vmem:[%s416_s0 + $0x90] sm:$0xff] }
   0x8   :  { %v52_v18 = vmul.f32 %v213_v11, %v14_v4  ;;  %v53_v19 = vmul.f32 %v217_v13, %v15_v6  ;;  %v54_v20 = vmul.f32 %v213_v11, %v16_v8  ;;  %v55_v21 = vmul.f32 %v217_v13, %v17_v9  ;;  %v33_v5 = vld [vmem:[%s416_s0 + $0x98] sm:$0xff]  ;;  %v34_v6 = vld [vmem:[%s416_s0 + $0xa0] sm:$0xff]  ;;  %v35_v7 = vld [vmem:[%s416_s0 + $0xa8] sm:$0xff] }
   0x9   :  { %v56_v22 = vmul.f32 %v213_v11, %v18_v10  ;;  %v57_v23 = vmul.f32 %v217_v13, %v19_v15  ;;  %v58_v24 = vmul.f32 %v213_v11, %v20_v16  ;;  %v59_v25 = vmul.f32 %v217_v13, %v21_v17  ;;  %v36_v16 = vld [vmem:[%s416_s0 + $0xb0] sm:$0xff]  ;;  %v37_v17 = vld [vmem:[%s416_s0 + $0xb8] sm:$0xff] }
   0xa   :  { %v90_v26 = vadd.f32 %v215_v12, %v52_v18  ;;  %v91_v27 = vadd.f32 %v219_v14, %v53_v19  ;;  %v92_v28 = vadd.f32 %v215_v12, %v54_v20  ;;  %v93_v29 = vadd.f32 %v219_v14, %v55_v21 }
   0xb   :  { %v94_v33 = vadd.f32 %v215_v12, %v56_v22  ;;  %v95_v34 = vadd.f32 %v219_v14, %v57_v23  ;;  %v96_v35 = vadd.f32 %v215_v12, %v58_v24  ;;  %v97_v36 = vadd.f32 %v219_v14, %v59_v25 }
   0xc   :  { %v116_v40 = vmax.f32 %v90_v26, 0.0  ;;  %v117_v41 = vmax.f32 %v91_v27, 0.0  ;;  %v118_v42 = vmax.f32 %v92_v28, 0.0  ;;  %v119_v43 = vmax.f32 %v93_v29, 0.0 }
   0xd   :  { %v120_v46 = vmax.f32 %v94_v33, 0.0  ;;  %v121_v47 = vmax.f32 %v95_v34, 0.0  ;;  %v122_v48 = vmax.f32 %v96_v35, 0.0  ;;  %v123_v49 = vmax.f32 %v97_v36, 0.0 }
   0xe   :  { %142 = vst [vmem:[%s417_s3] sm:$0xff] %v116_v40  ;;  %143 = vst [vmem:[%s417_s3 + $0x8] sm:$0xff] %v117_v41  ;;  %v60_v50 = vmul.f32 %v213_v11, %v22_v30  ;;  %v61_v51 = vmul.f32 %v217_v13, %v23_v31  ;;  %v62_v52 = vmul.f32 %v213_v11, %v24_v32 }
   0xf   :  { %144 = vst [vmem:[%s417_s3 + $0x10] sm:$0xff] %v118_v42  ;;  %145 = vst [vmem:[%s417_s3 + $0x18] sm:$0xff] %v119_v43  ;;  %v63_v53 = vmul.f32 %v217_v13, %v25_v37  ;;  %v64_v54 = vmul.f32 %v213_v11, %v26_v38  ;;  %v65_v55 = vmul.f32 %v217_v13, %v27_v39  ;;  %v38_v38 = vld [vmem:[%s416_s0 + $0xc0] sm:$0xff]  ;;  %v39_v39 = vld [vmem:[%s416_s0 + $0xc8] sm:$0xff] }
  0x10   :  { %146 = vst [vmem:[%s417_s3 + $0x20] sm:$0xff] %v120_v46  ;;  %147 = vst [vmem:[%s417_s3 + $0x28] sm:$0xff] %v121_v47  ;;  %v66_v56 = vmul.f32 %v213_v11, %v28_v44  ;;  %v67_v57 = vmul.f32 %v217_v13, %v29_v45  ;;  %v98_v58 = vadd.f32 %v215_v12, %v60_v50 }
  0x11   :  { %148 = vst [vmem:[%s417_s3 + $0x30] sm:$0xff] %v122_v48  ;;  %149 = vst [vmem:[%s417_s3 + $0x38] sm:$0xff] %v123_v49  ;;  %v99_v59 = vadd.f32 %v219_v14, %v61_v51  ;;  %v100_v60 = vadd.f32 %v215_v12, %v62_v52  ;;  %v101_v61 = vadd.f32 %v219_v14, %v63_v53 }
  0x12   :  { %v102_v1 = vadd.f32 %v215_v12, %v64_v54  ;;  %v103_v2 = vadd.f32 %v219_v14, %v65_v55  ;;  %v104_v3 = vadd.f32 %v215_v12, %v66_v56  ;;  %v105_v4 = vadd.f32 %v219_v14, %v67_v57 }
  0x13   :  { %v124_v8 = vmax.f32 %v98_v58, 0.0  ;;  %v125_v9 = vmax.f32 %v99_v59, 0.0  ;;  %v126_v10 = vmax.f32 %v100_v60, 0.0  ;;  %v127_v15 = vmax.f32 %v101_v61, 0.0 }
  0x14   :  { %v128_v18 = vmax.f32 %v102_v1, 0.0  ;;  %v129_v19 = vmax.f32 %v103_v2, 0.0  ;;  %v130_v20 = vmax.f32 %v104_v3, 0.0  ;;  %v131_v21 = vmax.f32 %v105_v4, 0.0 }
  0x15   :  { %150 = vst [vmem:[%s417_s3 + $0x40] sm:$0xff] %v124_v8  ;;  %151 = vst [vmem:[%s417_s3 + $0x48] sm:$0xff] %v125_v9  ;;  %v68_v22 = vmul.f32 %v213_v11, %v30_v62  ;;  %v69_v23 = vmul.f32 %v217_v13, %v31_v63  ;;  %v70_v24 = vmul.f32 %v213_v11, %v32_v0 }
  0x16   :  { %152 = vst [vmem:[%s417_s3 + $0x50] sm:$0xff] %v126_v10  ;;  %153 = vst [vmem:[%s417_s3 + $0x58] sm:$0xff] %v127_v15  ;;  %v71_v25 = vmul.f32 %v217_v13, %v33_v5  ;;  %v72_v26 = vmul.f32 %v213_v11, %v34_v6  ;;  %v73_v27 = vmul.f32 %v217_v13, %v35_v7 }
  0x17   :  { %154 = vst [vmem:[%s417_s3 + $0x60] sm:$0xff] %v128_v18  ;;  %155 = vst [vmem:[%s417_s3 + $0x68] sm:$0xff] %v129_v19  ;;  %v74_v28 = vmul.f32 %v213_v11, %v36_v16  ;;  %v75_v29 = vmul.f32 %v217_v13, %v37_v17  ;;  %v106_v30 = vadd.f32 %v215_v12, %v68_v22 }
  0x18   :  { %156 = vst [vmem:[%s417_s3 + $0x70] sm:$0xff] %v130_v20  ;;  %157 = vst [vmem:[%s417_s3 + $0x78] sm:$0xff] %v131_v21  ;;  %v107_v31 = vadd.f32 %v219_v14, %v69_v23  ;;  %v108_v32 = vadd.f32 %v215_v12, %v70_v24  ;;  %v109_v33 = vadd.f32 %v219_v14, %v71_v25 }
  0x19   :  { %v110_v34 = vadd.f32 %v215_v12, %v72_v26  ;;  %v111_v35 = vadd.f32 %v219_v14, %v73_v27  ;;  %v112_v36 = vadd.f32 %v215_v12, %v74_v28  ;;  %v113_v37 = vadd.f32 %v219_v14, %v75_v29 }
  0x1a   :  { %v132_v40 = vmax.f32 %v106_v30, 0.0  ;;  %v133_v41 = vmax.f32 %v107_v31, 0.0  ;;  %v134_v42 = vmax.f32 %v108_v32, 0.0  ;;  %v135_v43 = vmax.f32 %v109_v33, 0.0 }
  0x1b   :  { %v136_v44 = vmax.f32 %v110_v34, 0.0  ;;  %v137_v45 = vmax.f32 %v111_v35, 0.0  ;;  %v138_v46 = vmax.f32 %v112_v36, 0.0  ;;  %v139_v47 = vmax.f32 %v113_v37, 0.0 }
  0x1c   :  { %158 = vst [vmem:[%s417_s3 + $0x80] sm:$0xff] %v132_v40  ;;  %159 = vst [vmem:[%s417_s3 + $0x88] sm:$0xff] %v133_v41  ;;  %v76_v48 = vmul.f32 %v213_v11, %v38_v38  ;;  %v77_v49 = vmul.f32 %v217_v13, %v39_v39 }
  0x1d   :  { %160 = vst [vmem:[%s417_s3 + $0x90] sm:$0xff] %v134_v42  ;;  %161 = vst [vmem:[%s417_s3 + $0x98] sm:$0xff] %v135_v43 }
  0x1e   :  { %162 = vst [vmem:[%s417_s3 + $0xa0] sm:$0xff] %v136_v44  ;;  %163 = vst [vmem:[%s417_s3 + $0xa8] sm:$0xff] %v137_v45  ;;  %v114_v11 = vadd.f32 %v215_v12, %v76_v48  ;;  %v115_v13 = vadd.f32 %v219_v14, %v77_v49 }
  0x1f   :  { %164 = vst [vmem:[%s417_s3 + $0xb0] sm:$0xff] %v138_v46  ;;  %165 = vst [vmem:[%s417_s3 + $0xb8] sm:$0xff] %v139_v47 }
  0x20   :  { %v140_v50 = vmax.f32 %v114_v11, 0.0  ;;  %v141_v51 = vmax.f32 %v115_v13, 0.0 }
  0x22   :  { %166 = vst [vmem:[%s417_s3 + $0xc0] sm:$0xff] %v140_v50  ;;  %167 = vst [vmem:[%s417_s3 + $0xc8] sm:$0xff] %v141_v51 }

// kernel: generator_forward.23
= control target key start
LH: loop header
LB: loop body
LE: loop exit
PB: predicated region body
PF: predicated region fallthrough
CT: control target
= control target key end

     0   :  { %vm1260_vm0 = vcmask 1040384   ;;  %vm1262_vm1 = vcmask 1041408   ;;  %s2263_s1 = inlined_call_operand.vmem [shape: bf16[1024,128], index: 1, kind: input, shape index: {}]   ;;  %s2264_s0 = inlined_call_operand.vmem [shape: bf16[104,1024], index: 0, kind: input, shape index: {}]   ;;  %s2265_s2 = inlined_call_operand.vmem [shape: f32[104,128], index: 2, kind: output, shape index: {0}]   ;;  %s2266_s3 = inlined_call_operand.vmem [shape: f32[8,128], index: 3, kind: output, shape index: {1}]  }
   0x1   :  { %v1625_v0 = vld [vmem:[%s2263_s1 + $0x78] sm:$0xff]   ;;  %v1629_v4 = vld [vmem:[%s2263_s1 + $0x70] sm:$0xff]   ;;  %v1633_v8 = vld [vmem:[%s2263_s1 + $0x68] sm:$0xff]  }
   0x2   :  { %v1626_v1 = vld [vmem:[%s2263_s1 + $0xf8] sm:$0xff]   ;;  %1393 = vmatprep.subr.bf16.mxu0 %v1625_v0  ;;  %v1630_v5 = vld [vmem:[%s2263_s1 + $0xf0] sm:$0xff]   ;;  %v1634_v9 = vld [vmem:[%s2263_s1 + $0xe8] sm:$0xff]  }
   0x3   :  { %v1627_v2 = vld [vmem:[%s2263_s1 + $0x38] sm:$0xff]   ;;  %1451 = vmatprep.subr.bf16.mxu1 %v1626_v1  ;;  %v1631_v6 = vld [vmem:[%s2263_s1 + $0x30] sm:$0xff]   ;;  %v1635_v10 = vld [vmem:[%s2263_s1 + $0x28] sm:$0xff]  }
   0x4   :  { %v1628_v3 = vld [vmem:[%s2263_s1 + $0xb8] sm:$0xff]   ;;  %1394 = vmatpush3.bf16.msra.mxu0 %v1627_v2  ;;  %v1632_v7 = vld [vmem:[%s2263_s1 + $0xb0] sm:$0xff]   ;;  %v1636_v11 = vld [vmem:[%s2263_s1 + $0xa8] sm:$0xff]  }
   0x5   :  { %1452 = vmatpush3.bf16.msra.mxu1 %v1628_v3  ;;  %1395 = vmatprep.subr.bf16.mxu0 %v1629_v4  ;;  %v1637_v12 = vld [vmem:[%s2263_s1 + $0x60] sm:$0xff]   ;;  %v1641_v16 = vld [vmem:[%s2263_s1 + $0x58] sm:$0xff]   ;;  %v1645_v20 = vld [vmem:[%s2263_s1 + $0x50] sm:$0xff]  }
   0x6   :  { %1453 = vmatprep.subr.bf16.mxu1 %v1630_v5  ;;  %v1638_v13 = vld [vmem:[%s2263_s1 + $0xe0] sm:$0xff]   ;;  %v1642_v17 = vld [vmem:[%s2263_s1 + $0xd8] sm:$0xff]   ;;  %v1646_v21 = vld [vmem:[%s2263_s1 + $0xd0] sm:$0xff]  }
   0x7   :  { %v1639_v14 = vld [vmem:[%s2263_s1 + $0x20] sm:$0xff]   ;;  %v1643_v18 = vld [vmem:[%s2263_s1 + $0x18] sm:$0xff]   ;;  %v1647_v22 = vld [vmem:[%s2263_s1 + $0x10] sm:$0xff]  }
   0x8   :  { %1396 = vmatpush3.bf16.msra.mxu0 %v1631_v6  ;;  %v1640_v15 = vld [vmem:[%s2263_s1 + $0xa0] sm:$0xff]   ;;  %v1644_v19 = vld [vmem:[%s2263_s1 + $0x98] sm:$0xff]   ;;  %v1648_v23 = vld [vmem:[%s2263_s1 + $0x90] sm:$0xff]  }
   0x9   :  { %1454 = vmatpush3.bf16.msra.mxu1 %v1632_v7  ;;  %1397 = vmatprep.subr.bf16.mxu0 %v1633_v8  ;;  %v1649_v24 = vld [vmem:[%s2263_s1 + $0x48] sm:$0xff]   ;;  %v1653_v28 = vld [vmem:[%s2263_s1 + $0x40] sm:$0xff]   ;;  %v1657_v40 = vld [vmem:[%s2263_s1 + $0x178] sm:$0xff]  }
   0xa   :  { %1455 = vmatprep.subr.bf16.mxu1 %v1634_v9  ;;  %v1650_v25 = vld [vmem:[%s2263_s1 + $0xc8] sm:$0xff]   ;;  %v1654_v29 = vld [vmem:[%s2263_s1 + $0xc0] sm:$0xff]   ;;  %v1658_v41 = vld [vmem:[%s2263_s1 + $0x138] sm:$0xff]  }
   0xb   :  { %v1651_v26 = vld [vmem:[%s2263_s1 + $0x8] sm:$0xff]   ;;  %v1655_v30 = vld [vmem:[%s2263_s1] sm:$0xff]   ;;  %v1659_v42 = vld [vmem:[%s2263_s1 + $0x1f8] sm:$0xff]  }
   0xc   :  { %1398 = vmatpush3.bf16.msra.mxu0 %v1635_v10  ;;  %v1652_v27 = vld [vmem:[%s2263_s1 + $0x88] sm:$0xff]   ;;  %v1656_v31 = vld [vmem:[%s2263_s1 + $0x80] sm:$0xff]   ;;  %v1660_v43 = vld [vmem:[%s2263_s1 + $0x1b8] sm:$0xff]  }
   0xd   :  { %1456 = vmatpush3.bf16.msra.mxu1 %v1636_v11  ;;  %1399 = vmatprep.subr.bf16.mxu0 %v1637_v12  ;;  %v14_v32 = vld [vmem:[%s2264_s0] sm:$0xff]  ;;  %v15_v34 = vld [vmem:[%s2264_s0 + $0x8] sm:$0xff]  ;;  %v1661_v50 = vld [vmem:[%s2263_s1 + $0x170] sm:$0xff]  }
   0xe   :  { %1457 = vmatprep.subr.bf16.mxu1 %v1638_v13  ;;  %v18_v33 = vld [vmem:[%s2264_s0 + $0x20] sm:$0xff]  ;;  %v19_v37 = vld [vmem:[%s2264_s0 + $0x28] sm:$0xff]  ;;  %v1662_v52 = vld [vmem:[%s2263_s1 + $0x130] sm:$0xff]  }
   0xf   :  { %v1273_v35 = vcombine.low %v14_v32, %v18_v33  ;;  %v1274_v36 = vcombine.high %v14_v32, %v18_v33  ;;  %v1275_v38 = vcombine.low %v15_v34, %v19_v37  ;;  %v1276_v39 = vcombine.high %v15_v34, %v19_v37  ;;  %v22_v44 = vld [vmem:[%s2264_s0 + $0x40] sm:$0xff]  ;;  %v23_v47 = vld [vmem:[%s2264_s0 + $0x48] sm:$0xff]  ;;  %v1663_v54 = vld [vmem:[%s2263_s1 + $0x1f0] sm:$0xff]  }
  0x10   :  { %1400 = vmatpush3.bf16.msra.mxu0 %v1639_v14  ;;  %v26_v45 = vld [vmem:[%s2264_s0 + $0x60] sm:$0xff]  ;;  %v27_v48 = vld [vmem:[%s2264_s0 + $0x68] sm:$0xff]  ;;  %v1664_v55 = vld [vmem:[%s2263_s1 + $0x1b0] sm:$0xff]  }
  0x11   :  { %1458 = vmatpush3.bf16.msra.mxu1 %v1640_v15  ;;  %1401 = vmatprep.subr.bf16.mxu0 %v1641_v16  ;;  %v1282_v46 = vcombine.high %v22_v44, %v26_v45  ;;  %v1284_v49 = vcombine.high %v23_v47, %v27_v48  ;;  %v1281_v51 = vcombine.low %v22_v44, %v26_v45  ;;  %v1665_v56 = vld [vmem:[%s2263_s1 + $0x168] sm:$0xff]   ;;  %v30_v57 = vld [vmem:[%s2264_s0 + $0x80] sm:$0xff]  ;;  %v1673_v14 = vld [vmem:[%s2263_s1 + $0x158] sm:$0xff]  }
  0x12   :  { %1459 = vmatprep.subr.bf16.mxu1 %v1642_v17  ;;  %878 = vmatprep.mubr.bf16.mxu0 %v1274_v36  ;;  %v1283_v53 = vcombine.low %v23_v47, %v27_v48  ;;  %v34_v58 = vld [vmem:[%s2264_s0 + $0xa0] sm:$0xff]  ;;  %v31_v59 = vld [vmem:[%s2264_s0 + $0x88] sm:$0xff]  ;;  %v1674_v15 = vld [vmem:[%s2263_s1 + $0x118] sm:$0xff]  }
  0x13   :  { %966 = vmatprep.mubr.bf16.mxu1 %v1276_v39  ;;  %v35_v60 = vld [vmem:[%s2264_s0 + $0xa8] sm:$0xff]  ;;  %v1290_v61 = vcombine.high %v30_v57, %v34_v58  ;;  %v1289_v2 = vcombine.low %v30_v57, %v34_v58  ;;  %v1669_v3 = vld [vmem:[%s2263_s1 + $0x160] sm:$0xff]   ;;  %v1675_v17 = vld [vmem:[%s2263_s1 + $0x1d8] sm:$0xff]  }
  0x14   :  { %1402 = vmatpush3.bf16.msra.mxu0 %v1643_v18  ;;  %v1292_v62 = vcombine.high %v31_v59, %v35_v60  ;;  %v1666_v63 = vld [vmem:[%s2263_s1 + $0x128] sm:$0xff]   ;;  %v1291_v4 = vcombine.low %v31_v59, %v35_v60  ;;  %v1670_v5 = vld [vmem:[%s2263_s1 + $0x120] sm:$0xff]   ;;  %v24_v60 = vld [vmem:[%s2264_s0 + $0x50] sm:$0xff] }
  0x15   :  { %1460 = vmatpush3.bf16.msra.mxu1 %v1644_v19  ;;  %1403 = vmatprep.subr.bf16.mxu0 %v1645_v20  ;;  %v1667_v0 = vld [vmem:[%s2263_s1 + $0x1e8] sm:$0xff]   ;;  %v38_v6 = vld [vmem:[%s2264_s0 + $0xc0] sm:$0xff] }
  0x16   :  { %1461 = vmatprep.subr.bf16.mxu1 %v1646_v21  ;;  %v1668_v1 = vld [vmem:[%s2263_s1 + $0x1a8] sm:$0xff]   ;;  %v42_v7 = vld [vmem:[%s2264_s0 + $0xe0] sm:$0xff] }
  0x17   :  { %v39_v8 = vld [vmem:[%s2264_s0 + $0xc8] sm:$0xff]  ;;  %v1298_v9 = vcombine.high %v38_v6, %v42_v7  ;;  %v1671_v12 = vld [vmem:[%s2263_s1 + $0x1e0] sm:$0xff]   ;;  %v1297_v16 = vcombine.low %v38_v6, %v42_v7  ;;  %v33_v6 = vld [vmem:[%s2264_s0 + $0x98] sm:$0xff] }
  0x18   :  { %1404 = vmatpush3.bf16.msra.mxu0 %v1647_v22  ;;  %v43_v10 = vld [vmem:[%s2264_s0 + $0xe8] sm:$0xff]  ;;  %v1672_v13 = vld [vmem:[%s2263_s1 + $0x1a0] sm:$0xff]   ;;  %v37_v7 = vld [vmem:[%s2264_s0 + $0xb8] sm:$0xff] }
  0x19   :  { %1462 = vmatpush3.bf16.msra.mxu1 %v1648_v23  ;;  %1405 = vmatprep.subr.bf16.mxu0 %v1649_v24  ;;  %v1300_v11 = vcombine.high %v39_v8, %v43_v10  ;;  %v46_v18 = vld [vmem:[%s2264_s0 + $0x100] sm:$0xff]  ;;  %v1299_v20 = vcombine.low %v39_v8, %v43_v10  ;;  %v47_v22 = vld [vmem:[%s2264_s0 + $0x108] sm:$0xff] }
  0x1a   :  { %1463 = vmatprep.subr.bf16.mxu1 %v1650_v25  ;;  %v50_v19 = vld [vmem:[%s2264_s0 + $0x120] sm:$0xff]  ;;  %v51_v23 = vld [vmem:[%s2264_s0 + $0x128] sm:$0xff]  ;;  %v1676_v25 = vld [vmem:[%s2263_s1 + $0x198] sm:$0xff]  }
  0x1b   :  { %v1306_v21 = vcombine.high %v46_v18, %v50_v19  ;;  %v1308_v24 = vcombine.high %v47_v22, %v51_v23  ;;  %v55_v32 = vld [vmem:[%s2264_s0 + $0x148] sm:$0xff]  ;;  %v1305_v34 = vcombine.low %v46_v18, %v50_v19  ;;  %v1307_v36 = vcombine.low %v47_v22, %v51_v23  ;;  %v1689_v44 = vld [vmem:[%s2263_s1 + $0x140] sm:$0xff]   ;;  %v49_v22 = vld [vmem:[%s2264_s0 + $0x118] sm:$0xff] }
  0x1c   :  { %1406 = vmatpush3.bf16.msra.mxu0 %v1651_v26  ;;  %v1677_v26 = vld [vmem:[%s2263_s1 + $0x150] sm:$0xff]   ;;  %v59_v33 = vld [vmem:[%s2264_s0 + $0x168] sm:$0xff]  ;;  %v1690_v45 = vld [vmem:[%s2263_s1 + $0x100] sm:$0xff]  }
  0x1d   :  { %1464 = vmatpush3.bf16.msra.mxu1 %v1652_v27  ;;  %1407 = vmatprep.subr.bf16.mxu0 %v1653_v28  ;;  %v1678_v27 = vld [vmem:[%s2263_s1 + $0x110] sm:$0xff]   ;;  %v1316_v39 = vcombine.high %v55_v32, %v59_v33  ;;  %v1692_v48 = vld [vmem:[%s2263_s1 + $0x180] sm:$0xff]   ;;  %v53_v23 = vld [vmem:[%s2264_s0 + $0x138] sm:$0xff] }
  0x1e   :  { %1465 = vmatprep.subr.bf16.mxu1 %v1654_v29  ;;  %v1679_v28 = vld [vmem:[%s2263_s1 + $0x1d0] sm:$0xff]  }
  0x1f   :  { %v1680_v29 = vld [vmem:[%s2263_s1 + $0x190] sm:$0xff]  }
  0x20   :  { %1408 = vmatpush3.bf16.msra.mxu0 %v1655_v30  ;;  %v54_v30 = vld [vmem:[%s2264_s0 + $0x140] sm:$0xff] }
  0x21   :  { %1466 = vmatpush3.bf16.msra.mxu1 %v1656_v31  ;;  %1509 = vmatprep.subr.bf16.mxu0 %v1657_v40  ;;  %v58_v31 = vld [vmem:[%s2264_s0 + $0x160] sm:$0xff]  ;;  %v1683_v40 = vld [vmem:[%s2263_s1 + $0x1c8] sm:$0xff]  }
  0x22   :  { %1567 = vmatprep.subr.bf16.mxu1 %v1659_v42  ;;  %v1314_v37 = vcombine.high %v54_v30, %v58_v31  ;;  %v62_v42 = vld [vmem:[%s2264_s0 + $0x180] sm:$0xff]  ;;  %v1313_v47 = vcombine.low %v54_v30, %v58_v31  ;;  %v57_v30 = vld [vmem:[%s2264_s0 + $0x158] sm:$0xff] }
  0x23   :  { %879 = vmatmul.mubr.bf16.vlgmr.msra.gmra.mxu0 %v1273_v35  ;;  %v1681_v35 = vld [vmem:[%s2263_s1 + $0x148] sm:$0xff]   ;;  %v61_v31 = vld [vmem:[%s2264_s0 + $0x178] sm:$0xff] }
  0x24   :  { %967 = vmatmul.mubr.bf16.vlgmr.msra.gmra.mxu1 %v1275_v38  ;;  %1510 = vmatpush3.bf16.msra.mxu0 %v1658_v41  ;;  %v1682_v38 = vld [vmem:[%s2263_s1 + $0x108] sm:$0xff]  }
  0x25   :  { %1568 = vmatpush3.bf16.msra.mxu1 %v1660_v43  ;;  %886 = vmatprep.mubr.bf16.mxu0 %v1282_v46  ;;  %v1684_v41 = vld [vmem:[%s2263_s1 + $0x188] sm:$0xff]   ;;  %v1691_v46 = vld [vmem:[%s2263_s1 + $0x1c0] sm:$0xff]  }
  0x26   :  { %974 = vmatprep.mubr.bf16.mxu1 %v1284_v49  ;;  %1511 = vmatprep.subr.bf16.mxu0 %v1661_v50  ;;  %v63_v43 = vld [vmem:[%s2264_s0 + $0x188] sm:$0xff]  ;;  %v1315_v49 = vcombine.low %v55_v32, %v59_v33  ;;  %v1322_v50 = vcombine.high %v62_v42, %v62_v42  ;;  %v1311_v33 = vcombine.low %v49_v22, %v53_v23 }
  0x27   :  { %1569 = vmatprep.subr.bf16.mxu1 %v1663_v54  ;;  %v17_v54 = vld [vmem:[%s2264_s0 + $0x18] sm:$0xff]  ;;  %v1323_v57 = vcombine.low %v63_v43, %v63_v43 }
  0x28   :  { %1512 = vmatpush3.bf16.msra.mxu0 %v1662_v52  ;;  %v16_v52 = vld [vmem:[%s2264_s0 + $0x10] sm:$0xff] }
  0x29   :  { %1570 = vmatpush3.bf16.msra.mxu1 %v1664_v55  ;;  %1513 = vmatprep.subr.bf16.mxu0 %v1665_v56  ;;  %v21_v55 = vld [vmem:[%s2264_s0 + $0x38] sm:$0xff]  ;;  %v1321_v56 = vcombine.low %v62_v42, %v62_v42 }
  0x2a   :  { %1571 = vmatprep.subr.bf16.mxu1 %v1667_v0  ;;  %v1280_v59 = vcombine.high %v17_v54, %v21_v55 }
  0x2b   :  { %887 = vmatmul.mubr.bf16.gmra.mxu0 %v1281_v51  ;;  %v1324_v51 = vcombine.high %v63_v43, %v63_v43 }
  0x2c   :  { %975 = vmatmul.mubr.bf16.gmra.mxu1 %v1283_v53  ;;  %894 = vmatprep.mubr.bf16.mxu0 %v1290_v61  ;;  %v20_v53 = vld [vmem:[%s2264_s0 + $0x30] sm:$0xff] }
  0x2d   :  { %982 = vmatprep.mubr.bf16.mxu1 %v1292_v62  ;;  %1514 = vmatpush3.bf16.msra.mxu0 %v1666_v63  ;;  %v1278_v58 = vcombine.high %v16_v52, %v20_v53  ;;  %v28_v61 = vld [vmem:[%s2264_s0 + $0x70] sm:$0xff]  ;;  %v25_v62 = vld [vmem:[%s2264_s0 + $0x58] sm:$0xff]  ;;  %v1277_v0 = vcombine.low %v16_v52, %v20_v53 }
  0x2e   :  { %1572 = vmatpush3.bf16.msra.mxu1 %v1668_v1  ;;  %1515 = vmatprep.subr.bf16.mxu0 %v1669_v3  ;;  %v29_v63 = vld [vmem:[%s2264_s0 + $0x78] sm:$0xff]  ;;  %v1279_v1 = vcombine.low %v17_v54, %v21_v55  ;;  %v1285_v8 = vcombine.low %v24_v60, %v28_v61 }
  0x2f   :  { %1573 = vmatprep.subr.bf16.mxu1 %v1671_v12  ;;  %v1288_v3 = vcombine.high %v25_v62, %v29_v63  ;;  %v40_v12 = vld [vmem:[%s2264_s0 + $0xd0] sm:$0xff] }
  0x31   :  { %1516 = vmatpush3.bf16.msra.mxu0 %v1670_v5  ;;  %v36_v5 = vld [vmem:[%s2264_s0 + $0xb0] sm:$0xff] }
  0x32   :  { %1574 = vmatpush3.bf16.msra.mxu1 %v1672_v13  ;;  %1517 = vmatprep.subr.bf16.mxu0 %v1673_v14  ;;  %v44_v13 = vld [vmem:[%s2264_s0 + $0xf0] sm:$0xff]  ;;  %v41_v14 = vld [vmem:[%s2264_s0 + $0xd8] sm:$0xff] }
  0x33   :  { %895 = vmatmul.mubr.bf16.gmra.mxu0 %v1289_v2  ;;  %1575 = vmatprep.subr.bf16.mxu1 %v1675_v17  ;;  %v1286_v2 = vcombine.high %v24_v60, %v28_v61  ;;  %v1295_v17 = vcombine.low %v33_v6, %v37_v7  ;;  %v1302_v18 = vcombine.high %v40_v12, %v44_v13 }
  0x34   :  { %983 = vmatmul.mubr.bf16.gmra.mxu1 %v1291_v4  ;;  %902 = vmatprep.mubr.bf16.mxu0 %v1298_v9  ;;  %v32_v4 = vld [vmem:[%s2264_s0 + $0x90] sm:$0xff]  ;;  %v1287_v9 = vcombine.low %v25_v62, %v29_v63 }
  0x35   :  { %990 = vmatprep.mubr.bf16.mxu1 %v1300_v11  ;;  %1518 = vmatpush3.bf16.msra.mxu0 %v1674_v15  ;;  %v1294_v10 = vcombine.high %v32_v4, %v36_v5  ;;  %v1296_v11 = vcombine.high %v33_v6, %v37_v7  ;;  %v45_v15 = vld [vmem:[%s2264_s0 + $0xf8] sm:$0xff] }
  0x36   :  { %1576 = vmatpush3.bf16.msra.mxu1 %v1676_v25  ;;  %1519 = vmatprep.subr.bf16.mxu0 %v1677_v26  ;;  %v1304_v19 = vcombine.high %v41_v14, %v45_v15  ;;  %v1303_v25 = vcombine.low %v41_v14, %v45_v15 }
  0x37   :  { %1577 = vmatprep.subr.bf16.mxu1 %v1679_v28  ;;  %v56_v28 = vld [vmem:[%s2264_s0 + $0x150] sm:$0xff] }
  0x39   :  { %1520 = vmatpush3.bf16.msra.mxu0 %v1678_v27  ;;  %v1312_v27 = vcombine.high %v49_v22, %v53_v23 }
  0x3a   :  { %1578 = vmatpush3.bf16.msra.mxu1 %v1680_v29  ;;  %1521 = vmatprep.subr.bf16.mxu0 %v1681_v35  ;;  %v60_v29 = vld [vmem:[%s2264_s0 + $0x170] sm:$0xff]  ;;  %v1320_v35 = vcombine.high %v57_v30, %v61_v31 }
  0x3b   :  { %903 = vmatmul.mubr.bf16.gmra.mxu0 %v1297_v16  ;;  %1579 = vmatprep.subr.bf16.mxu1 %v1683_v40  ;;  %v1293_v16 = vcombine.low %v32_v4, %v36_v5 }
  0x3c   :  { %991 = vmatmul.mubr.bf16.gmra.mxu1 %v1299_v20  ;;  %910 = vmatprep.mubr.bf16.mxu0 %v1306_v21  ;;  %v48_v20 = vld [vmem:[%s2264_s0 + $0x110] sm:$0xff] }
  0x3d   :  { %998 = vmatprep.mubr.bf16.mxu1 %v1308_v24  ;;  %1522 = vmatpush3.bf16.msra.mxu0 %v1682_v38  ;;  %v52_v21 = vld [vmem:[%s2264_s0 + $0x130] sm:$0xff]  ;;  %v1301_v24 = vcombine.low %v40_v12, %v44_v13  ;;  %v1317_v38 = vcombine.low %v56_v28, %v60_v29 }
  0x3e   :  { %1580 = vmatpush3.bf16.msra.mxu1 %v1684_v41  ;;  %1523 = vmatprep.subr.bf16.mxu0 %v1689_v44  ;;  %v1310_v26 = vcombine.high %v48_v20, %v52_v21  ;;  %v1309_v32 = vcombine.low %v48_v20, %v52_v21 }
  0x3f   :  { %1581 = vmatprep.subr.bf16.mxu1 %v1691_v46 }
  0x41   :  { %1524 = vmatpush3.bf16.msra.mxu0 %v1690_v45 }
  0x42   :  { %1582 = vmatpush3.bf16.msra.mxu1 %v1692_v48 }
  0x43   :  { %911 = vmatmul.mubr.bf16.gmra.mxu0 %v1305_v34  ;;  %v1318_v34 = vcombine.high %v56_v28, %v60_v29 }
  0x44   :  { %999 = vmatmul.mubr.bf16.gmra.mxu1 %v1307_v36  ;;  %918 = vmatprep.mubr.bf16.mxu0 %v1314_v37  ;;  %v64_v36 = vld [vmem:[%s2264_s0 + $0x190] sm:$0xff]  ;;  %v65_v37 = vld [vmem:[%s2264_s0 + $0x198] sm:$0xff] }
  0x45   :  { %1006 = vmatprep.mubr.bf16.mxu1 %v1316_v39  ;;  %v1319_v39 = vcombine.low %v57_v30, %v61_v31  ;;  %v1326_v40 = vcombine.high %v64_v36, %v64_v36  ;;  %v1328_v41 = vcombine.high %v65_v37, %v65_v37  ;;  %v1325_v42 = vcombine.low %v64_v36, %v64_v36 }
  0x46   :  { %v1327_v43 = vcombine.low %v65_v37, %v65_v37 }
  0x4b   :  { %919 = vmatmul.mubr.bf16.gmra.mxu0 %v1313_v47 }
  0x4c   :  { %1007 = vmatmul.mubr.bf16.gmra.mxu1 %v1315_v49  ;;  %926 = vmatprep.mubr.bf16.mxu0 %v1322_v50 }
  0x4d   :  { %1014 = vmatprep.mubr.bf16.mxu1 %v1324_v51 }
  0x53   :  { %927 = vmatmul.mubr.bf16.gmra.mxu0 %v1321_v56 }
  0x54   :  { %1015 = vmatmul.mubr.bf16.gmra.mxu1 %v1323_v57  ;;  %1054 = vmatprep.mubr.bf16.mxu0 %v1278_v58 }
  0x55   :  { %1142 = vmatprep.mubr.bf16.mxu1 %v1280_v59 }
  0x5b   :  { %1055 = vmatmul.mubr.bf16.vlgmr.msra.gmra.mxu0 %v1277_v0 }
  0x5c   :  { %1143 = vmatmul.mubr.bf16.vlgmr.msra.gmra.mxu1 %v1279_v1  ;;  %1062 = vmatprep.mubr.bf16.mxu0 %v1286_v2 }
  0x5d   :  { %1150 = vmatprep.mubr.bf16.mxu1 %v1288_v3 }
  0x63   :  { %1063 = vmatmul.mubr.bf16.gmra.mxu0 %v1285_v8 }
  0x64   :  { %1151 = vmatmul.mubr.bf16.gmra.mxu1 %v1287_v9  ;;  %1070 = vmatprep.mubr.bf16.mxu0 %v1294_v10 }
  0x65   :  { %1158 = vmatprep.mubr.bf16.mxu1 %v1296_v11 }
  0x6b   :  { %1071 = vmatmul.mubr.bf16.gmra.mxu0 %v1293_v16 }
  0x6c   :  { %1159 = vmatmul.mubr.bf16.gmra.mxu1 %v1295_v17  ;;  %1078 = vmatprep.mubr.bf16.mxu0 %v1302_v18 }
  0x6d   :  { %1166 = vmatprep.mubr.bf16.mxu1 %v1304_v19 }
  0x73   :  { %1079 = vmatmul.mubr.bf16.gmra.mxu0 %v1301_v24 }
  0x74   :  { %1167 = vmatmul.mubr.bf16.gmra.mxu1 %v1303_v25  ;;  %1086 = vmatprep.mubr.bf16.mxu0 %v1310_v26 }
  0x75   :  { %1174 = vmatprep.mubr.bf16.mxu1 %v1312_v27 }
  0x7b   :  { %1087 = vmatmul.mubr.bf16.gmra.mxu0 %v1309_v32 }
  0x7c   :  { %1175 = vmatmul.mubr.bf16.gmra.mxu1 %v1311_v33  ;;  %1094 = vmatprep.mubr.bf16.mxu0 %v1318_v34 }
  0x7d   :  { %1182 = vmatprep.mubr.bf16.mxu1 %v1320_v35 }
  0x83   :  { %1095 = vmatmul.mubr.bf16.gmra.mxu0 %v1317_v38 }
  0x84   :  { %1183 = vmatmul.mubr.bf16.gmra.mxu1 %v1319_v39  ;;  %1102 = vmatprep.mubr.bf16.mxu0 %v1326_v40 }
  0x85   :  { %1190 = vmatprep.mubr.bf16.mxu1 %v1328_v41 }
  0x8b   :  { %1103 = vmatmul.mubr.bf16.gmra.mxu0 %v1325_v42 }
  0x8c   :  { %1191 = vmatmul.mubr.bf16.gmra.mxu1 %v1327_v43 }
  0xe3   :  { %v1409_v44 = vpop.f32.mrf.mxu0 }
  0xe4   :  { %v1467_v45 = vpop.f32.mrf.mxu1 }
  0xe5   :  { %v1410_v46 = vpop.f32.mrf.mxu0 }
  0xe6   :  { %v1468_v47 = vpop.f32.mrf.mxu1  ;;  %v1411_v35 = vadd.f32 %v1410_v46, %v1409_v44 }
  0xe7   :  { %v1412_v48 = vpop.f32.mrf.mxu0  ;;  %v1469_v36 = vadd.f32 %v1468_v47, %v1467_v45 }
  0xe8   :  { %v1470_v49 = vpop.f32.mrf.mxu1 }
  0xe9   :  { %v1413_v50 = vpop.f32.mrf.mxu0  ;;  %v969_v41 = vadd.f32 %v1469_v36, %v1411_v35 }
  0xea   :  { %v1471_v51 = vpop.f32.mrf.mxu1  ;;  %v1414_v42 = vadd.f32 %v1413_v50, %v1412_v48 }
  0xeb   :  { %v1415_v52 = vpop.f32.mrf.mxu0  ;;  %v1472_v43 = vadd.f32 %v1471_v51, %v1470_v49 }
  0xec   :  { %v1473_v53 = vpop.f32.mrf.mxu1 }
  0xed   :  { %v1416_v54 = vpop.f32.mrf.mxu0 }
  0xee   :  { %v1474_v55 = vpop.f32.mrf.mxu1 }
  0xef   :  { %v2065_v56 = vpop.f32.mrf.mxu0 }
  0xf0   :  { %v2067_v57 = vpop.f32.mrf.mxu1 }
  0xf1   :  { %v2069_v58 = vpop.f32.mrf.mxu0 }
  0xf2   :  { %v2071_v59 = vpop.f32.mrf.mxu1 }
  0xf3   :  { %v2073_v60 = vpop.f32.mrf.mxu0 }
  0xf4   :  { %v2075_v61 = vpop.f32.mrf.mxu1 }
  0xf5   :  { %v2077_v62 = vpop.f32.mrf.mxu0 }
  0xf6   :  { %v2079_v63 = vpop.f32.mrf.mxu1 }
  0xf7   :  { %v2081_v0 = vpop.f32.mrf.mxu0 }
  0xf8   :  { %v2083_v1 = vpop.f32.mrf.mxu1 }
  0xf9   :  { %v2085_v2 = vpop.f32.mrf.mxu0 }
  0xfa   :  { %v2087_v3 = vpop.f32.mrf.mxu1 }
  0xfb   :  { %v2089_v4 = vpop.f32.mrf.mxu0 }
  0xfc   :  { %v2091_v5 = vpop.f32.mrf.mxu1 }
  0xfd   :  { %v2093_v6 = vpop.f32.mrf.mxu0 }
  0xfe   :  { %v2095_v7 = vpop.f32.mrf.mxu1 }
  0xff   :  { %v2097_v8 = vpop.f32.mrf.mxu0 }
 0x100   :  { %v2099_v9 = vpop.f32.mrf.mxu1 }
 0x101   :  { %v2101_v10 = vpop.f32.mrf.mxu0 }
 0x102   :  { %v2103_v11 = vpop.f32.mrf.mxu1 }
 0x103   :  { %v2105_v12 = vpop.f32.mrf.mxu0 }
 0x104   :  { %v2107_v13 = vpop.f32.mrf.mxu1 }
 0x105   :  { %v2109_v14 = vpop.f32.mrf.mxu0 }
 0x106   :  { %v2111_v15 = vpop.f32.mrf.mxu1 }
 0x107   :  { %v2113_v16 = vpop.f32.mrf.mxu0 }
 0x108   :  { %v2115_v17 = vpop.f32.mrf.mxu1 }
 0x109   :  { %v2117_v18 = vpop.f32.mrf.mxu0 }
 0x10a   :  { %v2119_v19 = vpop.f32.mrf.mxu1 }
 0x10b   :  { %v2121_v20 = vpop.f32.mrf.mxu0 }
 0x10c   :  { %v2123_v21 = vpop.f32.mrf.mxu1 }
 0x10d   :  { %v2125_v22 = vpop.f32.mrf.mxu0 }
 0x10e   :  { %v2127_v23 = vpop.f32.mrf.mxu1 }
 0x10f   :  { %v2129_v24 = vpop.f32.mrf.mxu0 }
 0x110   :  { %2267 = vst [vmem:[#allocation2_spill] sm:$0xff] %v2129_v24  ;;  %v2131_v25 = vpop.f32.mrf.mxu1  ;;  %v1417_v24 = vadd.f32 %v1416_v54, %v1415_v52  ;;  %v1420_v52 = vadd.f32 %v2069_v58, %v2065_v56  ;;  %v1481_v56 = vadd.f32 %v2079_v63, %v2075_v61  ;;  %v1426_v61 = vadd.f32 %v2085_v2, %v2081_v0 }
 0x111   :  { %2268 = vst [vmem:[#allocation3_spill] sm:$0xff] %v2131_v25  ;;  %v2133_v26 = vpop.f32.mrf.mxu0  ;;  %v1487_v0 = vadd.f32 %v2095_v7, %v2091_v5  ;;  %v1432_v5 = vadd.f32 %v2101_v10, %v2097_v8  ;;  %v1493_v8 = vadd.f32 %v2111_v15, %v2107_v13  ;;  %v1438_v13 = vadd.f32 %v2117_v18, %v2113_v16 }
 0x112   :  { %2269 = vst [vmem:[#allocation4_spill] sm:$0xff] %v2133_v26  ;;  %v2135_v27 = vpop.f32.mrf.mxu1 }
 0x113   :  { %2270 = vst [vmem:[#allocation5_spill] sm:$0xff] %v2135_v27  ;;  %v2137_v28 = vpop.f32.mrf.mxu0 }
 0x114   :  { %2271 = vst [vmem:[#allocation6_spill] sm:$0xff] %v2137_v28  ;;  %v2139_v29 = vpop.f32.mrf.mxu1 }
 0x115   :  { %2272 = vst [vmem:[#allocation7_spill] sm:$0xff] %v2139_v29  ;;  %v2141_v30 = vpop.f32.mrf.mxu0 }
 0x116   :  { %2273 = vst [vmem:[#allocation8_spill] sm:$0xff] %v2141_v30  ;;  %v2143_v31 = vpop.f32.mrf.mxu1 }
 0x117   :  { %2274 = vst [vmem:[#allocation9_spill] sm:$0xff] %v2143_v31  ;;  %v1448_v32 = vpop.f32.mrf.mxu0  ;;  %v1475_v31 = vadd.f32 %v1474_v55, %v1473_v53  ;;  %v1478_v53 = vadd.f32 %v2071_v59, %v2067_v57 }
 0x118   :  { %v1506_v33 = vpop.f32.mrf.mxu1 }
 0x119   :  { %v1449_v34 = vpop.f32.mrf.mxu0  ;;  %v972_v33 = vadd.f32 %v1472_v43, %v1414_v42  ;;  %v977_v50 = vadd.f32 %v1475_v31, %v1417_v24  ;;  %v980_v58 = vadd.f32 %v1478_v53, %v1420_v52 }
 0x11a   :  { %v1507_v37 = vpop.f32.mrf.mxu1 }
 0x11b   :  { %v1525_v38 = vpop.f32.mrf.mxu0 }
 0x11c   :  { %v1583_v39 = vpop.f32.mrf.mxu1 }
 0x11d   :  { %v1526_v40 = vpop.f32.mrf.mxu0 }
 0x11e   :  { %v1527_v27 = vadd.f32 %v1526_v40, %v1525_v38  ;;  %v1584_v28 = vpop.f32.mrf.mxu1 }
 0x11f   :  { %v1528_v25 = vpop.f32.mrf.mxu0  ;;  %v1585_v26 = vadd.f32 %v1584_v28, %v1583_v39 }
 0x120   :  { %v1057_v29 = vadd.f32 %v1527_v27, %v969_v41  ;;  %v1586_v30 = vpop.f32.mrf.mxu1 }
 0x121   :  { %v1529_v32 = vpop.f32.mrf.mxu0 }
 0x122   :  { %v2145_v34 = vadd.f32 %v1585_v26, %v1057_v29  ;;  %v1530_v44 = vadd.f32 %v1529_v32, %v1528_v25  ;;  %v1587_v45 = vpop.f32.mrf.mxu1  ;;  %v1423_v29 = vadd.f32 %v2077_v62, %v2073_v60  ;;  %v1484_v62 = vadd.f32 %v2087_v3, %v2083_v1 }
 0x123   :  { %v1531_v46 = vpop.f32.mrf.mxu0  ;;  %v1588_v48 = vadd.f32 %v1587_v45, %v1586_v30 }
 0x124   :  { %1198 = vst [vmem:[%s2265_s2] sm:$0xff] %v2145_v34  ;;  %v1060_v47 = vadd.f32 %v1530_v44, %v972_v33  ;;  %v1589_v49 = vpop.f32.mrf.mxu1  ;;  %v985_v39 = vadd.f32 %v1481_v56, %v1423_v29  ;;  %v1429_v44 = vadd.f32 %v2093_v6, %v2089_v4  ;;  %v988_v2 = vadd.f32 %v1484_v62, %v1426_v61 }
 0x125   :  { %v1532_v51 = vpop.f32.mrf.mxu0  ;;  %v1490_v6 = vadd.f32 %v2103_v11, %v2099_v9 }
 0x126   :  { %v2155_v54 = vadd.f32 %v1588_v48, %v1060_v47  ;;  %v1533_v55 = vadd.f32 %v1532_v51, %v1531_v46  ;;  %v1590_v25 = vpop.f32.mrf.mxu1  ;;  %v993_v51 = vadd.f32 %v1487_v0, %v1429_v44 }
 0x127   :  { %v1534_v26 = vpop.f32.mrf.mxu0  ;;  %v1591_v28 = vadd.f32 %v1590_v25, %v1589_v49  ;;  %v996_v10 = vadd.f32 %v1490_v6, %v1432_v5  ;;  %v2278_v5 = vld [vmem:[#allocation5_spill] sm:$0xff] }
 0x128   :  { %1199 = vst [vmem:[%s2265_s2 + $0x8] sm:$0xff] %v2155_v54  ;;  %v1065_v27 = vadd.f32 %v1533_v55, %v977_v50  ;;  %v1592_v24 = vpop.f32.mrf.mxu1  ;;  %v1230_v56 = vmul.f32 %v2155_v54, %v2155_v54 }
 0x129   :  { %v1535_v57 = vpop.f32.mrf.mxu0 }
 0x12a   :  { %v2165_v59 = vadd.f32 %v1591_v28, %v1065_v27  ;;  %v1536_v30 = vadd.f32 %v1535_v57, %v1534_v26  ;;  %v1593_v31 = vpop.f32.mrf.mxu1  ;;  %v1435_v28 = vadd.f32 %v2109_v14, %v2105_v12  ;;  %v1229_v14 = vmul.f32 %v2145_v34, %v2145_v34 }
 0x12b   :  { %v1537_v35 = vpop.f32.mrf.mxu0  ;;  %v1594_v37 = vadd.f32 %v1593_v31, %v1592_v24 }
 0x12c   :  { %1200 = vst [vmem:[%s2265_s2 + $0x10] sm:$0xff] %v2165_v59  ;;  %v1068_v36 = vadd.f32 %v1536_v30, %v980_v58  ;;  %v1595_v38 = vpop.f32.mrf.mxu1  ;;  %v1001_v12 = vadd.f32 %v1493_v8, %v1435_v28  ;;  %v1231_v15 = vmul.f32 %v2165_v59, %v2165_v59  ;;  %v1242_v61 = vadd.f32 %v1230_v56, %v1229_v14 }
 0x12d   :  { %v1538_v60 = vpop.f32.mrf.mxu0 }
 0x12e   :  { %v2175_v63 = vadd.f32 %v1594_v37, %v1068_v36  ;;  %v1539_v40 = vadd.f32 %v1538_v60, %v1537_v35  ;;  %v1596_v41 = vpop.f32.mrf.mxu1  ;;  %v1496_v36 = vadd.f32 %v2119_v19, %v2115_v17  ;;  %v1211_v37 = vadd.f32 %v2155_v54, %v2145_v34 }
 0x12f   :  { %v1540_v42 = vpop.f32.mrf.mxu0  ;;  %v1597_v32 = vadd.f32 %v1596_v41, %v1595_v38  ;;  %v1441_v19 = vadd.f32 %v2125_v22, %v2121_v20  ;;  %v1499_v34 = vadd.f32 %v2127_v23, %v2123_v21  ;;  %v1243_v54 = vadd.f32 %v1242_v61, %v1231_v15 }
 0x130   :  { %1201 = vst [vmem:[%s2265_s2 + $0x18] sm:$0xff] %v2175_v63  ;;  %v1073_v43 = vadd.f32 %v1539_v40, %v985_v39  ;;  %v1598_v33 = vpop.f32.mrf.mxu1  ;;  %v1232_v16 = vmul.f32 %v2175_v63, %v2175_v63  ;;  %v1212_v62 = vadd.f32 %v1211_v37, %v2165_v59 }
 0x131   :  { %v1541_v1 = vpop.f32.mrf.mxu0 }
 0x132   :  { %v2185_v3 = vadd.f32 %v1597_v32, %v1073_v43  ;;  %v1542_v45 = vadd.f32 %v1541_v1, %v1540_v42  ;;  %v1599_v46 = vpop.f32.mrf.mxu1  ;;  %v1004_v32 = vadd.f32 %v1496_v36, %v1438_v13  ;;  %v1213_v59 = vadd.f32 %v1212_v62, %v2175_v63  ;;  %v2276_v63 = vld [vmem:[#allocation4_spill] sm:$0xff] }
 0x133   :  { %v1543_v47 = vpop.f32.mrf.mxu0  ;;  %v1600_v49 = vadd.f32 %v1599_v46, %v1598_v33  ;;  %v1244_v1 = vadd.f32 %v1243_v54, %v1232_v16  ;;  %v1009_v46 = vadd.f32 %v1499_v34, %v1441_v19 }
 0x134   :  { %1202 = vst [vmem:[%s2265_s2 + $0x20] sm:$0xff] %v2185_v3  ;;  %v1076_v48 = vadd.f32 %v1542_v45, %v988_v2  ;;  %v1601_v50 = vpop.f32.mrf.mxu1  ;;  %v1233_v42 = vmul.f32 %v2185_v3, %v2185_v3  ;;  %v1214_v20 = vadd.f32 %v1213_v59, %v2185_v3 }
 0x135   :  { %v1544_v4 = vpop.f32.mrf.mxu0 }
 0x136   :  { %v2195_v7 = vadd.f32 %v1600_v49, %v1076_v48  ;;  %v1545_v52 = vadd.f32 %v1544_v4, %v1543_v47  ;;  %v1602_v53 = vpop.f32.mrf.mxu1  ;;  %v2275_v47 = vld [vmem:[#allocation2_spill] sm:$0xff]  ;;  %v1245_v49 = vadd.f32 %v1244_v1, %v1233_v42  ;;  %v2277_v4 = vld [vmem:[#allocation3_spill] sm:$0xff] }
 0x137   :  { %v1546_v55 = vpop.f32.mrf.mxu0  ;;  %v1603_v26 = vadd.f32 %v1602_v53, %v1601_v50  ;;  %v1444_v48 = vadd.f32 %v2276_v63, %v2275_v47  ;;  %v1502_v6 = vadd.f32 %v2278_v5, %v2277_v4 }
 0x138   :  { %1203 = vst [vmem:[%s2265_s2 + $0x28] sm:$0xff] %v2195_v7  ;;  %v1081_v25 = vadd.f32 %v1545_v52, %v993_v51  ;;  %v1604_v27 = vpop.f32.mrf.mxu1  ;;  %v1234_v2 = vmul.f32 %v2195_v7, %v2195_v7  ;;  %v1215_v52 = vadd.f32 %v1214_v20, %v2195_v7 }
 0x139   :  { %v1547_v9 = vpop.f32.mrf.mxu0  ;;  %v1012_v13 = vadd.f32 %v1502_v6, %v1444_v48 }
 0x13a   :  { %v1169_v11 = vadd.f32 %v1603_v26, %v1081_v25  ;;  %v1548_v24 = vadd.f32 %v1547_v9, %v1546_v55  ;;  %v1605_v29 = vpop.f32.mrf.mxu1  ;;  %v1246_v25 = vadd.f32 %v1245_v49, %v1234_v2 }
 0x13b   :  { %v1549_v57 = vpop.f32.mrf.mxu0  ;;  %v1606_v30 = vadd.f32 %v1605_v29, %v1604_v27  ;;  %v2280_v29 = vld [vmem:[#allocation8_spill] sm:$0xff] }
 0x13c   :  { %1204 = vst [vmem:[%s2265_s2 + $0x30] sm:$0xff] %v1169_v11  ;;  %v1084_v58 = vadd.f32 %v1548_v24, %v996_v10  ;;  %v1607_v31 = vpop.f32.mrf.mxu1  ;;  %v1235_v50 = vmul.f32 %v1169_v11, %v1169_v11  ;;  %v1216_v28 = vadd.f32 %v1215_v52, %v1169_v11  ;;  %v2279_v24 = vld [vmem:[#allocation6_spill] sm:$0xff] }
 0x13d   :  { %v1550_v35 = vpop.f32.mrf.mxu0  ;;  %v1447_v56 = vadd.f32 %v2280_v29, %v2279_v24 }
 0x13e   :  { %v1172_v38 = vadd.f32 %v1606_v30, %v1084_v58  ;;  %v1551_v39 = vadd.f32 %v1550_v35, %v1549_v57  ;;  %v1608_v60 = vpop.f32.mrf.mxu1  ;;  %v2281_v57 = vld [vmem:[#allocation7_spill] sm:$0xff]  ;;  %v2282_v58 = vld [vmem:[#allocation9_spill] sm:$0xff]  ;;  %v1247_v30 = vadd.f32 %v1246_v25, %v1235_v50 }
 0x13f   :  { %v1552_v18 = vpop.f32.mrf.mxu0  ;;  %v1609_v41 = vadd.f32 %v1608_v60, %v1607_v31  ;;  %v1505_v7 = vadd.f32 %v2282_v58, %v2281_v57 }
 0x140   :  { %1205 = vst [vmem:[%s2265_s2 + $0x38] sm:$0xff] %v1172_v38  ;;  %v1089_v40 = vadd.f32 %v1551_v39, %v1001_v12  ;;  %v1610_v17 = vpop.f32.mrf.mxu1  ;;  %v1236_v26 = vmul.f32 %v1172_v38, %v1172_v38  ;;  %v1217_v14 = vadd.f32 %v1216_v28, %v1172_v38 }
 0x141   :  { %v1553_v43 = vpop.f32.mrf.mxu0  ;;  %v1017_v62 = vadd.f32 %v1505_v7, %v1447_v56 }
 0x142   :  { %v1177_v33 = vadd.f32 %v1609_v41, %v1089_v40  ;;  %v1554_v44 = vadd.f32 %v1553_v43, %v1552_v18  ;;  %v1611_v0 = vpop.f32.mrf.mxu1  ;;  %v1248_v36 = vadd.f32 %v1247_v30, %v1236_v26 }
 0x143   :  { %v1555_v45 = vpop.f32.mrf.mxu0  ;;  %v1612_v22 = vadd.f32 %v1611_v0, %v1610_v17 }
 0x144   :  { %1206 = vst [vmem:[%s2265_s2 + $0x40] sm:$0xff] %v1177_v33  ;;  %v1092_v21 = vadd.f32 %v1554_v44, %v1004_v32  ;;  %v1613_v23 = vpop.f32.mrf.mxu1  ;;  %v1237_v31 = vmul.f32 %v1177_v33, %v1177_v33  ;;  %v1218_v60 = vadd.f32 %v1217_v14, %v1177_v33 }
 0x145   :  { %v1556_v51 = vpop.f32.mrf.mxu0 }
 0x146   :  { %v1180_v3 = vadd.f32 %v1612_v22, %v1092_v21  ;;  %v1557_v53 = vadd.f32 %v1556_v51, %v1555_v45  ;;  %v1614_v55 = vpop.f32.mrf.mxu1  ;;  %v1249_v40 = vadd.f32 %v1248_v36, %v1237_v31 }
 0x147   :  { %v1558_v27 = vpop.f32.mrf.mxu0  ;;  %v1615_v9 = vadd.f32 %v1614_v55, %v1613_v23 }
 0x148   :  { %1207 = vst [vmem:[%s2265_s2 + $0x48] sm:$0xff] %v1180_v3  ;;  %v1097_v8 = vadd.f32 %v1557_v53, %v1009_v46  ;;  %v1616_v10 = vpop.f32.mrf.mxu1  ;;  %v1238_v37 = vmul.f32 %v1180_v3, %v1180_v3  ;;  %v1219_v17 = vadd.f32 %v1218_v60, %v1180_v3 }
 0x149   :  { %v1559_v12 = vpop.f32.mrf.mxu0 }
 0x14a   :  { %v1185_v15 = vadd.f32 %v1615_v9, %v1097_v8  ;;  %v1560_v11 = vadd.f32 %v1559_v12, %v1558_v27  ;;  %v1617_v35 = vpop.f32.mrf.mxu1  ;;  %v1250_v42 = vadd.f32 %v1249_v40, %v1238_v37 }
 0x14b   :  { %v1561_v39 = vpop.f32.mrf.mxu0  ;;  %v1618_v16 = vadd.f32 %v1617_v35, %v1616_v10 }
 0x14c   :  { %1208 = vst [vmem:[%s2265_s2 + $0x50] sm:$0xff] %v1185_v15  ;;  %v1100_v61 = vadd.f32 %v1560_v11, %v1012_v13  ;;  %v1619_v18 = vpop.f32.mrf.mxu1  ;;  %v1239_v19 = vmul.f32 %v1185_v15, %v1185_v15  ;;  %v1220_v32 = vadd.f32 %v1219_v17, %v1185_v15 }
 0x14d   :  { %v1562_v41 = vpop.f32.mrf.mxu0 }
 0x14e   :  { %v1188_v38 = vadd.f32 %v1618_v16, %v1100_v61  ;;  %v1563_v34 = vadd.f32 %v1562_v41, %v1561_v39  ;;  %v1620_v54 = vpop.f32.mrf.mxu1  ;;  %v1251_v2 = vadd.f32 %v1250_v42, %v1239_v19 }
 0x14f   :  { %v1564_v43 = vpop.f32.mrf.mxu0  ;;  %v1621_v44 = vadd.f32 %v1620_v54, %v1619_v18 }
 0x150   :  { %1209 = vst [vmem:[%s2265_s2 + $0x58] sm:$0xff] %v1188_v38  ;;  %v1240_v59 = vmul.f32 %v1188_v38, %v1188_v38  ;;  %v1105_v33 = vadd.f32 %v1563_v34, %v1017_v62  ;;  %v1622_v0 = vpop.f32.mrf.mxu1  ;;  %v1221_v45 = vadd.f32 %v1220_v32, %v1188_v38 }
 0x151   :  { %v1565_v1 = vpop.f32.mrf.mxu0 }
 0x152   :  { %v1193_v20 = vadd.f32 %v1621_v44, %v1105_v33  ;;  %v1623_v21 = vpop.f32.mrf.mxu1  ;;  %v1252_v22 = vadd.f32 %v1251_v2, %v1240_v59 }
 0x154   :  { %1210 = vst [vmem:[%s2265_s2 + $0x60] sm:$0xff] %v1193_v20  ;;  %v1222_v23 = vadd.f32 %v1221_v45, %v1193_v20  ;;  %v1241_v46 = vmul.f32 %v1193_v20, %v1193_v20 }
 0x156   :  { %v1223_v47 = vrot.slane %v1222_v23, 4  ;;  %v1253_v63 = vadd.f32 %v1252_v22, %v1241_v46 }
 0x158   :  { %v1224_v48 = vadd.f32 %v1223_v47, %v1222_v23  ;;  %v1254_v49 = vrot.slane %v1253_v63, 4 }
 0x15a   :  { %v1225_v50 = vrot.slane %v1224_v48, 2  ;;  %v1255_v51 = vadd.f32 %v1254_v49, %v1253_v63 }
 0x15c   :  { %v1226_v4 = vadd.f32 %v1225_v50, %v1224_v48  ;;  %v1256_v5 = vrot.slane %v1255_v51, 2 }
 0x15e   :  { %v1227_v6 = vrot.slane %v1226_v4, 1  ;;  %v1257_v52 = vadd.f32 %v1256_v5, %v1255_v51 }
 0x160   :  { %v1258_v3 = vrot.slane %v1257_v52, 1  ;;  %v1228_v53 = vadd.f32 %v1227_v6, %v1226_v4 }
 0x162   :  { %v1259_v55 = vadd.f32 %v1258_v3, %v1257_v52 }
 0x164   :  { %v1261_v25 = vsel %vm1260_vm0, %v1228_v53, %v1259_v55 }
 0x165   :  { %v1263_v26 = vsel %vm1262_vm1, %v1261_v25, 0.0 }
 0x166   :  { %1264 = vst [vmem:[%s2266_s3] sm:$0xff] %v1263_v26 }

// kernel: generator_forward.27
= control target key start
LH: loop header
LB: loop body
LE: loop exit
PB: predicated region body
PF: predicated region fallthrough
CT: control target
= control target key end

     0   :  { %s701_s0 = inlined_call_operand.vmem [shape: f32[392,128], index: 0, kind: input, shape index: {}]   ;;  %s702_s1 = inlined_call_operand.vmem [shape: f32[1,128], index: 1, kind: input, shape index: {}]   ;;  %s703_s2 = inlined_call_operand.vmem [shape: f32[1,128], index: 2, kind: input, shape index: {}]   ;;  %s704_s3 = inlined_call_operand.vmem [shape: f32[392,128], index: 3, kind: output, shape index: {}]  }
   0x1   :  { %v14_v0 = vld [vmem:[%s701_s0] sm:$0xff]  ;;  %v15_v4 = vld [vmem:[%s701_s0 + $0x8] sm:$0xff]  ;;  %v16_v5 = vld [vmem:[%s701_s0 + $0x10] sm:$0xff] }
   0x2   :  { %v305_v1 = vld [vmem:[%s702_s1] ss:$0 sm:$0xff]  ;;  %v17_v6 = vld [vmem:[%s701_s0 + $0x18] sm:$0xff]  ;;  %v19_v11 = vld [vmem:[%s701_s0 + $0x28] sm:$0xff] }
   0x3   :  { %v310_v2 = vld [vmem:[%s703_s2] ss:$0 sm:$0xff]  ;;  %v70_v3 = vmul.f32 %v305_v1, %v14_v0  ;;  %v71_v7 = vmul.f32 %v305_v1, %v15_v4  ;;  %v72_v8 = vmul.f32 %v305_v1, %v16_v5  ;;  %v73_v9 = vmul.f32 %v305_v1, %v17_v6  ;;  %v20_v12 = vld [vmem:[%s701_s0 + $0x30] sm:$0xff]  ;;  %v21_v17 = vld [vmem:[%s701_s0 + $0x38] sm:$0xff] }
   0x4   :  { %v18_v10 = vld [vmem:[%s701_s0 + $0x20] sm:$0xff]  ;;  %v75_v15 = vmul.f32 %v305_v1, %v19_v11  ;;  %v76_v16 = vmul.f32 %v305_v1, %v20_v12  ;;  %v77_v21 = vmul.f32 %v305_v1, %v21_v17  ;;  %v23_v27 = vld [vmem:[%s701_s0 + $0x48] sm:$0xff]  ;;  %v24_v28 = vld [vmem:[%s701_s0 + $0x50] sm:$0xff] }
   0x5   :  { %v126_v13 = vadd.f32 %v310_v2, %v70_v3  ;;  %v74_v14 = vmul.f32 %v305_v1, %v18_v10  ;;  %v127_v18 = vadd.f32 %v310_v2, %v71_v7  ;;  %v128_v19 = vadd.f32 %v310_v2, %v72_v8  ;;  %v22_v22 = vld [vmem:[%s701_s0 + $0x40] sm:$0xff]  ;;  %v25_v29 = vld [vmem:[%s701_s0 + $0x58] sm:$0xff]  ;;  %v27_v35 = vld [vmem:[%s701_s0 + $0x68] sm:$0xff] }
   0x6   :  { %v129_v20 = vadd.f32 %v310_v2, %v73_v9  ;;  %v131_v25 = vadd.f32 %v310_v2, %v75_v15  ;;  %v132_v26 = vadd.f32 %v310_v2, %v76_v16  ;;  %v133_v33 = vadd.f32 %v310_v2, %v77_v21  ;;  %v26_v34 = vld [vmem:[%s701_s0 + $0x60] sm:$0xff]  ;;  %v28_v36 = vld [vmem:[%s701_s0 + $0x70] sm:$0xff]  ;;  %v29_v41 = vld [vmem:[%s701_s0 + $0x78] sm:$0xff] }
   0x7   :  { %v175_v23 = vmax.f32 %v126_v13, 0.0  ;;  %v130_v24 = vadd.f32 %v310_v2, %v74_v14  ;;  %v176_v30 = vmax.f32 %v127_v18, 0.0  ;;  %v177_v31 = vmax.f32 %v128_v19, 0.0  ;;  %v30_v54 = vld [vmem:[%s701_s0 + $0x80] sm:$0xff]  ;;  %v31_v59 = vld [vmem:[%s701_s0 + $0x88] sm:$0xff]  ;;  %v32_v60 = vld [vmem:[%s701_s0 + $0x90] sm:$0xff] }
   0x8   :  { %v178_v32 = vmax.f32 %v129_v20, 0.0  ;;  %v180_v38 = vmax.f32 %v131_v25, 0.0  ;;  %v181_v39 = vmax.f32 %v132_v26, 0.0  ;;  %v78_v40 = vmul.f32 %v305_v1, %v22_v22  ;;  %v33_v61 = vld [vmem:[%s701_s0 + $0x98] sm:$0xff]  ;;  %v34_v4 = vld [vmem:[%s701_s0 + $0xa0] sm:$0xff]  ;;  %v35_v5 = vld [vmem:[%s701_s0 + $0xa8] sm:$0xff] }
   0x9   :  { %224 = vst [vmem:[%s704_s3] sm:$0xff] %v175_v23  ;;  %v179_v37 = vmax.f32 %v130_v24, 0.0  ;;  %225 = vst [vmem:[%s704_s3 + $0x8] sm:$0xff] %v176_v30  ;;  %v182_v42 = vmax.f32 %v133_v33, 0.0  ;;  %v79_v43 = vmul.f32 %v305_v1, %v23_v27  ;;  %v80_v44 = vmul.f32 %v305_v1, %v24_v28  ;;  %v36_v6 = vld [vmem:[%s701_s0 + $0xb0] sm:$0xff]  ;;  %v37_v11 = vld [vmem:[%s701_s0 + $0xb8] sm:$0xff] }
   0xa   :  { %226 = vst [vmem:[%s704_s3 + $0x10] sm:$0xff] %v177_v31  ;;  %227 = vst [vmem:[%s704_s3 + $0x18] sm:$0xff] %v178_v32  ;;  %v81_v45 = vmul.f32 %v305_v1, %v25_v29  ;;  %v134_v46 = vadd.f32 %v310_v2, %v78_v40  ;;  %v82_v47 = vmul.f32 %v305_v1, %v26_v34  ;;  %v38_v24 = vld [vmem:[%s701_s0 + $0xc0] sm:$0xff]  ;;  %v39_v29 = vld [vmem:[%s701_s0 + $0xc8] sm:$0xff] }
   0xb   :  { %228 = vst [vmem:[%s704_s3 + $0x20] sm:$0xff] %v179_v37  ;;  %229 = vst [vmem:[%s704_s3 + $0x28] sm:$0xff] %v180_v38  ;;  %v83_v48 = vmul.f32 %v305_v1, %v27_v35  ;;  %v84_v49 = vmul.f32 %v305_v1, %v28_v36  ;;  %v135_v50 = vadd.f32 %v310_v2, %v79_v43  ;;  %v40_v30 = vld [vmem:[%s701_s0 + $0xd0] sm:$0xff]  ;;  %v41_v31 = vld [vmem:[%s701_s0 + $0xd8] sm:$0xff] }
   0xc   :  { %230 = vst [vmem:[%s704_s3 + $0x30] sm:$0xff] %v181_v39  ;;  %231 = vst [vmem:[%s704_s3 + $0x38] sm:$0xff] %v182_v42  ;;  %v136_v51 = vadd.f32 %v310_v2, %v80_v44  ;;  %v137_v52 = vadd.f32 %v310_v2, %v81_v45  ;;  %v85_v53 = vmul.f32 %v305_v1, %v29_v41  ;;  %v183_v55 = vmax.f32 %v134_v46, 0.0  ;;  %v42_v36 = vld [vmem:[%s701_s0 + $0xe0] sm:$0xff]  ;;  %v43_v37 = vld [vmem:[%s701_s0 + $0xe8] sm:$0xff] }
   0xd   :  { %v138_v56 = vadd.f32 %v310_v2, %v82_v47  ;;  %v139_v57 = vadd.f32 %v310_v2, %v83_v48  ;;  %v140_v58 = vadd.f32 %v310_v2, %v84_v49  ;;  %v184_v62 = vmax.f32 %v135_v50, 0.0  ;;  %v44_v38 = vld [vmem:[%s701_s0 + $0xf0] sm:$0xff]  ;;  %v45_v43 = vld [vmem:[%s701_s0 + $0xf8] sm:$0xff] }
   0xe   :  { %v185_v63 = vmax.f32 %v136_v51, 0.0  ;;  %v186_v0 = vmax.f32 %v137_v52, 0.0  ;;  %v141_v3 = vadd.f32 %v310_v2, %v85_v53  ;;  %232 = vst [vmem:[%s704_s3 + $0x40] sm:$0xff] %v183_v55  ;;  %v86_v10 = vmul.f32 %v305_v1, %v30_v54 }
   0xf   :  { %v187_v7 = vmax.f32 %v138_v56, 0.0  ;;  %v188_v8 = vmax.f32 %v139_v57, 0.0  ;;  %v189_v9 = vmax.f32 %v140_v58, 0.0  ;;  %233 = vst [vmem:[%s704_s3 + $0x48] sm:$0xff] %v184_v62  ;;  %v87_v13 = vmul.f32 %v305_v1, %v31_v59  ;;  %v46_v56 = vld [vmem:[%s701_s0 + $0x100] sm:$0xff]  ;;  %v48_v62 = vld [vmem:[%s701_s0 + $0x110] sm:$0xff] }
  0x10   :  { %234 = vst [vmem:[%s704_s3 + $0x50] sm:$0xff] %v185_v63  ;;  %235 = vst [vmem:[%s704_s3 + $0x58] sm:$0xff] %v186_v0  ;;  %v190_v12 = vmax.f32 %v141_v3, 0.0  ;;  %v88_v14 = vmul.f32 %v305_v1, %v32_v60  ;;  %v89_v15 = vmul.f32 %v305_v1, %v33_v61  ;;  %v142_v16 = vadd.f32 %v310_v2, %v86_v10  ;;  %v47_v61 = vld [vmem:[%s701_s0 + $0x108] sm:$0xff]  ;;  %v49_v63 = vld [vmem:[%s701_s0 + $0x118] sm:$0xff] }
  0x11   :  { %236 = vst [vmem:[%s704_s3 + $0x60] sm:$0xff] %v187_v7  ;;  %237 = vst [vmem:[%s704_s3 + $0x68] sm:$0xff] %v188_v8  ;;  %v90_v17 = vmul.f32 %v305_v1, %v34_v4  ;;  %v91_v18 = vmul.f32 %v305_v1, %v35_v5  ;;  %v92_v19 = vmul.f32 %v305_v1, %v36_v6  ;;  %v50_v6 = vld [vmem:[%s701_s0 + $0x120] sm:$0xff]  ;;  %v51_v7 = vld [vmem:[%s701_s0 + $0x128] sm:$0xff] }
  0x12   :  { %238 = vst [vmem:[%s704_s3 + $0x70] sm:$0xff] %v189_v9  ;;  %239 = vst [vmem:[%s704_s3 + $0x78] sm:$0xff] %v190_v12  ;;  %v143_v20 = vadd.f32 %v310_v2, %v87_v13  ;;  %v144_v21 = vadd.f32 %v310_v2, %v88_v14  ;;  %v145_v22 = vadd.f32 %v310_v2, %v89_v15  ;;  %v191_v25 = vmax.f32 %v142_v16, 0.0  ;;  %v52_v8 = vld [vmem:[%s701_s0 + $0x130] sm:$0xff]  ;;  %v53_v13 = vld [vmem:[%s701_s0 + $0x138] sm:$0xff] }
  0x13   :  { %v93_v23 = vmul.f32 %v305_v1, %v37_v11  ;;  %v146_v26 = vadd.f32 %v310_v2, %v90_v17  ;;  %v147_v27 = vadd.f32 %v310_v2, %v91_v18  ;;  %v148_v28 = vadd.f32 %v310_v2, %v92_v19 }
  0x14   :  { %v192_v32 = vmax.f32 %v143_v20, 0.0  ;;  %v193_v33 = vmax.f32 %v144_v21, 0.0  ;;  %v194_v34 = vmax.f32 %v145_v22, 0.0  ;;  %240 = vst [vmem:[%s704_s3 + $0x80] sm:$0xff] %v191_v25  ;;  %v94_v42 = vmul.f32 %v305_v1, %v38_v24 }
  0x15   :  { %v149_v35 = vadd.f32 %v310_v2, %v93_v23  ;;  %v195_v39 = vmax.f32 %v146_v26, 0.0  ;;  %v196_v40 = vmax.f32 %v147_v27, 0.0  ;;  %v197_v41 = vmax.f32 %v148_v28, 0.0  ;;  %v54_v26 = vld [vmem:[%s701_s0 + $0x140] sm:$0xff] }
  0x16   :  { %241 = vst [vmem:[%s704_s3 + $0x88] sm:$0xff] %v192_v32  ;;  %242 = vst [vmem:[%s704_s3 + $0x90] sm:$0xff] %v193_v33  ;;  %v95_v45 = vmul.f32 %v305_v1, %v39_v29  ;;  %v96_v46 = vmul.f32 %v305_v1, %v40_v30  ;;  %v97_v47 = vmul.f32 %v305_v1, %v41_v31  ;;  %v55_v31 = vld [vmem:[%s701_s0 + $0x148] sm:$0xff]  ;;  %v56_v32 = vld [vmem:[%s701_s0 + $0x150] sm:$0xff] }
  0x17   :  { %243 = vst [vmem:[%s704_s3 + $0x98] sm:$0xff] %v194_v34  ;;  %v198_v44 = vmax.f32 %v149_v35, 0.0  ;;  %244 = vst [vmem:[%s704_s3 + $0xa0] sm:$0xff] %v195_v39  ;;  %v150_v48 = vadd.f32 %v310_v2, %v94_v42  ;;  %v98_v49 = vmul.f32 %v305_v1, %v42_v36  ;;  %v99_v50 = vmul.f32 %v305_v1, %v43_v37  ;;  %v57_v33 = vld [vmem:[%s701_s0 + $0x158] sm:$0xff]  ;;  %v59_v39 = vld [vmem:[%s701_s0 + $0x168] sm:$0xff] }
  0x18   :  { %245 = vst [vmem:[%s704_s3 + $0xa8] sm:$0xff] %v196_v40  ;;  %246 = vst [vmem:[%s704_s3 + $0xb0] sm:$0xff] %v197_v41  ;;  %v100_v51 = vmul.f32 %v305_v1, %v44_v38  ;;  %v151_v52 = vadd.f32 %v310_v2, %v95_v45  ;;  %v152_v53 = vadd.f32 %v310_v2, %v96_v46  ;;  %v58_v38 = vld [vmem:[%s701_s0 + $0x160] sm:$0xff]  ;;  %v60_v40 = vld [vmem:[%s701_s0 + $0x170] sm:$0xff] }
  0x19   :  { %247 = vst [vmem:[%s704_s3 + $0xb8] sm:$0xff] %v198_v44  ;;  %v153_v54 = vadd.f32 %v310_v2, %v97_v47  ;;  %v101_v55 = vmul.f32 %v305_v1, %v45_v43  ;;  %v199_v57 = vmax.f32 %v150_v48, 0.0  ;;  %v154_v58 = vadd.f32 %v310_v2, %v98_v49  ;;  %v61_v45 = vld [vmem:[%s701_s0 + $0x178] sm:$0xff] }
  0x1a   :  { %v155_v59 = vadd.f32 %v310_v2, %v99_v50  ;;  %v156_v60 = vadd.f32 %v310_v2, %v100_v51  ;;  %v200_v0 = vmax.f32 %v151_v52, 0.0  ;;  %v201_v3 = vmax.f32 %v152_v53, 0.0 }
  0x1b   :  { %v202_v4 = vmax.f32 %v153_v54, 0.0  ;;  %v157_v5 = vadd.f32 %v310_v2, %v101_v55  ;;  %248 = vst [vmem:[%s704_s3 + $0xc0] sm:$0xff] %v199_v57  ;;  %v203_v9 = vmax.f32 %v154_v58, 0.0  ;;  %v102_v12 = vmul.f32 %v305_v1, %v46_v56  ;;  %v62_v58 = vld [vmem:[%s701_s0 + $0x180] sm:$0xff] }
  0x1c   :  { %v204_v10 = vmax.f32 %v155_v59, 0.0  ;;  %v205_v11 = vmax.f32 %v156_v60, 0.0  ;;  %249 = vst [vmem:[%s704_s3 + $0xc8] sm:$0xff] %v200_v0  ;;  %250 = vst [vmem:[%s704_s3 + $0xd0] sm:$0xff] %v201_v3  ;;  %v103_v15 = vmul.f32 %v305_v1, %v47_v61  ;;  %v104_v16 = vmul.f32 %v305_v1, %v48_v62 }
  0x1d   :  { %251 = vst [vmem:[%s704_s3 + $0xd8] sm:$0xff] %v202_v4  ;;  %v206_v14 = vmax.f32 %v157_v5, 0.0  ;;  %v105_v17 = vmul.f32 %v305_v1, %v49_v63  ;;  %252 = vst [vmem:[%s704_s3 + $0xe0] sm:$0xff] %v203_v9  ;;  %v158_v18 = vadd.f32 %v310_v2, %v102_v12  ;;  %v106_v19 = vmul.f32 %v305_v1, %v50_v6 }
  0x1e   :  { %253 = vst [vmem:[%s704_s3 + $0xe8] sm:$0xff] %v204_v10  ;;  %254 = vst [vmem:[%s704_s3 + $0xf0] sm:$0xff] %v205_v11  ;;  %v107_v20 = vmul.f32 %v305_v1, %v51_v7  ;;  %v108_v21 = vmul.f32 %v305_v1, %v52_v8  ;;  %v159_v22 = vadd.f32 %v310_v2, %v103_v15 }
  0x1f   :  { %255 = vst [vmem:[%s704_s3 + $0xf8] sm:$0xff] %v206_v14  ;;  %v160_v23 = vadd.f32 %v310_v2, %v104_v16  ;;  %v161_v24 = vadd.f32 %v310_v2, %v105_v17  ;;  %v109_v25 = vmul.f32 %v305_v1, %v53_v13  ;;  %v207_v27 = vmax.f32 %v158_v18, 0.0 }
  0x20   :  { %v162_v28 = vadd.f32 %v310_v2, %v106_v19  ;;  %v163_v29 = vadd.f32 %v310_v2, %v107_v20  ;;  %v164_v30 = vadd.f32 %v310_v2, %v108_v21  ;;  %v208_v34 = vmax.f32 %v159_v22, 0.0 }
  0x21   :  { %v209_v35 = vmax.f32 %v160_v23, 0.0  ;;  %v210_v36 = vmax.f32 %v161_v24, 0.0  ;;  %v165_v37 = vadd.f32 %v310_v2, %v109_v25  ;;  %256 = vst [vmem:[%s704_s3 + $0x100] sm:$0xff] %v207_v27  ;;  %v110_v44 = vmul.f32 %v305_v1, %v54_v26 }
  0x22   :  { %v211_v41 = vmax.f32 %v162_v28, 0.0  ;;  %v212_v42 = vmax.f32 %v163_v29, 0.0  ;;  %v213_v43 = vmax.f32 %v164_v30, 0.0  ;;  %257 = vst [vmem:[%s704_s3 + $0x108] sm:$0xff] %v208_v34  ;;  %v111_v47 = vmul.f32 %v305_v1, %v55_v31 }
  0x23   :  { %258 = vst [vmem:[%s704_s3 + $0x110] sm:$0xff] %v209_v35  ;;  %259 = vst [vmem:[%s704_s3 + $0x118] sm:$0xff] %v210_v36  ;;  %v214_v46 = vmax.f32 %v165_v37, 0.0  ;;  %v112_v48 = vmul.f32 %v305_v1, %v56_v32  ;;  %v113_v49 = vmul.f32 %v305_v1, %v57_v33  ;;  %v166_v50 = vadd.f32 %v310_v2, %v110_v44 }
  0x24   :  { %260 = vst [vmem:[%s704_s3 + $0x120] sm:$0xff] %v211_v41  ;;  %261 = vst [vmem:[%s704_s3 + $0x128] sm:$0xff] %v212_v42  ;;  %v114_v51 = vmul.f32 %v305_v1, %v58_v38  ;;  %v115_v52 = vmul.f32 %v305_v1, %v59_v39  ;;  %v116_v53 = vmul.f32 %v305_v1, %v60_v40 }
  0x25   :  { %262 = vst [vmem:[%s704_s3 + $0x130] sm:$0xff] %v213_v43  ;;  %263 = vst [vmem:[%s704_s3 + $0x138] sm:$0xff] %v214_v46  ;;  %v167_v54 = vadd.f32 %v310_v2, %v111_v47  ;;  %v168_v55 = vadd.f32 %v310_v2, %v112_v48  ;;  %v169_v56 = vadd.f32 %v310_v2, %v113_v49  ;;  %v215_v59 = vmax.f32 %v166_v50, 0.0 }
  0x26   :  { %v117_v57 = vmul.f32 %v305_v1, %v61_v45  ;;  %v170_v60 = vadd.f32 %v310_v2, %v114_v51  ;;  %v171_v61 = vadd.f32 %v310_v2, %v115_v52  ;;  %v172_v62 = vadd.f32 %v310_v2, %v116_v53 }
  0x27   :  { %v216_v63 = vmax.f32 %v167_v54, 0.0  ;;  %v217_v0 = vmax.f32 %v168_v55, 0.0  ;;  %v218_v3 = vmax.f32 %v169_v56, 0.0  ;;  %264 = vst [vmem:[%s704_s3 + $0x140] sm:$0xff] %v215_v59  ;;  %v118_v8 = vmul.f32 %v305_v1, %v62_v58 }
  0x28   :  { %v173_v4 = vadd.f32 %v310_v2, %v117_v57  ;;  %v219_v5 = vmax.f32 %v170_v60, 0.0  ;;  %v220_v6 = vmax.f32 %v171_v61, 0.0  ;;  %v221_v7 = vmax.f32 %v172_v62, 0.0 }
  0x29   :  { %265 = vst [vmem:[%s704_s3 + $0x148] sm:$0xff] %v216_v63  ;;  %266 = vst [vmem:[%s704_s3 + $0x150] sm:$0xff] %v217_v0  ;;  %v174_v1 = vadd.f32 %v310_v2, %v118_v8 }
  0x2a   :  { %267 = vst [vmem:[%s704_s3 + $0x158] sm:$0xff] %v218_v3  ;;  %v222_v9 = vmax.f32 %v173_v4, 0.0  ;;  %268 = vst [vmem:[%s704_s3 + $0x160] sm:$0xff] %v219_v5 }
  0x2b   :  { %269 = vst [vmem:[%s704_s3 + $0x168] sm:$0xff] %v220_v6  ;;  %270 = vst [vmem:[%s704_s3 + $0x170] sm:$0xff] %v221_v7  ;;  %v223_v10 = vmax.f32 %v174_v1, 0.0 }
  0x2c   :  { %271 = vst [vmem:[%s704_s3 + $0x178] sm:$0xff] %v222_v9 }
  0x2d   :  { %272 = vst [vmem:[%s704_s3 + $0x180] sm:$0xff] %v223_v10 }

// kernel: squeeze.42
= control target key start
LH: loop header
LB: loop body
LE: loop exit
PB: predicated region body
PF: predicated region fallthrough
CT: control target
= control target key end

     0   :  { %vm174_vm0 = vcmask 998400   ;;  %s269_s8 = smov 118   ;;  %vm188_vm1 = vcmask 1014784   ;;  %vm201_vm2 = vcmask 1031168   ;;  %s270_s9 = smov 6   ;;  %vm8_vm3 = vcmask 113664   ;;  %s426_s0 = inlined_call_operand.vmem [shape: f32[392], index: 0, kind: input, shape index: {}]   ;;  %s427_s1 = inlined_call_operand.vmem [shape: f32[2,14,14], index: 1, kind: output, shape index: {}]  }
   0x1   :  { %v5_v0 = vld [vmem:[%s426_s0] sm:$0xf]  ;;  %s268_s0 = smov 116   ;;  %s271_s10 = smov 114   ;;  %vm178_vm4 = vcmask 48128   ;;  %vm181_vm5 = vcmask 113712  }
   0x2   :  { %6 = vst [vmem:[#allocation0] sm:$0xf] %v5_v0  ;;  %s272_s11 = smov 4   ;;  %s273_s12 = smov 2   ;;  %vm192_vm6 = vcmask 31744   ;;  %vm205_vm7 = vcmask 15360  }
   0x3   :  { %s274_s13 = smov 104   ;;  %s275_s14 = smov 102   ;;  %vm195_vm8 = vcmask 113696   ;;  %vm208_vm9 = vcmask 113680  }
   0x4   :  { %s276_s15 = smov 100   ;;  %s277_s16 = smov 90  }
   0x5   :  { %s278_s17 = smov 88   ;;  %s279_s18 = smov 86  }
   0x6   :  { %s280_s19 = smov 76   ;;  %s281_s20 = smov 74  }
   0x7   :  { %s282_s21 = smov 72   ;;  %s283_s22 = smov 62  }
   0x8   :  { %s284_s23 = smov 60   ;;  %s285_s24 = smov 58  }
   0x9   :  { %v18_v1 = vld [vmem:[#allocation0 + $0x1] sm:$0x1]   ;;  %v11_v2 = vld [vmem:[#allocation0 + $0x2] sm:$0x1]   ;;  %v173_v4 = vld [vmem:[#allocation0 + $0x3] sm:$0x1]  }
   0xa   :  { %v171_v3 = vld [vmem:[#allocation0 + $0x2] sm:$0x1]   ;;  %19 = vrot.lane.b32.xlu0 %v18_v1, %s268_s0  ;;  %12 = vrot.lane.b32.xlu1 %v11_v2, %s269_s8  ;;  %v24_v6 = vld [vmem:[#allocation0] sm:$0x1]   ;;  %v185_v7 = vld [vmem:[#allocation0 + $0x1] sm:$0x1]  }
   0xb   :  { %v175_v5 = vsel %vm174_vm0, %v173_v4, %v171_v3  ;;  %v187_v8 = vld [vmem:[#allocation0 + $0x2] sm:$0x1]   ;;  %v198_v9 = vld [vmem:[#allocation0] sm:$0x1]   ;;  %v200_v10 = vld [vmem:[#allocation0 + $0x1] sm:$0x1]  }
   0xc   :  { %v189_v11 = vsel %vm188_vm1, %v187_v8, %v185_v7  ;;  %v202_v12 = vsel %vm201_vm2, %v200_v10, %v198_v9  ;;  %v31_v13 = vld [vmem:[#allocation0 + $0x2] sm:$0x1]   ;;  %v38_v14 = vld [vmem:[#allocation0 + $0x1] sm:$0x1]   ;;  %v44_v15 = vld [vmem:[#allocation0] sm:$0x1]  }
   0xd   :  { %v51_v16 = vld [vmem:[#allocation0 + $0x2] sm:$0x1]   ;;  %v58_v17 = vld [vmem:[#allocation0 + $0x1] sm:$0x1]   ;;  %v64_v18 = vld [vmem:[#allocation0] sm:$0x1]  }
   0xe   :  { %176 = vrot.lane.b32.xlu0 %v175_v5, %s270_s9  ;;  %25 = vrot.lane.b32.xlu1 %v24_v6, %s271_s10  ;;  %v71_v19 = vld [vmem:[#allocation0 + $0x2] sm:$0x1]   ;;  %v78_v20 = vld [vmem:[#allocation0 + $0x1] sm:$0x1]   ;;  %v84_v21 = vld [vmem:[#allocation0] sm:$0x1]  }
   0xf   :  { %v91_v22 = vld [vmem:[#allocation0 + $0x2] sm:$0x1]   ;;  %v98_v23 = vld [vmem:[#allocation0 + $0x1] sm:$0x1]   ;;  %v104_v24 = vld [vmem:[#allocation0] sm:$0x1]  }
  0x10   :  { %v111_v25 = vld [vmem:[#allocation0 + $0x2] sm:$0x1]   ;;  %v118_v26 = vld [vmem:[#allocation0 + $0x1] sm:$0x1]   ;;  %s286_s25 = smov 48   ;;  %s287_s26 = smov 46  }
  0x11   :  { %v124_v27 = vld [vmem:[#allocation0] sm:$0x1]   ;;  %v131_v28 = vld [vmem:[#allocation0 + $0x2] sm:$0x1]   ;;  %s288_s29 = smov 44   ;;  %s289_s30 = smov 34  }
  0x12   :  { %190 = vrot.lane.b32.xlu0 %v189_v11, %s272_s11  ;;  %203 = vrot.lane.b32.xlu1 %v202_v12, %s273_s12  ;;  %v7_v29 = vld [vmem:[#allocation0] sm:$0x1]   ;;  %v138_v30 = vld [vmem:[#allocation0 + $0x1] sm:$0x1]   ;;  %s290_s2 = smov 32   ;;  %s291_s3 = smov 30  }
  0x13   :  { %9 = vst.msk [vmem:[%s427_s1] sm:$0x1] %vm8_vm3, %v7_v29   ;;  %v144_v31 = vld [vmem:[#allocation0] sm:$0x1]   ;;  %v151_v32 = vld [vmem:[#allocation0 + $0x2] sm:$0x1]  }
  0x14   :  { %v158_v33 = vld [vmem:[#allocation0 + $0x1] sm:$0x1]   ;;  %s292_s4 = smov 20   ;;  %s293_s5 = smov 18   ;;  %v164_v34 = vld [vmem:[#allocation0] sm:$0x1]  }
  0x15   :  { %s294_s6 = smov 16  }
  0x16   :  { %32 = vrot.lane.b32.xlu0 %v31_v13, %s274_s13  ;;  %39 = vrot.lane.b32.xlu1 %v38_v14, %s275_s14 }
  0x1a   :  { %45 = vrot.lane.b32.xlu0 %v44_v15, %s276_s15  ;;  %52 = vrot.lane.b32.xlu1 %v51_v16, %s277_s16 }
  0x1e   :  { %59 = vrot.lane.b32.xlu0 %v58_v17, %s278_s17  ;;  %65 = vrot.lane.b32.xlu1 %v64_v18, %s279_s18 }
  0x22   :  { %72 = vrot.lane.b32.xlu0 %v71_v19, %s280_s19  ;;  %79 = vrot.lane.b32.xlu1 %v78_v20, %s281_s20 }
  0x26   :  { %85 = vrot.lane.b32.xlu0 %v84_v21, %s282_s21  ;;  %92 = vrot.lane.b32.xlu1 %v91_v22, %s283_s22 }
  0x2a   :  { %99 = vrot.lane.b32.xlu0 %v98_v23, %s284_s23  ;;  %105 = vrot.lane.b32.xlu1 %v104_v24, %s285_s24 }
  0x2e   :  { %112 = vrot.lane.b32.xlu0 %v111_v25, %s286_s25  ;;  %119 = vrot.lane.b32.xlu1 %v118_v26, %s287_s26 }
  0x32   :  { %125 = vrot.lane.b32.xlu0 %v124_v27, %s288_s29  ;;  %132 = vrot.lane.b32.xlu1 %v131_v28, %s289_s30 }
  0x36   :  { %139 = vrot.lane.b32.xlu0 %v138_v30, %s290_s2  ;;  %145 = vrot.lane.b32.xlu1 %v144_v31, %s291_s3 }
  0x3a   :  { %152 = vrot.lane.b32.xlu0 %v151_v32, %s292_s4  ;;  %159 = vrot.lane.b32.xlu1 %v158_v33, %s293_s5 }
  0x3e   :  { %165 = vrot.lane.b32.xlu0 %v164_v34, %s294_s6 }
  0x7c   :  { %v20_v35 = vpop.permute.xlu0 %19   ;;  %v13_v36 = vpop.permute.xlu1 %12  }
  0x7d   :  { %212 = vst.msk [vmem:[%s427_s1 + $0xa] sm:$0x1] %vm8_vm3, %v20_v35   ;;  %211 = vst.msk [vmem:[%s427_s1 + $0x15] sm:$0x1] %vm8_vm3, %v13_v36  }
  0x80   :  { %v177_v37 = vpop.permute.xlu0 %176   ;;  %v26_v38 = vpop.permute.xlu1 %25  }
  0x81   :  { %235 = vst.msk [vmem:[%s427_s1 + $0x1d] sm:$0x1] %vm178_vm4, %v177_v37  }
  0x82   :  { %213 = vst.msk [vmem:[%s427_s1 + $0x1] sm:$0x1] %vm8_vm3, %v26_v38  }
  0x83   :  { %236 = vst.msk [vmem:[%s427_s1 + $0x1d] sm:$0x1] %vm181_vm5, %v177_v37  }
  0x84   :  { %v191_v39 = vpop.permute.xlu0 %190   ;;  %v204_v40 = vpop.permute.xlu1 %203  }
  0x85   :  { %237 = vst.msk [vmem:[%s427_s1 + $0x14] sm:$0x1] %vm192_vm6, %v191_v39  }
  0x86   :  { %239 = vst.msk [vmem:[%s427_s1 + $0x9] sm:$0x1] %vm205_vm7, %v204_v40  }
  0x87   :  { %238 = vst.msk [vmem:[%s427_s1 + $0x14] sm:$0x1] %vm195_vm8, %v191_v39  }
  0x88   :  { %240 = vst.msk [vmem:[%s427_s1 + $0x9] sm:$0x1] %vm208_vm9, %v204_v40   ;;  %v33_v41 = vpop.permute.xlu0 %32   ;;  %v40_v42 = vpop.permute.xlu1 %39  }
  0x89   :  { %214 = vst.msk [vmem:[%s427_s1 + $0x16] sm:$0x1] %vm8_vm3, %v33_v41   ;;  %215 = vst.msk [vmem:[%s427_s1 + $0xb] sm:$0x1] %vm8_vm3, %v40_v42  }
  0x8c   :  { %v46_v43 = vpop.permute.xlu0 %45   ;;  %v53_v44 = vpop.permute.xlu1 %52  }
  0x8d   :  { %216 = vst.msk [vmem:[%s427_s1 + $0x2] sm:$0x1] %vm8_vm3, %v46_v43   ;;  %217 = vst.msk [vmem:[%s427_s1 + $0x17] sm:$0x1] %vm8_vm3, %v53_v44  }
  0x90   :  { %v60_v45 = vpop.permute.xlu0 %59   ;;  %v66_v46 = vpop.permute.xlu1 %65  }
  0x91   :  { %218 = vst.msk [vmem:[%s427_s1 + $0xc] sm:$0x1] %vm8_vm3, %v60_v45   ;;  %219 = vst.msk [vmem:[%s427_s1 + $0x3] sm:$0x1] %vm8_vm3, %v66_v46  }
  0x94   :  { %v73_v47 = vpop.permute.xlu0 %72   ;;  %v80_v48 = vpop.permute.xlu1 %79  }
  0x95   :  { %220 = vst.msk [vmem:[%s427_s1 + $0x18] sm:$0x1] %vm8_vm3, %v73_v47   ;;  %221 = vst.msk [vmem:[%s427_s1 + $0xd] sm:$0x1] %vm8_vm3, %v80_v48  }
  0x98   :  { %v86_v49 = vpop.permute.xlu0 %85   ;;  %v93_v50 = vpop.permute.xlu1 %92  }
  0x99   :  { %222 = vst.msk [vmem:[%s427_s1 + $0x4] sm:$0x1] %vm8_vm3, %v86_v49   ;;  %223 = vst.msk [vmem:[%s427_s1 + $0x19] sm:$0x1] %vm8_vm3, %v93_v50  }
  0x9c   :  { %v100_v51 = vpop.permute.xlu0 %99   ;;  %v106_v52 = vpop.permute.xlu1 %105  }
  0x9d   :  { %224 = vst.msk [vmem:[%s427_s1 + $0x10] sm:$0x1] %vm8_vm3, %v100_v51   ;;  %225 = vst.msk [vmem:[%s427_s1 + $0x5] sm:$0x1] %vm8_vm3, %v106_v52  }
  0xa0   :  { %v113_v53 = vpop.permute.xlu0 %112   ;;  %v120_v54 = vpop.permute.xlu1 %119  }
  0xa1   :  { %226 = vst.msk [vmem:[%s427_s1 + $0x1a] sm:$0x1] %vm8_vm3, %v113_v53   ;;  %227 = vst.msk [vmem:[%s427_s1 + $0x11] sm:$0x1] %vm8_vm3, %v120_v54  }
  0xa4   :  { %v126_v55 = vpop.permute.xlu0 %125   ;;  %v133_v56 = vpop.permute.xlu1 %132  }
  0xa5   :  { %228 = vst.msk [vmem:[%s427_s1 + $0x6] sm:$0x1] %vm8_vm3, %v126_v55   ;;  %229 = vst.msk [vmem:[%s427_s1 + $0x1b] sm:$0x1] %vm8_vm3, %v133_v56  }
  0xa8   :  { %v140_v57 = vpop.permute.xlu0 %139   ;;  %v146_v58 = vpop.permute.xlu1 %145  }
  0xa9   :  { %230 = vst.msk [vmem:[%s427_s1 + $0x12] sm:$0x1] %vm8_vm3, %v140_v57   ;;  %231 = vst.msk [vmem:[%s427_s1 + $0x7] sm:$0x1] %vm8_vm3, %v146_v58  }
  0xac   :  { %v153_v59 = vpop.permute.xlu0 %152   ;;  %v160_v60 = vpop.permute.xlu1 %159  }
  0xad   :  { %232 = vst.msk [vmem:[%s427_s1 + $0x1c] sm:$0x1] %vm8_vm3, %v153_v59   ;;  %233 = vst.msk [vmem:[%s427_s1 + $0x13] sm:$0x1] %vm8_vm3, %v160_v60  }
  0xb0   :  { %v166_v61 = vpop.permute.xlu0 %165  }
  0xb1   :  { %234 = vst.msk [vmem:[%s427_s1 + $0x8] sm:$0x1] %vm8_vm3, %v166_v61  }

// kernel: generator_forward.30
= control target key start
LH: loop header
LB: loop body
LE: loop exit
PB: predicated region body
PF: predicated region fallthrough
CT: control target
= control target key end

     0   :  { %s1736_s1 = inlined_call_operand.vmem [shape: bf16[512,512], index: 1, kind: input, shape index: {}]   ;;  %s1737_s0 = inlined_call_operand.vmem [shape: bf16[8,512], index: 0, kind: input, shape index: {}]   ;;  %s1738_s2 = inlined_call_operand.vmem [shape: f32[8,512], index: 2, kind: output, shape index: {}]  }
   0x1   :  { %v1103_v0 = vld [vmem:[%s1736_s1 + $0xe4] ss:$16 sps:$4 sm:$0xff]   ;;  %v1107_v2 = vld [vmem:[%s1736_s1 + $0xe0] ss:$16 sps:$4 sm:$0xff]   ;;  %v12_v48 = vld [vmem:[%s1737_s0 + $0x8] sm:$0xff] }
   0x2   :  { %v1105_v1 = vld [vmem:[%s1736_s1 + $0x2e4] ss:$16 sps:$4 sm:$0xff]   ;;  %795 = vmatprep.subr.bf16.mxu0 %v1103_v0  ;;  %v1108_v3 = vld [vmem:[%s1736_s1 + $0x2e0] ss:$16 sps:$4 sm:$0xff]   ;;  %v974_v51 = vcombine.high %v12_v48, %v12_v48 }
   0x3   :  { %836 = vmatprep.subr.bf16.mxu1 %v1105_v1  ;;  %v1109_v4 = vld [vmem:[%s1736_s1 + $0xc4] ss:$16 sps:$4 sm:$0xff]   ;;  %796 = vmatpush1.bf16.msra.mxu0 %v1107_v2  ;;  %v1113_v6 = vld [vmem:[%s1736_s1 + $0xc0] ss:$16 sps:$4 sm:$0xff]  }
   0x4   :  { %837 = vmatpush1.bf16.msra.mxu1 %v1108_v3  ;;  %v1111_v5 = vld [vmem:[%s1736_s1 + $0x2c4] ss:$16 sps:$4 sm:$0xff]   ;;  %797 = vmatprep.subr.bf16.mxu0 %v1109_v4  ;;  %v1114_v7 = vld [vmem:[%s1736_s1 + $0x2c0] ss:$16 sps:$4 sm:$0xff]   ;;  %v1205_v4 = vld [vmem:[%s1736_s1 + $0xec] ss:$16 sps:$4 sm:$0xff]  }
   0x5   :  { %838 = vmatprep.subr.bf16.mxu1 %v1111_v5  ;;  %v1115_v8 = vld [vmem:[%s1736_s1 + $0xa4] ss:$16 sps:$4 sm:$0xff]   ;;  %v1119_v10 = vld [vmem:[%s1736_s1 + $0xa0] ss:$16 sps:$4 sm:$0xff]   ;;  %868 = vmatprep.mubr.bf16.mxu1 %v974_v51  ;;  %v1208_v5 = vld [vmem:[%s1736_s1 + $0x2ec] ss:$16 sps:$4 sm:$0xff]  }
   0x6   :  { %v1117_v9 = vld [vmem:[%s1736_s1 + $0x2a4] ss:$16 sps:$4 sm:$0xff]   ;;  %v1120_v11 = vld [vmem:[%s1736_s1 + $0x2a0] ss:$16 sps:$4 sm:$0xff]  }
   0x7   :  { %798 = vmatpush1.bf16.msra.mxu0 %v1113_v6  ;;  %v1121_v12 = vld [vmem:[%s1736_s1 + $0x84] ss:$16 sps:$4 sm:$0xff]   ;;  %v1125_v14 = vld [vmem:[%s1736_s1 + $0x80] ss:$16 sps:$4 sm:$0xff]  }
   0x8   :  { %839 = vmatpush1.bf16.msra.mxu1 %v1114_v7  ;;  %799 = vmatprep.subr.bf16.mxu0 %v1115_v8  ;;  %v1123_v13 = vld [vmem:[%s1736_s1 + $0x284] ss:$16 sps:$4 sm:$0xff]   ;;  %v1126_v15 = vld [vmem:[%s1736_s1 + $0x280] ss:$16 sps:$4 sm:$0xff]   ;;  %v1531_v7 = vcombine.low %v12_v48, %v12_v48  ;;  %v1203_v8 = vld [vmem:[%s1736_s1 + $0xe8] ss:$16 sps:$4 sm:$0xff]  }
   0x9   :  { %840 = vmatprep.subr.bf16.mxu1 %v1117_v9  ;;  %v1127_v16 = vld [vmem:[%s1736_s1 + $0x64] ss:$16 sps:$4 sm:$0xff]   ;;  %v1131_v18 = vld [vmem:[%s1736_s1 + $0x60] ss:$16 sps:$4 sm:$0xff]   ;;  %v1206_v9 = vld [vmem:[%s1736_s1 + $0x2e8] ss:$16 sps:$4 sm:$0xff]  }
   0xa   :  { %v1129_v17 = vld [vmem:[%s1736_s1 + $0x264] ss:$16 sps:$4 sm:$0xff]   ;;  %v1132_v19 = vld [vmem:[%s1736_s1 + $0x260] ss:$16 sps:$4 sm:$0xff]   ;;  %v1263_v48 = vld [vmem:[%s1736_s1 + $0x1a8] ss:$16 sps:$4 sm:$0xff]  }
   0xb   :  { %800 = vmatpush1.bf16.msra.mxu0 %v1119_v10  ;;  %v1133_v20 = vld [vmem:[%s1736_s1 + $0x44] ss:$16 sps:$4 sm:$0xff]   ;;  %v1137_v22 = vld [vmem:[%s1736_s1 + $0x40] ss:$16 sps:$4 sm:$0xff]   ;;  %v1211_v10 = vld [vmem:[%s1736_s1 + $0xcc] ss:$16 sps:$4 sm:$0xff]  }
   0xc   :  { %841 = vmatpush1.bf16.msra.mxu1 %v1120_v11  ;;  %801 = vmatprep.subr.bf16.mxu0 %v1121_v12  ;;  %v1135_v21 = vld [vmem:[%s1736_s1 + $0x244] ss:$16 sps:$4 sm:$0xff]   ;;  %v1138_v23 = vld [vmem:[%s1736_s1 + $0x240] ss:$16 sps:$4 sm:$0xff]   ;;  %v1214_v11 = vld [vmem:[%s1736_s1 + $0x2cc] ss:$16 sps:$4 sm:$0xff]  }
   0xd   :  { %842 = vmatprep.subr.bf16.mxu1 %v1123_v13  ;;  %v1139_v24 = vld [vmem:[%s1736_s1 + $0x24] ss:$16 sps:$4 sm:$0xff]   ;;  %v1143_v26 = vld [vmem:[%s1736_s1 + $0x20] ss:$16 sps:$4 sm:$0xff]   ;;  %v1209_v12 = vld [vmem:[%s1736_s1 + $0xc8] ss:$16 sps:$4 sm:$0xff]  }
   0xe   :  { %v1141_v25 = vld [vmem:[%s1736_s1 + $0x224] ss:$16 sps:$4 sm:$0xff]   ;;  %v1144_v27 = vld [vmem:[%s1736_s1 + $0x220] ss:$16 sps:$4 sm:$0xff]   ;;  %v1212_v13 = vld [vmem:[%s1736_s1 + $0x2c8] ss:$16 sps:$4 sm:$0xff]  }
   0xf   :  { %802 = vmatpush1.bf16.msra.mxu0 %v1125_v14  ;;  %v1145_v28 = vld [vmem:[%s1736_s1 + $0x4] ss:$16 sps:$4 sm:$0xff]   ;;  %v1149_v30 = vld [vmem:[%s1736_s1] ss:$16 sps:$4 sm:$0xff]   ;;  %v1217_v14 = vld [vmem:[%s1736_s1 + $0xac] ss:$16 sps:$4 sm:$0xff]  }
  0x10   :  { %843 = vmatpush1.bf16.msra.mxu1 %v1126_v15  ;;  %803 = vmatprep.subr.bf16.mxu0 %v1127_v16  ;;  %v1147_v29 = vld [vmem:[%s1736_s1 + $0x204] ss:$16 sps:$4 sm:$0xff]   ;;  %v1150_v31 = vld [vmem:[%s1736_s1 + $0x200] ss:$16 sps:$4 sm:$0xff]   ;;  %v1220_v15 = vld [vmem:[%s1736_s1 + $0x2ac] ss:$16 sps:$4 sm:$0xff]  }
  0x11   :  { %844 = vmatprep.subr.bf16.mxu1 %v1129_v17  ;;  %v1151_v32 = vld [vmem:[%s1736_s1 + $0x1e4] ss:$16 sps:$4 sm:$0xff]   ;;  %v1155_v34 = vld [vmem:[%s1736_s1 + $0x1e0] ss:$16 sps:$4 sm:$0xff]   ;;  %v1215_v16 = vld [vmem:[%s1736_s1 + $0xa8] ss:$16 sps:$4 sm:$0xff]  }
  0x12   :  { %v1153_v33 = vld [vmem:[%s1736_s1 + $0x3e4] ss:$16 sps:$4 sm:$0xff]   ;;  %v1156_v35 = vld [vmem:[%s1736_s1 + $0x3e0] ss:$16 sps:$4 sm:$0xff]   ;;  %v1218_v17 = vld [vmem:[%s1736_s1 + $0x2a8] ss:$16 sps:$4 sm:$0xff]  }
  0x13   :  { %804 = vmatpush1.bf16.msra.mxu0 %v1131_v18  ;;  %v1157_v36 = vld [vmem:[%s1736_s1 + $0x1c4] ss:$16 sps:$4 sm:$0xff]   ;;  %v1161_v38 = vld [vmem:[%s1736_s1 + $0x1c0] ss:$16 sps:$4 sm:$0xff]   ;;  %v1223_v18 = vld [vmem:[%s1736_s1 + $0x8c] ss:$16 sps:$4 sm:$0xff]  }
  0x14   :  { %845 = vmatpush1.bf16.msra.mxu1 %v1132_v19  ;;  %805 = vmatprep.subr.bf16.mxu0 %v1133_v20  ;;  %v1159_v37 = vld [vmem:[%s1736_s1 + $0x3c4] ss:$16 sps:$4 sm:$0xff]   ;;  %v1162_v39 = vld [vmem:[%s1736_s1 + $0x3c0] ss:$16 sps:$4 sm:$0xff]   ;;  %v1226_v19 = vld [vmem:[%s1736_s1 + $0x28c] ss:$16 sps:$4 sm:$0xff]  }
  0x15   :  { %846 = vmatprep.subr.bf16.mxu1 %v1135_v21  ;;  %v1163_v40 = vld [vmem:[%s1736_s1 + $0x1a4] ss:$16 sps:$4 sm:$0xff]   ;;  %v1167_v42 = vld [vmem:[%s1736_s1 + $0x1a0] ss:$16 sps:$4 sm:$0xff]   ;;  %v1221_v20 = vld [vmem:[%s1736_s1 + $0x88] ss:$16 sps:$4 sm:$0xff]  }
  0x16   :  { %v1165_v41 = vld [vmem:[%s1736_s1 + $0x3a4] ss:$16 sps:$4 sm:$0xff]   ;;  %v1168_v43 = vld [vmem:[%s1736_s1 + $0x3a0] ss:$16 sps:$4 sm:$0xff]   ;;  %v1224_v21 = vld [vmem:[%s1736_s1 + $0x288] ss:$16 sps:$4 sm:$0xff]  }
  0x17   :  { %806 = vmatpush1.bf16.msra.mxu0 %v1137_v22  ;;  %v1169_v44 = vld [vmem:[%s1736_s1 + $0x184] ss:$16 sps:$4 sm:$0xff]   ;;  %v1173_v49 = vld [vmem:[%s1736_s1 + $0x180] ss:$16 sps:$4 sm:$0xff]   ;;  %v1229_v22 = vld [vmem:[%s1736_s1 + $0x6c] ss:$16 sps:$4 sm:$0xff]  }
  0x18   :  { %847 = vmatpush1.bf16.msra.mxu1 %v1138_v23  ;;  %807 = vmatprep.subr.bf16.mxu0 %v1139_v24  ;;  %v1171_v45 = vld [vmem:[%s1736_s1 + $0x384] ss:$16 sps:$4 sm:$0xff]   ;;  %v1174_v50 = vld [vmem:[%s1736_s1 + $0x380] ss:$16 sps:$4 sm:$0xff]   ;;  %v1232_v23 = vld [vmem:[%s1736_s1 + $0x26c] ss:$16 sps:$4 sm:$0xff]  }
  0x19   :  { %848 = vmatprep.subr.bf16.mxu1 %v1141_v25  ;;  %v11_v46 = vld [vmem:[%s1737_s0] sm:$0xff]  ;;  %v1227_v24 = vld [vmem:[%s1736_s1 + $0x68] ss:$16 sps:$4 sm:$0xff]  }
  0x1a   :  { %v1463_v47 = vcombine.high %v11_v46, %v11_v46  ;;  %v1175_v52 = vld [vmem:[%s1736_s1 + $0x164] ss:$16 sps:$4 sm:$0xff]   ;;  %v1179_v54 = vld [vmem:[%s1736_s1 + $0x160] ss:$16 sps:$4 sm:$0xff]   ;;  %v1529_v6 = vcombine.low %v11_v46, %v11_v46  ;;  %v1230_v25 = vld [vmem:[%s1736_s1 + $0x268] ss:$16 sps:$4 sm:$0xff]  }
  0x1b   :  { %808 = vmatpush1.bf16.msra.mxu0 %v1143_v26  ;;  %v1177_v53 = vld [vmem:[%s1736_s1 + $0x364] ss:$16 sps:$4 sm:$0xff]   ;;  %v1180_v55 = vld [vmem:[%s1736_s1 + $0x360] ss:$16 sps:$4 sm:$0xff]   ;;  %v1235_v26 = vld [vmem:[%s1736_s1 + $0x4c] ss:$16 sps:$4 sm:$0xff]  }
  0x1c   :  { %849 = vmatpush1.bf16.msra.mxu1 %v1144_v27  ;;  %809 = vmatprep.subr.bf16.mxu0 %v1145_v28  ;;  %v1181_v56 = vld [vmem:[%s1736_s1 + $0x144] ss:$16 sps:$4 sm:$0xff]   ;;  %v1185_v58 = vld [vmem:[%s1736_s1 + $0x140] ss:$16 sps:$4 sm:$0xff]   ;;  %v1238_v27 = vld [vmem:[%s1736_s1 + $0x24c] ss:$16 sps:$4 sm:$0xff]  }
  0x1d   :  { %850 = vmatprep.subr.bf16.mxu1 %v1147_v29  ;;  %827 = vmatprep.mubr.bf16.mxu0 %v1463_v47  ;;  %v1183_v57 = vld [vmem:[%s1736_s1 + $0x344] ss:$16 sps:$4 sm:$0xff]   ;;  %v1186_v59 = vld [vmem:[%s1736_s1 + $0x340] ss:$16 sps:$4 sm:$0xff]   ;;  %v1233_v28 = vld [vmem:[%s1736_s1 + $0x48] ss:$16 sps:$4 sm:$0xff]  }
  0x1e   :  { %v1187_v60 = vld [vmem:[%s1736_s1 + $0x124] ss:$16 sps:$4 sm:$0xff]   ;;  %v1191_v62 = vld [vmem:[%s1736_s1 + $0x120] ss:$16 sps:$4 sm:$0xff]   ;;  %v1236_v29 = vld [vmem:[%s1736_s1 + $0x248] ss:$16 sps:$4 sm:$0xff]  }
  0x1f   :  { %810 = vmatpush1.bf16.msra.mxu0 %v1149_v30  ;;  %v1189_v61 = vld [vmem:[%s1736_s1 + $0x324] ss:$16 sps:$4 sm:$0xff]   ;;  %v1192_v63 = vld [vmem:[%s1736_s1 + $0x320] ss:$16 sps:$4 sm:$0xff]   ;;  %v1241_v30 = vld [vmem:[%s1736_s1 + $0x2c] ss:$16 sps:$4 sm:$0xff]  }
  0x20   :  { %851 = vmatpush1.bf16.msra.mxu1 %v1150_v31  ;;  %811 = vmatprep.subr.bf16.mxu0 %v1151_v32  ;;  %v1193_v0 = vld [vmem:[%s1736_s1 + $0x104] ss:$16 sps:$4 sm:$0xff]   ;;  %v1197_v2 = vld [vmem:[%s1736_s1 + $0x100] ss:$16 sps:$4 sm:$0xff]   ;;  %v1244_v31 = vld [vmem:[%s1736_s1 + $0x22c] ss:$16 sps:$4 sm:$0xff]  }
  0x21   :  { %852 = vmatprep.subr.bf16.mxu1 %v1153_v33  ;;  %v1195_v1 = vld [vmem:[%s1736_s1 + $0x304] ss:$16 sps:$4 sm:$0xff]   ;;  %v1198_v3 = vld [vmem:[%s1736_s1 + $0x300] ss:$16 sps:$4 sm:$0xff]   ;;  %v1239_v32 = vld [vmem:[%s1736_s1 + $0x28] ss:$16 sps:$4 sm:$0xff]  }
  0x22   :  { %v1242_v33 = vld [vmem:[%s1736_s1 + $0x228] ss:$16 sps:$4 sm:$0xff]   ;;  %v1265_v46 = vld [vmem:[%s1736_s1 + $0x1ac] ss:$16 sps:$4 sm:$0xff]  }
  0x23   :  { %812 = vmatpush2.bf16.msra.mxu0 %v1155_v34  ;;  %v1247_v34 = vld [vmem:[%s1736_s1 + $0xc] ss:$16 sps:$4 sm:$0xff]  }
  0x24   :  { %853 = vmatpush2.bf16.msra.mxu1 %v1156_v35  ;;  %813 = vmatprep.subr.bf16.mxu0 %v1157_v36  ;;  %v1250_v35 = vld [vmem:[%s1736_s1 + $0x20c] ss:$16 sps:$4 sm:$0xff]   ;;  %v1245_v36 = vld [vmem:[%s1736_s1 + $0x8] ss:$16 sps:$4 sm:$0xff]  }
  0x25   :  { %854 = vmatprep.subr.bf16.mxu1 %v1159_v37  ;;  %v1248_v37 = vld [vmem:[%s1736_s1 + $0x208] ss:$16 sps:$4 sm:$0xff]  }
  0x27   :  { %814 = vmatpush2.bf16.msra.mxu0 %v1161_v38  ;;  %v1253_v38 = vld [vmem:[%s1736_s1 + $0x1ec] ss:$16 sps:$4 sm:$0xff]  }
  0x28   :  { %855 = vmatpush2.bf16.msra.mxu1 %v1162_v39  ;;  %815 = vmatprep.subr.bf16.mxu0 %v1163_v40  ;;  %v1256_v39 = vld [vmem:[%s1736_s1 + $0x3ec] ss:$16 sps:$4 sm:$0xff]   ;;  %v1251_v40 = vld [vmem:[%s1736_s1 + $0x1e8] ss:$16 sps:$4 sm:$0xff]  }
  0x29   :  { %856 = vmatprep.subr.bf16.mxu1 %v1165_v41  ;;  %v1254_v41 = vld [vmem:[%s1736_s1 + $0x3e8] ss:$16 sps:$4 sm:$0xff]  }
  0x2b   :  { %816 = vmatpush2.bf16.msra.mxu0 %v1167_v42  ;;  %v1259_v42 = vld [vmem:[%s1736_s1 + $0x1cc] ss:$16 sps:$4 sm:$0xff]  }
  0x2c   :  { %857 = vmatpush2.bf16.msra.mxu1 %v1168_v43  ;;  %817 = vmatprep.subr.bf16.mxu0 %v1169_v44  ;;  %v1262_v43 = vld [vmem:[%s1736_s1 + $0x3cc] ss:$16 sps:$4 sm:$0xff]   ;;  %v1257_v44 = vld [vmem:[%s1736_s1 + $0x1c8] ss:$16 sps:$4 sm:$0xff]  }
  0x2d   :  { %858 = vmatprep.subr.bf16.mxu1 %v1171_v45  ;;  %v1260_v45 = vld [vmem:[%s1736_s1 + $0x3c8] ss:$16 sps:$4 sm:$0xff]  }
  0x2f   :  { %818 = vmatpush2.bf16.msra.mxu0 %v1173_v49  ;;  %v1266_v49 = vld [vmem:[%s1736_s1 + $0x3a8] ss:$16 sps:$4 sm:$0xff]  }
  0x30   :  { %859 = vmatpush2.bf16.msra.mxu1 %v1174_v50  ;;  %819 = vmatprep.subr.bf16.mxu0 %v1175_v52  ;;  %v1271_v50 = vld [vmem:[%s1736_s1 + $0x18c] ss:$16 sps:$4 sm:$0xff]   ;;  %v1269_v52 = vld [vmem:[%s1736_s1 + $0x188] ss:$16 sps:$4 sm:$0xff]  }
  0x31   :  { %860 = vmatprep.subr.bf16.mxu1 %v1177_v53  ;;  %v1272_v53 = vld [vmem:[%s1736_s1 + $0x388] ss:$16 sps:$4 sm:$0xff]  }
  0x33   :  { %820 = vmatpush2.bf16.msra.mxu0 %v1179_v54  ;;  %v1277_v54 = vld [vmem:[%s1736_s1 + $0x16c] ss:$16 sps:$4 sm:$0xff]  }
  0x34   :  { %861 = vmatpush2.bf16.msra.mxu1 %v1180_v55  ;;  %821 = vmatprep.subr.bf16.mxu0 %v1181_v56  ;;  %v1280_v55 = vld [vmem:[%s1736_s1 + $0x36c] ss:$16 sps:$4 sm:$0xff]   ;;  %v1275_v56 = vld [vmem:[%s1736_s1 + $0x168] ss:$16 sps:$4 sm:$0xff]  }
  0x35   :  { %862 = vmatprep.subr.bf16.mxu1 %v1183_v57  ;;  %v1278_v57 = vld [vmem:[%s1736_s1 + $0x368] ss:$16 sps:$4 sm:$0xff]  }
  0x37   :  { %822 = vmatpush2.bf16.msra.mxu0 %v1185_v58  ;;  %v1283_v58 = vld [vmem:[%s1736_s1 + $0x14c] ss:$16 sps:$4 sm:$0xff]  }
  0x38   :  { %863 = vmatpush2.bf16.msra.mxu1 %v1186_v59  ;;  %823 = vmatprep.subr.bf16.mxu0 %v1187_v60  ;;  %v1286_v59 = vld [vmem:[%s1736_s1 + $0x34c] ss:$16 sps:$4 sm:$0xff]   ;;  %v1281_v60 = vld [vmem:[%s1736_s1 + $0x148] ss:$16 sps:$4 sm:$0xff]  }
  0x39   :  { %864 = vmatprep.subr.bf16.mxu1 %v1189_v61  ;;  %v1284_v61 = vld [vmem:[%s1736_s1 + $0x348] ss:$16 sps:$4 sm:$0xff]  }
  0x3b   :  { %824 = vmatpush2.bf16.msra.mxu0 %v1191_v62  ;;  %v1289_v62 = vld [vmem:[%s1736_s1 + $0x12c] ss:$16 sps:$4 sm:$0xff]  }
  0x3c   :  { %865 = vmatpush2.bf16.msra.mxu1 %v1192_v63  ;;  %825 = vmatprep.subr.bf16.mxu0 %v1193_v0  ;;  %v1292_v63 = vld [vmem:[%s1736_s1 + $0x32c] ss:$16 sps:$4 sm:$0xff]   ;;  %v1287_v0 = vld [vmem:[%s1736_s1 + $0x128] ss:$16 sps:$4 sm:$0xff]  }
  0x3d   :  { %866 = vmatprep.subr.bf16.mxu1 %v1195_v1  ;;  %v1290_v1 = vld [vmem:[%s1736_s1 + $0x328] ss:$16 sps:$4 sm:$0xff]  }
  0x3f   :  { %826 = vmatpush2.bf16.msra.mxu0 %v1197_v2  ;;  %v1295_v2 = vld [vmem:[%s1736_s1 + $0x10c] ss:$16 sps:$4 sm:$0xff]  }
  0x40   :  { %867 = vmatpush2.bf16.msra.mxu1 %v1198_v3  ;;  %877 = vmatprep.subr.bf16.mxu0 %v1205_v4  ;;  %v1298_v3 = vld [vmem:[%s1736_s1 + $0x30c] ss:$16 sps:$4 sm:$0xff]   ;;  %v1293_v4 = vld [vmem:[%s1736_s1 + $0x108] ss:$16 sps:$4 sm:$0xff]  }
  0x41   :  { %918 = vmatprep.subr.bf16.mxu1 %v1208_v5  ;;  %v1296_v5 = vld [vmem:[%s1736_s1 + $0x308] ss:$16 sps:$4 sm:$0xff]  }
  0x42   :  { %828 = vmatmul.mubr.bf16.vlgmr.msra.gmra.mxu0 %v1529_v6 }
  0x43   :  { %869 = vmatmul.mubr.bf16.vlgmr.msra.gmra.mxu1 %v1531_v7  ;;  %878 = vmatpush1.bf16.msra.mxu0 %v1203_v8 }
  0x44   :  { %919 = vmatpush1.bf16.msra.mxu1 %v1206_v9  ;;  %879 = vmatprep.subr.bf16.mxu0 %v1211_v10 }
  0x45   :  { %920 = vmatprep.subr.bf16.mxu1 %v1214_v11  ;;  %909 = vmatprep.mubr.bf16.mxu0 %v1463_v47  ;;  %v1268_v47 = vld [vmem:[%s1736_s1 + $0x3ac] ss:$16 sps:$4 sm:$0xff]  }
  0x46   :  { %950 = vmatprep.mubr.bf16.mxu1 %v974_v51  ;;  %v1274_v51 = vld [vmem:[%s1736_s1 + $0x38c] ss:$16 sps:$4 sm:$0xff]  }
  0x47   :  { %880 = vmatpush1.bf16.msra.mxu0 %v1209_v12 }
  0x48   :  { %921 = vmatpush1.bf16.msra.mxu1 %v1212_v13  ;;  %881 = vmatprep.subr.bf16.mxu0 %v1217_v14 }
  0x49   :  { %922 = vmatprep.subr.bf16.mxu1 %v1220_v15 }
  0x4b   :  { %882 = vmatpush1.bf16.msra.mxu0 %v1215_v16 }
  0x4c   :  { %923 = vmatpush1.bf16.msra.mxu1 %v1218_v17  ;;  %883 = vmatprep.subr.bf16.mxu0 %v1223_v18 }
  0x4d   :  { %924 = vmatprep.subr.bf16.mxu1 %v1226_v19 }
  0x4f   :  { %884 = vmatpush1.bf16.msra.mxu0 %v1221_v20 }
  0x50   :  { %925 = vmatpush1.bf16.msra.mxu1 %v1224_v21  ;;  %885 = vmatprep.subr.bf16.mxu0 %v1229_v22 }
  0x51   :  { %926 = vmatprep.subr.bf16.mxu1 %v1232_v23 }
  0x53   :  { %886 = vmatpush1.bf16.msra.mxu0 %v1227_v24 }
  0x54   :  { %927 = vmatpush1.bf16.msra.mxu1 %v1230_v25  ;;  %887 = vmatprep.subr.bf16.mxu0 %v1235_v26 }
  0x55   :  { %928 = vmatprep.subr.bf16.mxu1 %v1238_v27 }
  0x57   :  { %888 = vmatpush1.bf16.msra.mxu0 %v1233_v28 }
  0x58   :  { %929 = vmatpush1.bf16.msra.mxu1 %v1236_v29  ;;  %889 = vmatprep.subr.bf16.mxu0 %v1241_v30 }
  0x59   :  { %930 = vmatprep.subr.bf16.mxu1 %v1244_v31 }
  0x5b   :  { %890 = vmatpush1.bf16.msra.mxu0 %v1239_v32 }
  0x5c   :  { %931 = vmatpush1.bf16.msra.mxu1 %v1242_v33  ;;  %891 = vmatprep.subr.bf16.mxu0 %v1247_v34 }
  0x5d   :  { %932 = vmatprep.subr.bf16.mxu1 %v1250_v35 }
  0x5f   :  { %892 = vmatpush1.bf16.msra.mxu0 %v1245_v36 }
  0x60   :  { %933 = vmatpush1.bf16.msra.mxu1 %v1248_v37  ;;  %893 = vmatprep.subr.bf16.mxu0 %v1253_v38 }
  0x61   :  { %934 = vmatprep.subr.bf16.mxu1 %v1256_v39 }
  0x63   :  { %894 = vmatpush2.bf16.msra.mxu0 %v1251_v40 }
  0x64   :  { %935 = vmatpush2.bf16.msra.mxu1 %v1254_v41  ;;  %895 = vmatprep.subr.bf16.mxu0 %v1259_v42 }
  0x65   :  { %936 = vmatprep.subr.bf16.mxu1 %v1262_v43 }
  0x67   :  { %896 = vmatpush2.bf16.msra.mxu0 %v1257_v44 }
  0x68   :  { %937 = vmatpush2.bf16.msra.mxu1 %v1260_v45  ;;  %897 = vmatprep.subr.bf16.mxu0 %v1265_v46 }
  0x69   :  { %938 = vmatprep.subr.bf16.mxu1 %v1268_v47 }
  0x6b   :  { %898 = vmatpush2.bf16.msra.mxu0 %v1263_v48 }
  0x6c   :  { %939 = vmatpush2.bf16.msra.mxu1 %v1266_v49  ;;  %899 = vmatprep.subr.bf16.mxu0 %v1271_v50 }
  0x6d   :  { %940 = vmatprep.subr.bf16.mxu1 %v1274_v51 }
  0x6f   :  { %900 = vmatpush2.bf16.msra.mxu0 %v1269_v52 }
  0x70   :  { %941 = vmatpush2.bf16.msra.mxu1 %v1272_v53  ;;  %901 = vmatprep.subr.bf16.mxu0 %v1277_v54 }
  0x71   :  { %942 = vmatprep.subr.bf16.mxu1 %v1280_v55 }
  0x73   :  { %902 = vmatpush2.bf16.msra.mxu0 %v1275_v56 }
  0x74   :  { %943 = vmatpush2.bf16.msra.mxu1 %v1278_v57  ;;  %903 = vmatprep.subr.bf16.mxu0 %v1283_v58 }
  0x75   :  { %944 = vmatprep.subr.bf16.mxu1 %v1286_v59 }
  0x77   :  { %904 = vmatpush2.bf16.msra.mxu0 %v1281_v60 }
  0x78   :  { %945 = vmatpush2.bf16.msra.mxu1 %v1284_v61  ;;  %905 = vmatprep.subr.bf16.mxu0 %v1289_v62 }
  0x79   :  { %946 = vmatprep.subr.bf16.mxu1 %v1292_v63 }
  0x7b   :  { %906 = vmatpush2.bf16.msra.mxu0 %v1287_v0 }
  0x7c   :  { %947 = vmatpush2.bf16.msra.mxu1 %v1290_v1  ;;  %907 = vmatprep.subr.bf16.mxu0 %v1295_v2 }
  0x7d   :  { %948 = vmatprep.subr.bf16.mxu1 %v1298_v3 }
  0x7f   :  { %908 = vmatpush2.bf16.msra.mxu0 %v1293_v4 }
  0x80   :  { %949 = vmatpush2.bf16.msra.mxu1 %v1296_v5 }
  0x82   :  { %910 = vmatmul.mubr.bf16.vlgmr.msra.gmra.mxu0 %v1529_v6 }
  0x83   :  { %951 = vmatmul.mubr.bf16.vlgmr.msra.gmra.mxu1 %v1531_v7 }
 0x102   :  { %v829_v8 = vpop.f32.mrf.mxu0 }
 0x103   :  { %v870_v9 = vpop.f32.mrf.mxu1 }
 0x104   :  { %v871_v10 = vadd.f32 %v870_v9, %v829_v8  ;;  %v831_v11 = vpop.f32.mrf.mxu0 }
 0x105   :  { %v872_v12 = vpop.f32.mrf.mxu1 }
 0x106   :  { %1299 = vtanh.f32 %v871_v10  ;;  %v873_v13 = vadd.f32 %v872_v12, %v831_v11  ;;  %v833_v14 = vpop.f32.mrf.mxu0 }
 0x107   :  { %v874_v15 = vpop.f32.mrf.mxu1 }
 0x108   :  { %1301 = vtanh.f32 %v873_v13  ;;  %v834_v16 = vpop.f32.mrf.mxu0 }
 0x109   :  { %v875_v17 = vpop.f32.mrf.mxu1 }
 0x113   :  { %v1300_v18 = vpop.eup %1299 }
 0x114   :  { %963 = vst [vmem:[%s1738_s2] sm:$0xff] %v1300_v18 }
 0x115   :  { %v1302_v6 = vpop.eup %1301 }
 0x116   :  { %964 = vst [vmem:[%s1738_s2 + $0x8] sm:$0xff] %v1302_v6 }
 0x142   :  { %v911_v7 = vpop.f32.mrf.mxu0 }
 0x143   :  { %v952_v19 = vpop.f32.mrf.mxu1 }
 0x144   :  { %v953_v20 = vadd.f32 %v952_v19, %v911_v7  ;;  %v913_v21 = vpop.f32.mrf.mxu0 }
 0x145   :  { %v954_v22 = vpop.f32.mrf.mxu1 }
 0x146   :  { %1303 = vtanh.f32 %v953_v20  ;;  %v955_v23 = vadd.f32 %v954_v22, %v913_v21  ;;  %v915_v24 = vpop.f32.mrf.mxu0 }
 0x147   :  { %v956_v25 = vpop.f32.mrf.mxu1 }
 0x148   :  { %1305 = vtanh.f32 %v955_v23  ;;  %v916_v26 = vpop.f32.mrf.mxu0 }
 0x149   :  { %v957_v27 = vpop.f32.mrf.mxu1 }
 0x153   :  { %v1304_v28 = vpop.eup %1303 }
 0x154   :  { %965 = vst [vmem:[%s1738_s2 + $0x10] sm:$0xff] %v1304_v28 }
 0x155   :  { %v1306_v29 = vpop.eup %1305 }
 0x156   :  { %966 = vst [vmem:[%s1738_s2 + $0x18] sm:$0xff] %v1306_v29 }

</bundles_post_ra>
